<compile_context>
chip_gen: v6e
topology: v6e:2x2x1
jax: 0.10.0
libtpu: 0.0.40
codegen_flags: <defaults>
</compile_context>

<pallas_src>
import functools
import numpy as np
import jax
import jax.numpy as jnp
from jax.experimental import pallas as pl
from jax.experimental.pallas import tpu as pltpu

BN_EPS = 1e-5


def _round_up(x, m):
    return ((x + m - 1) // m) * m


# ----------------------------------------------------------------------------
# Pallas tiled fused matmul kernel:  out = act((A @ B) * scale + bias)
# ----------------------------------------------------------------------------
def _fused_matmul_kernel(act, a_ref, b_ref, s_ref, c_ref, o_ref, acc_ref):
    k = pl.program_id(2)

    @pl.when(k == 0)
    def _():
        acc_ref[...] = jnp.zeros_like(acc_ref)

    acc_ref[...] += jnp.dot(a_ref[...], b_ref[...],
                            preferred_element_type=jnp.float32)

    @pl.when(k == pl.num_programs(2) - 1)
    def _():
        y = acc_ref[...] * s_ref[...] + c_ref[...]   # per-output-channel BN fold
        if act == "relu":
            y = jnp.maximum(y, 0.0)
        elif act == "relu6":
            y = jnp.clip(y, 0.0, 6.0)
        o_ref[...] = y.astype(o_ref.dtype)


def _pad2d(arr, rows, cols, dtype):
    arr = arr.astype(dtype)
    r, c = arr.shape
    if r == rows and c == cols:
        return arr
    return jnp.pad(arr, ((0, rows - r), (0, cols - c)))


def fused_matmul(a, b, scale=None, bias=None, act="none"):
    """a: [M, K], b: [K, N] -> [M, N] f32 via one tiled Pallas call."""
    M, K = a.shape
    K2, N = b.shape
    assert K == K2
    if scale is None:
        scale = jnp.ones((N,), jnp.float32)
    if bias is None:
        bias = jnp.zeros((N,), jnp.float32)

    # Tile sizes: 128-multiples (lane/sublane friendly for f32 and bf16),
    # capped so tiny problems stay single-block while big ones pipeline.
    tm = min(256, _round_up(M, 128))
    tn = min(256, _round_up(N, 128))
    tk = min(512, _round_up(K, 128))
    Mp, Np, Kp = _round_up(M, tm), _round_up(N, tn), _round_up(K, tk)

    # bf16 MXU inputs, f32 accumulation; zero padding is exact for the matmul.
    a_p = _pad2d(a, Mp, Kp, jnp.bfloat16)
    b_p = _pad2d(b, Kp, Np, jnp.bfloat16)
    s_p = _pad2d(scale.reshape(1, N), 1, Np, jnp.float32)
    c_p = _pad2d(bias.reshape(1, N), 1, Np, jnp.float32)

    grid = (Mp // tm, Np // tn, Kp // tk)
    kernel = functools.partial(_fused_matmul_kernel, act)
    out = pl.pallas_call(
        kernel,
        out_shape=jax.ShapeDtypeStruct((Mp, Np), jnp.float32),
        grid_spec=pltpu.PrefetchScalarGridSpec(
            num_scalar_prefetch=0,
            grid=grid,
            in_specs=[
                pl.BlockSpec((tm, tk), lambda i, j, k: (i, k)),
                pl.BlockSpec((tk, tn), lambda i, j, k: (k, j)),
                pl.BlockSpec((1, tn), lambda i, j, k: (0, j)),
                pl.BlockSpec((1, tn), lambda i, j, k: (0, j)),
            ],
            out_specs=pl.BlockSpec((tm, tn), lambda i, j, k: (i, j)),
            scratch_shapes=[pltpu.VMEM((tm, tn), jnp.float32)],
        ),
        compiler_params=pltpu.CompilerParams(
            dimension_semantics=("parallel", "parallel", "arbitrary")),
        cost_estimate=pl.CostEstimate(
            flops=2 * Mp * Np * Kp,
            transcendentals=0,
            bytes_accessed=Mp * Kp * 2 + Kp * Np * 2 + Mp * Np * 4),
    )(a_p, b_p, s_p, c_p)

    if Mp != M or Np != N:
        out = out[:M, :N]
    return out


# ----------------------------------------------------------------------------
# Conv2d (NHWC) = channels-last im2col (glue) + fused Pallas matmul (hot path)
# ----------------------------------------------------------------------------
def conv2d(x, weight, bias, bn=None, act="none", stride=1, padding=0, dilation=1):
    """x: [B, H, W, Cin] (NHWC); weight: [Cout, Cin, kh, kw] (PyTorch layout)."""
    B, H, W, Cin = x.shape
    Cout, _, kh, kw = weight.shape
    Hp, Wp = H + 2 * padding, W + 2 * padding
    Hout = (Hp - dilation * (kh - 1) - 1) // stride + 1
    Wout = (Wp - dilation * (kw - 1) - 1) // stride + 1

    if kh == 1 and kw == 1 and stride == 1 and padding == 0:
        p = x.reshape(B * H * W, Cin)
    else:
        xp = jnp.pad(x, ((0, 0), (padding, padding), (padding, padding), (0, 0)))
        cols = []
        for i in range(kh):
            for j in range(kw):
                cols.append(
                    xp[:, i * dilation: i * dilation + stride * (Hout - 1) + 1: stride,
                          j * dilation: j * dilation + stride * (Wout - 1) + 1: stride, :])
        p = jnp.concatenate(cols, axis=-1).reshape(B * Hout * Wout, kh * kw * Cin)

    # [Cout, Cin, kh, kw] -> [kh*kw*Cin, Cout], matching the tap-major im2col order.
    wmat = jnp.transpose(weight, (2, 3, 1, 0)).reshape(kh * kw * Cin, Cout)

    if bn is not None:
        gamma, beta, mean, var = bn
        s = gamma / jnp.sqrt(var + BN_EPS)
        c = beta + s * (bias - mean)
    else:
        s = None
        c = bias

    y = fused_matmul(p, wmat, s, c, act)               # [B*Hout*Wout, Cout]
    return y.reshape(B, Hout, Wout, Cout)


def global_avg_pool(x):
    """AdaptiveAvgPool2d(1) on NHWC — trivial reduction, done in XLA."""
    return jnp.mean(x, axis=(1, 2), keepdims=True)     # [B,1,1,C]


def _bilinear_matrix(in_size, out_size):
    """align_corners=True interpolation matrix [out_size, in_size]."""
    m = np.zeros((out_size, in_size), np.float32)
    for i in range(out_size):
        src = 0.0 if out_size == 1 else i * (in_size - 1) / (out_size - 1)
        i0 = min(int(np.floor(src)), in_size - 1)
        i1 = min(i0 + 1, in_size - 1)
        frac = src - i0
        m[i, i0] += 1.0 - frac
        m[i, i1] += frac
    return jnp.asarray(m)


def bilinear_upsample(x, out_h, out_w):
    """F.interpolate(mode='bilinear', align_corners=True) on NHWC (tiny, XLA)."""
    B, H, W, C = x.shape
    Mh = _bilinear_matrix(H, out_h)                    # [out_h, H]
    Mw = _bilinear_matrix(W, out_w)                    # [out_w, W]
    y = jnp.einsum('oh,bhwc->bowc', Mh, x)
    y = jnp.einsum('pw,bowc->bopc', Mw, y)
    return y


# ----------------------------------------------------------------------------
# Parameter construction (deterministic)
# ----------------------------------------------------------------------------
def _init_conv(key, cout, cin, kh, kw):
    k1, k2 = jax.random.split(key)
    fan_in = cin * kh * kw
    w = jax.random.normal(k1, (cout, cin, kh, kw), jnp.float32) / np.sqrt(fan_in)
    b = 0.01 * jax.random.normal(k2, (cout,), jnp.float32)
    return w, b


def _init_bn(c):
    return (jnp.ones((c,), jnp.float32), jnp.zeros((c,), jnp.float32),
            jnp.zeros((c,), jnp.float32), jnp.ones((c,), jnp.float32))


def make_params(key, num_classes):
    p = {}
    names = [
        # synthetic backbone (mobilenet_v3 channel/stride contract)
        ("stem1", 16, 3, 3), ("stem2", 24, 16, 3), ("stem3", 40, 24, 3), ("stem4", 960, 40, 3),
        # ASPP (in=960, out=256, output_stride=16)
        ("op1", 256, 960, 1), ("op2", 256, 960, 3), ("op3", 256, 960, 3), ("op4", 256, 960, 3),
        ("conv_pool", 256, 960, 1), ("aspp_proj", 256, 1280, 1),
        # decoder
        ("low_conv", 48, 40, 1), ("cls1", 256, 304, 3), ("cls2", num_classes, 256, 1),
    ]
    keys = jax.random.split(key, len(names))
    for k, (name, cout, cin, ksz) in zip(keys, names):
        w, b = _init_conv(k, cout, cin, ksz, ksz)
        p[name + "_w"], p[name + "_b"] = w, b
        if name != "cls2":
            p[name + "_bn"] = _init_bn(cout)
    return p


# ----------------------------------------------------------------------------
# Full forward pass of SegmentationCustom (mobilenet_v3, output_stride=16)
# ----------------------------------------------------------------------------
def segmentation_custom_forward(x, params):
    B, _, H0, W0 = x.shape
    x = jnp.transpose(x, (0, 2, 3, 1))                 # NCHW -> NHWC (internal)

    # --- feature extractor (synthetic backbone) ---
    f = conv2d(x, params["stem1_w"], params["stem1_b"], params["stem1_bn"],
               "relu6", stride=2, padding=1)           # [B,H/2,W/2,16]
    f = conv2d(f, params["stem2_w"], params["stem2_b"], params["stem2_bn"],
               "relu6", stride=2, padding=1)           # [B,H/4,W/4,24]
    low = conv2d(f, params["stem3_w"], params["stem3_b"], params["stem3_bn"],
                 "relu6", stride=2, padding=1)         # [B,H/8,W/8,40]
    high = conv2d(low, params["stem4_w"], params["stem4_b"], params["stem4_bn"],
                  "relu6", stride=2, padding=1)        # [B,H/16,W/16,960]

    hH, hW = high.shape[1], high.shape[2]
    lH, lW = low.shape[1], low.shape[2]

    # --- ASPP (output_stride=16: dilations 6, 12, 18) ---
    o1 = conv2d(high, params["op1_w"], params["op1_b"], params["op1_bn"], "relu6")
    o2 = conv2d(high, params["op2_w"], params["op2_b"], params["op2_bn"], "relu6",
                padding=6, dilation=6)
    o3 = conv2d(high, params["op3_w"], params["op3_b"], params["op3_bn"], "relu6",
                padding=12, dilation=12)
    o4 = conv2d(high, params["op4_w"], params["op4_b"], params["op4_bn"], "relu6",
                padding=18, dilation=18)
    pool = global_avg_pool(high)
    pool = conv2d(pool, params["conv_pool_w"], params["conv_pool_b"],
                  params["conv_pool_bn"], "relu6")
    pool = bilinear_upsample(pool, hH, hW)
    aspp_cat = jnp.concatenate([o1, o2, o3, o4, pool], axis=-1)         # [B,hH,hW,1280]
    aspp_out = conv2d(aspp_cat, params["aspp_proj_w"], params["aspp_proj_b"],
                      params["aspp_proj_bn"], "relu6")                  # [B,hH,hW,256]

    # --- decoder ---
    low_f = conv2d(low, params["low_conv_w"], params["low_conv_b"],
                   params["low_conv_bn"], "relu6")                      # [B,lH,lW,48]
    high_up = bilinear_upsample(aspp_out, lH, lW)                       # [B,lH,lW,256]
    concat = jnp.concatenate([high_up, low_f], axis=-1)                 # [B,lH,lW,304]
    y = conv2d(concat, params["cls1_w"], params["cls1_b"], params["cls1_bn"],
               "relu", padding=1)                                       # [B,lH,lW,256]
    y = conv2d(y, params["cls2_w"], params["cls2_b"], None, "none")     # [B,lH,lW,nc]

    # --- final upsample back to the input resolution ---
    y = bilinear_upsample(y, H0, W0)                                    # [B,H0,W0,nc]
    return jnp.transpose(y, (0, 3, 1, 2))                               # back to NCHW


if __name__ == "__main__":
    num_classes = 5
    key = jax.random.PRNGKey(0)
    k_in, k_par = jax.random.split(key)

    # small input consistent with the module: NCHW RGB image
    x = jax.random.normal(k_in, (2, 3, 32, 32), jnp.float32)
    params = make_params(k_par, num_classes)

    fwd = jax.jit(segmentation_custom_forward)
    out = fwd(x, params)
    out = jax.block_until_ready(out)
    assert out.shape == (2, num_classes, 32, 32), out.shape
    assert out.dtype == jnp.float32
    print("KERNEL_OK")
</pallas_src>

<mosaic_0001>
module attributes {stable_mosaic.version = 11 : i64} {
  func.func @_fused_matmul_kernel(%arg0: i32, %arg1: i32, %arg2: i32, %arg3: memref<256x128xbf16, #tpu.memory_space<vmem>>, %arg4: memref<128x128xbf16, #tpu.memory_space<vmem>>, %arg5: memref<1x128xf32, #tpu.memory_space<vmem>>, %arg6: memref<1x128xf32, #tpu.memory_space<vmem>>, %arg7: memref<256x128xf32, #tpu.memory_space<vmem>>, %arg8: memref<256x128xf32, #tpu.memory_space<vmem>>) attributes {dimension_semantics = [#tpu.dimension_semantics<parallel>, #tpu.dimension_semantics<parallel>, #tpu.dimension_semantics<arbitrary>], iteration_bounds = array<i64: 2, 1, 1>, scalar_prefetch = 0 : i64, scratch_operands = 1 : i64, tpu.core_type = #tpu.core_type<tc>, window_params = [{transform_indices = @transform_0, window_bounds = array<i64: 256, 128>}, {transform_indices = @transform_1, window_bounds = array<i64: 128, 128>}, {transform_indices = @transform_2, window_bounds = array<i64: 1, 128>}, {transform_indices = @transform_3, window_bounds = array<i64: 1, 128>}, {transform_indices = @transform_4, window_bounds = array<i64: 256, 128>}]} {
    %c0_i32 = arith.constant 0 : i32
    %0 = arith.cmpi eq, %arg2, %c0_i32 : i32
    %1 = arith.extui %0 : i1 to i32
    %c0_i32_0 = arith.constant 0 : i32
    %2 = arith.cmpi ne, %1, %c0_i32_0 : i32
    scf.if %2 {
      %cst_10 = arith.constant 0.000000e+00 : f32
      %12 = vector.broadcast %cst_10 : f32 to vector<256x128xf32>
      %c0_11 = arith.constant 0 : index
      %c0_12 = arith.constant 0 : index
      %13 = vector.load %arg8[%c0_11, %c0_12] : memref<256x128xf32, #tpu.memory_space<vmem>>, vector<256x128xf32>
      tpu.vector_store %arg8[%c0_11, %c0_12], %12 {strides = array<i32>} : memref<256x128xf32, #tpu.memory_space<vmem>>, vector<256x128xf32>,
    } else {
    }
    %c0 = arith.constant 0 : index
    %c0_1 = arith.constant 0 : index
    %3 = vector.load %arg8[%c0, %c0_1] : memref<256x128xf32, #tpu.memory_space<vmem>>, vector<256x128xf32>
    %c0_2 = arith.constant 0 : index
    %c0_3 = arith.constant 0 : index
    %4 = vector.load %arg3[%c0_2, %c0_3] : memref<256x128xbf16, #tpu.memory_space<vmem>>, vector<256x128xbf16>
    %c0_4 = arith.constant 0 : index
    %c0_5 = arith.constant 0 : index
    %5 = vector.load %arg4[%c0_4, %c0_5] : memref<128x128xbf16, #tpu.memory_space<vmem>>, vector<128x128xbf16>
    %cst = arith.constant dense<0.000000e+00> : vector<256x128xf32>
    %6 = tpu.matmul %4, %5, %cst {dimension_numbers = #tpu.dot_dimension_numbers<[1], [0], [0], [1], [0, 0, 1, 1], [], []>} : vector<256x128xbf16>, vector<128x128xbf16>, vector<256x128xf32> -> vector<256x128xf32>
    %7 = arith.addf %3, %6 : vector<256x128xf32>
    %c0_6 = arith.constant 0 : index
    %c0_7 = arith.constant 0 : index
    %8 = vector.load %arg8[%c0_6, %c0_7] : memref<256x128xf32, #tpu.memory_space<vmem>>, vector<256x128xf32>
    tpu.vector_store %arg8[%c0_6, %c0_7], %7 {strides = array<i32>} : memref<256x128xf32, #tpu.memory_space<vmem>>, vector<256x128xf32>,
    %c0_i32_8 = arith.constant 0 : i32
    %9 = arith.cmpi eq, %arg2, %c0_i32_8 : i32
    %10 = arith.extui %9 : i1 to i32
    %c0_i32_9 = arith.constant 0 : i32
    %11 = arith.cmpi ne, %10, %c0_i32_9 : i32
    scf.if %11 {
      %c0_10 = arith.constant 0 : index
      %c0_11 = arith.constant 0 : index
      %12 = vector.load %arg8[%c0_10, %c0_11] : memref<256x128xf32, #tpu.memory_space<vmem>>, vector<256x128xf32>
      %c0_12 = arith.constant 0 : index
      %c0_13 = arith.constant 0 : index
      %13 = vector.load %arg5[%c0_12, %c0_13] : memref<1x128xf32, #tpu.memory_space<vmem>>, vector<1x128xf32>
      %14 = vector.broadcast %13 : vector<1x128xf32> to vector<256x128xf32>
      %15 = arith.mulf %12, %14 : vector<256x128xf32>
      %c0_14 = arith.constant 0 : index
      %c0_15 = arith.constant 0 : index
      %16 = vector.load %arg6[%c0_14, %c0_15] : memref<1x128xf32, #tpu.memory_space<vmem>>, vector<1x128xf32>
      %17 = vector.broadcast %16 : vector<1x128xf32> to vector<256x128xf32>
      %18 = arith.addf %15, %17 : vector<256x128xf32>
      %cst_16 = arith.constant 0.000000e+00 : f32
      %cst_17 = arith.constant 6.000000e+00 : f32
      %19 = vector.broadcast %cst_16 : f32 to vector<256x128xf32>
      %20 = arith.maximumf %19, %18 : vector<256x128xf32>
      %21 = vector.broadcast %cst_17 : f32 to vector<256x128xf32>
      %22 = arith.minimumf %21, %20 : vector<256x128xf32>
      %c0_18 = arith.constant 0 : index
      %c0_19 = arith.constant 0 : index
      %23 = vector.load %arg7[%c0_18, %c0_19] : memref<256x128xf32, #tpu.memory_space<vmem>>, vector<256x128xf32>
      tpu.vector_store %arg7[%c0_18, %c0_19], %22 {strides = array<i32>} : memref<256x128xf32, #tpu.memory_space<vmem>>, vector<256x128xf32>,
    } else {
    }
    return
  }
  func.func @transform_0(%arg0: i32, %arg1: i32, %arg2: i32) -> (i32, i32) {
    %c0_i32 = arith.constant 0 : i32
    return %arg0, %arg2 : i32, i32
  }
  func.func @transform_1(%arg0: i32, %arg1: i32, %arg2: i32) -> (i32, i32) {
    %c0_i32 = arith.constant 0 : i32
    return %arg2, %arg1 : i32, i32
  }
  func.func @transform_2(%arg0: i32, %arg1: i32, %arg2: i32) -> (i32, i32) {
    %c0_i32 = arith.constant 0 : i32
    %c0_i32_0 = arith.constant 0 : i32
    return %c0_i32, %arg1 : i32, i32
  }
  func.func @transform_3(%arg0: i32, %arg1: i32, %arg2: i32) -> (i32, i32) {
    %c0_i32 = arith.constant 0 : i32
    %c0_i32_0 = arith.constant 0 : i32
    return %c0_i32, %arg1 : i32, i32
  }
  func.func @transform_4(%arg0: i32, %arg1: i32, %arg2: i32) -> (i32, i32) {
    %c0_i32 = arith.constant 0 : i32
    return %arg0, %arg1 : i32, i32
  }
}

module attributes {stable_mosaic.version = 11 : i64} {
  func.func @_fused_matmul_kernel(%arg0: i32, %arg1: i32, %arg2: i32, %arg3: memref<128x256xbf16, #tpu.memory_space<vmem>>, %arg4: memref<256x128xbf16, #tpu.memory_space<vmem>>, %arg5: memref<1x128xf32, #tpu.memory_space<vmem>>, %arg6: memref<1x128xf32, #tpu.memory_space<vmem>>, %arg7: memref<128x128xf32, #tpu.memory_space<vmem>>, %arg8: memref<128x128xf32, #tpu.memory_space<vmem>>) attributes {dimension_semantics = [#tpu.dimension_semantics<parallel>, #tpu.dimension_semantics<parallel>, #tpu.dimension_semantics<arbitrary>], iteration_bounds = array<i64: 1, 1, 1>, scalar_prefetch = 0 : i64, scratch_operands = 1 : i64, tpu.core_type = #tpu.core_type<tc>, window_params = [{transform_indices = @transform_0, window_bounds = array<i64: 128, 256>}, {transform_indices = @transform_1, window_bounds = array<i64: 256, 128>}, {transform_indices = @transform_2, window_bounds = array<i64: 1, 128>}, {transform_indices = @transform_3, window_bounds = array<i64: 1, 128>}, {transform_indices = @transform_4, window_bounds = array<i64: 128, 128>}]} {
    %c0_i32 = arith.constant 0 : i32
    %0 = arith.cmpi eq, %arg2, %c0_i32 : i32
    %1 = arith.extui %0 : i1 to i32
    %c0_i32_0 = arith.constant 0 : i32
    %2 = arith.cmpi ne, %1, %c0_i32_0 : i32
    scf.if %2 {
      %cst_10 = arith.constant 0.000000e+00 : f32
      %12 = vector.broadcast %cst_10 : f32 to vector<128x128xf32>
      %c0_11 = arith.constant 0 : index
      %c0_12 = arith.constant 0 : index
      %13 = vector.load %arg8[%c0_11, %c0_12] : memref<128x128xf32, #tpu.memory_space<vmem>>, vector<128x128xf32>
      tpu.vector_store %arg8[%c0_11, %c0_12], %12 {strides = array<i32>} : memref<128x128xf32, #tpu.memory_space<vmem>>, vector<128x128xf32>,
    } else {
    }
    %c0 = arith.constant 0 : index
    %c0_1 = arith.constant 0 : index
    %3 = vector.load %arg8[%c0, %c0_1] : memref<128x128xf32, #tpu.memory_space<vmem>>, vector<128x128xf32>
    %c0_2 = arith.constant 0 : index
    %c0_3 = arith.constant 0 : index
    %4 = vector.load %arg3[%c0_2, %c0_3] : memref<128x256xbf16, #tpu.memory_space<vmem>>, vector<128x256xbf16>
    %c0_4 = arith.constant 0 : index
    %c0_5 = arith.constant 0 : index
    %5 = vector.load %arg4[%c0_4, %c0_5] : memref<256x128xbf16, #tpu.memory_space<vmem>>, vector<256x128xbf16>
    %cst = arith.constant dense<0.000000e+00> : vector<128x128xf32>
    %6 = tpu.matmul %4, %5, %cst {dimension_numbers = #tpu.dot_dimension_numbers<[1], [0], [0], [1], [0, 0, 1, 1], [], []>} : vector<128x256xbf16>, vector<256x128xbf16>, vector<128x128xf32> -> vector<128x128xf32>
    %7 = arith.addf %3, %6 : vector<128x128xf32>
    %c0_6 = arith.constant 0 : index
    %c0_7 = arith.constant 0 : index
    %8 = vector.load %arg8[%c0_6, %c0_7] : memref<128x128xf32, #tpu.memory_space<vmem>>, vector<128x128xf32>
    tpu.vector_store %arg8[%c0_6, %c0_7], %7 {strides = array<i32>} : memref<128x128xf32, #tpu.memory_space<vmem>>, vector<128x128xf32>,
    %c0_i32_8 = arith.constant 0 : i32
    %9 = arith.cmpi eq, %arg2, %c0_i32_8 : i32
    %10 = arith.extui %9 : i1 to i32
    %c0_i32_9 = arith.constant 0 : i32
    %11 = arith.cmpi ne, %10, %c0_i32_9 : i32
    scf.if %11 {
      %c0_10 = arith.constant 0 : index
      %c0_11 = arith.constant 0 : index
      %12 = vector.load %arg8[%c0_10, %c0_11] : memref<128x128xf32, #tpu.memory_space<vmem>>, vector<128x128xf32>
      %c0_12 = arith.constant 0 : index
      %c0_13 = arith.constant 0 : index
      %13 = vector.load %arg5[%c0_12, %c0_13] : memref<1x128xf32, #tpu.memory_space<vmem>>, vector<1x128xf32>
      %14 = vector.broadcast %13 : vector<1x128xf32> to vector<128x128xf32>
      %15 = arith.mulf %12, %14 : vector<128x128xf32>
      %c0_14 = arith.constant 0 : index
      %c0_15 = arith.constant 0 : index
      %16 = vector.load %arg6[%c0_14, %c0_15] : memref<1x128xf32, #tpu.memory_space<vmem>>, vector<1x128xf32>
      %17 = vector.broadcast %16 : vector<1x128xf32> to vector<128x128xf32>
      %18 = arith.addf %15, %17 : vector<128x128xf32>
      %cst_16 = arith.constant 0.000000e+00 : f32
      %cst_17 = arith.constant 6.000000e+00 : f32
      %19 = vector.broadcast %cst_16 : f32 to vector<128x128xf32>
      %20 = arith.maximumf %19, %18 : vector<128x128xf32>
      %21 = vector.broadcast %cst_17 : f32 to vector<128x128xf32>
      %22 = arith.minimumf %21, %20 : vector<128x128xf32>
      %c0_18 = arith.constant 0 : index
      %c0_19 = arith.constant 0 : index
      %23 = vector.load %arg7[%c0_18, %c0_19] : memref<128x128xf32, #tpu.memory_space<vmem>>, vector<128x128xf32>
      tpu.vector_store %arg7[%c0_18, %c0_19], %22 {strides = array<i32>} : memref<128x128xf32, #tpu.memory_space<vmem>>, vector<128x128xf32>,
    } else {
    }
    return
  }
  func.func @transform_0(%arg0: i32, %arg1: i32, %arg2: i32) -> (i32, i32) {
    %c0_i32 = arith.constant 0 : i32
    return %arg0, %arg2 : i32, i32
  }
  func.func @transform_1(%arg0: i32, %arg1: i32, %arg2: i32) -> (i32, i32) {
    %c0_i32 = arith.constant 0 : i32
    return %arg2, %arg1 : i32, i32
  }
  func.func @transform_2(%arg0: i32, %arg1: i32, %arg2: i32) -> (i32, i32) {
    %c0_i32 = arith.constant 0 : i32
    %c0_i32_0 = arith.constant 0 : i32
    return %c0_i32, %arg1 : i32, i32
  }
  func.func @transform_3(%arg0: i32, %arg1: i32, %arg2: i32) -> (i32, i32) {
    %c0_i32 = arith.constant 0 : i32
    %c0_i32_0 = arith.constant 0 : i32
    return %c0_i32, %arg1 : i32, i32
  }
  func.func @transform_4(%arg0: i32, %arg1: i32, %arg2: i32) -> (i32, i32) {
    %c0_i32 = arith.constant 0 : i32
    return %arg0, %arg1 : i32, i32
  }
}

module attributes {stable_mosaic.version = 11 : i64} {
  func.func @_fused_matmul_kernel(%arg0: i32, %arg1: i32, %arg2: i32, %arg3: memref<128x128xbf16, #tpu.memory_space<vmem>>, %arg4: memref<128x128xbf16, #tpu.memory_space<vmem>>, %arg5: memref<1x128xf32, #tpu.memory_space<vmem>>, %arg6: memref<1x128xf32, #tpu.memory_space<vmem>>, %arg7: memref<128x128xf32, #tpu.memory_space<vmem>>, %arg8: memref<128x128xf32, #tpu.memory_space<vmem>>) attributes {dimension_semantics = [#tpu.dimension_semantics<parallel>, #tpu.dimension_semantics<parallel>, #tpu.dimension_semantics<arbitrary>], iteration_bounds = array<i64: 1, 1, 1>, scalar_prefetch = 0 : i64, scratch_operands = 1 : i64, tpu.core_type = #tpu.core_type<tc>, window_params = [{transform_indices = @transform_0, window_bounds = array<i64: 128, 128>}, {transform_indices = @transform_1, window_bounds = array<i64: 128, 128>}, {transform_indices = @transform_2, window_bounds = array<i64: 1, 128>}, {transform_indices = @transform_3, window_bounds = array<i64: 1, 128>}, {transform_indices = @transform_4, window_bounds = array<i64: 128, 128>}]} {
    %c0_i32 = arith.constant 0 : i32
    %0 = arith.cmpi eq, %arg2, %c0_i32 : i32
    %1 = arith.extui %0 : i1 to i32
    %c0_i32_0 = arith.constant 0 : i32
    %2 = arith.cmpi ne, %1, %c0_i32_0 : i32
    scf.if %2 {
      %cst_10 = arith.constant 0.000000e+00 : f32
      %12 = vector.broadcast %cst_10 : f32 to vector<128x128xf32>
      %c0_11 = arith.constant 0 : index
      %c0_12 = arith.constant 0 : index
      %13 = vector.load %arg8[%c0_11, %c0_12] : memref<128x128xf32, #tpu.memory_space<vmem>>, vector<128x128xf32>
      tpu.vector_store %arg8[%c0_11, %c0_12], %12 {strides = array<i32>} : memref<128x128xf32, #tpu.memory_space<vmem>>, vector<128x128xf32>,
    } else {
    }
    %c0 = arith.constant 0 : index
    %c0_1 = arith.constant 0 : index
    %3 = vector.load %arg8[%c0, %c0_1] : memref<128x128xf32, #tpu.memory_space<vmem>>, vector<128x128xf32>
    %c0_2 = arith.constant 0 : index
    %c0_3 = arith.constant 0 : index
    %4 = vector.load %arg3[%c0_2, %c0_3] : memref<128x128xbf16, #tpu.memory_space<vmem>>, vector<128x128xbf16>
    %c0_4 = arith.constant 0 : index
    %c0_5 = arith.constant 0 : index
    %5 = vector.load %arg4[%c0_4, %c0_5] : memref<128x128xbf16, #tpu.memory_space<vmem>>, vector<128x128xbf16>
    %cst = arith.constant dense<0.000000e+00> : vector<128x128xf32>
    %6 = tpu.matmul %4, %5, %cst {dimension_numbers = #tpu.dot_dimension_numbers<[1], [0], [0], [1], [0, 0, 1, 1], [], []>} : vector<128x128xbf16>, vector<128x128xbf16>, vector<128x128xf32> -> vector<128x128xf32>
    %7 = arith.addf %3, %6 : vector<128x128xf32>
    %c0_6 = arith.constant 0 : index
    %c0_7 = arith.constant 0 : index
    %8 = vector.load %arg8[%c0_6, %c0_7] : memref<128x128xf32, #tpu.memory_space<vmem>>, vector<128x128xf32>
    tpu.vector_store %arg8[%c0_6, %c0_7], %7 {strides = array<i32>} : memref<128x128xf32, #tpu.memory_space<vmem>>, vector<128x128xf32>,
    %c0_i32_8 = arith.constant 0 : i32
    %9 = arith.cmpi eq, %arg2, %c0_i32_8 : i32
    %10 = arith.extui %9 : i1 to i32
    %c0_i32_9 = arith.constant 0 : i32
    %11 = arith.cmpi ne, %10, %c0_i32_9 : i32
    scf.if %11 {
      %c0_10 = arith.constant 0 : index
      %c0_11 = arith.constant 0 : index
      %12 = vector.load %arg8[%c0_10, %c0_11] : memref<128x128xf32, #tpu.memory_space<vmem>>, vector<128x128xf32>
      %c0_12 = arith.constant 0 : index
      %c0_13 = arith.constant 0 : index
      %13 = vector.load %arg5[%c0_12, %c0_13] : memref<1x128xf32, #tpu.memory_space<vmem>>, vector<1x128xf32>
      %14 = vector.broadcast %13 : vector<1x128xf32> to vector<128x128xf32>
      %15 = arith.mulf %12, %14 : vector<128x128xf32>
      %c0_14 = arith.constant 0 : index
      %c0_15 = arith.constant 0 : index
      %16 = vector.load %arg6[%c0_14, %c0_15] : memref<1x128xf32, #tpu.memory_space<vmem>>, vector<1x128xf32>
      %17 = vector.broadcast %16 : vector<1x128xf32> to vector<128x128xf32>
      %18 = arith.addf %15, %17 : vector<128x128xf32>
      %cst_16 = arith.constant 0.000000e+00 : f32
      %cst_17 = arith.constant 6.000000e+00 : f32
      %19 = vector.broadcast %cst_16 : f32 to vector<128x128xf32>
      %20 = arith.maximumf %19, %18 : vector<128x128xf32>
      %21 = vector.broadcast %cst_17 : f32 to vector<128x128xf32>
      %22 = arith.minimumf %21, %20 : vector<128x128xf32>
      %c0_18 = arith.constant 0 : index
      %c0_19 = arith.constant 0 : index
      %23 = vector.load %arg7[%c0_18, %c0_19] : memref<128x128xf32, #tpu.memory_space<vmem>>, vector<128x128xf32>
      tpu.vector_store %arg7[%c0_18, %c0_19], %22 {strides = array<i32>} : memref<128x128xf32, #tpu.memory_space<vmem>>, vector<128x128xf32>,
    } else {
    }
    return
  }
  func.func @transform_0(%arg0: i32, %arg1: i32, %arg2: i32) -> (i32, i32) {
    %c0_i32 = arith.constant 0 : i32
    return %arg0, %arg2 : i32, i32
  }
  func.func @transform_1(%arg0: i32, %arg1: i32, %arg2: i32) -> (i32, i32) {
    %c0_i32 = arith.constant 0 : i32
    return %arg2, %arg1 : i32, i32
  }
  func.func @transform_2(%arg0: i32, %arg1: i32, %arg2: i32) -> (i32, i32) {
    %c0_i32 = arith.constant 0 : i32
    %c0_i32_0 = arith.constant 0 : i32
    return %c0_i32, %arg1 : i32, i32
  }
  func.func @transform_3(%arg0: i32, %arg1: i32, %arg2: i32) -> (i32, i32) {
    %c0_i32 = arith.constant 0 : i32
    %c0_i32_0 = arith.constant 0 : i32
    return %c0_i32, %arg1 : i32, i32
  }
  func.func @transform_4(%arg0: i32, %arg1: i32, %arg2: i32) -> (i32, i32) {
    %c0_i32 = arith.constant 0 : i32
    return %arg0, %arg1 : i32, i32
  }
}

module attributes {stable_mosaic.version = 11 : i64} {
  func.func @_fused_matmul_kernel(%arg0: i32, %arg1: i32, %arg2: i32, %arg3: memref<128x384xbf16, #tpu.memory_space<vmem>>, %arg4: memref<384x256xbf16, #tpu.memory_space<vmem>>, %arg5: memref<1x256xf32, #tpu.memory_space<vmem>>, %arg6: memref<1x256xf32, #tpu.memory_space<vmem>>, %arg7: memref<128x256xf32, #tpu.memory_space<vmem>>, %arg8: memref<128x256xf32, #tpu.memory_space<vmem>>) attributes {dimension_semantics = [#tpu.dimension_semantics<parallel>, #tpu.dimension_semantics<parallel>, #tpu.dimension_semantics<arbitrary>], iteration_bounds = array<i64: 1, 4, 1>, scalar_prefetch = 0 : i64, scratch_operands = 1 : i64, tpu.core_type = #tpu.core_type<tc>, window_params = [{transform_indices = @transform_0, window_bounds = array<i64: 128, 384>}, {transform_indices = @transform_1, window_bounds = array<i64: 384, 256>}, {transform_indices = @transform_2, window_bounds = array<i64: 1, 256>}, {transform_indices = @transform_3, window_bounds = array<i64: 1, 256>}, {transform_indices = @transform_4, window_bounds = array<i64: 128, 256>}]} {
    %c0_i32 = arith.constant 0 : i32
    %0 = arith.cmpi eq, %arg2, %c0_i32 : i32
    %1 = arith.extui %0 : i1 to i32
    %c0_i32_0 = arith.constant 0 : i32
    %2 = arith.cmpi ne, %1, %c0_i32_0 : i32
    scf.if %2 {
      %cst_10 = arith.constant 0.000000e+00 : f32
      %12 = vector.broadcast %cst_10 : f32 to vector<128x256xf32>
      %c0_11 = arith.constant 0 : index
      %c0_12 = arith.constant 0 : index
      %13 = vector.load %arg8[%c0_11, %c0_12] : memref<128x256xf32, #tpu.memory_space<vmem>>, vector<128x256xf32>
      tpu.vector_store %arg8[%c0_11, %c0_12], %12 {strides = array<i32>} : memref<128x256xf32, #tpu.memory_space<vmem>>, vector<128x256xf32>,
    } else {
    }
    %c0 = arith.constant 0 : index
    %c0_1 = arith.constant 0 : index
    %3 = vector.load %arg8[%c0, %c0_1] : memref<128x256xf32, #tpu.memory_space<vmem>>, vector<128x256xf32>
    %c0_2 = arith.constant 0 : index
    %c0_3 = arith.constant 0 : index
    %4 = vector.load %arg3[%c0_2, %c0_3] : memref<128x384xbf16, #tpu.memory_space<vmem>>, vector<128x384xbf16>
    %c0_4 = arith.constant 0 : index
    %c0_5 = arith.constant 0 : index
    %5 = vector.load %arg4[%c0_4, %c0_5] : memref<384x256xbf16, #tpu.memory_space<vmem>>, vector<384x256xbf16>
    %cst = arith.constant dense<0.000000e+00> : vector<128x256xf32>
    %6 = tpu.matmul %4, %5, %cst {dimension_numbers = #tpu.dot_dimension_numbers<[1], [0], [0], [1], [0, 0, 1, 1], [], []>} : vector<128x384xbf16>, vector<384x256xbf16>, vector<128x256xf32> -> vector<128x256xf32>
    %7 = arith.addf %3, %6 : vector<128x256xf32>
    %c0_6 = arith.constant 0 : index
    %c0_7 = arith.constant 0 : index
    %8 = vector.load %arg8[%c0_6, %c0_7] : memref<128x256xf32, #tpu.memory_space<vmem>>, vector<128x256xf32>
    tpu.vector_store %arg8[%c0_6, %c0_7], %7 {strides = array<i32>} : memref<128x256xf32, #tpu.memory_space<vmem>>, vector<128x256xf32>,
    %c0_i32_8 = arith.constant 0 : i32
    %9 = arith.cmpi eq, %arg2, %c0_i32_8 : i32
    %10 = arith.extui %9 : i1 to i32
    %c0_i32_9 = arith.constant 0 : i32
    %11 = arith.cmpi ne, %10, %c0_i32_9 : i32
    scf.if %11 {
      %c0_10 = arith.constant 0 : index
      %c0_11 = arith.constant 0 : index
      %12 = vector.load %arg8[%c0_10, %c0_11] : memref<128x256xf32, #tpu.memory_space<vmem>>, vector<128x256xf32>
      %c0_12 = arith.constant 0 : index
      %c0_13 = arith.constant 0 : index
      %13 = vector.load %arg5[%c0_12, %c0_13] : memref<1x256xf32, #tpu.memory_space<vmem>>, vector<1x256xf32>
      %14 = vector.broadcast %13 : vector<1x256xf32> to vector<128x256xf32>
      %15 = arith.mulf %12, %14 : vector<128x256xf32>
      %c0_14 = arith.constant 0 : index
      %c0_15 = arith.constant 0 : index
      %16 = vector.load %arg6[%c0_14, %c0_15] : memref<1x256xf32, #tpu.memory_space<vmem>>, vector<1x256xf32>
      %17 = vector.broadcast %16 : vector<1x256xf32> to vector<128x256xf32>
      %18 = arith.addf %15, %17 : vector<128x256xf32>
      %cst_16 = arith.constant 0.000000e+00 : f32
      %cst_17 = arith.constant 6.000000e+00 : f32
      %19 = vector.broadcast %cst_16 : f32 to vector<128x256xf32>
      %20 = arith.maximumf %19, %18 : vector<128x256xf32>
      %21 = vector.broadcast %cst_17 : f32 to vector<128x256xf32>
      %22 = arith.minimumf %21, %20 : vector<128x256xf32>
      %c0_18 = arith.constant 0 : index
      %c0_19 = arith.constant 0 : index
      %23 = vector.load %arg7[%c0_18, %c0_19] : memref<128x256xf32, #tpu.memory_space<vmem>>, vector<128x256xf32>
      tpu.vector_store %arg7[%c0_18, %c0_19], %22 {strides = array<i32>} : memref<128x256xf32, #tpu.memory_space<vmem>>, vector<128x256xf32>,
    } else {
    }
    return
  }
  func.func @transform_0(%arg0: i32, %arg1: i32, %arg2: i32) -> (i32, i32) {
    %c0_i32 = arith.constant 0 : i32
    return %arg0, %arg2 : i32, i32
  }
  func.func @transform_1(%arg0: i32, %arg1: i32, %arg2: i32) -> (i32, i32) {
    %c0_i32 = arith.constant 0 : i32
    return %arg2, %arg1 : i32, i32
  }
  func.func @transform_2(%arg0: i32, %arg1: i32, %arg2: i32) -> (i32, i32) {
    %c0_i32 = arith.constant 0 : i32
    %c0_i32_0 = arith.constant 0 : i32
    return %c0_i32, %arg1 : i32, i32
  }
  func.func @transform_3(%arg0: i32, %arg1: i32, %arg2: i32) -> (i32, i32) {
    %c0_i32 = arith.constant 0 : i32
    %c0_i32_0 = arith.constant 0 : i32
    return %c0_i32, %arg1 : i32, i32
  }
  func.func @transform_4(%arg0: i32, %arg1: i32, %arg2: i32) -> (i32, i32) {
    %c0_i32 = arith.constant 0 : i32
    return %arg0, %arg1 : i32, i32
  }
}

module attributes {stable_mosaic.version = 11 : i64} {
  func.func @_fused_matmul_kernel(%arg0: i32, %arg1: i32, %arg2: i32, %arg3: memref<128x512xbf16, #tpu.memory_space<vmem>>, %arg4: memref<512x256xbf16, #tpu.memory_space<vmem>>, %arg5: memref<1x256xf32, #tpu.memory_space<vmem>>, %arg6: memref<1x256xf32, #tpu.memory_space<vmem>>, %arg7: memref<128x256xf32, #tpu.memory_space<vmem>>, %arg8: memref<128x256xf32, #tpu.memory_space<vmem>>) attributes {dimension_semantics = [#tpu.dimension_semantics<parallel>, #tpu.dimension_semantics<parallel>, #tpu.dimension_semantics<arbitrary>], iteration_bounds = array<i64: 1, 1, 2>, scalar_prefetch = 0 : i64, scratch_operands = 1 : i64, tpu.core_type = #tpu.core_type<tc>, window_params = [{transform_indices = @transform_0, window_bounds = array<i64: 128, 512>}, {transform_indices = @transform_1, window_bounds = array<i64: 512, 256>}, {transform_indices = @transform_2, window_bounds = array<i64: 1, 256>}, {transform_indices = @transform_3, window_bounds = array<i64: 1, 256>}, {transform_indices = @transform_4, window_bounds = array<i64: 128, 256>}]} {
    %c0_i32 = arith.constant 0 : i32
    %0 = arith.cmpi eq, %arg2, %c0_i32 : i32
    %1 = arith.extui %0 : i1 to i32
    %c0_i32_0 = arith.constant 0 : i32
    %2 = arith.cmpi ne, %1, %c0_i32_0 : i32
    scf.if %2 {
      %cst_9 = arith.constant 0.000000e+00 : f32
      %12 = vector.broadcast %cst_9 : f32 to vector<128x256xf32>
      %c0_10 = arith.constant 0 : index
      %c0_11 = arith.constant 0 : index
      %13 = vector.load %arg8[%c0_10, %c0_11] : memref<128x256xf32, #tpu.memory_space<vmem>>, vector<128x256xf32>
      tpu.vector_store %arg8[%c0_10, %c0_11], %12 {strides = array<i32>} : memref<128x256xf32, #tpu.memory_space<vmem>>, vector<128x256xf32>,
    } else {
    }
    %c0 = arith.constant 0 : index
    %c0_1 = arith.constant 0 : index
    %3 = vector.load %arg8[%c0, %c0_1] : memref<128x256xf32, #tpu.memory_space<vmem>>, vector<128x256xf32>
    %c0_2 = arith.constant 0 : index
    %c0_3 = arith.constant 0 : index
    %4 = vector.load %arg3[%c0_2, %c0_3] : memref<128x512xbf16, #tpu.memory_space<vmem>>, vector<128x512xbf16>
    %c0_4 = arith.constant 0 : index
    %c0_5 = arith.constant 0 : index
    %5 = vector.load %arg4[%c0_4, %c0_5] : memref<512x256xbf16, #tpu.memory_space<vmem>>, vector<512x256xbf16>
    %cst = arith.constant dense<0.000000e+00> : vector<128x256xf32>
    %6 = tpu.matmul %4, %5, %cst {dimension_numbers = #tpu.dot_dimension_numbers<[1], [0], [0], [1], [0, 0, 1, 1], [], []>} : vector<128x512xbf16>, vector<512x256xbf16>, vector<128x256xf32> -> vector<128x256xf32>
    %7 = arith.addf %3, %6 : vector<128x256xf32>
    %c0_6 = arith.constant 0 : index
    %c0_7 = arith.constant 0 : index
    %8 = vector.load %arg8[%c0_6, %c0_7] : memref<128x256xf32, #tpu.memory_space<vmem>>, vector<128x256xf32>
    tpu.vector_store %arg8[%c0_6, %c0_7], %7 {strides = array<i32>} : memref<128x256xf32, #tpu.memory_space<vmem>>, vector<128x256xf32>,
    %c1_i32 = arith.constant 1 : i32
    %9 = arith.cmpi eq, %arg2, %c1_i32 : i32
    %10 = arith.extui %9 : i1 to i32
    %c0_i32_8 = arith.constant 0 : i32
    %11 = arith.cmpi ne, %10, %c0_i32_8 : i32
    scf.if %11 {
      %c0_9 = arith.constant 0 : index
      %c0_10 = arith.constant 0 : index
      %12 = vector.load %arg8[%c0_9, %c0_10] : memref<128x256xf32, #tpu.memory_space<vmem>>, vector<128x256xf32>
      %c0_11 = arith.constant 0 : index
      %c0_12 = arith.constant 0 : index
      %13 = vector.load %arg5[%c0_11, %c0_12] : memref<1x256xf32, #tpu.memory_space<vmem>>, vector<1x256xf32>
      %14 = vector.broadcast %13 : vector<1x256xf32> to vector<128x256xf32>
      %15 = arith.mulf %12, %14 : vector<128x256xf32>
      %c0_13 = arith.constant 0 : index
      %c0_14 = arith.constant 0 : index
      %16 = vector.load %arg6[%c0_13, %c0_14] : memref<1x256xf32, #tpu.memory_space<vmem>>, vector<1x256xf32>
      %17 = vector.broadcast %16 : vector<1x256xf32> to vector<128x256xf32>
      %18 = arith.addf %15, %17 : vector<128x256xf32>
      %cst_15 = arith.constant 0.000000e+00 : f32
      %cst_16 = arith.constant 6.000000e+00 : f32
      %19 = vector.broadcast %cst_15 : f32 to vector<128x256xf32>
      %20 = arith.maximumf %19, %18 : vector<128x256xf32>
      %21 = vector.broadcast %cst_16 : f32 to vector<128x256xf32>
      %22 = arith.minimumf %21, %20 : vector<128x256xf32>
      %c0_17 = arith.constant 0 : index
      %c0_18 = arith.constant 0 : index
      %23 = vector.load %arg7[%c0_17, %c0_18] : memref<128x256xf32, #tpu.memory_space<vmem>>, vector<128x256xf32>
      tpu.vector_store %arg7[%c0_17, %c0_18], %22 {strides = array<i32>} : memref<128x256xf32, #tpu.memory_space<vmem>>, vector<128x256xf32>,
    } else {
    }
    return
  }
  func.func @transform_0(%arg0: i32, %arg1: i32, %arg2: i32) -> (i32, i32) {
    %c0_i32 = arith.constant 0 : i32
    return %arg0, %arg2 : i32, i32
  }
  func.func @transform_1(%arg0: i32, %arg1: i32, %arg2: i32) -> (i32, i32) {
    %c0_i32 = arith.constant 0 : i32
    return %arg2, %arg1 : i32, i32
  }
  func.func @transform_2(%arg0: i32, %arg1: i32, %arg2: i32) -> (i32, i32) {
    %c0_i32 = arith.constant 0 : i32
    %c0_i32_0 = arith.constant 0 : i32
    return %c0_i32, %arg1 : i32, i32
  }
  func.func @transform_3(%arg0: i32, %arg1: i32, %arg2: i32) -> (i32, i32) {
    %c0_i32 = arith.constant 0 : i32
    %c0_i32_0 = arith.constant 0 : i32
    return %c0_i32, %arg1 : i32, i32
  }
  func.func @transform_4(%arg0: i32, %arg1: i32, %arg2: i32) -> (i32, i32) {
    %c0_i32 = arith.constant 0 : i32
    return %arg0, %arg1 : i32, i32
  }
}

module attributes {stable_mosaic.version = 11 : i64} {
  func.func @_fused_matmul_kernel(%arg0: i32, %arg1: i32, %arg2: i32, %arg3: memref<128x512xbf16, #tpu.memory_space<vmem>>, %arg4: memref<512x256xbf16, #tpu.memory_space<vmem>>, %arg5: memref<1x256xf32, #tpu.memory_space<vmem>>, %arg6: memref<1x256xf32, #tpu.memory_space<vmem>>, %arg7: memref<128x256xf32, #tpu.memory_space<vmem>>, %arg8: memref<128x256xf32, #tpu.memory_space<vmem>>) attributes {dimension_semantics = [#tpu.dimension_semantics<parallel>, #tpu.dimension_semantics<parallel>, #tpu.dimension_semantics<arbitrary>], iteration_bounds = array<i64: 1, 1, 17>, scalar_prefetch = 0 : i64, scratch_operands = 1 : i64, tpu.core_type = #tpu.core_type<tc>, window_params = [{transform_indices = @transform_0, window_bounds = array<i64: 128, 512>}, {transform_indices = @transform_1, window_bounds = array<i64: 512, 256>}, {transform_indices = @transform_2, window_bounds = array<i64: 1, 256>}, {transform_indices = @transform_3, window_bounds = array<i64: 1, 256>}, {transform_indices = @transform_4, window_bounds = array<i64: 128, 256>}]} {
    %c0_i32 = arith.constant 0 : i32
    %0 = arith.cmpi eq, %arg2, %c0_i32 : i32
    %1 = arith.extui %0 : i1 to i32
    %c0_i32_0 = arith.constant 0 : i32
    %2 = arith.cmpi ne, %1, %c0_i32_0 : i32
    scf.if %2 {
      %cst_9 = arith.constant 0.000000e+00 : f32
      %12 = vector.broadcast %cst_9 : f32 to vector<128x256xf32>
      %c0_10 = arith.constant 0 : index
      %c0_11 = arith.constant 0 : index
      %13 = vector.load %arg8[%c0_10, %c0_11] : memref<128x256xf32, #tpu.memory_space<vmem>>, vector<128x256xf32>
      tpu.vector_store %arg8[%c0_10, %c0_11], %12 {strides = array<i32>} : memref<128x256xf32, #tpu.memory_space<vmem>>, vector<128x256xf32>,
    } else {
    }
    %c0 = arith.constant 0 : index
    %c0_1 = arith.constant 0 : index
    %3 = vector.load %arg8[%c0, %c0_1] : memref<128x256xf32, #tpu.memory_space<vmem>>, vector<128x256xf32>
    %c0_2 = arith.constant 0 : index
    %c0_3 = arith.constant 0 : index
    %4 = vector.load %arg3[%c0_2, %c0_3] : memref<128x512xbf16, #tpu.memory_space<vmem>>, vector<128x512xbf16>
    %c0_4 = arith.constant 0 : index
    %c0_5 = arith.constant 0 : index
    %5 = vector.load %arg4[%c0_4, %c0_5] : memref<512x256xbf16, #tpu.memory_space<vmem>>, vector<512x256xbf16>
    %cst = arith.constant dense<0.000000e+00> : vector<128x256xf32>
    %6 = tpu.matmul %4, %5, %cst {dimension_numbers = #tpu.dot_dimension_numbers<[1], [0], [0], [1], [0, 0, 1, 1], [], []>} : vector<128x512xbf16>, vector<512x256xbf16>, vector<128x256xf32> -> vector<128x256xf32>
    %7 = arith.addf %3, %6 : vector<128x256xf32>
    %c0_6 = arith.constant 0 : index
    %c0_7 = arith.constant 0 : index
    %8 = vector.load %arg8[%c0_6, %c0_7] : memref<128x256xf32, #tpu.memory_space<vmem>>, vector<128x256xf32>
    tpu.vector_store %arg8[%c0_6, %c0_7], %7 {strides = array<i32>} : memref<128x256xf32, #tpu.memory_space<vmem>>, vector<128x256xf32>,
    %c16_i32 = arith.constant 16 : i32
    %9 = arith.cmpi eq, %arg2, %c16_i32 : i32
    %10 = arith.extui %9 : i1 to i32
    %c0_i32_8 = arith.constant 0 : i32
    %11 = arith.cmpi ne, %10, %c0_i32_8 : i32
    scf.if %11 {
      %c0_9 = arith.constant 0 : index
      %c0_10 = arith.constant 0 : index
      %12 = vector.load %arg8[%c0_9, %c0_10] : memref<128x256xf32, #tpu.memory_space<vmem>>, vector<128x256xf32>
      %c0_11 = arith.constant 0 : index
      %c0_12 = arith.constant 0 : index
      %13 = vector.load %arg5[%c0_11, %c0_12] : memref<1x256xf32, #tpu.memory_space<vmem>>, vector<1x256xf32>
      %14 = vector.broadcast %13 : vector<1x256xf32> to vector<128x256xf32>
      %15 = arith.mulf %12, %14 : vector<128x256xf32>
      %c0_13 = arith.constant 0 : index
      %c0_14 = arith.constant 0 : index
      %16 = vector.load %arg6[%c0_13, %c0_14] : memref<1x256xf32, #tpu.memory_space<vmem>>, vector<1x256xf32>
      %17 = vector.broadcast %16 : vector<1x256xf32> to vector<128x256xf32>
      %18 = arith.addf %15, %17 : vector<128x256xf32>
      %cst_15 = arith.constant 0.000000e+00 : f32
      %cst_16 = arith.constant 6.000000e+00 : f32
      %19 = vector.broadcast %cst_15 : f32 to vector<128x256xf32>
      %20 = arith.maximumf %19, %18 : vector<128x256xf32>
      %21 = vector.broadcast %cst_16 : f32 to vector<128x256xf32>
      %22 = arith.minimumf %21, %20 : vector<128x256xf32>
      %c0_17 = arith.constant 0 : index
      %c0_18 = arith.constant 0 : index
      %23 = vector.load %arg7[%c0_17, %c0_18] : memref<128x256xf32, #tpu.memory_space<vmem>>, vector<128x256xf32>
      tpu.vector_store %arg7[%c0_17, %c0_18], %22 {strides = array<i32>} : memref<128x256xf32, #tpu.memory_space<vmem>>, vector<128x256xf32>,
    } else {
    }
    return
  }
  func.func @transform_0(%arg0: i32, %arg1: i32, %arg2: i32) -> (i32, i32) {
    %c0_i32 = arith.constant 0 : i32
    return %arg0, %arg2 : i32, i32
  }
  func.func @transform_1(%arg0: i32, %arg1: i32, %arg2: i32) -> (i32, i32) {
    %c0_i32 = arith.constant 0 : i32
    return %arg2, %arg1 : i32, i32
  }
  func.func @transform_2(%arg0: i32, %arg1: i32, %arg2: i32) -> (i32, i32) {
    %c0_i32 = arith.constant 0 : i32
    %c0_i32_0 = arith.constant 0 : i32
    return %c0_i32, %arg1 : i32, i32
  }
  func.func @transform_3(%arg0: i32, %arg1: i32, %arg2: i32) -> (i32, i32) {
    %c0_i32 = arith.constant 0 : i32
    %c0_i32_0 = arith.constant 0 : i32
    return %c0_i32, %arg1 : i32, i32
  }
  func.func @transform_4(%arg0: i32, %arg1: i32, %arg2: i32) -> (i32, i32) {
    %c0_i32 = arith.constant 0 : i32
    return %arg0, %arg1 : i32, i32
  }
}

module attributes {stable_mosaic.version = 11 : i64} {
  func.func @_fused_matmul_kernel(%arg0: i32, %arg1: i32, %arg2: i32, %arg3: memref<128x512xbf16, #tpu.memory_space<vmem>>, %arg4: memref<512x256xbf16, #tpu.memory_space<vmem>>, %arg5: memref<1x256xf32, #tpu.memory_space<vmem>>, %arg6: memref<1x256xf32, #tpu.memory_space<vmem>>, %arg7: memref<128x256xf32, #tpu.memory_space<vmem>>, %arg8: memref<128x256xf32, #tpu.memory_space<vmem>>) attributes {dimension_semantics = [#tpu.dimension_semantics<parallel>, #tpu.dimension_semantics<parallel>, #tpu.dimension_semantics<arbitrary>], iteration_bounds = array<i64: 1, 1, 3>, scalar_prefetch = 0 : i64, scratch_operands = 1 : i64, tpu.core_type = #tpu.core_type<tc>, window_params = [{transform_indices = @transform_0, window_bounds = array<i64: 128, 512>}, {transform_indices = @transform_1, window_bounds = array<i64: 512, 256>}, {transform_indices = @transform_2, window_bounds = array<i64: 1, 256>}, {transform_indices = @transform_3, window_bounds = array<i64: 1, 256>}, {transform_indices = @transform_4, window_bounds = array<i64: 128, 256>}]} {
    %c0_i32 = arith.constant 0 : i32
    %0 = arith.cmpi eq, %arg2, %c0_i32 : i32
    %1 = arith.extui %0 : i1 to i32
    %c0_i32_0 = arith.constant 0 : i32
    %2 = arith.cmpi ne, %1, %c0_i32_0 : i32
    scf.if %2 {
      %cst_9 = arith.constant 0.000000e+00 : f32
      %12 = vector.broadcast %cst_9 : f32 to vector<128x256xf32>
      %c0_10 = arith.constant 0 : index
      %c0_11 = arith.constant 0 : index
      %13 = vector.load %arg8[%c0_10, %c0_11] : memref<128x256xf32, #tpu.memory_space<vmem>>, vector<128x256xf32>
      tpu.vector_store %arg8[%c0_10, %c0_11], %12 {strides = array<i32>} : memref<128x256xf32, #tpu.memory_space<vmem>>, vector<128x256xf32>,
    } else {
    }
    %c0 = arith.constant 0 : index
    %c0_1 = arith.constant 0 : index
    %3 = vector.load %arg8[%c0, %c0_1] : memref<128x256xf32, #tpu.memory_space<vmem>>, vector<128x256xf32>
    %c0_2 = arith.constant 0 : index
    %c0_3 = arith.constant 0 : index
    %4 = vector.load %arg3[%c0_2, %c0_3] : memref<128x512xbf16, #tpu.memory_space<vmem>>, vector<128x512xbf16>
    %c0_4 = arith.constant 0 : index
    %c0_5 = arith.constant 0 : index
    %5 = vector.load %arg4[%c0_4, %c0_5] : memref<512x256xbf16, #tpu.memory_space<vmem>>, vector<512x256xbf16>
    %cst = arith.constant dense<0.000000e+00> : vector<128x256xf32>
    %6 = tpu.matmul %4, %5, %cst {dimension_numbers = #tpu.dot_dimension_numbers<[1], [0], [0], [1], [0, 0, 1, 1], [], []>} : vector<128x512xbf16>, vector<512x256xbf16>, vector<128x256xf32> -> vector<128x256xf32>
    %7 = arith.addf %3, %6 : vector<128x256xf32>
    %c0_6 = arith.constant 0 : index
    %c0_7 = arith.constant 0 : index
    %8 = vector.load %arg8[%c0_6, %c0_7] : memref<128x256xf32, #tpu.memory_space<vmem>>, vector<128x256xf32>
    tpu.vector_store %arg8[%c0_6, %c0_7], %7 {strides = array<i32>} : memref<128x256xf32, #tpu.memory_space<vmem>>, vector<128x256xf32>,
    %c2_i32 = arith.constant 2 : i32
    %9 = arith.cmpi eq, %arg2, %c2_i32 : i32
    %10 = arith.extui %9 : i1 to i32
    %c0_i32_8 = arith.constant 0 : i32
    %11 = arith.cmpi ne, %10, %c0_i32_8 : i32
    scf.if %11 {
      %c0_9 = arith.constant 0 : index
      %c0_10 = arith.constant 0 : index
      %12 = vector.load %arg8[%c0_9, %c0_10] : memref<128x256xf32, #tpu.memory_space<vmem>>, vector<128x256xf32>
      %c0_11 = arith.constant 0 : index
      %c0_12 = arith.constant 0 : index
      %13 = vector.load %arg5[%c0_11, %c0_12] : memref<1x256xf32, #tpu.memory_space<vmem>>, vector<1x256xf32>
      %14 = vector.broadcast %13 : vector<1x256xf32> to vector<128x256xf32>
      %15 = arith.mulf %12, %14 : vector<128x256xf32>
      %c0_13 = arith.constant 0 : index
      %c0_14 = arith.constant 0 : index
      %16 = vector.load %arg6[%c0_13, %c0_14] : memref<1x256xf32, #tpu.memory_space<vmem>>, vector<1x256xf32>
      %17 = vector.broadcast %16 : vector<1x256xf32> to vector<128x256xf32>
      %18 = arith.addf %15, %17 : vector<128x256xf32>
      %cst_15 = arith.constant 0.000000e+00 : f32
      %cst_16 = arith.constant 6.000000e+00 : f32
      %19 = vector.broadcast %cst_15 : f32 to vector<128x256xf32>
      %20 = arith.maximumf %19, %18 : vector<128x256xf32>
      %21 = vector.broadcast %cst_16 : f32 to vector<128x256xf32>
      %22 = arith.minimumf %21, %20 : vector<128x256xf32>
      %c0_17 = arith.constant 0 : index
      %c0_18 = arith.constant 0 : index
      %23 = vector.load %arg7[%c0_17, %c0_18] : memref<128x256xf32, #tpu.memory_space<vmem>>, vector<128x256xf32>
      tpu.vector_store %arg7[%c0_17, %c0_18], %22 {strides = array<i32>} : memref<128x256xf32, #tpu.memory_space<vmem>>, vector<128x256xf32>,
    } else {
    }
    return
  }
  func.func @transform_0(%arg0: i32, %arg1: i32, %arg2: i32) -> (i32, i32) {
    %c0_i32 = arith.constant 0 : i32
    return %arg0, %arg2 : i32, i32
  }
  func.func @transform_1(%arg0: i32, %arg1: i32, %arg2: i32) -> (i32, i32) {
    %c0_i32 = arith.constant 0 : i32
    return %arg2, %arg1 : i32, i32
  }
  func.func @transform_2(%arg0: i32, %arg1: i32, %arg2: i32) -> (i32, i32) {
    %c0_i32 = arith.constant 0 : i32
    %c0_i32_0 = arith.constant 0 : i32
    return %c0_i32, %arg1 : i32, i32
  }
  func.func @transform_3(%arg0: i32, %arg1: i32, %arg2: i32) -> (i32, i32) {
    %c0_i32 = arith.constant 0 : i32
    %c0_i32_0 = arith.constant 0 : i32
    return %c0_i32, %arg1 : i32, i32
  }
  func.func @transform_4(%arg0: i32, %arg1: i32, %arg2: i32) -> (i32, i32) {
    %c0_i32 = arith.constant 0 : i32
    return %arg0, %arg1 : i32, i32
  }
}

module attributes {stable_mosaic.version = 11 : i64} {
  func.func @_fused_matmul_kernel(%arg0: i32, %arg1: i32, %arg2: i32, %arg3: memref<128x512xbf16, #tpu.memory_space<vmem>>, %arg4: memref<512x256xbf16, #tpu.memory_space<vmem>>, %arg5: memref<1x256xf32, #tpu.memory_space<vmem>>, %arg6: memref<1x256xf32, #tpu.memory_space<vmem>>, %arg7: memref<128x256xf32, #tpu.memory_space<vmem>>, %arg8: memref<128x256xf32, #tpu.memory_space<vmem>>) attributes {dimension_semantics = [#tpu.dimension_semantics<parallel>, #tpu.dimension_semantics<parallel>, #tpu.dimension_semantics<arbitrary>], iteration_bounds = array<i64: 1, 1, 6>, scalar_prefetch = 0 : i64, scratch_operands = 1 : i64, tpu.core_type = #tpu.core_type<tc>, window_params = [{transform_indices = @transform_0, window_bounds = array<i64: 128, 512>}, {transform_indices = @transform_1, window_bounds = array<i64: 512, 256>}, {transform_indices = @transform_2, window_bounds = array<i64: 1, 256>}, {transform_indices = @transform_3, window_bounds = array<i64: 1, 256>}, {transform_indices = @transform_4, window_bounds = array<i64: 128, 256>}]} {
    %c0_i32 = arith.constant 0 : i32
    %0 = arith.cmpi eq, %arg2, %c0_i32 : i32
    %1 = arith.extui %0 : i1 to i32
    %c0_i32_0 = arith.constant 0 : i32
    %2 = arith.cmpi ne, %1, %c0_i32_0 : i32
    scf.if %2 {
      %cst_9 = arith.constant 0.000000e+00 : f32
      %12 = vector.broadcast %cst_9 : f32 to vector<128x256xf32>
      %c0_10 = arith.constant 0 : index
      %c0_11 = arith.constant 0 : index
      %13 = vector.load %arg8[%c0_10, %c0_11] : memref<128x256xf32, #tpu.memory_space<vmem>>, vector<128x256xf32>
      tpu.vector_store %arg8[%c0_10, %c0_11], %12 {strides = array<i32>} : memref<128x256xf32, #tpu.memory_space<vmem>>, vector<128x256xf32>,
    } else {
    }
    %c0 = arith.constant 0 : index
    %c0_1 = arith.constant 0 : index
    %3 = vector.load %arg8[%c0, %c0_1] : memref<128x256xf32, #tpu.memory_space<vmem>>, vector<128x256xf32>
    %c0_2 = arith.constant 0 : index
    %c0_3 = arith.constant 0 : index
    %4 = vector.load %arg3[%c0_2, %c0_3] : memref<128x512xbf16, #tpu.memory_space<vmem>>, vector<128x512xbf16>
    %c0_4 = arith.constant 0 : index
    %c0_5 = arith.constant 0 : index
    %5 = vector.load %arg4[%c0_4, %c0_5] : memref<512x256xbf16, #tpu.memory_space<vmem>>, vector<512x256xbf16>
    %cst = arith.constant dense<0.000000e+00> : vector<128x256xf32>
    %6 = tpu.matmul %4, %5, %cst {dimension_numbers = #tpu.dot_dimension_numbers<[1], [0], [0], [1], [0, 0, 1, 1], [], []>} : vector<128x512xbf16>, vector<512x256xbf16>, vector<128x256xf32> -> vector<128x256xf32>
    %7 = arith.addf %3, %6 : vector<128x256xf32>
    %c0_6 = arith.constant 0 : index
    %c0_7 = arith.constant 0 : index
    %8 = vector.load %arg8[%c0_6, %c0_7] : memref<128x256xf32, #tpu.memory_space<vmem>>, vector<128x256xf32>
    tpu.vector_store %arg8[%c0_6, %c0_7], %7 {strides = array<i32>} : memref<128x256xf32, #tpu.memory_space<vmem>>, vector<128x256xf32>,
    %c5_i32 = arith.constant 5 : i32
    %9 = arith.cmpi eq, %arg2, %c5_i32 : i32
    %10 = arith.extui %9 : i1 to i32
    %c0_i32_8 = arith.constant 0 : i32
    %11 = arith.cmpi ne, %10, %c0_i32_8 : i32
    scf.if %11 {
      %c0_9 = arith.constant 0 : index
      %c0_10 = arith.constant 0 : index
      %12 = vector.load %arg8[%c0_9, %c0_10] : memref<128x256xf32, #tpu.memory_space<vmem>>, vector<128x256xf32>
      %c0_11 = arith.constant 0 : index
      %c0_12 = arith.constant 0 : index
      %13 = vector.load %arg5[%c0_11, %c0_12] : memref<1x256xf32, #tpu.memory_space<vmem>>, vector<1x256xf32>
      %14 = vector.broadcast %13 : vector<1x256xf32> to vector<128x256xf32>
      %15 = arith.mulf %12, %14 : vector<128x256xf32>
      %c0_13 = arith.constant 0 : index
      %c0_14 = arith.constant 0 : index
      %16 = vector.load %arg6[%c0_13, %c0_14] : memref<1x256xf32, #tpu.memory_space<vmem>>, vector<1x256xf32>
      %17 = vector.broadcast %16 : vector<1x256xf32> to vector<128x256xf32>
      %18 = arith.addf %15, %17 : vector<128x256xf32>
      %cst_15 = arith.constant 0.000000e+00 : f32
      %19 = vector.broadcast %cst_15 : f32 to vector<128x256xf32>
      %20 = arith.maximumf %18, %19 : vector<128x256xf32>
      %c0_16 = arith.constant 0 : index
      %c0_17 = arith.constant 0 : index
      %21 = vector.load %arg7[%c0_16, %c0_17] : memref<128x256xf32, #tpu.memory_space<vmem>>, vector<128x256xf32>
      tpu.vector_store %arg7[%c0_16, %c0_17], %20 {strides = array<i32>} : memref<128x256xf32, #tpu.memory_space<vmem>>, vector<128x256xf32>,
    } else {
    }
    return
  }
  func.func @transform_0(%arg0: i32, %arg1: i32, %arg2: i32) -> (i32, i32) {
    %c0_i32 = arith.constant 0 : i32
    return %arg0, %arg2 : i32, i32
  }
  func.func @transform_1(%arg0: i32, %arg1: i32, %arg2: i32) -> (i32, i32) {
    %c0_i32 = arith.constant 0 : i32
    return %arg2, %arg1 : i32, i32
  }
  func.func @transform_2(%arg0: i32, %arg1: i32, %arg2: i32) -> (i32, i32) {
    %c0_i32 = arith.constant 0 : i32
    %c0_i32_0 = arith.constant 0 : i32
    return %c0_i32, %arg1 : i32, i32
  }
  func.func @transform_3(%arg0: i32, %arg1: i32, %arg2: i32) -> (i32, i32) {
    %c0_i32 = arith.constant 0 : i32
    %c0_i32_0 = arith.constant 0 : i32
    return %c0_i32, %arg1 : i32, i32
  }
  func.func @transform_4(%arg0: i32, %arg1: i32, %arg2: i32) -> (i32, i32) {
    %c0_i32 = arith.constant 0 : i32
    return %arg0, %arg1 : i32, i32
  }
}

module attributes {stable_mosaic.version = 11 : i64} {
  func.func @_fused_matmul_kernel(%arg0: i32, %arg1: i32, %arg2: i32, %arg3: memref<128x256xbf16, #tpu.memory_space<vmem>>, %arg4: memref<256x128xbf16, #tpu.memory_space<vmem>>, %arg5: memref<1x128xf32, #tpu.memory_space<vmem>>, %arg6: memref<1x128xf32, #tpu.memory_space<vmem>>, %arg7: memref<128x128xf32, #tpu.memory_space<vmem>>, %arg8: memref<128x128xf32, #tpu.memory_space<vmem>>) attributes {dimension_semantics = [#tpu.dimension_semantics<parallel>, #tpu.dimension_semantics<parallel>, #tpu.dimension_semantics<arbitrary>], iteration_bounds = array<i64: 1, 1, 1>, scalar_prefetch = 0 : i64, scratch_operands = 1 : i64, tpu.core_type = #tpu.core_type<tc>, window_params = [{transform_indices = @transform_0, window_bounds = array<i64: 128, 256>}, {transform_indices = @transform_1, window_bounds = array<i64: 256, 128>}, {transform_indices = @transform_2, window_bounds = array<i64: 1, 128>}, {transform_indices = @transform_3, window_bounds = array<i64: 1, 128>}, {transform_indices = @transform_4, window_bounds = array<i64: 128, 128>}]} {
    %c0_i32 = arith.constant 0 : i32
    %0 = arith.cmpi eq, %arg2, %c0_i32 : i32
    %1 = arith.extui %0 : i1 to i32
    %c0_i32_0 = arith.constant 0 : i32
    %2 = arith.cmpi ne, %1, %c0_i32_0 : i32
    scf.if %2 {
      %cst_10 = arith.constant 0.000000e+00 : f32
      %12 = vector.broadcast %cst_10 : f32 to vector<128x128xf32>
      %c0_11 = arith.constant 0 : index
      %c0_12 = arith.constant 0 : index
      %13 = vector.load %arg8[%c0_11, %c0_12] : memref<128x128xf32, #tpu.memory_space<vmem>>, vector<128x128xf32>
      tpu.vector_store %arg8[%c0_11, %c0_12], %12 {strides = array<i32>} : memref<128x128xf32, #tpu.memory_space<vmem>>, vector<128x128xf32>,
    } else {
    }
    %c0 = arith.constant 0 : index
    %c0_1 = arith.constant 0 : index
    %3 = vector.load %arg8[%c0, %c0_1] : memref<128x128xf32, #tpu.memory_space<vmem>>, vector<128x128xf32>
    %c0_2 = arith.constant 0 : index
    %c0_3 = arith.constant 0 : index
    %4 = vector.load %arg3[%c0_2, %c0_3] : memref<128x256xbf16, #tpu.memory_space<vmem>>, vector<128x256xbf16>
    %c0_4 = arith.constant 0 : index
    %c0_5 = arith.constant 0 : index
    %5 = vector.load %arg4[%c0_4, %c0_5] : memref<256x128xbf16, #tpu.memory_space<vmem>>, vector<256x128xbf16>
    %cst = arith.constant dense<0.000000e+00> : vector<128x128xf32>
    %6 = tpu.matmul %4, %5, %cst {dimension_numbers = #tpu.dot_dimension_numbers<[1], [0], [0], [1], [0, 0, 1, 1], [], []>} : vector<128x256xbf16>, vector<256x128xbf16>, vector<128x128xf32> -> vector<128x128xf32>
    %7 = arith.addf %3, %6 : vector<128x128xf32>
    %c0_6 = arith.constant 0 : index
    %c0_7 = arith.constant 0 : index
    %8 = vector.load %arg8[%c0_6, %c0_7] : memref<128x128xf32, #tpu.memory_space<vmem>>, vector<128x128xf32>
    tpu.vector_store %arg8[%c0_6, %c0_7], %7 {strides = array<i32>} : memref<128x128xf32, #tpu.memory_space<vmem>>, vector<128x128xf32>,
    %c0_i32_8 = arith.constant 0 : i32
    %9 = arith.cmpi eq, %arg2, %c0_i32_8 : i32
    %10 = arith.extui %9 : i1 to i32
    %c0_i32_9 = arith.constant 0 : i32
    %11 = arith.cmpi ne, %10, %c0_i32_9 : i32
    scf.if %11 {
      %c0_10 = arith.constant 0 : index
      %c0_11 = arith.constant 0 : index
      %12 = vector.load %arg8[%c0_10, %c0_11] : memref<128x128xf32, #tpu.memory_space<vmem>>, vector<128x128xf32>
      %c0_12 = arith.constant 0 : index
      %c0_13 = arith.constant 0 : index
      %13 = vector.load %arg5[%c0_12, %c0_13] : memref<1x128xf32, #tpu.memory_space<vmem>>, vector<1x128xf32>
      %14 = vector.broadcast %13 : vector<1x128xf32> to vector<128x128xf32>
      %15 = arith.mulf %12, %14 : vector<128x128xf32>
      %c0_14 = arith.constant 0 : index
      %c0_15 = arith.constant 0 : index
      %16 = vector.load %arg6[%c0_14, %c0_15] : memref<1x128xf32, #tpu.memory_space<vmem>>, vector<1x128xf32>
      %17 = vector.broadcast %16 : vector<1x128xf32> to vector<128x128xf32>
      %18 = arith.addf %15, %17 : vector<128x128xf32>
      %c0_16 = arith.constant 0 : index
      %c0_17 = arith.constant 0 : index
      %19 = vector.load %arg7[%c0_16, %c0_17] : memref<128x128xf32, #tpu.memory_space<vmem>>, vector<128x128xf32>
      tpu.vector_store %arg7[%c0_16, %c0_17], %18 {strides = array<i32>} : memref<128x128xf32, #tpu.memory_space<vmem>>, vector<128x128xf32>,
    } else {
    }
    return
  }
  func.func @transform_0(%arg0: i32, %arg1: i32, %arg2: i32) -> (i32, i32) {
    %c0_i32 = arith.constant 0 : i32
    return %arg0, %arg2 : i32, i32
  }
  func.func @transform_1(%arg0: i32, %arg1: i32, %arg2: i32) -> (i32, i32) {
    %c0_i32 = arith.constant 0 : i32
    return %arg2, %arg1 : i32, i32
  }
  func.func @transform_2(%arg0: i32, %arg1: i32, %arg2: i32) -> (i32, i32) {
    %c0_i32 = arith.constant 0 : i32
    %c0_i32_0 = arith.constant 0 : i32
    return %c0_i32, %arg1 : i32, i32
  }
  func.func @transform_3(%arg0: i32, %arg1: i32, %arg2: i32) -> (i32, i32) {
    %c0_i32 = arith.constant 0 : i32
    %c0_i32_0 = arith.constant 0 : i32
    return %c0_i32, %arg1 : i32, i32
  }
  func.func @transform_4(%arg0: i32, %arg1: i32, %arg2: i32) -> (i32, i32) {
    %c0_i32 = arith.constant 0 : i32
    return %arg0, %arg1 : i32, i32
  }
}

</mosaic_0001>

<bundles_post_ra>
// kernel: segmentation_custom_forward.13
= control target key start
LH: loop header
LB: loop body
LE: loop exit
PB: predicated region body
PF: predicated region fallthrough
CT: control target
= control target key end

     0   :  { %s1343_s15 = smov 0   ;;  %s1345_s16 = smov 0   ;;  %s1530_s0 = inlined_call_operand.vmem [shape: bf16[512,128], index: 0, kind: input, shape index: {}]   ;;  %s1531_s1 = inlined_call_operand.vmem [shape: bf16[128,128], index: 1, kind: input, shape index: {}]   ;;  %s1532_s2 = inlined_call_operand.vmem [shape: f32[1,128], index: 2, kind: input, shape index: {}]   ;;  %s1533_s3 = inlined_call_operand.vmem [shape: f32[1,128], index: 3, kind: input, shape index: {}]   ;;  %s1534_s4 = inlined_call_operand.vmem [shape: f32[512,128], index: 4, kind: output, shape index: {}]  }
   0x1   :  { %s1347_s17 = smov 0  }
   0x2 LB: > { %s33_s18 = sadd.s32 1, %s1312_s16  ;;  %p1125_p0 = scmp.ge.s32.totalorder %s1316_s17, 1  ;;  %s1316_s17 = sphi %s1347_s17, %s14_s17   ;;  %s1312_s16 = sphi %s1345_s16, %s1536_s16   ;;  %s1308_s15 = sphi %s1343_s15, %s1535_s15  }
   0x3   : > { %p35_p1 = scmp.ge.s32.totalorder %s33_s18, 2  ;;  %p221_p2 = scmp.lt.s32.totalorder %s1316_s17, 3 }
   0x5   : > { %s1538_s18 = smov (%p35_p1, %s33_s18), 0  ;;  %p222_p3 = pnand %p1125_p0, %p221_p2 }
   0x6   : > { %s1126_s21 = sshll.u32 (!%p222_p3), %s1308_s15, 5 }
   0x7   : > { %225 = sbr.rel (%p222_p3) target bundleno = 279 (0x117), region = 36  ;;  %p268_p4 = scmp.lt.s32.totalorder (!%p222_p3), %s1126_s21, 63 }
   0xc   : > { %v1270_v0 = vld [vmem:[%s1531_s1 + $0x38] sm:$0xff]   ;;  %v1271_v1 = vld [vmem:[%s1531_s1 + $0x30] sm:$0xff]   ;;  %s1540_s21 = smov (!%p268_p4, %s1126_s21), 63  ;;  %v1272_v2 = vld [vmem:[%s1531_s1 + $0x28] sm:$0xff]  }
   0xd   : > { %1182 = vmatprep.subr.bf16.mxu0 %v1270_v0  ;;  %1230 = vmatprep.subr.bf16.mxu1 %v1270_v0  ;;  %s1127_s26 = sshll.u32 %s1540_s21, 2  ;;  %v1273_v3 = vld [vmem:[%s1531_s1 + $0x20] sm:$0xff]   ;;  %v1274_v6 = vld [vmem:[%s1531_s1 + $0x18] sm:$0xff]   ;;  %v1275_v7 = vld [vmem:[%s1531_s1 + $0x10] sm:$0xff]   ;;  %s1129_s22 = sshll.u32 %s1540_s21, 3 }
   0xe   : > { %1183 = vmatpush3.bf16.msra.mxu0 %v1270_v0  ;;  %1238 = vmatpush3.bf16.msra.mxu1 %v1270_v0  ;;  %s1376_s29 = scalar_lea.vmem %s1530_s0, %s1127_s26  ;;  %v1276_v8 = vld [vmem:[%s1531_s1 + $0x8] sm:$0xff]   ;;  %v1277_v9 = vld [vmem:[%s1531_s1] sm:$0xff]   ;;  %s1431_s21 = scalar_lea.vmem %s1534_s4, %s1129_s22 }
   0xf   : > { %1184 = vmatprep.subr.bf16.mxu0 %v1271_v1  ;;  %1231 = vmatprep.subr.bf16.mxu1 %v1271_v1  ;;  %v1278_v4 = vld [vmem:[%s1376_s29] sm:$0xff]   ;;  %v1280_v10 = vld [vmem:[%s1376_s29 + $0x8] sm:$0xff]   ;;  %v1282_v12 = vld [vmem:[%s1376_s29 + $0x10] sm:$0xff]  }
  0x10   : > { %v1279_v5 = vld [vmem:[%s1376_s29 + $0x40] sm:$0xff]   ;;  %1198 = vmatprep.mubr.bf16.mxu0 %v1278_v4  ;;  %v1281_v11 = vld [vmem:[%s1376_s29 + $0x48] sm:$0xff]   ;;  %v1283_v13 = vld [vmem:[%s1376_s29 + $0x50] sm:$0xff]  }
  0x11   : > { %1214 = vmatprep.mubr.bf16.mxu1 %v1279_v5  ;;  %v1284_v14 = vld [vmem:[%s1376_s29 + $0x18] sm:$0xff]   ;;  %v1286_v16 = vld [vmem:[%s1376_s29 + $0x20] sm:$0xff]   ;;  %v1288_v18 = vld [vmem:[%s1376_s29 + $0x28] sm:$0xff]  }
  0x12   : > { %1185 = vmatpush3.bf16.msra.mxu0 %v1271_v1  ;;  %1239 = vmatpush3.bf16.msra.mxu1 %v1271_v1  ;;  %v1285_v15 = vld [vmem:[%s1376_s29 + $0x58] sm:$0xff]   ;;  %v1287_v17 = vld [vmem:[%s1376_s29 + $0x60] sm:$0xff]   ;;  %v1289_v19 = vld [vmem:[%s1376_s29 + $0x68] sm:$0xff]  }
  0x13   : > { %1186 = vmatprep.subr.bf16.mxu0 %v1272_v2  ;;  %1232 = vmatprep.subr.bf16.mxu1 %v1272_v2  ;;  %v1290_v20 = vld [vmem:[%s1376_s29 + $0x30] sm:$0xff]   ;;  %v1292_v22 = vld [vmem:[%s1376_s29 + $0x38] sm:$0xff]   ;;  %v1412_v24 = vld [vmem:[%s1532_s2] ss:$0 sm:$0xff] }
  0x14   : > { %v1291_v21 = vld [vmem:[%s1376_s29 + $0x70] sm:$0xff]   ;;  %v1293_v23 = vld [vmem:[%s1376_s29 + $0x78] sm:$0xff]   ;;  %v1417_v26 = vld [vmem:[%s1533_s3] ss:$0 sm:$0xff] }
  0x16   : > { %1187 = vmatpush3.bf16.msra.mxu0 %v1272_v2  ;;  %1240 = vmatpush3.bf16.msra.mxu1 %v1272_v2 }
  0x17   : > { %1188 = vmatprep.subr.bf16.mxu0 %v1273_v3  ;;  %1233 = vmatprep.subr.bf16.mxu1 %v1273_v3 }
  0x1a   : > { %1189 = vmatpush3.bf16.msra.mxu0 %v1273_v3  ;;  %1241 = vmatpush3.bf16.msra.mxu1 %v1273_v3 }
  0x1b   : > { %1190 = vmatprep.subr.bf16.mxu0 %v1274_v6  ;;  %1234 = vmatprep.subr.bf16.mxu1 %v1274_v6 }
  0x1e   : > { %1191 = vmatpush3.bf16.msra.mxu0 %v1274_v6  ;;  %1242 = vmatpush3.bf16.msra.mxu1 %v1274_v6 }
  0x1f   : > { %1192 = vmatprep.subr.bf16.mxu0 %v1275_v7  ;;  %1235 = vmatprep.subr.bf16.mxu1 %v1275_v7 }
  0x22   : > { %1193 = vmatpush3.bf16.msra.mxu0 %v1275_v7  ;;  %1243 = vmatpush3.bf16.msra.mxu1 %v1275_v7 }
  0x23   : > { %1194 = vmatprep.subr.bf16.mxu0 %v1276_v8  ;;  %1236 = vmatprep.subr.bf16.mxu1 %v1276_v8 }
  0x26   : > { %1195 = vmatpush3.bf16.msra.mxu0 %v1276_v8  ;;  %1244 = vmatpush3.bf16.msra.mxu1 %v1276_v8 }
  0x27   : > { %1196 = vmatprep.subr.bf16.mxu0 %v1277_v9  ;;  %1237 = vmatprep.subr.bf16.mxu1 %v1277_v9 }
  0x2a   : > { %1197 = vmatpush3.bf16.msra.mxu0 %v1277_v9  ;;  %1245 = vmatpush3.bf16.msra.mxu1 %v1277_v9 }
  0x2d   : > { %1199 = vmatmul.mubr.bf16.vlgmr.msra.gmra.mxu0 %v1280_v10  ;;  %1215 = vmatmul.mubr.bf16.vlgmr.msra.gmra.mxu1 %v1281_v11 }
  0x2e   : > { %1202 = vmatprep.mubr.bf16.mxu0 %v1282_v12  ;;  %1218 = vmatprep.mubr.bf16.mxu1 %v1283_v13 }
  0x35   : > { %1203 = vmatmul.mubr.bf16.gmra.mxu0 %v1284_v14  ;;  %1219 = vmatmul.mubr.bf16.gmra.mxu1 %v1285_v15 }
  0x36   : > { %1206 = vmatprep.mubr.bf16.mxu0 %v1286_v16  ;;  %1222 = vmatprep.mubr.bf16.mxu1 %v1287_v17 }
  0x3d   : > { %1207 = vmatmul.mubr.bf16.gmra.mxu0 %v1288_v18  ;;  %1223 = vmatmul.mubr.bf16.gmra.mxu1 %v1289_v19 }
  0x3e   : > { %1210 = vmatprep.mubr.bf16.mxu0 %v1290_v20  ;;  %1226 = vmatprep.mubr.bf16.mxu1 %v1291_v21 }
  0x45   : > { %1211 = vmatmul.mubr.bf16.gmra.mxu0 %v1292_v22  ;;  %1227 = vmatmul.mubr.bf16.gmra.mxu1 %v1293_v23 }
  0xed   : > { %v1200_v25 = vpop.f32.mrf.mxu0  ;;  %v1216_v27 = vpop.f32.mrf.mxu1 }
  0xee   : > { %v830_v28 = vmul.f32 %v1200_v25, %v1412_v24  ;;  %v846_v29 = vmul.f32 %v1216_v27, %v1412_v24 }
  0xef   : > { %v595_v30 = vpop.f32.mrf.mxu0  ;;  %v659_v31 = vpop.f32.mrf.mxu1 }
  0xf0   : > { %v869_v32 = vadd.f32 %v1417_v26, %v830_v28  ;;  %v885_v33 = vadd.f32 %v1417_v26, %v846_v29  ;;  %v828_v34 = vmul.f32 %v1412_v24, %v595_v30  ;;  %v844_v35 = vmul.f32 %v1412_v24, %v659_v31 }
  0xf1   : > { %v1201_v36 = vpop.f32.mrf.mxu0  ;;  %v1217_v37 = vpop.f32.mrf.mxu1 }
  0xf2   : > { %v901_v38 = vmax.f32 %v869_v32, 0.0  ;;  %v917_v39 = vmax.f32 %v885_v33, 0.0  ;;  %v867_v40 = vadd.f32 %v1417_v26, %v828_v34  ;;  %v883_v41 = vadd.f32 %v1417_v26, %v844_v35 }
  0xf3   : > { %v831_v42 = vmul.f32 %v1201_v36, %v1412_v24  ;;  %v847_v43 = vmul.f32 %v1217_v37, %v1412_v24  ;;  %v598_v44 = vpop.f32.mrf.mxu0  ;;  %v662_v45 = vpop.f32.mrf.mxu1 }
  0xf4   : > { %v933_v46 = vmin.f32 %v901_v38, 6.0  ;;  %v949_v47 = vmin.f32 %v917_v39, 6.0  ;;  %v899_v48 = vmax.f32 %v867_v40, 0.0  ;;  %v915_v49 = vmax.f32 %v883_v41, 0.0 }
  0xf5   : > { %v870_v50 = vadd.f32 %v1417_v26, %v831_v42  ;;  %v886_v51 = vadd.f32 %v1417_v26, %v847_v43  ;;  %v829_v52 = vmul.f32 %v1412_v24, %v598_v44  ;;  %v845_v53 = vmul.f32 %v1412_v24, %v662_v45  ;;  %v1204_v54 = vpop.f32.mrf.mxu0  ;;  %v1220_v55 = vpop.f32.mrf.mxu1 }
  0xf6   : > { %965 = vst [vmem:[%s1431_s21 + $0x10] sm:$0xff] %v933_v46  ;;  %981 = vst [vmem:[%s1431_s21 + $0x90] sm:$0xff] %v949_v47  ;;  %v931_v56 = vmin.f32 %v899_v48, 6.0  ;;  %v947_v57 = vmin.f32 %v915_v49, 6.0  ;;  %v834_v58 = vmul.f32 %v1204_v54, %v1412_v24  ;;  %v850_v59 = vmul.f32 %v1220_v55, %v1412_v24 }
  0xf7   : > { %v902_v60 = vmax.f32 %v870_v50, 0.0  ;;  %v918_v61 = vmax.f32 %v886_v51, 0.0  ;;  %v868_v62 = vadd.f32 %v1417_v26, %v829_v52  ;;  %v884_v63 = vadd.f32 %v1417_v26, %v845_v53  ;;  %v611_v0 = vpop.f32.mrf.mxu0  ;;  %v675_v1 = vpop.f32.mrf.mxu1 }
  0xf8   : > { %963 = vst [vmem:[%s1431_s21] sm:$0xff] %v931_v56  ;;  %979 = vst [vmem:[%s1431_s21 + $0x80] sm:$0xff] %v947_v57  ;;  %v873_v2 = vadd.f32 %v1417_v26, %v834_v58  ;;  %v889_v3 = vadd.f32 %v1417_v26, %v850_v59  ;;  %v832_v4 = vmul.f32 %v1412_v24, %v611_v0 }
  0xf9   : > { %v848_v5 = vmul.f32 %v1412_v24, %v675_v1  ;;  %v934_v6 = vmin.f32 %v902_v60, 6.0  ;;  %v950_v7 = vmin.f32 %v918_v61, 6.0  ;;  %v900_v8 = vmax.f32 %v868_v62, 0.0  ;;  %v1205_v10 = vpop.f32.mrf.mxu0  ;;  %v1221_v11 = vpop.f32.mrf.mxu1 }
  0xfa   : > { %v916_v9 = vmax.f32 %v884_v63, 0.0  ;;  %v905_v12 = vmax.f32 %v873_v2, 0.0  ;;  %v921_v13 = vmax.f32 %v889_v3, 0.0  ;;  %v871_v14 = vadd.f32 %v1417_v26, %v832_v4 }
  0xfb   : > { %v887_v15 = vadd.f32 %v1417_v26, %v848_v5  ;;  %966 = vst [vmem:[%s1431_s21 + $0x18] sm:$0xff] %v934_v6  ;;  %982 = vst [vmem:[%s1431_s21 + $0x98] sm:$0xff] %v950_v7  ;;  %v932_v16 = vmin.f32 %v900_v8, 6.0  ;;  %v835_v18 = vmul.f32 %v1205_v10, %v1412_v24  ;;  %v851_v19 = vmul.f32 %v1221_v11, %v1412_v24  ;;  %v614_v20 = vpop.f32.mrf.mxu0  ;;  %v678_v21 = vpop.f32.mrf.mxu1 }
  0xfc   : > { %v948_v17 = vmin.f32 %v916_v9, 6.0  ;;  %v937_v22 = vmin.f32 %v905_v12, 6.0  ;;  %v953_v23 = vmin.f32 %v921_v13, 6.0  ;;  %v903_v25 = vmax.f32 %v871_v14, 0.0 }
  0xfd   : > { %v919_v27 = vmax.f32 %v887_v15, 0.0  ;;  %964 = vst [vmem:[%s1431_s21 + $0x8] sm:$0xff] %v932_v16  ;;  %v874_v28 = vadd.f32 %v1417_v26, %v835_v18  ;;  %v890_v29 = vadd.f32 %v1417_v26, %v851_v19  ;;  %v833_v30 = vmul.f32 %v1412_v24, %v614_v20  ;;  %v1208_v32 = vpop.f32.mrf.mxu0  ;;  %v1224_v33 = vpop.f32.mrf.mxu1 }
  0xfe   : > { %980 = vst [vmem:[%s1431_s21 + $0x88] sm:$0xff] %v948_v17  ;;  %v849_v31 = vmul.f32 %v1412_v24, %v678_v21  ;;  %969 = vst [vmem:[%s1431_s21 + $0x30] sm:$0xff] %v937_v22  ;;  %v935_v34 = vmin.f32 %v903_v25, 6.0  ;;  %v838_v36 = vmul.f32 %v1208_v32, %v1412_v24  ;;  %v854_v37 = vmul.f32 %v1224_v33, %v1412_v24 }
  0xff   : > { %985 = vst [vmem:[%s1431_s21 + $0xb0] sm:$0xff] %v953_v23  ;;  %v951_v35 = vmin.f32 %v919_v27, 6.0  ;;  %v906_v38 = vmax.f32 %v874_v28, 0.0  ;;  %v922_v39 = vmax.f32 %v890_v29, 0.0  ;;  %v872_v40 = vadd.f32 %v1417_v26, %v833_v30  ;;  %v627_v42 = vpop.f32.mrf.mxu0  ;;  %v691_v43 = vpop.f32.mrf.mxu1 }
 0x100   : > { %v888_v41 = vadd.f32 %v1417_v26, %v849_v31  ;;  %967 = vst [vmem:[%s1431_s21 + $0x20] sm:$0xff] %v935_v34  ;;  %v877_v44 = vadd.f32 %v1417_v26, %v838_v36  ;;  %v893_v45 = vadd.f32 %v1417_v26, %v854_v37  ;;  %v836_v46 = vmul.f32 %v1412_v24, %v627_v42 }
 0x101   : > { %983 = vst [vmem:[%s1431_s21 + $0xa0] sm:$0xff] %v951_v35  ;;  %v852_v47 = vmul.f32 %v1412_v24, %v691_v43  ;;  %v938_v48 = vmin.f32 %v906_v38, 6.0  ;;  %v954_v49 = vmin.f32 %v922_v39, 6.0  ;;  %v904_v50 = vmax.f32 %v872_v40, 0.0  ;;  %v1209_v52 = vpop.f32.mrf.mxu0  ;;  %v1225_v53 = vpop.f32.mrf.mxu1 }
 0x102   : > { %v920_v51 = vmax.f32 %v888_v41, 0.0  ;;  %v909_v54 = vmax.f32 %v877_v44, 0.0  ;;  %v925_v55 = vmax.f32 %v893_v45, 0.0  ;;  %v875_v56 = vadd.f32 %v1417_v26, %v836_v46 }
 0x103   : > { %v891_v57 = vadd.f32 %v1417_v26, %v852_v47  ;;  %970 = vst [vmem:[%s1431_s21 + $0x38] sm:$0xff] %v938_v48  ;;  %986 = vst [vmem:[%s1431_s21 + $0xb8] sm:$0xff] %v954_v49  ;;  %v936_v58 = vmin.f32 %v904_v50, 6.0  ;;  %v839_v60 = vmul.f32 %v1209_v52, %v1412_v24  ;;  %v855_v61 = vmul.f32 %v1225_v53, %v1412_v24  ;;  %v630_v62 = vpop.f32.mrf.mxu0  ;;  %v694_v63 = vpop.f32.mrf.mxu1 }
 0x104   : > { %v952_v59 = vmin.f32 %v920_v51, 6.0  ;;  %v941_v0 = vmin.f32 %v909_v54, 6.0  ;;  %v957_v1 = vmin.f32 %v925_v55, 6.0  ;;  %v907_v2 = vmax.f32 %v875_v56, 0.0 }
 0x105   : > { %v923_v3 = vmax.f32 %v891_v57, 0.0  ;;  %968 = vst [vmem:[%s1431_s21 + $0x28] sm:$0xff] %v936_v58  ;;  %v878_v4 = vadd.f32 %v1417_v26, %v839_v60  ;;  %v894_v5 = vadd.f32 %v1417_v26, %v855_v61  ;;  %v837_v6 = vmul.f32 %v1412_v24, %v630_v62  ;;  %v1212_v8 = vpop.f32.mrf.mxu0  ;;  %v1228_v9 = vpop.f32.mrf.mxu1 }
 0x106   : > { %984 = vst [vmem:[%s1431_s21 + $0xa8] sm:$0xff] %v952_v59  ;;  %v853_v7 = vmul.f32 %v1412_v24, %v694_v63  ;;  %973 = vst [vmem:[%s1431_s21 + $0x50] sm:$0xff] %v941_v0  ;;  %v939_v10 = vmin.f32 %v907_v2, 6.0  ;;  %v842_v12 = vmul.f32 %v1212_v8, %v1412_v24  ;;  %v858_v13 = vmul.f32 %v1228_v9, %v1412_v24 }
 0x107   : > { %989 = vst [vmem:[%s1431_s21 + $0xd0] sm:$0xff] %v957_v1  ;;  %v955_v11 = vmin.f32 %v923_v3, 6.0  ;;  %v910_v14 = vmax.f32 %v878_v4, 0.0  ;;  %v926_v15 = vmax.f32 %v894_v5, 0.0  ;;  %v876_v16 = vadd.f32 %v1417_v26, %v837_v6  ;;  %v643_v18 = vpop.f32.mrf.mxu0  ;;  %v707_v19 = vpop.f32.mrf.mxu1 }
 0x108   : > { %v892_v17 = vadd.f32 %v1417_v26, %v853_v7  ;;  %971 = vst [vmem:[%s1431_s21 + $0x40] sm:$0xff] %v939_v10  ;;  %v881_v20 = vadd.f32 %v1417_v26, %v842_v12  ;;  %v897_v21 = vadd.f32 %v1417_v26, %v858_v13  ;;  %v840_v22 = vmul.f32 %v1412_v24, %v643_v18 }
 0x109   : > { %987 = vst [vmem:[%s1431_s21 + $0xc0] sm:$0xff] %v955_v11  ;;  %v856_v23 = vmul.f32 %v1412_v24, %v707_v19  ;;  %v942_v25 = vmin.f32 %v910_v14, 6.0  ;;  %v958_v27 = vmin.f32 %v926_v15, 6.0  ;;  %v908_v28 = vmax.f32 %v876_v16, 0.0  ;;  %v1213_v30 = vpop.f32.mrf.mxu0  ;;  %v1229_v31 = vpop.f32.mrf.mxu1 }
 0x10a   : > { %v924_v29 = vmax.f32 %v892_v17, 0.0  ;;  %v913_v32 = vmax.f32 %v881_v20, 0.0  ;;  %v929_v33 = vmax.f32 %v897_v21, 0.0  ;;  %v879_v34 = vadd.f32 %v1417_v26, %v840_v22 }
 0x10b   : > { %v895_v35 = vadd.f32 %v1417_v26, %v856_v23  ;;  %974 = vst [vmem:[%s1431_s21 + $0x58] sm:$0xff] %v942_v25  ;;  %990 = vst [vmem:[%s1431_s21 + $0xd8] sm:$0xff] %v958_v27  ;;  %v940_v36 = vmin.f32 %v908_v28, 6.0  ;;  %v843_v38 = vmul.f32 %v1213_v30, %v1412_v24  ;;  %v859_v39 = vmul.f32 %v1229_v31, %v1412_v24  ;;  %v646_v40 = vpop.f32.mrf.mxu0  ;;  %v710_v41 = vpop.f32.mrf.mxu1 }
 0x10c   : > { %v956_v37 = vmin.f32 %v924_v29, 6.0  ;;  %v945_v42 = vmin.f32 %v913_v32, 6.0  ;;  %v961_v43 = vmin.f32 %v929_v33, 6.0  ;;  %v911_v44 = vmax.f32 %v879_v34, 0.0 }
 0x10d   : > { %v927_v45 = vmax.f32 %v895_v35, 0.0  ;;  %972 = vst [vmem:[%s1431_s21 + $0x48] sm:$0xff] %v940_v36  ;;  %v882_v46 = vadd.f32 %v1417_v26, %v843_v38  ;;  %v898_v47 = vadd.f32 %v1417_v26, %v859_v39  ;;  %v841_v48 = vmul.f32 %v1412_v24, %v646_v40 }
 0x10e   : > { %988 = vst [vmem:[%s1431_s21 + $0xc8] sm:$0xff] %v956_v37  ;;  %v857_v49 = vmul.f32 %v1412_v24, %v710_v41  ;;  %977 = vst [vmem:[%s1431_s21 + $0x70] sm:$0xff] %v945_v42  ;;  %v943_v50 = vmin.f32 %v911_v44, 6.0 }
 0x10f   : > { %993 = vst [vmem:[%s1431_s21 + $0xf0] sm:$0xff] %v961_v43  ;;  %v959_v51 = vmin.f32 %v927_v45, 6.0  ;;  %v914_v52 = vmax.f32 %v882_v46, 0.0  ;;  %v930_v53 = vmax.f32 %v898_v47, 0.0  ;;  %v880_v54 = vadd.f32 %v1417_v26, %v841_v48 }
 0x110   : > { %v896_v55 = vadd.f32 %v1417_v26, %v857_v49  ;;  %975 = vst [vmem:[%s1431_s21 + $0x60] sm:$0xff] %v943_v50 }
 0x111   : > { %991 = vst [vmem:[%s1431_s21 + $0xe0] sm:$0xff] %v959_v51  ;;  %v946_v56 = vmin.f32 %v914_v52, 6.0  ;;  %v962_v57 = vmin.f32 %v930_v53, 6.0  ;;  %v912_v58 = vmax.f32 %v880_v54, 0.0 }
 0x112   : > { %v928_v59 = vmax.f32 %v896_v55, 0.0 }
 0x113   : > { %978 = vst [vmem:[%s1431_s21 + $0x78] sm:$0xff] %v946_v56  ;;  %994 = vst [vmem:[%s1431_s21 + $0xf8] sm:$0xff] %v962_v57  ;;  %v944_v24 = vmin.f32 %v912_v58, 6.0 }
 0x114   : > { %v960_v60 = vmin.f32 %v928_v59, 6.0 }
 0x115   : > { %976 = vst [vmem:[%s1431_s21 + $0x68] sm:$0xff] %v944_v24 }
 0x116   : > { %992 = vst [vmem:[%s1431_s21 + $0xe8] sm:$0xff] %v960_v60 }
 0x117 PF: > { %s14_s17 = sadd.s32 1, %s1316_s17   ;;  %s1535_s15 = smov %s1312_s16 }
 0x118   : > { %p11_p5 = scmp.ge.s32.totalorder %s14_s17, 4   ;;  %s1536_s16 = smov %s1538_s18 }
 0x11a   :  { %13 = sbr.rel (!%p11_p5) target bundleno = 2 (0x2), region = 83 }

// kernel: segmentation_custom_forward.14
= control target key start
LH: loop header
LB: loop body
LE: loop exit
PB: predicated region body
PF: predicated region fallthrough
CT: control target
= control target key end

     0   :  { %s889_s1 = inlined_call_operand.vmem [shape: bf16[256,128], index: 1, kind: input, shape index: {}]   ;;  %s890_s0 = inlined_call_operand.vmem [shape: bf16[128,256], index: 0, kind: input, shape index: {}]   ;;  %s891_s2 = inlined_call_operand.vmem [shape: f32[1,128], index: 2, kind: input, shape index: {}]   ;;  %s892_s3 = inlined_call_operand.vmem [shape: f32[1,128], index: 3, kind: input, shape index: {}]   ;;  %s893_s4 = inlined_call_operand.vmem [shape: f32[128,128], index: 4, kind: output, shape index: {}]  }
   0x1   :  { %v638_v0 = vld [vmem:[%s889_s1 + $0x78] sm:$0xff]   ;;  %v640_v2 = vld [vmem:[%s889_s1 + $0x70] sm:$0xff]   ;;  %v642_v4 = vld [vmem:[%s889_s1 + $0x68] sm:$0xff]  }
   0x2   :  { %v639_v1 = vld [vmem:[%s889_s1 + $0x38] sm:$0xff]   ;;  %558 = vmatprep.subr.bf16.mxu0 %v638_v0  ;;  %622 = vmatprep.subr.bf16.mxu1 %v638_v0  ;;  %v641_v3 = vld [vmem:[%s889_s1 + $0x30] sm:$0xff]   ;;  %v643_v5 = vld [vmem:[%s889_s1 + $0x28] sm:$0xff]  }
   0x3   :  { %559 = vmatpush3.bf16.msra.mxu0 %v639_v1  ;;  %630 = vmatpush3.bf16.msra.mxu1 %v639_v1  ;;  %v644_v6 = vld [vmem:[%s889_s1 + $0x60] sm:$0xff]   ;;  %v646_v8 = vld [vmem:[%s889_s1 + $0x58] sm:$0xff]   ;;  %v648_v10 = vld [vmem:[%s889_s1 + $0x50] sm:$0xff]  }
   0x4   :  { %560 = vmatprep.subr.bf16.mxu0 %v640_v2  ;;  %623 = vmatprep.subr.bf16.mxu1 %v640_v2  ;;  %v645_v7 = vld [vmem:[%s889_s1 + $0x20] sm:$0xff]   ;;  %v647_v9 = vld [vmem:[%s889_s1 + $0x18] sm:$0xff]   ;;  %v649_v13 = vld [vmem:[%s889_s1 + $0x10] sm:$0xff]  }
   0x5   :  { %v656_v11 = vld [vmem:[%s890_s0 + $0x4] ss:$8 sps:$4 sm:$0xff]   ;;  %v654_v18 = vld [vmem:[%s890_s0] ss:$8 sps:$4 sm:$0xff]   ;;  %v660_v20 = vld [vmem:[%s890_s0 + $0x14] ss:$8 sps:$4 sm:$0xff]  }
   0x6   :  { %v659_v12 = vld [vmem:[%s890_s0 + $0x44] ss:$8 sps:$4 sm:$0xff]   ;;  %310 = vmatprep.mubr.bf16.mxu0 %v656_v11  ;;  %v657_v19 = vld [vmem:[%s890_s0 + $0x40] ss:$8 sps:$4 sm:$0xff]   ;;  %v662_v21 = vld [vmem:[%s890_s0 + $0x54] ss:$8 sps:$4 sm:$0xff]  }
   0x7   :  { %561 = vmatpush3.bf16.msra.mxu0 %v641_v3  ;;  %631 = vmatpush3.bf16.msra.mxu1 %v641_v3  ;;  %v650_v14 = vld [vmem:[%s889_s1 + $0x48] sm:$0xff]   ;;  %v652_v16 = vld [vmem:[%s889_s1 + $0x40] sm:$0xff]   ;;  %v664_v22 = vld [vmem:[%s890_s0 + $0x10] ss:$8 sps:$4 sm:$0xff]  }
   0x8   :  { %562 = vmatprep.subr.bf16.mxu0 %v642_v4  ;;  %624 = vmatprep.subr.bf16.mxu1 %v642_v4  ;;  %v651_v15 = vld [vmem:[%s889_s1 + $0x8] sm:$0xff]   ;;  %v653_v17 = vld [vmem:[%s889_s1] sm:$0xff]   ;;  %v665_v23 = vld [vmem:[%s890_s0 + $0x50] ss:$8 sps:$4 sm:$0xff]  }
   0x9   :  { %342 = vmatprep.mubr.bf16.mxu1 %v659_v12  ;;  %v666_v24 = vld [vmem:[%s890_s0 + $0x24] ss:$8 sps:$4 sm:$0xff]   ;;  %v670_v26 = vld [vmem:[%s890_s0 + $0x20] ss:$8 sps:$4 sm:$0xff]   ;;  %v672_v28 = vld [vmem:[%s890_s0 + $0x34] ss:$8 sps:$4 sm:$0xff]  }
   0xa   :  { %v668_v25 = vld [vmem:[%s890_s0 + $0x64] ss:$8 sps:$4 sm:$0xff]   ;;  %v671_v27 = vld [vmem:[%s890_s0 + $0x60] ss:$8 sps:$4 sm:$0xff]   ;;  %v674_v29 = vld [vmem:[%s890_s0 + $0x74] ss:$8 sps:$4 sm:$0xff]  }
   0xb   :  { %563 = vmatpush3.bf16.msra.mxu0 %v643_v5  ;;  %632 = vmatpush3.bf16.msra.mxu1 %v643_v5  ;;  %v676_v30 = vld [vmem:[%s890_s0 + $0x30] ss:$8 sps:$4 sm:$0xff]   ;;  %v802_v35 = vld [vmem:[%s891_s2] ss:$0 sm:$0xff] }
   0xc   :  { %564 = vmatprep.subr.bf16.mxu0 %v644_v6  ;;  %625 = vmatprep.subr.bf16.mxu1 %v644_v6  ;;  %v677_v31 = vld [vmem:[%s890_s0 + $0x70] ss:$8 sps:$4 sm:$0xff]   ;;  %v807_v39 = vld [vmem:[%s892_s3] ss:$0 sm:$0xff] }
   0xf   :  { %565 = vmatpush3.bf16.msra.mxu0 %v645_v7  ;;  %633 = vmatpush3.bf16.msra.mxu1 %v645_v7 }
  0x10   :  { %566 = vmatprep.subr.bf16.mxu0 %v646_v8  ;;  %626 = vmatprep.subr.bf16.mxu1 %v646_v8 }
  0x13   :  { %567 = vmatpush3.bf16.msra.mxu0 %v647_v9  ;;  %634 = vmatpush3.bf16.msra.mxu1 %v647_v9 }
  0x14   :  { %568 = vmatprep.subr.bf16.mxu0 %v648_v10  ;;  %627 = vmatprep.subr.bf16.mxu1 %v648_v10 }
  0x17   :  { %569 = vmatpush3.bf16.msra.mxu0 %v649_v13  ;;  %635 = vmatpush3.bf16.msra.mxu1 %v649_v13 }
  0x18   :  { %570 = vmatprep.subr.bf16.mxu0 %v650_v14  ;;  %628 = vmatprep.subr.bf16.mxu1 %v650_v14 }
  0x1b   :  { %571 = vmatpush3.bf16.msra.mxu0 %v651_v15  ;;  %636 = vmatpush3.bf16.msra.mxu1 %v651_v15 }
  0x1c   :  { %572 = vmatprep.subr.bf16.mxu0 %v652_v16  ;;  %629 = vmatprep.subr.bf16.mxu1 %v652_v16 }
  0x1f   :  { %573 = vmatpush3.bf16.msra.mxu0 %v653_v17  ;;  %637 = vmatpush3.bf16.msra.mxu1 %v653_v17 }
  0x22   :  { %311 = vmatmul.mubr.bf16.vlgmr.msra.gmra.mxu0 %v654_v18  ;;  %343 = vmatmul.mubr.bf16.vlgmr.msra.gmra.mxu1 %v657_v19 }
  0x23   :  { %318 = vmatprep.mubr.bf16.mxu0 %v660_v20  ;;  %350 = vmatprep.mubr.bf16.mxu1 %v662_v21 }
  0x2a   :  { %319 = vmatmul.mubr.bf16.gmra.mxu0 %v664_v22  ;;  %351 = vmatmul.mubr.bf16.gmra.mxu1 %v665_v23 }
  0x2b   :  { %326 = vmatprep.mubr.bf16.mxu0 %v666_v24  ;;  %358 = vmatprep.mubr.bf16.mxu1 %v668_v25 }
  0x32   :  { %327 = vmatmul.mubr.bf16.gmra.mxu0 %v670_v26  ;;  %359 = vmatmul.mubr.bf16.gmra.mxu1 %v671_v27 }
  0x33   :  { %334 = vmatprep.mubr.bf16.mxu0 %v672_v28  ;;  %366 = vmatprep.mubr.bf16.mxu1 %v674_v29 }
  0x3a   :  { %335 = vmatmul.mubr.bf16.gmra.mxu0 %v676_v30  ;;  %367 = vmatmul.mubr.bf16.gmra.mxu1 %v677_v31 }
  0xe2   :  { %v574_v32 = vpop.f32.mrf.mxu0  ;;  %v598_v33 = vpop.f32.mrf.mxu1 }
  0xe4   :  { %v575_v34 = vpop.f32.mrf.mxu0  ;;  %v599_v36 = vpop.f32.mrf.mxu1 }
  0xe5   :  { %v576_v37 = vadd.f32 %v575_v34, %v574_v32  ;;  %v600_v38 = vadd.f32 %v599_v36, %v598_v33 }
  0xe6   :  { %v577_v40 = vpop.f32.mrf.mxu0  ;;  %v601_v41 = vpop.f32.mrf.mxu1 }
  0xe7   :  { %v433_v42 = vmul.f32 %v576_v37, %v802_v35  ;;  %v441_v43 = vmul.f32 %v600_v38, %v802_v35 }
  0xe8   :  { %v578_v44 = vpop.f32.mrf.mxu0  ;;  %v602_v45 = vpop.f32.mrf.mxu1 }
  0xe9   :  { %v456_v46 = vadd.f32 %v807_v39, %v433_v42  ;;  %v464_v47 = vadd.f32 %v807_v39, %v441_v43  ;;  %v579_v48 = vadd.f32 %v578_v44, %v577_v40  ;;  %v603_v49 = vadd.f32 %v602_v45, %v601_v41 }
  0xea   :  { %v580_v50 = vpop.f32.mrf.mxu0  ;;  %v604_v51 = vpop.f32.mrf.mxu1 }
  0xeb   :  { %v472_v52 = vmax.f32 %v456_v46, 0.0  ;;  %v480_v53 = vmax.f32 %v464_v47, 0.0  ;;  %v434_v54 = vmul.f32 %v579_v48, %v802_v35  ;;  %v442_v55 = vmul.f32 %v603_v49, %v802_v35 }
  0xec   :  { %v581_v56 = vpop.f32.mrf.mxu0  ;;  %v605_v57 = vpop.f32.mrf.mxu1 }
  0xed   :  { %v488_v58 = vmin.f32 %v472_v52, 6.0  ;;  %v496_v59 = vmin.f32 %v480_v53, 6.0  ;;  %v457_v60 = vadd.f32 %v807_v39, %v434_v54  ;;  %v465_v61 = vadd.f32 %v807_v39, %v442_v55 }
  0xee   :  { %v582_v62 = vadd.f32 %v581_v56, %v580_v50  ;;  %v606_v63 = vadd.f32 %v605_v57, %v604_v51  ;;  %v583_v0 = vpop.f32.mrf.mxu0  ;;  %v607_v1 = vpop.f32.mrf.mxu1 }
  0xef   :  { %504 = vst [vmem:[%s893_s4] sm:$0xff] %v488_v58  ;;  %512 = vst [vmem:[%s893_s4 + $0x40] sm:$0xff] %v496_v59  ;;  %v473_v2 = vmax.f32 %v457_v60, 0.0  ;;  %v481_v3 = vmax.f32 %v465_v61, 0.0 }
  0xf0   :  { %v435_v4 = vmul.f32 %v582_v62, %v802_v35  ;;  %v443_v5 = vmul.f32 %v606_v63, %v802_v35  ;;  %v584_v6 = vpop.f32.mrf.mxu0  ;;  %v608_v7 = vpop.f32.mrf.mxu1 }
  0xf1   :  { %v489_v8 = vmin.f32 %v473_v2, 6.0  ;;  %v497_v9 = vmin.f32 %v481_v3, 6.0  ;;  %v585_v10 = vadd.f32 %v584_v6, %v583_v0  ;;  %v609_v11 = vadd.f32 %v608_v7, %v607_v1 }
  0xf2   :  { %v458_v12 = vadd.f32 %v807_v39, %v435_v4  ;;  %v466_v13 = vadd.f32 %v807_v39, %v443_v5  ;;  %v586_v14 = vpop.f32.mrf.mxu0  ;;  %v610_v15 = vpop.f32.mrf.mxu1 }
  0xf3   :  { %505 = vst [vmem:[%s893_s4 + $0x8] sm:$0xff] %v489_v8  ;;  %513 = vst [vmem:[%s893_s4 + $0x48] sm:$0xff] %v497_v9  ;;  %v436_v16 = vmul.f32 %v585_v10, %v802_v35  ;;  %v444_v17 = vmul.f32 %v609_v11, %v802_v35 }
  0xf4   :  { %v474_v18 = vmax.f32 %v458_v12, 0.0  ;;  %v482_v19 = vmax.f32 %v466_v13, 0.0  ;;  %v587_v20 = vpop.f32.mrf.mxu0  ;;  %v611_v21 = vpop.f32.mrf.mxu1 }
  0xf5   :  { %v459_v22 = vadd.f32 %v807_v39, %v436_v16  ;;  %v467_v23 = vadd.f32 %v807_v39, %v444_v17  ;;  %v588_v24 = vadd.f32 %v587_v20, %v586_v14  ;;  %v612_v25 = vadd.f32 %v611_v21, %v610_v15 }
  0xf6   :  { %v490_v26 = vmin.f32 %v474_v18, 6.0  ;;  %v498_v27 = vmin.f32 %v482_v19, 6.0  ;;  %v589_v28 = vpop.f32.mrf.mxu0  ;;  %v613_v29 = vpop.f32.mrf.mxu1 }
  0xf7   :  { %v475_v30 = vmax.f32 %v459_v22, 0.0  ;;  %v483_v31 = vmax.f32 %v467_v23, 0.0  ;;  %v437_v32 = vmul.f32 %v588_v24, %v802_v35  ;;  %v445_v33 = vmul.f32 %v612_v25, %v802_v35 }
  0xf8   :  { %506 = vst [vmem:[%s893_s4 + $0x10] sm:$0xff] %v490_v26  ;;  %514 = vst [vmem:[%s893_s4 + $0x50] sm:$0xff] %v498_v27  ;;  %v590_v34 = vpop.f32.mrf.mxu0  ;;  %v614_v36 = vpop.f32.mrf.mxu1 }
  0xf9   :  { %v491_v37 = vmin.f32 %v475_v30, 6.0  ;;  %v499_v38 = vmin.f32 %v483_v31, 6.0  ;;  %v460_v40 = vadd.f32 %v807_v39, %v437_v32  ;;  %v468_v41 = vadd.f32 %v807_v39, %v445_v33 }
  0xfa   :  { %v591_v42 = vadd.f32 %v590_v34, %v589_v28  ;;  %v615_v43 = vadd.f32 %v614_v36, %v613_v29  ;;  %v592_v44 = vpop.f32.mrf.mxu0  ;;  %v616_v45 = vpop.f32.mrf.mxu1 }
  0xfb   :  { %507 = vst [vmem:[%s893_s4 + $0x18] sm:$0xff] %v491_v37  ;;  %515 = vst [vmem:[%s893_s4 + $0x58] sm:$0xff] %v499_v38  ;;  %v476_v46 = vmax.f32 %v460_v40, 0.0  ;;  %v484_v47 = vmax.f32 %v468_v41, 0.0 }
  0xfc   :  { %v438_v48 = vmul.f32 %v591_v42, %v802_v35  ;;  %v446_v49 = vmul.f32 %v615_v43, %v802_v35  ;;  %v593_v50 = vpop.f32.mrf.mxu0  ;;  %v617_v51 = vpop.f32.mrf.mxu1 }
  0xfd   :  { %v492_v52 = vmin.f32 %v476_v46, 6.0  ;;  %v500_v53 = vmin.f32 %v484_v47, 6.0  ;;  %v594_v54 = vadd.f32 %v593_v50, %v592_v44  ;;  %v618_v55 = vadd.f32 %v617_v51, %v616_v45 }
  0xfe   :  { %v461_v56 = vadd.f32 %v807_v39, %v438_v48  ;;  %v469_v57 = vadd.f32 %v807_v39, %v446_v49  ;;  %v595_v58 = vpop.f32.mrf.mxu0  ;;  %v619_v59 = vpop.f32.mrf.mxu1 }
  0xff   :  { %508 = vst [vmem:[%s893_s4 + $0x20] sm:$0xff] %v492_v52  ;;  %516 = vst [vmem:[%s893_s4 + $0x60] sm:$0xff] %v500_v53  ;;  %v439_v60 = vmul.f32 %v594_v54, %v802_v35  ;;  %v447_v61 = vmul.f32 %v618_v55, %v802_v35 }
 0x100   :  { %v477_v62 = vmax.f32 %v461_v56, 0.0  ;;  %v485_v63 = vmax.f32 %v469_v57, 0.0  ;;  %v596_v0 = vpop.f32.mrf.mxu0  ;;  %v620_v1 = vpop.f32.mrf.mxu1 }
 0x101   :  { %v462_v2 = vadd.f32 %v807_v39, %v439_v60  ;;  %v470_v3 = vadd.f32 %v807_v39, %v447_v61  ;;  %v597_v4 = vadd.f32 %v596_v0, %v595_v58  ;;  %v621_v5 = vadd.f32 %v620_v1, %v619_v59 }
 0x102   :  { %v493_v6 = vmin.f32 %v477_v62, 6.0  ;;  %v501_v7 = vmin.f32 %v485_v63, 6.0 }
 0x103   :  { %v478_v8 = vmax.f32 %v462_v2, 0.0  ;;  %v486_v9 = vmax.f32 %v470_v3, 0.0  ;;  %v440_v10 = vmul.f32 %v597_v4, %v802_v35  ;;  %v448_v11 = vmul.f32 %v621_v5, %v802_v35 }
 0x104   :  { %509 = vst [vmem:[%s893_s4 + $0x28] sm:$0xff] %v493_v6  ;;  %517 = vst [vmem:[%s893_s4 + $0x68] sm:$0xff] %v501_v7 }
 0x105   :  { %v494_v12 = vmin.f32 %v478_v8, 6.0  ;;  %v502_v13 = vmin.f32 %v486_v9, 6.0  ;;  %v463_v14 = vadd.f32 %v807_v39, %v440_v10  ;;  %v471_v15 = vadd.f32 %v807_v39, %v448_v11 }
 0x107   :  { %510 = vst [vmem:[%s893_s4 + $0x30] sm:$0xff] %v494_v12  ;;  %518 = vst [vmem:[%s893_s4 + $0x70] sm:$0xff] %v502_v13  ;;  %v479_v35 = vmax.f32 %v463_v14, 0.0  ;;  %v487_v16 = vmax.f32 %v471_v15, 0.0 }
 0x109   :  { %v495_v17 = vmin.f32 %v479_v35, 6.0  ;;  %v503_v18 = vmin.f32 %v487_v16, 6.0 }
 0x10b   :  { %511 = vst [vmem:[%s893_s4 + $0x38] sm:$0xff] %v495_v17  ;;  %519 = vst [vmem:[%s893_s4 + $0x78] sm:$0xff] %v503_v18 }

// kernel: segmentation_custom_forward.23
= control target key start
LH: loop header
LB: loop body
LE: loop exit
PB: predicated region body
PF: predicated region fallthrough
CT: control target
= control target key end

     0   :  { %s689_s1 = inlined_call_operand.vmem [shape: bf16[128,128], index: 1, kind: input, shape index: {}]   ;;  %s690_s0 = inlined_call_operand.vmem [shape: bf16[128,128], index: 0, kind: input, shape index: {}]   ;;  %s691_s2 = inlined_call_operand.vmem [shape: f32[1,128], index: 2, kind: input, shape index: {}]   ;;  %s692_s3 = inlined_call_operand.vmem [shape: f32[1,128], index: 3, kind: input, shape index: {}]   ;;  %s693_s4 = inlined_call_operand.vmem [shape: f32[128,128], index: 4, kind: output, shape index: {}]  }
   0x1   :  { %v510_v0 = vld [vmem:[%s689_s1 + $0x38] sm:$0xff]   ;;  %v511_v1 = vld [vmem:[%s689_s1 + $0x30] sm:$0xff]   ;;  %v512_v2 = vld [vmem:[%s689_s1 + $0x28] sm:$0xff]  }
   0x2   :  { %462 = vmatprep.subr.bf16.mxu0 %v510_v0  ;;  %494 = vmatprep.subr.bf16.mxu1 %v510_v0  ;;  %v513_v3 = vld [vmem:[%s689_s1 + $0x20] sm:$0xff]   ;;  %v514_v6 = vld [vmem:[%s689_s1 + $0x18] sm:$0xff]   ;;  %v515_v7 = vld [vmem:[%s689_s1 + $0x10] sm:$0xff]  }
   0x3   :  { %463 = vmatpush3.bf16.msra.mxu0 %v510_v0  ;;  %502 = vmatpush3.bf16.msra.mxu1 %v510_v0  ;;  %v518_v4 = vld [vmem:[%s690_s0] sm:$0xff]   ;;  %v516_v8 = vld [vmem:[%s689_s1 + $0x8] sm:$0xff]   ;;  %v522_v12 = vld [vmem:[%s690_s0 + $0x10] sm:$0xff]  }
   0x4   :  { %464 = vmatprep.subr.bf16.mxu0 %v511_v1  ;;  %495 = vmatprep.subr.bf16.mxu1 %v511_v1  ;;  %v519_v5 = vld [vmem:[%s690_s0 + $0x20] sm:$0xff]   ;;  %v520_v10 = vld [vmem:[%s690_s0 + $0x8] sm:$0xff]   ;;  %v523_v13 = vld [vmem:[%s690_s0 + $0x30] sm:$0xff]  }
   0x5   :  { %478 = vmatprep.mubr.bf16.mxu0 %v518_v4  ;;  %486 = vmatprep.mubr.bf16.mxu1 %v519_v5  ;;  %v517_v9 = vld [vmem:[%s689_s1] sm:$0xff]   ;;  %v521_v11 = vld [vmem:[%s690_s0 + $0x28] sm:$0xff]   ;;  %v524_v14 = vld [vmem:[%s690_s0 + $0x18] sm:$0xff]  }
   0x6   :  { %v525_v15 = vld [vmem:[%s690_s0 + $0x38] sm:$0xff]   ;;  %v602_v16 = vld [vmem:[%s691_s2] ss:$0 sm:$0xff] }
   0x7   :  { %465 = vmatpush3.bf16.msra.mxu0 %v511_v1  ;;  %503 = vmatpush3.bf16.msra.mxu1 %v511_v1  ;;  %v607_v18 = vld [vmem:[%s692_s3] ss:$0 sm:$0xff] }
   0x8   :  { %466 = vmatprep.subr.bf16.mxu0 %v512_v2  ;;  %496 = vmatprep.subr.bf16.mxu1 %v512_v2 }
   0xb   :  { %467 = vmatpush3.bf16.msra.mxu0 %v512_v2  ;;  %504 = vmatpush3.bf16.msra.mxu1 %v512_v2 }
   0xc   :  { %468 = vmatprep.subr.bf16.mxu0 %v513_v3  ;;  %497 = vmatprep.subr.bf16.mxu1 %v513_v3 }
   0xf   :  { %469 = vmatpush3.bf16.msra.mxu0 %v513_v3  ;;  %505 = vmatpush3.bf16.msra.mxu1 %v513_v3 }
  0x10   :  { %470 = vmatprep.subr.bf16.mxu0 %v514_v6  ;;  %498 = vmatprep.subr.bf16.mxu1 %v514_v6 }
  0x13   :  { %471 = vmatpush3.bf16.msra.mxu0 %v514_v6  ;;  %506 = vmatpush3.bf16.msra.mxu1 %v514_v6 }
  0x14   :  { %472 = vmatprep.subr.bf16.mxu0 %v515_v7  ;;  %499 = vmatprep.subr.bf16.mxu1 %v515_v7 }
  0x17   :  { %473 = vmatpush3.bf16.msra.mxu0 %v515_v7  ;;  %507 = vmatpush3.bf16.msra.mxu1 %v515_v7 }
  0x18   :  { %474 = vmatprep.subr.bf16.mxu0 %v516_v8  ;;  %500 = vmatprep.subr.bf16.mxu1 %v516_v8 }
  0x1b   :  { %475 = vmatpush3.bf16.msra.mxu0 %v516_v8  ;;  %508 = vmatpush3.bf16.msra.mxu1 %v516_v8 }
  0x1c   :  { %476 = vmatprep.subr.bf16.mxu0 %v517_v9  ;;  %501 = vmatprep.subr.bf16.mxu1 %v517_v9 }
  0x1f   :  { %477 = vmatpush3.bf16.msra.mxu0 %v517_v9  ;;  %509 = vmatpush3.bf16.msra.mxu1 %v517_v9 }
  0x22   :  { %479 = vmatmul.mubr.bf16.vlgmr.msra.gmra.mxu0 %v520_v10  ;;  %487 = vmatmul.mubr.bf16.vlgmr.msra.gmra.mxu1 %v521_v11 }
  0x23   :  { %482 = vmatprep.mubr.bf16.mxu0 %v522_v12  ;;  %490 = vmatprep.mubr.bf16.mxu1 %v523_v13 }
  0x2a   :  { %483 = vmatmul.mubr.bf16.gmra.mxu0 %v524_v14  ;;  %491 = vmatmul.mubr.bf16.gmra.mxu1 %v525_v15 }
  0xe2   :  { %v480_v17 = vpop.f32.mrf.mxu0  ;;  %v488_v19 = vpop.f32.mrf.mxu1 }
  0xe3   :  { %v339_v20 = vmul.f32 %v480_v17, %v602_v16  ;;  %v347_v21 = vmul.f32 %v488_v19, %v602_v16 }
  0xe4   :  { %v216_v22 = vpop.f32.mrf.mxu0  ;;  %v248_v23 = vpop.f32.mrf.mxu1 }
  0xe5   :  { %v362_v24 = vadd.f32 %v607_v18, %v339_v20  ;;  %v370_v25 = vadd.f32 %v607_v18, %v347_v21  ;;  %v337_v26 = vmul.f32 %v602_v16, %v216_v22  ;;  %v345_v27 = vmul.f32 %v602_v16, %v248_v23 }
  0xe6   :  { %v481_v28 = vpop.f32.mrf.mxu0  ;;  %v489_v29 = vpop.f32.mrf.mxu1 }
  0xe7   :  { %v378_v30 = vmax.f32 %v362_v24, 0.0  ;;  %v386_v31 = vmax.f32 %v370_v25, 0.0  ;;  %v360_v32 = vadd.f32 %v607_v18, %v337_v26  ;;  %v368_v33 = vadd.f32 %v607_v18, %v345_v27 }
  0xe8   :  { %v340_v34 = vmul.f32 %v481_v28, %v602_v16  ;;  %v348_v35 = vmul.f32 %v489_v29, %v602_v16  ;;  %v219_v36 = vpop.f32.mrf.mxu0  ;;  %v251_v37 = vpop.f32.mrf.mxu1 }
  0xe9   :  { %v394_v38 = vmin.f32 %v378_v30, 6.0  ;;  %v402_v39 = vmin.f32 %v386_v31, 6.0  ;;  %v376_v40 = vmax.f32 %v360_v32, 0.0  ;;  %v384_v41 = vmax.f32 %v368_v33, 0.0 }
  0xea   :  { %v363_v42 = vadd.f32 %v607_v18, %v340_v34  ;;  %v371_v43 = vadd.f32 %v607_v18, %v348_v35  ;;  %v338_v44 = vmul.f32 %v602_v16, %v219_v36  ;;  %v346_v45 = vmul.f32 %v602_v16, %v251_v37  ;;  %v484_v46 = vpop.f32.mrf.mxu0  ;;  %v492_v47 = vpop.f32.mrf.mxu1 }
  0xeb   :  { %410 = vst [vmem:[%s693_s4 + $0x10] sm:$0xff] %v394_v38  ;;  %418 = vst [vmem:[%s693_s4 + $0x50] sm:$0xff] %v402_v39  ;;  %v392_v48 = vmin.f32 %v376_v40, 6.0  ;;  %v400_v49 = vmin.f32 %v384_v41, 6.0  ;;  %v343_v50 = vmul.f32 %v484_v46, %v602_v16  ;;  %v351_v51 = vmul.f32 %v492_v47, %v602_v16 }
  0xec   :  { %v379_v52 = vmax.f32 %v363_v42, 0.0  ;;  %v387_v53 = vmax.f32 %v371_v43, 0.0  ;;  %v361_v54 = vadd.f32 %v607_v18, %v338_v44  ;;  %v369_v55 = vadd.f32 %v607_v18, %v346_v45  ;;  %v232_v56 = vpop.f32.mrf.mxu0  ;;  %v264_v57 = vpop.f32.mrf.mxu1 }
  0xed   :  { %408 = vst [vmem:[%s693_s4] sm:$0xff] %v392_v48  ;;  %416 = vst [vmem:[%s693_s4 + $0x40] sm:$0xff] %v400_v49  ;;  %v366_v58 = vadd.f32 %v607_v18, %v343_v50  ;;  %v374_v59 = vadd.f32 %v607_v18, %v351_v51  ;;  %v341_v60 = vmul.f32 %v602_v16, %v232_v56 }
  0xee   :  { %v349_v61 = vmul.f32 %v602_v16, %v264_v57  ;;  %v395_v62 = vmin.f32 %v379_v52, 6.0  ;;  %v403_v63 = vmin.f32 %v387_v53, 6.0  ;;  %v377_v0 = vmax.f32 %v361_v54, 0.0  ;;  %v485_v2 = vpop.f32.mrf.mxu0  ;;  %v493_v3 = vpop.f32.mrf.mxu1 }
  0xef   :  { %v385_v1 = vmax.f32 %v369_v55, 0.0  ;;  %v382_v4 = vmax.f32 %v366_v58, 0.0  ;;  %v390_v5 = vmax.f32 %v374_v59, 0.0  ;;  %v364_v6 = vadd.f32 %v607_v18, %v341_v60 }
  0xf0   :  { %v372_v7 = vadd.f32 %v607_v18, %v349_v61  ;;  %411 = vst [vmem:[%s693_s4 + $0x18] sm:$0xff] %v395_v62  ;;  %419 = vst [vmem:[%s693_s4 + $0x58] sm:$0xff] %v403_v63  ;;  %v393_v8 = vmin.f32 %v377_v0, 6.0  ;;  %v344_v10 = vmul.f32 %v485_v2, %v602_v16  ;;  %v352_v11 = vmul.f32 %v493_v3, %v602_v16  ;;  %v235_v12 = vpop.f32.mrf.mxu0  ;;  %v267_v13 = vpop.f32.mrf.mxu1 }
  0xf1   :  { %v401_v9 = vmin.f32 %v385_v1, 6.0  ;;  %v398_v14 = vmin.f32 %v382_v4, 6.0  ;;  %v406_v15 = vmin.f32 %v390_v5, 6.0  ;;  %v380_v17 = vmax.f32 %v364_v6, 0.0 }
  0xf2   :  { %v388_v19 = vmax.f32 %v372_v7, 0.0  ;;  %409 = vst [vmem:[%s693_s4 + $0x8] sm:$0xff] %v393_v8  ;;  %v367_v20 = vadd.f32 %v607_v18, %v344_v10  ;;  %v375_v21 = vadd.f32 %v607_v18, %v352_v11  ;;  %v342_v22 = vmul.f32 %v602_v16, %v235_v12 }
  0xf3   :  { %417 = vst [vmem:[%s693_s4 + $0x48] sm:$0xff] %v401_v9  ;;  %v350_v23 = vmul.f32 %v602_v16, %v267_v13  ;;  %414 = vst [vmem:[%s693_s4 + $0x30] sm:$0xff] %v398_v14  ;;  %v396_v24 = vmin.f32 %v380_v17, 6.0 }
  0xf4   :  { %422 = vst [vmem:[%s693_s4 + $0x70] sm:$0xff] %v406_v15  ;;  %v404_v25 = vmin.f32 %v388_v19, 6.0  ;;  %v383_v26 = vmax.f32 %v367_v20, 0.0  ;;  %v391_v27 = vmax.f32 %v375_v21, 0.0  ;;  %v365_v28 = vadd.f32 %v607_v18, %v342_v22 }
  0xf5   :  { %v373_v29 = vadd.f32 %v607_v18, %v350_v23  ;;  %412 = vst [vmem:[%s693_s4 + $0x20] sm:$0xff] %v396_v24 }
  0xf6   :  { %420 = vst [vmem:[%s693_s4 + $0x60] sm:$0xff] %v404_v25  ;;  %v399_v16 = vmin.f32 %v383_v26, 6.0  ;;  %v407_v30 = vmin.f32 %v391_v27, 6.0  ;;  %v381_v31 = vmax.f32 %v365_v28, 0.0 }
  0xf7   :  { %v389_v32 = vmax.f32 %v373_v29, 0.0 }
  0xf8   :  { %415 = vst [vmem:[%s693_s4 + $0x38] sm:$0xff] %v399_v16  ;;  %423 = vst [vmem:[%s693_s4 + $0x78] sm:$0xff] %v407_v30  ;;  %v397_v18 = vmin.f32 %v381_v31, 6.0 }
  0xf9   :  { %v405_v33 = vmin.f32 %v389_v32, 6.0 }
  0xfa   :  { %413 = vst [vmem:[%s693_s4 + $0x28] sm:$0xff] %v397_v18 }
  0xfb   :  { %421 = vst [vmem:[%s693_s4 + $0x68] sm:$0xff] %v405_v33 }

// kernel: segmentation_custom_forward.16
= control target key start
LH: loop header
LB: loop body
LE: loop exit
PB: predicated region body
PF: predicated region fallthrough
CT: control target
= control target key end

     0   :  { %s2059_s15 = smov 0   ;;  %s2061_s16 = smov 0   ;;  %s2595_s0 = inlined_call_operand.vmem [shape: bf16[128,384], index: 0, kind: input, shape index: {}]   ;;  %s2596_s1 = inlined_call_operand.vmem [shape: bf16[384,1024], index: 1, kind: input, shape index: {}]   ;;  %s2597_s2 = inlined_call_operand.vmem [shape: f32[1,1024], index: 2, kind: input, shape index: {}]   ;;  %s2598_s3 = inlined_call_operand.vmem [shape: f32[1,1024], index: 3, kind: input, shape index: {}]   ;;  %s2599_s4 = inlined_call_operand.vmem [shape: f32[128,1024], index: 4, kind: output, shape index: {}]  }
   0x1   :  { %s2063_s17 = smov 0   ;;  %s2065_s18 = smov 0  }
   0x2   :  { %s2067_s19 = smov 0  }
   0x3 LB: > { %s29_s20 = sadd.s32 1, %s2027_s18  ;;  %s1756_s21 = sadd.s32 4294967295, %s2031_s19   ;;  %s2031_s19 = sphi %s2067_s19, %s14_s19   ;;  %s2027_s18 = sphi %s2065_s18, %s2604_s18   ;;  %s2023_s17 = sphi %s2063_s17, %s2603_s17   ;;  %s2019_s16 = sphi %s2061_s16, %s2602_s16   ;;  %s2015_s15 = sphi %s2059_s15, %s2601_s15  }
   0x4   : > { %p31_p0 = scmp.ge.s32.totalorder %s29_s20, 4  ;;  %p77_p1 = scmp.ne.s32.totalorder %s2019_s16, %s2015_s15 }
   0x5   : > { %p78_p2 = scmp.eq.s32.totalorder %s2031_s19, 0  ;;  %p161_p4 = scmp.eq.s32.totalorder %s1756_s21, 3 }
   0x6   : > { %s2606_s20 = smov (%p31_p0, %s29_s20), 0  ;;  %s70_s23 = sadd.s32 1, %s2019_s16 }
   0x7   : > { %p79_p3 = por %p78_p2, %p77_p1  ;;  %s66_s22 = ssub.s32 %s2027_s18, %s2606_s20 }
   0x8   : > { %p68_p5 = scmp.eq.s32.totalorder %s66_s22, 0  ;;  %p2094_p6 = por %p161_p4, %p77_p1 }
   0x9   : > { %p1760_p7 = scmp.ge.s32.totalorder %s2031_s19, 4 }
   0xa   : > { %s2099_s25 = scalar_select %p68_p5, %s2019_s16, %s70_s23  }
   0xb   : > { %198 = sbr.rel (%p1760_p7) target bundleno = 68 (0x44), region = 20 }
  0x10   : > { %201 = sbr.rel (!%p79_p3) target bundleno = 68 (0x44), region = 24  ;;  %s203_s26 = sand.u32 (%p79_p3), 1, %s2019_s16  }
  0x11   : > { %s1844_s27 = sshll.u32 (%p79_p3), %s2027_s18, 3  ;;  %s1846_s28 = smul.u32 (%p79_p3), 384, %s203_s26 }
  0x12   : > { %s2107_s5 = scalar_lea.vmem (%p79_p3), %s2596_s1, %s1844_s27 }
  0x13   : > { %v334_v0 = vld [vmem:[%s2107_s5] sm:$0xff] (%p79_p3)  ;;  %s2115_s6 = scalar_lea.vmem (%p79_p3), [#allocation3], %s1846_s28 }
  0x14   : > { %v336_v1 = vld [vmem:[%s2107_s5 + $0x20] sm:$0xff] (%p79_p3)  ;;  %335 = vst [vmem:[%s2115_s6] sm:$0xff] (%p79_p3), %v334_v0 }
  0x15   : > { %v338_v2 = vld [vmem:[%s2107_s5 + $0x40] sm:$0xff]  ;;  %337 = vst [vmem:[%s2115_s6 + $0x8] sm:$0xff] %v336_v1 }
  0x16   : > { %v340_v3 = vld [vmem:[%s2107_s5 + $0x60] sm:$0xff]  ;;  %339 = vst [vmem:[%s2115_s6 + $0x10] sm:$0xff] %v338_v2 }
  0x17   : > { %v342_v4 = vld [vmem:[%s2107_s5 + $0x80] sm:$0xff]  ;;  %341 = vst [vmem:[%s2115_s6 + $0x18] sm:$0xff] %v340_v3 }
  0x18   : > { %v344_v5 = vld [vmem:[%s2107_s5 + $0xa0] sm:$0xff]  ;;  %343 = vst [vmem:[%s2115_s6 + $0x20] sm:$0xff] %v342_v4 }
  0x19   : > { %345 = vst [vmem:[%s2115_s6 + $0x28] sm:$0xff] %v344_v5  ;;  %v346_v6 = vld [vmem:[%s2107_s5 + $0xc0] sm:$0xff] }
  0x1a   : > { %v348_v7 = vld [vmem:[%s2107_s5 + $0xe0] sm:$0xff]  ;;  %347 = vst [vmem:[%s2115_s6 + $0x30] sm:$0xff] %v346_v6 }
  0x1b   : > { %v350_v8 = vld [vmem:[%s2107_s5 + $0x100] sm:$0xff]  ;;  %349 = vst [vmem:[%s2115_s6 + $0x38] sm:$0xff] %v348_v7 }
  0x1c   : > { %351 = vst [vmem:[%s2115_s6 + $0x40] sm:$0xff] %v350_v8  ;;  %v352_v9 = vld [vmem:[%s2107_s5 + $0x120] sm:$0xff] }
  0x1d   : > { %v354_v10 = vld [vmem:[%s2107_s5 + $0x140] sm:$0xff]  ;;  %353 = vst [vmem:[%s2115_s6 + $0x48] sm:$0xff] %v352_v9 }
  0x1e   : > { %v356_v11 = vld [vmem:[%s2107_s5 + $0x160] sm:$0xff]  ;;  %355 = vst [vmem:[%s2115_s6 + $0x50] sm:$0xff] %v354_v10 }
  0x1f   : > { %357 = vst [vmem:[%s2115_s6 + $0x58] sm:$0xff] %v356_v11  ;;  %v358_v12 = vld [vmem:[%s2107_s5 + $0x180] sm:$0xff] }
  0x20   : > { %v360_v13 = vld [vmem:[%s2107_s5 + $0x1a0] sm:$0xff]  ;;  %359 = vst [vmem:[%s2115_s6 + $0x60] sm:$0xff] %v358_v12 }
  0x21   : > { %v362_v14 = vld [vmem:[%s2107_s5 + $0x1c0] sm:$0xff]  ;;  %361 = vst [vmem:[%s2115_s6 + $0x68] sm:$0xff] %v360_v13 }
  0x22   : > { %363 = vst [vmem:[%s2115_s6 + $0x70] sm:$0xff] %v362_v14  ;;  %v364_v15 = vld [vmem:[%s2107_s5 + $0x1e0] sm:$0xff] }
  0x23   : > { %v366_v16 = vld [vmem:[%s2107_s5 + $0x200] sm:$0xff]  ;;  %365 = vst [vmem:[%s2115_s6 + $0x78] sm:$0xff] %v364_v15 }
  0x24   : > { %v368_v17 = vld [vmem:[%s2107_s5 + $0x220] sm:$0xff]  ;;  %367 = vst [vmem:[%s2115_s6 + $0x80] sm:$0xff] %v366_v16 }
  0x25   : > { %369 = vst [vmem:[%s2115_s6 + $0x88] sm:$0xff] %v368_v17  ;;  %v370_v18 = vld [vmem:[%s2107_s5 + $0x240] sm:$0xff] }
  0x26   : > { %v372_v19 = vld [vmem:[%s2107_s5 + $0x260] sm:$0xff]  ;;  %371 = vst [vmem:[%s2115_s6 + $0x90] sm:$0xff] %v370_v18 }
  0x27   : > { %v374_v20 = vld [vmem:[%s2107_s5 + $0x280] sm:$0xff]  ;;  %373 = vst [vmem:[%s2115_s6 + $0x98] sm:$0xff] %v372_v19 }
  0x28   : > { %375 = vst [vmem:[%s2115_s6 + $0xa0] sm:$0xff] %v374_v20  ;;  %v376_v21 = vld [vmem:[%s2107_s5 + $0x2a0] sm:$0xff] }
  0x29   : > { %v378_v22 = vld [vmem:[%s2107_s5 + $0x2c0] sm:$0xff]  ;;  %377 = vst [vmem:[%s2115_s6 + $0xa8] sm:$0xff] %v376_v21 }
  0x2a   : > { %v380_v23 = vld [vmem:[%s2107_s5 + $0x2e0] sm:$0xff]  ;;  %379 = vst [vmem:[%s2115_s6 + $0xb0] sm:$0xff] %v378_v22 }
  0x2b   : > { %381 = vst [vmem:[%s2115_s6 + $0xb8] sm:$0xff] %v380_v23  ;;  %v382_v24 = vld [vmem:[%s2107_s5 + $0x300] sm:$0xff] }
  0x2c   : > { %v384_v25 = vld [vmem:[%s2107_s5 + $0x320] sm:$0xff]  ;;  %383 = vst [vmem:[%s2115_s6 + $0xc0] sm:$0xff] %v382_v24 }
  0x2d   : > { %v386_v26 = vld [vmem:[%s2107_s5 + $0x340] sm:$0xff]  ;;  %385 = vst [vmem:[%s2115_s6 + $0xc8] sm:$0xff] %v384_v25 }
  0x2e   : > { %387 = vst [vmem:[%s2115_s6 + $0xd0] sm:$0xff] %v386_v26  ;;  %v388_v27 = vld [vmem:[%s2107_s5 + $0x360] sm:$0xff] }
  0x2f   : > { %v390_v28 = vld [vmem:[%s2107_s5 + $0x380] sm:$0xff]  ;;  %389 = vst [vmem:[%s2115_s6 + $0xd8] sm:$0xff] %v388_v27 }
  0x30   : > { %v392_v29 = vld [vmem:[%s2107_s5 + $0x3a0] sm:$0xff]  ;;  %391 = vst [vmem:[%s2115_s6 + $0xe0] sm:$0xff] %v390_v28 }
  0x31   : > { %393 = vst [vmem:[%s2115_s6 + $0xe8] sm:$0xff] %v392_v29  ;;  %v394_v30 = vld [vmem:[%s2107_s5 + $0x3c0] sm:$0xff] }
  0x32   : > { %v396_v31 = vld [vmem:[%s2107_s5 + $0x3e0] sm:$0xff]  ;;  %395 = vst [vmem:[%s2115_s6 + $0xf0] sm:$0xff] %v394_v30 }
  0x33   : > { %v398_v32 = vld [vmem:[%s2107_s5 + $0x400] sm:$0xff]  ;;  %397 = vst [vmem:[%s2115_s6 + $0xf8] sm:$0xff] %v396_v31 }
  0x34   : > { %399 = vst [vmem:[%s2115_s6 + $0x100] sm:$0xff] %v398_v32  ;;  %v400_v33 = vld [vmem:[%s2107_s5 + $0x420] sm:$0xff] }
  0x35   : > { %v402_v34 = vld [vmem:[%s2107_s5 + $0x440] sm:$0xff]  ;;  %401 = vst [vmem:[%s2115_s6 + $0x108] sm:$0xff] %v400_v33 }
  0x36   : > { %v404_v35 = vld [vmem:[%s2107_s5 + $0x460] sm:$0xff]  ;;  %403 = vst [vmem:[%s2115_s6 + $0x110] sm:$0xff] %v402_v34 }
  0x37   : > { %405 = vst [vmem:[%s2115_s6 + $0x118] sm:$0xff] %v404_v35  ;;  %v406_v36 = vld [vmem:[%s2107_s5 + $0x480] sm:$0xff] }
  0x38   : > { %v408_v37 = vld [vmem:[%s2107_s5 + $0x4a0] sm:$0xff]  ;;  %407 = vst [vmem:[%s2115_s6 + $0x120] sm:$0xff] %v406_v36 }
  0x39   : > { %v410_v38 = vld [vmem:[%s2107_s5 + $0x4c0] sm:$0xff]  ;;  %409 = vst [vmem:[%s2115_s6 + $0x128] sm:$0xff] %v408_v37 }
  0x3a   : > { %411 = vst [vmem:[%s2115_s6 + $0x130] sm:$0xff] %v410_v38  ;;  %v412_v39 = vld [vmem:[%s2107_s5 + $0x4e0] sm:$0xff] }
  0x3b   : > { %v414_v40 = vld [vmem:[%s2107_s5 + $0x500] sm:$0xff]  ;;  %413 = vst [vmem:[%s2115_s6 + $0x138] sm:$0xff] %v412_v39 }
  0x3c   : > { %v416_v41 = vld [vmem:[%s2107_s5 + $0x520] sm:$0xff]  ;;  %415 = vst [vmem:[%s2115_s6 + $0x140] sm:$0xff] %v414_v40 }
  0x3d   : > { %417 = vst [vmem:[%s2115_s6 + $0x148] sm:$0xff] %v416_v41  ;;  %v418_v42 = vld [vmem:[%s2107_s5 + $0x540] sm:$0xff] }
  0x3e   : > { %v420_v43 = vld [vmem:[%s2107_s5 + $0x560] sm:$0xff]  ;;  %419 = vst [vmem:[%s2115_s6 + $0x150] sm:$0xff] %v418_v42 }
  0x3f   : > { %v422_v44 = vld [vmem:[%s2107_s5 + $0x580] sm:$0xff]  ;;  %421 = vst [vmem:[%s2115_s6 + $0x158] sm:$0xff] %v420_v43 }
  0x40   : > { %423 = vst [vmem:[%s2115_s6 + $0x160] sm:$0xff] %v422_v44  ;;  %v424_v45 = vld [vmem:[%s2107_s5 + $0x5a0] sm:$0xff] }
  0x41   : > { %v426_v46 = vld [vmem:[%s2107_s5 + $0x5c0] sm:$0xff]  ;;  %425 = vst [vmem:[%s2115_s6 + $0x168] sm:$0xff] %v424_v45 }
  0x42   : > { %v428_v47 = vld [vmem:[%s2107_s5 + $0x5e0] sm:$0xff]  ;;  %427 = vst [vmem:[%s2115_s6 + $0x170] sm:$0xff] %v426_v46 }
  0x43   : > { %429 = vst [vmem:[%s2115_s6 + $0x178] sm:$0xff] %v428_v47 }
  0x44 PF: > { %p1763_p8 = scmp.ge.s32.totalorder %s2031_s19, 1  ;;  %p450_p9 = scmp.lt.s32.totalorder %s2031_s19, 5 }
  0x46   : > { %p451_p10 = pnand %p1763_p8, %p450_p9 }
  0x47   : > { %s457_s7 = sand.u32 (!%p451_p10), 1, %s2015_s15   ;;  %s1765_s6 = sshll.u32 (!%p451_p10), %s2023_s17, 1 }
  0x48   : > { %454 = sbr.rel (%p451_p10) target bundleno = 417 (0x1a1), region = 70  ;;  %p514_p11 = scmp.lt.s32.totalorder (!%p451_p10), %s1765_s6, 7 }
  0x49   : > { %s1847_s8 = smul.u32 (!%p451_p10), 384, %s457_s7  ;;  %s1764_s14 = sshll.u32 (!%p451_p10), %s457_s7, 8 }
  0x4a   : > { %s2386_s15 = scalar_lea.vmem (!%p451_p10), [#allocation4], %s1764_s14 }
  0x4b   : > { %s2216_s11 = scalar_lea.vmem (!%p451_p10), [#allocation3], %s1847_s8 }
  0x4d   : > { %v2033_v48 = vmov 0   ;;  %v1964_v49 = vld [vmem:[%s2595_s0 + $0x4] ss:$12 sps:$4 sm:$0xff]   ;;  %v1889_v50 = vld [vmem:[%s2216_s11 + $0x74] ss:$8 sps:$4 sm:$0xff]   ;;  %s2608_s6 = smov (!%p514_p11, %s1765_s6), 7 }
  0x4e   : > { %1187 = vmatprep.mubr.bf16.mxu1 %v2033_v48  ;;  %1074 = vmatprep.mubr.bf16.mxu0 %v1964_v49  ;;  %v1891_v51 = vld [vmem:[%s2216_s11 + $0x70] ss:$8 sps:$4 sm:$0xff]   ;;  %v1892_v52 = vld [vmem:[%s2216_s11 + $0x64] ss:$8 sps:$4 sm:$0xff]   ;;  %v1894_v53 = vld [vmem:[%s2216_s11 + $0x60] ss:$8 sps:$4 sm:$0xff]   ;;  %s516_s10 = scalar_lea.vmem %s2597_s2, %s2608_s6  ;;  %s521_s13 = scalar_lea.vmem %s2598_s3, %s2608_s6 }
  0x4f   : > { %1042 = vmatprep.subr.bf16.mxu0 %v1889_v50  ;;  %v1895_v54 = vld [vmem:[%s2216_s11 + $0x54] ss:$8 sps:$4 sm:$0xff]   ;;  %v1897_v55 = vld [vmem:[%s2216_s11 + $0x50] ss:$8 sps:$4 sm:$0xff]   ;;  %v1898_v56 = vld [vmem:[%s2216_s11 + $0x44] ss:$8 sps:$4 sm:$0xff]  }
  0x50   : > { %1043 = vmatpush1.bf16.msra.mxu0 %v1891_v51  ;;  %v1910_v57 = vld [vmem:[%s2216_s11 + $0x174] ss:$8 sps:$4 sm:$0xff]   ;;  %v1912_v58 = vld [vmem:[%s2216_s11 + $0x170] ss:$8 sps:$4 sm:$0xff]   ;;  %v1900_v59 = vld [vmem:[%s2216_s11 + $0x40] ss:$8 sps:$4 sm:$0xff]  }
  0x51   : > { %1044 = vmatprep.subr.bf16.mxu0 %v1892_v52  ;;  %v1901_v60 = vld [vmem:[%s2216_s11 + $0x34] ss:$8 sps:$4 sm:$0xff]   ;;  %1155 = vmatprep.subr.bf16.mxu1 %v1910_v57  ;;  %v1916_v61 = vld [vmem:[%s2216_s11 + $0x164] ss:$8 sps:$4 sm:$0xff]   ;;  %v1918_v62 = vld [vmem:[%s2216_s11 + $0x160] ss:$8 sps:$4 sm:$0xff]  }
  0x52   : > { %1156 = vmatpush1.bf16.msra.mxu1 %v1912_v58  ;;  %v1903_v63 = vld [vmem:[%s2216_s11 + $0x30] ss:$8 sps:$4 sm:$0xff]   ;;  %v1922_v0 = vld [vmem:[%s2216_s11 + $0x154] ss:$8 sps:$4 sm:$0xff]   ;;  %v1904_v1 = vld [vmem:[%s2216_s11 + $0x24] ss:$8 sps:$4 sm:$0xff]  }
  0x53   : > { %1157 = vmatprep.subr.bf16.mxu1 %v1916_v61  ;;  %v1924_v2 = vld [vmem:[%s2216_s11 + $0x150] ss:$8 sps:$4 sm:$0xff]   ;;  %v1928_v3 = vld [vmem:[%s2216_s11 + $0x144] ss:$8 sps:$4 sm:$0xff]   ;;  %v1906_v4 = vld [vmem:[%s2216_s11 + $0x20] ss:$8 sps:$4 sm:$0xff]  }
  0x54   : > { %1045 = vmatpush1.bf16.msra.mxu0 %v1894_v53  ;;  %v1907_v5 = vld [vmem:[%s2216_s11 + $0x14] ss:$8 sps:$4 sm:$0xff]   ;;  %v1930_v6 = vld [vmem:[%s2216_s11 + $0x140] ss:$8 sps:$4 sm:$0xff]   ;;  %v1909_v8 = vld [vmem:[%s2216_s11 + $0x10] ss:$8 sps:$4 sm:$0xff]  }
  0x55   : > { %1046 = vmatprep.subr.bf16.mxu0 %v1895_v54  ;;  %v1934_v7 = vld [vmem:[%s2216_s11 + $0x134] ss:$8 sps:$4 sm:$0xff]   ;;  %v1913_v9 = vld [vmem:[%s2216_s11 + $0x4] ss:$8 sps:$4 sm:$0xff]   ;;  %v1936_v10 = vld [vmem:[%s2216_s11 + $0x130] ss:$8 sps:$4 sm:$0xff]  }
  0x56   : > { %1158 = vmatpush1.bf16.msra.mxu1 %v1918_v62  ;;  %v1940_v11 = vld [vmem:[%s2216_s11 + $0x124] ss:$8 sps:$4 sm:$0xff]   ;;  %v1915_v12 = vld [vmem:[%s2216_s11] ss:$8 sps:$4 sm:$0xff]   ;;  %v1919_v13 = vld [vmem:[%s2216_s11 + $0xf4] ss:$8 sps:$4 sm:$0xff]   ;;  %v1369_v62 = vlaneseq }
  0x57   : > { %1159 = vmatprep.subr.bf16.mxu1 %v1922_v0  ;;  %v1942_v14 = vld [vmem:[%s2216_s11 + $0x120] ss:$8 sps:$4 sm:$0xff]   ;;  %v1946_v15 = vld [vmem:[%s2216_s11 + $0x114] ss:$8 sps:$4 sm:$0xff]   ;;  %v1921_v16 = vld [vmem:[%s2216_s11 + $0xf0] ss:$8 sps:$4 sm:$0xff]  }
  0x58   : > { %1047 = vmatpush1.bf16.msra.mxu0 %v1897_v55  ;;  %v1925_v17 = vld [vmem:[%s2216_s11 + $0xe4] ss:$8 sps:$4 sm:$0xff]   ;;  %v1948_v18 = vld [vmem:[%s2216_s11 + $0x110] ss:$8 sps:$4 sm:$0xff]   ;;  %v1927_v20 = vld [vmem:[%s2216_s11 + $0xe0] ss:$8 sps:$4 sm:$0xff]  }
  0x59   : > { %1048 = vmatprep.subr.bf16.mxu0 %v1898_v56  ;;  %v1952_v19 = vld [vmem:[%s2216_s11 + $0x104] ss:$8 sps:$4 sm:$0xff]   ;;  %v1931_v21 = vld [vmem:[%s2216_s11 + $0xd4] ss:$8 sps:$4 sm:$0xff]   ;;  %v1954_v22 = vld [vmem:[%s2216_s11 + $0x100] ss:$8 sps:$4 sm:$0xff]  }
  0x5a   : > { %1160 = vmatpush1.bf16.msra.mxu1 %v1924_v2  ;;  %v1933_v23 = vld [vmem:[%s2216_s11 + $0xd0] ss:$8 sps:$4 sm:$0xff]   ;;  %v1958_v24 = vld [vmem:[%s2595_s0 + $0x8] ss:$12 sps:$4 sm:$0xff]   ;;  %v1937_v25 = vld [vmem:[%s2216_s11 + $0xc4] ss:$8 sps:$4 sm:$0xff]  }
  0x5b   : > { %1161 = vmatprep.subr.bf16.mxu1 %v1928_v3  ;;  %v1939_v26 = vld [vmem:[%s2216_s11 + $0xc0] ss:$8 sps:$4 sm:$0xff]   ;;  %v1943_v27 = vld [vmem:[%s2216_s11 + $0xb4] ss:$8 sps:$4 sm:$0xff]   ;;  %v1945_v28 = vld [vmem:[%s2216_s11 + $0xb0] ss:$8 sps:$4 sm:$0xff]  }
  0x5c   : > { %1049 = vmatpush1.bf16.msra.mxu0 %v1900_v59  ;;  %v1949_v29 = vld [vmem:[%s2216_s11 + $0xa4] ss:$8 sps:$4 sm:$0xff]   ;;  %v1951_v31 = vld [vmem:[%s2216_s11 + $0xa0] ss:$8 sps:$4 sm:$0xff]   ;;  %v1955_v32 = vld [vmem:[%s2216_s11 + $0x94] ss:$8 sps:$4 sm:$0xff]  }
  0x5d   : > { %1050 = vmatprep.subr.bf16.mxu0 %v1901_v60  ;;  %v1965_v30 = vld [vmem:[%s2595_s0 + $0x20] ss:$12 sps:$4 sm:$0xff]   ;;  %v1957_v33 = vld [vmem:[%s2216_s11 + $0x90] ss:$8 sps:$4 sm:$0xff]   ;;  %v1966_v38 = vld [vmem:[%s2595_s0 + $0x1c] ss:$12 sps:$4 sm:$0xff]  }
  0x5e   : > { %1162 = vmatpush1.bf16.msra.mxu1 %v1930_v6  ;;  %v1959_v34 = vld [vmem:[%s2216_s11 + $0x84] ss:$8 sps:$4 sm:$0xff]   ;;  %v1961_v36 = vld [vmem:[%s2216_s11 + $0x80] ss:$8 sps:$4 sm:$0xff]   ;;  %v1973_v39 = vld [vmem:[%s2595_s0 + $0x50] ss:$12 sps:$4 sm:$0xff]  }
  0x5f   : > { %1163 = vmatprep.subr.bf16.mxu1 %v1934_v7  ;;  %v1969_v35 = vld [vmem:[%s2595_s0 + $0x38] ss:$12 sps:$4 sm:$0xff]   ;;  %v1962_v37 = vld [vmem:[%s2595_s0] ss:$12 sps:$4 sm:$0xff]   ;;  %v1977_v42 = vld [vmem:[%s2595_s0 + $0x68] ss:$12 sps:$4 sm:$0xff]  }
  0x60   : > { %1051 = vmatpush1.bf16.msra.mxu0 %v1903_v63  ;;  %v1968_v40 = vld [vmem:[%s2595_s0 + $0x18] ss:$12 sps:$4 sm:$0xff]   ;;  %v1970_v41 = vld [vmem:[%s2595_s0 + $0x34] ss:$12 sps:$4 sm:$0xff]   ;;  %v1972_v43 = vld [vmem:[%s2595_s0 + $0x30] ss:$12 sps:$4 sm:$0xff]  }
  0x61   : > { %1052 = vmatprep.subr.bf16.mxu0 %v1904_v1  ;;  %v1974_v44 = vld [vmem:[%s2595_s0 + $0x4c] ss:$12 sps:$4 sm:$0xff]   ;;  %v1976_v46 = vld [vmem:[%s2595_s0 + $0x48] ss:$12 sps:$4 sm:$0xff]   ;;  %v1978_v47 = vld [vmem:[%s2595_s0 + $0x64] ss:$12 sps:$4 sm:$0xff]  }
  0x62   : > { %1164 = vmatpush1.bf16.msra.mxu1 %v1936_v10  ;;  %v1981_v45 = vld [vmem:[%s2595_s0 + $0x80] ss:$12 sps:$4 sm:$0xff]   ;;  %v1985_v49 = vld [vmem:[%s2595_s0 + $0x98] ss:$12 sps:$4 sm:$0xff]   ;;  %v1982_v51 = vld [vmem:[%s2595_s0 + $0x7c] ss:$12 sps:$4 sm:$0xff]  }
  0x63   : > { %1165 = vmatprep.subr.bf16.mxu1 %v1940_v11  ;;  %v1980_v50 = vld [vmem:[%s2595_s0 + $0x60] ss:$12 sps:$4 sm:$0xff]   ;;  %v1989_v52 = vld [vmem:[%s2595_s0 + $0xb0] ss:$12 sps:$4 sm:$0xff]   ;;  %v1992_v56 = vld [vmem:[%s2595_s0 + $0xa8] ss:$12 sps:$4 sm:$0xff]  }
  0x64   : > { %1053 = vmatpush1.bf16.msra.mxu0 %v1906_v4  ;;  %v1986_v53 = vld [vmem:[%s2595_s0 + $0x94] ss:$12 sps:$4 sm:$0xff]   ;;  %v1988_v54 = vld [vmem:[%s2595_s0 + $0x90] ss:$12 sps:$4 sm:$0xff]   ;;  %v1990_v55 = vld [vmem:[%s2595_s0 + $0xac] ss:$12 sps:$4 sm:$0xff]  }
  0x65   : > { %1054 = vmatprep.subr.bf16.mxu0 %v1907_v5  ;;  %v1370_v1 = vshrl.u32 %v1369_v62, 7  ;;  %v1367_v5 = vld [vmem:[%s516_s10] sm:$0x3]  ;;  %s1845_s7 = sshll.u32 (%p2094_p6), %s2023_s17, 4 }
  0x66   : > { %1166 = vmatpush1.bf16.msra.mxu1 %v1942_v14  ;;  %s2517_s23 = scalar_lea.vmem (%p2094_p6), %s2599_s4, %s1845_s7 }
  0x67   : > { %1167 = vmatprep.subr.bf16.mxu1 %v1946_v15  ;;  %v1371_v4 = vsub.s32 0, %v1370_v1  ;;  %v1375_v7 = vsub.s32 1, %v1370_v1 }
  0x68   : > { %1055 = vmatpush1.bf16.msra.mxu0 %v1909_v8  ;;  %v1411_v8 = vld [vmem:[%s521_s13] sm:$0x3] }
  0x69   : > { %1056 = vmatprep.subr.bf16.mxu0 %v1913_v9  ;;  %v2357_v10 = vrot.slane %v1367_v5, %v1371_v4  ;;  %v2361_v14 = vrot.slane %v1411_v8, %v1371_v4  ;;  %v2363_v15 = vrot.slane %v1367_v5, %v1375_v7 }
  0x6a   : > { %1168 = vmatpush1.bf16.msra.mxu1 %v1948_v18 }
  0x6b   : > { %1169 = vmatprep.subr.bf16.mxu1 %v1952_v19 }
  0x6c   : > { %1057 = vmatpush1.bf16.msra.mxu0 %v1915_v12 }
  0x6d   : > { %1058 = vmatprep.subr.bf16.mxu0 %v1919_v13 }
  0x6e   : > { %1170 = vmatpush1.bf16.msra.mxu1 %v1954_v22 }
  0x70   : > { %1059 = vmatpush2.bf16.msra.mxu0 %v1921_v16 }
  0x71   : > { %1060 = vmatprep.subr.bf16.mxu0 %v1925_v17  ;;  %1188 = vmatmul.mubr.bf16.vlgmr.msra.gmra.mxu1 %v1958_v24 }
  0x72   : > { %1197 = vmatprep.mubr.bf16.mxu1 %v2033_v48 }
  0x74   : > { %1061 = vmatpush2.bf16.msra.mxu0 %v1927_v20  ;;  %v2368_v20 = vrot.slane %v1411_v8, %v1375_v7 }
  0x75   : > { %1062 = vmatprep.subr.bf16.mxu0 %v1931_v21 }
  0x78   : > { %1063 = vmatpush2.bf16.msra.mxu0 %v1933_v23 }
  0x79   : > { %1064 = vmatprep.subr.bf16.mxu0 %v1937_v25  ;;  %1198 = vmatmul.mubr.bf16.gmra.mxu1 %v1965_v30 }
  0x7a   : > { %1207 = vmatprep.mubr.bf16.mxu1 %v2033_v48 }
  0x7c   : > { %1065 = vmatpush2.bf16.msra.mxu0 %v1939_v26 }
  0x7d   : > { %1066 = vmatprep.subr.bf16.mxu0 %v1943_v27 }
  0x80   : > { %1067 = vmatpush2.bf16.msra.mxu0 %v1945_v28 }
  0x81   : > { %1068 = vmatprep.subr.bf16.mxu0 %v1949_v29  ;;  %1208 = vmatmul.mubr.bf16.gmra.mxu1 %v1969_v35 }
  0x82   : > { %1217 = vmatprep.mubr.bf16.mxu1 %v2033_v48 }
  0x84   : > { %1069 = vmatpush2.bf16.msra.mxu0 %v1951_v31 }
  0x85   : > { %1070 = vmatprep.subr.bf16.mxu0 %v1955_v32 }
  0x88   : > { %1071 = vmatpush2.bf16.msra.mxu0 %v1957_v33 }
  0x89   : > { %1072 = vmatprep.subr.bf16.mxu0 %v1959_v34  ;;  %1218 = vmatmul.mubr.bf16.gmra.mxu1 %v1973_v39 }
  0x8a   : > { %1227 = vmatprep.mubr.bf16.mxu1 %v2033_v48 }
  0x8c   : > { %1073 = vmatpush2.bf16.msra.mxu0 %v1961_v36 }
  0x8f   : > { %1075 = vmatmul.mubr.bf16.vlgmr.msra.gmra.mxu0 %v1962_v37 }
  0x90   : > { %1084 = vmatprep.mubr.bf16.mxu0 %v1966_v38 }
  0x91   : > { %1228 = vmatmul.mubr.bf16.gmra.mxu1 %v1977_v42 }
  0x92   : > { %1237 = vmatprep.mubr.bf16.mxu1 %v2033_v48 }
  0x97   : > { %1085 = vmatmul.mubr.bf16.gmra.mxu0 %v1968_v40 }
  0x98   : > { %1094 = vmatprep.mubr.bf16.mxu0 %v1970_v41 }
  0x99   : > { %1238 = vmatmul.mubr.bf16.gmra.mxu1 %v1981_v45 }
  0x9a   : > { %1247 = vmatprep.mubr.bf16.mxu1 %v2033_v48 }
  0x9f   : > { %1095 = vmatmul.mubr.bf16.gmra.mxu0 %v1972_v43 }
  0xa0   : > { %1104 = vmatprep.mubr.bf16.mxu0 %v1974_v44 }
  0xa1   : > { %1248 = vmatmul.mubr.bf16.gmra.mxu1 %v1985_v49 }
  0xa2   : > { %1257 = vmatprep.mubr.bf16.mxu1 %v2033_v48  ;;  %v1984_v48 = vld [vmem:[%s2595_s0 + $0x78] ss:$12 sps:$4 sm:$0xff]  }
  0xa7   : > { %1105 = vmatmul.mubr.bf16.gmra.mxu0 %v1976_v46 }
  0xa8   : > { %1114 = vmatprep.mubr.bf16.mxu0 %v1978_v47 }
  0xa9   : > { %1258 = vmatmul.mubr.bf16.gmra.mxu1 %v1989_v52 }
  0xaf   : > { %1115 = vmatmul.mubr.bf16.gmra.mxu0 %v1980_v50 }
  0xb0   : > { %1124 = vmatprep.mubr.bf16.mxu0 %v1982_v51 }
  0xb7   : > { %1125 = vmatmul.mubr.bf16.gmra.mxu0 %v1984_v48 }
  0xb8   : > { %1134 = vmatprep.mubr.bf16.mxu0 %v1986_v53 }
  0xbf   : > { %1135 = vmatmul.mubr.bf16.gmra.mxu0 %v1988_v54 }
  0xc0   : > { %1144 = vmatprep.mubr.bf16.mxu0 %v1990_v55 }
  0xc7   : > { %1145 = vmatmul.mubr.bf16.gmra.mxu0 %v1992_v56 }
 0x131   : > { %v1189_v57 = vpop.f32.mrf.mxu1 }
 0x133   : > { %v1191_v58 = vpop.f32.mrf.mxu1 }
 0x135   : > { %v1193_v59 = vpop.f32.mrf.mxu1 }
 0x137   : > { %v1195_v60 = vpop.f32.mrf.mxu1 }
 0x139   : > { %v1199_v61 = vpop.f32.mrf.mxu1 }
 0x13b   : > { %v1201_v63 = vpop.f32.mrf.mxu1 }
 0x13d   : > { %v1203_v0 = vpop.f32.mrf.mxu1 }
 0x13f   : > { %v2343_v2 = vpop.f32.mrf.mxu1 }
 0x141   : > { %v2348_v3 = vpop.f32.mrf.mxu1 }
 0x143   : > { %v2353_v6 = vpop.f32.mrf.mxu1 }
 0x145   : > { %v2355_v9 = vpop.f32.mrf.mxu1 }
 0x147   : > { %v2359_v12 = vpop.f32.mrf.mxu1 }
 0x149   : > { %v2365_v17 = vpop.f32.mrf.mxu1 }
 0x14b   : > { %v2370_v22 = vpop.f32.mrf.mxu1 }
 0x14d   : > { %v2376_v27 = vpop.f32.mrf.mxu1 }
 0x14f   : > { %v1076_v11 = vpop.f32.mrf.mxu0  ;;  %v2380_v33 = vpop.f32.mrf.mxu1 }
 0x150   : > { %v1190_v13 = vadd.f32 %v1189_v57, %v1076_v11 }
 0x151   : > { %v1078_v16 = vpop.f32.mrf.mxu0  ;;  %v2384_v40 = vpop.f32.mrf.mxu1 }
 0x152   : > { %v1379_v18 = vmul.f32 %v2357_v10, %v1190_v13  ;;  %v1192_v19 = vadd.f32 %v1191_v58, %v1078_v16 }
 0x153   : > { %v1080_v21 = vpop.f32.mrf.mxu0  ;;  %v2391_v47 = vpop.f32.mrf.mxu1 }
 0x154   : > { %v1423_v23 = vadd.f32 %v2361_v14, %v1379_v18  ;;  %v1380_v24 = vmul.f32 %v2363_v15, %v1192_v19  ;;  %v1194_v25 = vadd.f32 %v1193_v59, %v1080_v21 }
 0x155   : > { %v1082_v26 = vpop.f32.mrf.mxu0  ;;  %v2396_v54 = vpop.f32.mrf.mxu1 }
 0x156   : > { %v1455_v28 = vmax.f32 %v1423_v23, 0.0  ;;  %v1424_v29 = vadd.f32 %v2368_v20, %v1380_v24  ;;  %v1381_v30 = vmul.f32 %v2357_v10, %v1194_v25  ;;  %v1196_v31 = vadd.f32 %v1195_v60, %v1082_v26 }
 0x157   : > { %v1086_v32 = vpop.f32.mrf.mxu0 }
 0x158   : > { %v1487_v34 = vmin.f32 %v1455_v28, 6.0  ;;  %v1456_v35 = vmax.f32 %v1424_v29, 0.0  ;;  %v1425_v36 = vadd.f32 %v2361_v14, %v1381_v30  ;;  %v1382_v37 = vmul.f32 %v2363_v15, %v1196_v31 }
 0x159   : > { %v1200_v38 = vadd.f32 %v1199_v61, %v1086_v32  ;;  %v1088_v39 = vpop.f32.mrf.mxu0  ;;  %v2402_v61 = vpop.f32.mrf.mxu1 }
 0x15a   : > { %1519 = vst [vmem:[%s2386_s15] sm:$0xff] %v1487_v34  ;;  %v1488_v41 = vmin.f32 %v1456_v35, 6.0  ;;  %v1457_v42 = vmax.f32 %v1425_v36, 0.0  ;;  %v1426_v43 = vadd.f32 %v2368_v20, %v1382_v37  ;;  %v1202_v44 = vadd.f32 %v1201_v63, %v1088_v39 }
 0x15b   : > { %v1383_v45 = vmul.f32 %v2357_v10, %v1200_v38  ;;  %v1090_v46 = vpop.f32.mrf.mxu0  ;;  %v2408_v7 = vpop.f32.mrf.mxu1 }
 0x15c   : > { %1520 = vst [vmem:[%s2386_s15 + $0x8] sm:$0xff] %v1488_v41  ;;  %v1489_v49 = vmin.f32 %v1457_v42, 6.0  ;;  %v1458_v50 = vmax.f32 %v1426_v43, 0.0  ;;  %v1384_v51 = vmul.f32 %v2363_v15, %v1202_v44  ;;  %v1204_v52 = vadd.f32 %v1203_v0, %v1090_v46 }
 0x15d   : > { %v1427_v48 = vadd.f32 %v2361_v14, %v1383_v45  ;;  %v1092_v53 = vpop.f32.mrf.mxu0  ;;  %v2418_v26 = vpop.f32.mrf.mxu1 }
 0x15e   : > { %1521 = vst [vmem:[%s2386_s15 + $0x10] sm:$0xff] %v1489_v49  ;;  %v1490_v55 = vmin.f32 %v1458_v50, 6.0  ;;  %v1428_v56 = vadd.f32 %v2368_v20, %v1384_v51  ;;  %v1385_v57 = vmul.f32 %v2357_v10, %v1204_v52  ;;  %v1206_v58 = vadd.f32 %v2343_v2, %v1092_v53 }
 0x15f   : > { %v1459_v59 = vmax.f32 %v1427_v48, 0.0  ;;  %v1096_v60 = vpop.f32.mrf.mxu0  ;;  %v2428_v39 = vpop.f32.mrf.mxu1 }
 0x160   : > { %1522 = vst [vmem:[%s2386_s15 + $0x18] sm:$0xff] %v1490_v55  ;;  %v1460_v62 = vmax.f32 %v1428_v56, 0.0  ;;  %v1429_v63 = vadd.f32 %v2361_v14, %v1385_v57  ;;  %v1386_v0 = vmul.f32 %v2363_v15, %v1206_v58  ;;  %v1210_v1 = vadd.f32 %v2348_v3, %v1096_v60 }
 0x161   : > { %v1491_v4 = vmin.f32 %v1459_v59, 6.0  ;;  %v1098_v5 = vpop.f32.mrf.mxu0  ;;  %v2438_v48 = vpop.f32.mrf.mxu1 }
 0x162   : > { %v1492_v2 = vmin.f32 %v1460_v62, 6.0  ;;  %v1461_v8 = vmax.f32 %v1429_v63, 0.0  ;;  %v1430_v11 = vadd.f32 %v2368_v20, %v1386_v0  ;;  %v1387_v13 = vmul.f32 %v2357_v10, %v1210_v1 }
 0x163   : > { %1523 = vst [vmem:[%s2386_s15 + $0x20] sm:$0xff] %v1491_v4  ;;  %v1212_v16 = vadd.f32 %v2353_v6, %v1098_v5  ;;  %v1100_v18 = vpop.f32.mrf.mxu0  ;;  %v1249_v1 = vpop.f32.mrf.mxu1 }
 0x164   : > { %1524 = vst [vmem:[%s2386_s15 + $0x28] sm:$0xff] %v1492_v2  ;;  %v1493_v19 = vmin.f32 %v1461_v8, 6.0  ;;  %v1462_v21 = vmax.f32 %v1430_v11, 0.0  ;;  %v1431_v3 = vadd.f32 %v2361_v14, %v1387_v13  ;;  %v1214_v23 = vadd.f32 %v2355_v9, %v1100_v18 }
 0x165   : > { %v1388_v24 = vmul.f32 %v2363_v15, %v1212_v16  ;;  %v1102_v25 = vpop.f32.mrf.mxu0 }
 0x166   : > { %1525 = vst [vmem:[%s2386_s15 + $0x30] sm:$0xff] %v1493_v19  ;;  %v1494_v28 = vmin.f32 %v1462_v21, 6.0  ;;  %v1463_v29 = vmax.f32 %v1431_v3, 0.0  ;;  %v1389_v6 = vmul.f32 %v2357_v10, %v1214_v23  ;;  %v1216_v30 = vadd.f32 %v2359_v12, %v1102_v25  ;;  %v1251_v3 = vpop.f32.mrf.mxu1 }
 0x167   : > { %v1432_v31 = vadd.f32 %v2368_v20, %v1388_v24  ;;  %v1106_v32 = vpop.f32.mrf.mxu0 }
 0x168   : > { %1526 = vst [vmem:[%s2386_s15 + $0x38] sm:$0xff] %v1494_v28  ;;  %v1495_v34 = vmin.f32 %v1463_v29, 6.0  ;;  %v1433_v9 = vadd.f32 %v2361_v14, %v1389_v6  ;;  %v1390_v35 = vmul.f32 %v2363_v15, %v1216_v30  ;;  %v1220_v36 = vadd.f32 %v2365_v17, %v1106_v32 }
 0x169   : > { %v1464_v37 = vmax.f32 %v1432_v31, 0.0  ;;  %v1108_v38 = vpop.f32.mrf.mxu0 }
 0x16a   : > { %1527 = vst [vmem:[%s2386_s15 + $0x40] sm:$0xff] %v1495_v34  ;;  %v1465_v41 = vmax.f32 %v1433_v9, 0.0  ;;  %v1434_v12 = vadd.f32 %v2368_v20, %v1390_v35  ;;  %v1391_v42 = vmul.f32 %v2357_v10, %v1220_v36  ;;  %v1222_v43 = vadd.f32 %v2370_v22, %v1108_v38  ;;  %v1253_v9 = vpop.f32.mrf.mxu1 }
 0x16b   : > { %v1496_v44 = vmin.f32 %v1464_v37, 6.0  ;;  %v1110_v45 = vpop.f32.mrf.mxu0 }
 0x16c   : > { %v1497_v46 = vmin.f32 %v1465_v41, 6.0  ;;  %v1466_v49 = vmax.f32 %v1434_v12, 0.0  ;;  %v1435_v17 = vadd.f32 %v2361_v14, %v1391_v42  ;;  %v1392_v50 = vmul.f32 %v2363_v15, %v1222_v43 }
 0x16d   : > { %1528 = vst [vmem:[%s2386_s15 + $0x48] sm:$0xff] %v1496_v44  ;;  %v1224_v51 = vadd.f32 %v2376_v27, %v1110_v45  ;;  %v1112_v52 = vpop.f32.mrf.mxu0 }
 0x16e   : > { %1529 = vst [vmem:[%s2386_s15 + $0x50] sm:$0xff] %v1497_v46  ;;  %v1498_v53 = vmin.f32 %v1466_v49, 6.0  ;;  %v1467_v55 = vmax.f32 %v1435_v17, 0.0  ;;  %v1436_v22 = vadd.f32 %v2368_v20, %v1392_v50  ;;  %v1226_v56 = vadd.f32 %v2380_v33, %v1112_v52  ;;  %v1255_v46 = vpop.f32.mrf.mxu1 }
 0x16f   : > { %v1393_v57 = vmul.f32 %v2357_v10, %v1224_v51  ;;  %v1116_v58 = vpop.f32.mrf.mxu0 }
 0x170   : > { %1530 = vst [vmem:[%s2386_s15 + $0x58] sm:$0xff] %v1498_v53  ;;  %v1499_v59 = vmin.f32 %v1467_v55, 6.0  ;;  %v1468_v60 = vmax.f32 %v1436_v22, 0.0  ;;  %v1394_v27 = vmul.f32 %v2363_v15, %v1226_v56  ;;  %v1230_v62 = vadd.f32 %v2384_v40, %v1116_v58  ;;  %v1259_v58 = vpop.f32.mrf.mxu1 }
 0x171   : > { %v1437_v63 = vadd.f32 %v2361_v14, %v1393_v57  ;;  %v1118_v0 = vpop.f32.mrf.mxu0 }
 0x172   : > { %1531 = vst [vmem:[%s2386_s15 + $0x60] sm:$0xff] %v1499_v59  ;;  %v1500_v4 = vmin.f32 %v1468_v60, 6.0  ;;  %v1438_v5 = vadd.f32 %v2368_v20, %v1394_v27  ;;  %v1395_v33 = vmul.f32 %v2357_v10, %v1230_v62  ;;  %v1232_v2 = vadd.f32 %v2391_v47, %v1118_v0 }
 0x173   : > { %v1469_v8 = vmax.f32 %v1437_v63, 0.0  ;;  %v1120_v11 = vpop.f32.mrf.mxu0 }
 0x174   : > { %1532 = vst [vmem:[%s2386_s15 + $0x68] sm:$0xff] %v1500_v4  ;;  %v1470_v13 = vmax.f32 %v1438_v5, 0.0  ;;  %v1439_v40 = vadd.f32 %v2361_v14, %v1395_v33  ;;  %v1396_v16 = vmul.f32 %v2363_v15, %v1232_v2  ;;  %v1234_v18 = vadd.f32 %v2396_v54, %v1120_v11  ;;  %v1261_v2 = vpop.f32.mrf.mxu1 }
 0x175   : > { %v1501_v19 = vmin.f32 %v1469_v8, 6.0  ;;  %v1122_v21 = vpop.f32.mrf.mxu0 }
 0x176   : > { %v1502_v23 = vmin.f32 %v1470_v13, 6.0  ;;  %v1471_v24 = vmax.f32 %v1439_v40, 0.0  ;;  %v1440_v25 = vadd.f32 %v2368_v20, %v1396_v16  ;;  %v1397_v47 = vmul.f32 %v2357_v10, %v1234_v18 }
 0x177   : > { %1533 = vst [vmem:[%s2386_s15 + $0x70] sm:$0xff] %v1501_v19  ;;  %v1236_v28 = vadd.f32 %v2402_v61, %v1122_v21  ;;  %v1126_v29 = vpop.f32.mrf.mxu0 }
 0x178   : > { %1534 = vst [vmem:[%s2386_s15 + $0x78] sm:$0xff] %v1502_v23  ;;  %v1503_v6 = vmin.f32 %v1471_v24, 6.0  ;;  %v1472_v30 = vmax.f32 %v1440_v25, 0.0  ;;  %v1441_v54 = vadd.f32 %v2361_v14, %v1397_v47  ;;  %v1240_v31 = vadd.f32 %v2408_v7, %v1126_v29  ;;  %v1263_v47 = vpop.f32.mrf.mxu1 }
 0x179   : > { %v1398_v32 = vmul.f32 %v2363_v15, %v1236_v28  ;;  %v1128_v34 = vpop.f32.mrf.mxu0 }
 0x17a   : > { %1535 = vst [vmem:[%s2386_s15 + $0x80] sm:$0xff] %v1503_v6  ;;  %v1504_v35 = vmin.f32 %v1472_v30, 6.0  ;;  %v1473_v36 = vmax.f32 %v1441_v54, 0.0  ;;  %v1399_v37 = vmul.f32 %v2357_v10, %v1240_v31  ;;  %v1242_v61 = vadd.f32 %v2418_v26, %v1128_v34 }
 0x17b   : > { %v1442_v38 = vadd.f32 %v2368_v20, %v1398_v32  ;;  %v1130_v41 = vpop.f32.mrf.mxu0 }
 0x17c   : > { %1536 = vst [vmem:[%s2386_s15 + $0x88] sm:$0xff] %v1504_v35  ;;  %v1505_v12 = vmin.f32 %v1473_v36, 6.0  ;;  %v1443_v42 = vadd.f32 %v2361_v14, %v1399_v37  ;;  %v1400_v7 = vmul.f32 %v2363_v15, %v1242_v61  ;;  %v1244_v43 = vadd.f32 %v2428_v39, %v1130_v41  ;;  %v1265_v37 = vpop.f32.mrf.mxu1 }
 0x17d   : > { %v1474_v44 = vmax.f32 %v1442_v38, 0.0  ;;  %v1132_v45 = vpop.f32.mrf.mxu0 }
 0x17e   : > { %1537 = vst [vmem:[%s2386_s15 + $0x90] sm:$0xff] %v1505_v12  ;;  %v1475_v49 = vmax.f32 %v1443_v42, 0.0  ;;  %v1444_v26 = vadd.f32 %v2368_v20, %v1400_v7  ;;  %v1401_v17 = vmul.f32 %v2357_v10, %v1244_v43  ;;  %v1246_v50 = vadd.f32 %v2438_v48, %v1132_v45 }
 0x17f   : > { %v1506_v51 = vmin.f32 %v1474_v44, 6.0  ;;  %v1136_v52 = vpop.f32.mrf.mxu0 }
 0x180   : > { %v1507_v53 = vmin.f32 %v1475_v49, 6.0  ;;  %v1476_v55 = vmax.f32 %v1444_v26, 0.0  ;;  %v1445_v22 = vadd.f32 %v2361_v14, %v1401_v17  ;;  %v1402_v39 = vmul.f32 %v2363_v15, %v1246_v50 }
 0x181   : > { %1538 = vst [vmem:[%s2386_s15 + $0x98] sm:$0xff] %v1506_v51  ;;  %v1250_v56 = vadd.f32 %v1249_v1, %v1136_v52  ;;  %v1138_v57 = vpop.f32.mrf.mxu0 }
 0x182   : > { %1539 = vst [vmem:[%s2386_s15 + $0xa0] sm:$0xff] %v1507_v53  ;;  %v1508_v59 = vmin.f32 %v1476_v55, 6.0  ;;  %v1477_v60 = vmax.f32 %v1445_v22, 0.0  ;;  %v1446_v27 = vadd.f32 %v2368_v20, %v1402_v39  ;;  %v1252_v48 = vadd.f32 %v1251_v3, %v1138_v57  ;;  %v1582_v53 = vld [vmem:[%s2386_s15 + $0x18] sm:$0xff] (%p2094_p6)  ;;  %v1584_v55 = vld [vmem:[%s2386_s15 + $0x20] sm:$0xff] (%p2094_p6)  ;;  %v1586_v22 = vld [vmem:[%s2386_s15 + $0x28] sm:$0xff] (%p2094_p6) }
 0x183   : > { %v1403_v62 = vmul.f32 %v2357_v10, %v1250_v56  ;;  %v1140_v63 = vpop.f32.mrf.mxu0  ;;  %1583 = vst [vmem:[%s2517_s23 + $0x48] sm:$0xff] (%p2094_p6), %v1582_v53  ;;  %1585 = vst [vmem:[%s2517_s23 + $0x80] sm:$0xff] (%p2094_p6), %v1584_v55  ;;  %v1588_v39 = vld [vmem:[%s2386_s15 + $0x30] sm:$0xff] (%p2094_p6)  ;;  %v1590_v56 = vld [vmem:[%s2386_s15 + $0x38] sm:$0xff] (%p2094_p6) }
 0x184   : > { %1540 = vst [vmem:[%s2386_s15 + $0xa8] sm:$0xff] %v1508_v59  ;;  %v1509_v0 = vmin.f32 %v1477_v60, 6.0  ;;  %v1478_v4 = vmax.f32 %v1446_v27, 0.0  ;;  %v1404_v5 = vmul.f32 %v2363_v15, %v1252_v48  ;;  %v1254_v33 = vadd.f32 %v1253_v9, %v1140_v63  ;;  %1587 = vst [vmem:[%s2517_s23 + $0x88] sm:$0xff] (%p2094_p6), %v1586_v22  ;;  %v1592_v57 = vld [vmem:[%s2386_s15 + $0x40] sm:$0xff] (%p2094_p6)  ;;  %v1596_v59 = vld [vmem:[%s2386_s15 + $0x50] sm:$0xff] (%p2094_p6) }
 0x185   : > { %v1447_v1 = vadd.f32 %v2361_v14, %v1403_v62  ;;  %v1142_v8 = vpop.f32.mrf.mxu0  ;;  %1589 = vst [vmem:[%s2517_s23 + $0xc0] sm:$0xff] (%p2094_p6), %v1588_v39  ;;  %1591 = vst [vmem:[%s2517_s23 + $0xc8] sm:$0xff] (%p2094_p6), %v1590_v56  ;;  %v1598_v60 = vld [vmem:[%s2386_s15 + $0x58] sm:$0xff] (%p2094_p6)  ;;  %v1600_v27 = vld [vmem:[%s2386_s15 + $0x60] sm:$0xff] (%p2094_p6) }
 0x186   : > { %1541 = vst [vmem:[%s2386_s15 + $0xb0] sm:$0xff] %v1509_v0  ;;  %v1510_v11 = vmin.f32 %v1478_v4, 6.0  ;;  %v1448_v13 = vadd.f32 %v2368_v20, %v1404_v5  ;;  %v1405_v40 = vmul.f32 %v2357_v10, %v1254_v33  ;;  %v1256_v16 = vadd.f32 %v1255_v46, %v1142_v8  ;;  %1593 = vst [vmem:[%s2517_s23 + $0x100] sm:$0xff] (%p2094_p6), %v1592_v57  ;;  %v1602_v48 = vld [vmem:[%s2386_s15 + $0x68] sm:$0xff] (%p2094_p6)  ;;  %v1604_v62 = vld [vmem:[%s2386_s15 + $0x70] sm:$0xff] (%p2094_p6) }
 0x187   : > { %v1479_v18 = vmax.f32 %v1447_v1, 0.0  ;;  %v1146_v19 = vpop.f32.mrf.mxu0  ;;  %1597 = vst [vmem:[%s2517_s23 + $0x140] sm:$0xff] (%p2094_p6), %v1596_v59  ;;  %1599 = vst [vmem:[%s2517_s23 + $0x148] sm:$0xff] (%p2094_p6), %v1598_v60  ;;  %v1606_v63 = vld [vmem:[%s2386_s15 + $0x78] sm:$0xff] (%p2094_p6)  ;;  %v1608_v0 = vld [vmem:[%s2386_s15 + $0x80] sm:$0xff] (%p2094_p6) }
 0x188   : > { %1542 = vst [vmem:[%s2386_s15 + $0xb8] sm:$0xff] %v1510_v11  ;;  %v1480_v21 = vmax.f32 %v1448_v13, 0.0  ;;  %v1449_v3 = vadd.f32 %v2361_v14, %v1405_v40  ;;  %v1406_v23 = vmul.f32 %v2363_v15, %v1256_v16  ;;  %v1260_v24 = vadd.f32 %v1259_v58, %v1146_v19  ;;  %v1594_v58 = vld [vmem:[%s2386_s15 + $0x48] sm:$0xff] (%p2094_p6)  ;;  %1601 = vst [vmem:[%s2517_s23 + $0x180] sm:$0xff] (%p2094_p6), %v1600_v27  ;;  %v1612_v5 = vld [vmem:[%s2386_s15 + $0x90] sm:$0xff] (%p2094_p6) }
 0x189   : > { %v1511_v25 = vmin.f32 %v1479_v18, 6.0  ;;  %v1148_v28 = vpop.f32.mrf.mxu0  ;;  %1595 = vst [vmem:[%s2517_s23 + $0x108] sm:$0xff] (%p2094_p6), %v1594_v58  ;;  %1603 = vst [vmem:[%s2517_s23 + $0x188] sm:$0xff] (%p2094_p6), %v1602_v48  ;;  %v1610_v4 = vld [vmem:[%s2386_s15 + $0x88] sm:$0xff] (%p2094_p6)  ;;  %v1614_v33 = vld [vmem:[%s2386_s15 + $0x98] sm:$0xff] (%p2094_p6) }
 0x18a   : > { %v1512_v29 = vmin.f32 %v1480_v21, 6.0  ;;  %v1481_v6 = vmax.f32 %v1449_v3, 0.0  ;;  %v1450_v30 = vadd.f32 %v2368_v20, %v1406_v23  ;;  %v1407_v54 = vmul.f32 %v2357_v10, %v1260_v24  ;;  %1605 = vst [vmem:[%s2517_s23 + $0x1c0] sm:$0xff] (%p2094_p6), %v1604_v62  ;;  %1607 = vst [vmem:[%s2517_s23 + $0x1c8] sm:$0xff] (%p2094_p6), %v1606_v63  ;;  %v1616_v1 = vld [vmem:[%s2386_s15 + $0xa0] sm:$0xff] (%p2094_p6) }
 0x18b   : > { %1543 = vst [vmem:[%s2386_s15 + $0xc0] sm:$0xff] %v1511_v25  ;;  %v1262_v31 = vadd.f32 %v1261_v2, %v1148_v28  ;;  %v1150_v32 = vpop.f32.mrf.mxu0  ;;  %1609 = vst [vmem:[%s2517_s23 + $0x200] sm:$0xff] (%p2094_p6), %v1608_v0  ;;  %v1618_v2 = vld [vmem:[%s2386_s15 + $0xa8] sm:$0xff] (%p2094_p6) }
 0x18c   : > { %1544 = vst [vmem:[%s2386_s15 + $0xc8] sm:$0xff] %v1512_v29  ;;  %v1513_v34 = vmin.f32 %v1481_v6, 6.0  ;;  %v1482_v9 = vmax.f32 %v1450_v30, 0.0  ;;  %v1451_v35 = vadd.f32 %v2361_v14, %v1407_v54  ;;  %v1264_v36 = vadd.f32 %v1263_v47, %v1150_v32  ;;  %1611 = vst [vmem:[%s2517_s23 + $0x208] sm:$0xff] (%p2094_p6), %v1610_v4 }
 0x18d   : > { %v1408_v61 = vmul.f32 %v2363_v15, %v1262_v31  ;;  %v1152_v38 = vpop.f32.mrf.mxu0  ;;  %1613 = vst [vmem:[%s2517_s23 + $0x240] sm:$0xff] (%p2094_p6), %v1612_v5  ;;  %1615 = vst [vmem:[%s2517_s23 + $0x248] sm:$0xff] (%p2094_p6), %v1614_v33  ;;  %v1620_v8 = vld [vmem:[%s2386_s15 + $0xb0] sm:$0xff] (%p2094_p6) }
 0x18e   : > { %1545 = vst [vmem:[%s2386_s15 + $0xd0] sm:$0xff] %v1513_v34  ;;  %v1514_v41 = vmin.f32 %v1482_v9, 6.0  ;;  %v1483_v12 = vmax.f32 %v1451_v35, 0.0  ;;  %v1409_v42 = vmul.f32 %v2357_v10, %v1264_v36  ;;  %v1266_v7 = vadd.f32 %v1265_v37, %v1152_v38  ;;  %1617 = vst [vmem:[%s2517_s23 + $0x280] sm:$0xff] (%p2094_p6), %v1616_v1 }
 0x18f   : > { %v1452_v43 = vadd.f32 %v2368_v20, %v1408_v61  ;;  %v1622_v11 = vld [vmem:[%s2386_s15 + $0xb8] sm:$0xff] (%p2094_p6)  ;;  %1619 = vst [vmem:[%s2517_s23 + $0x288] sm:$0xff] (%p2094_p6), %v1618_v2  ;;  %1621 = vst [vmem:[%s2517_s23 + $0x2c0] sm:$0xff] (%p2094_p6), %v1620_v8 }
 0x190   : > { %1546 = vst [vmem:[%s2386_s15 + $0xd8] sm:$0xff] %v1514_v41  ;;  %v1515_v44 = vmin.f32 %v1483_v12, 6.0  ;;  %v1453_v45 = vadd.f32 %v2361_v14, %v1409_v42  ;;  %v1410_v46 = vmul.f32 %v2363_v15, %v1266_v7  ;;  %v1576_v14 = vld [vmem:[%s2386_s15] sm:$0xff] (%p2094_p6)  ;;  %v1578_v15 = vld [vmem:[%s2386_s15 + $0x8] sm:$0xff] (%p2094_p6)  ;;  %1623 = vst [vmem:[%s2517_s23 + $0x2c8] sm:$0xff] (%p2094_p6), %v1622_v11 }
 0x191   : > { %v1484_v49 = vmax.f32 %v1452_v43, 0.0  ;;  %1577 = vst [vmem:[%s2517_s23] sm:$0xff] (%p2094_p6), %v1576_v14  ;;  %1579 = vst [vmem:[%s2517_s23 + $0x8] sm:$0xff] (%p2094_p6), %v1578_v15 }
 0x192   : > { %1547 = vst [vmem:[%s2386_s15 + $0xe0] sm:$0xff] %v1515_v44  ;;  %v1485_v26 = vmax.f32 %v1453_v45, 0.0  ;;  %v1454_v17 = vadd.f32 %v2368_v20, %v1410_v46  ;;  %v1580_v20 = vld [vmem:[%s2386_s15 + $0x10] sm:$0xff] (%p2094_p6)  ;;  %v1624_v13 = vld [vmem:[%s2386_s15 + $0xc0] sm:$0xff] (%p2094_p6) }
 0x193   : > { %v1516_v50 = vmin.f32 %v1484_v49, 6.0  ;;  %1581 = vst [vmem:[%s2517_s23 + $0x40] sm:$0xff] (%p2094_p6), %v1580_v20  ;;  %v1626_v40 = vld [vmem:[%s2386_s15 + $0xc8] sm:$0xff] (%p2094_p6)  ;;  %1625 = vst [vmem:[%s2517_s23 + $0x300] sm:$0xff] (%p2094_p6), %v1624_v13 }
 0x194   : > { %v1517_v51 = vmin.f32 %v1485_v26, 6.0  ;;  %v1486_v52 = vmax.f32 %v1454_v17, 0.0  ;;  %1557 = sbr.rel (!%p2094_p6) target bundleno = 417 (0x1a1), region = 86  ;;  %1627 = vst [vmem:[%s2517_s23 + $0x308] sm:$0xff] (%p2094_p6), %v1626_v40 }
 0x195   : > { %1548 = vst [vmem:[%s2386_s15 + $0xe8] sm:$0xff] %v1516_v50  ;;  %v1628_v16 = vld [vmem:[%s2386_s15 + $0xd0] sm:$0xff] (%p2094_p6) }
 0x196   : > { %1549 = vst [vmem:[%s2386_s15 + $0xf0] sm:$0xff] %v1517_v51  ;;  %v1518_v10 = vmin.f32 %v1486_v52, 6.0  ;;  %1629 = vst [vmem:[%s2517_s23 + $0x340] sm:$0xff] (%p2094_p6), %v1628_v16 }
 0x197   : > { %v1630_v18 = vld [vmem:[%s2386_s15 + $0xd8] sm:$0xff] (%p2094_p6) }
 0x198   : > { %1550 = vst [vmem:[%s2386_s15 + $0xf8] sm:$0xff] %v1518_v10  ;;  %1631 = vst [vmem:[%s2517_s23 + $0x348] sm:$0xff] (%p2094_p6), %v1630_v18 }
 0x199   : > { %v1632_v19 = vld [vmem:[%s2386_s15 + $0xe0] sm:$0xff] }
 0x19a   : > { %1633 = vst [vmem:[%s2517_s23 + $0x380] sm:$0xff] %v1632_v19 }
 0x19c   : > { %v1634_v21 = vld [vmem:[%s2386_s15 + $0xe8] sm:$0xff] }
 0x19d   : > { %1635 = vst [vmem:[%s2517_s23 + $0x388] sm:$0xff] %v1634_v21  ;;  %v1636_v3 = vld [vmem:[%s2386_s15 + $0xf0] sm:$0xff] }
 0x19e   : > { %1637 = vst [vmem:[%s2517_s23 + $0x3c0] sm:$0xff] %v1636_v3 }
 0x19f   : > { %v1638_v23 = vld [vmem:[%s2386_s15 + $0xf8] sm:$0xff] }
 0x1a0   : > { %1639 = vst [vmem:[%s2517_s23 + $0x3c8] sm:$0xff] %v1638_v23 }
 0x1a1 PF: > { %s14_s19 = sadd.s32 1, %s2031_s19   ;;  %s2601_s15 = smov %s2019_s16 }
 0x1a2   : > { %p11_p12 = scmp.ge.s32.totalorder %s14_s19, 6   ;;  %s2602_s16 = smov %s2099_s25 }
 0x1a3   : > { %s2603_s17 = smov %s2027_s18  ;;  %s2604_s18 = smov %s2606_s20 }
 0x1a4   :  { %13 = sbr.rel (!%p11_p12) target bundleno = 3 (0x3), region = 149 }

// kernel: segmentation_custom_forward.17
= control target key start
LH: loop header
LB: loop body
LE: loop exit
PB: predicated region body
PF: predicated region fallthrough
CT: control target
= control target key end

     0   :  { %s2056_s15 = smov 0   ;;  %s2058_s16 = smov 0   ;;  %s2465_s0 = inlined_call_operand.vmem [shape: bf16[128,1024], index: 0, kind: input, shape index: {}]   ;;  %s2466_s1 = inlined_call_operand.vmem [shape: bf16[1024,256], index: 1, kind: input, shape index: {}]   ;;  %s2467_s2 = inlined_call_operand.vmem [shape: f32[1,256], index: 2, kind: input, shape index: {}]   ;;  %s2468_s3 = inlined_call_operand.vmem [shape: f32[1,256], index: 3, kind: input, shape index: {}]   ;;  %s2469_s4 = inlined_call_operand.vmem [shape: f32[128,256], index: 4, kind: output, shape index: {}]  }
   0x1   :  { %s2060_s17 = smov 0   ;;  %s2062_s18 = smov 0  }
   0x2   :  { %s2064_s19 = smov 0  }
   0x3 LB: > { %s26_s20 = sadd.s32 1, %s2024_s18  ;;  %p49_p1 = scmp.ne.s32.totalorder %s2016_s16, %s2012_s15  ;;  %s2028_s19 = sphi %s2064_s19, %s14_s19   ;;  %s2024_s18 = sphi %s2062_s18, %s2473_s18   ;;  %s2020_s17 = sphi %s2060_s17, %s2472_s17   ;;  %s2016_s16 = sphi %s2058_s16, %s2471_s16   ;;  %s2012_s15 = sphi %s2056_s15, %s2470_s15  }
   0x4   : > { %p27_p0 = scmp.ge.s32.totalorder %s26_s20, 2  ;;  %p50_p2 = scmp.eq.s32.totalorder %s2028_s19, 0 }
   0x5   : > { %s42_s22 = sadd.s32 1, %s2016_s16  ;;  %p1692_p5 = scmp.ge.s32.totalorder %s2028_s19, 2 }
   0x6   : > { %s2475_s20 = smov (%p27_p0, %s26_s20), 0  ;;  %p51_p3 = por %p50_p2, %p49_p1 }
   0x7   : > { %s38_s21 = ssub.s32 %s2024_s18, %s2475_s20  ;;  %199 = sbr.rel (%p1692_p5) target bundleno = 32 (0x20), region = 24 }
   0x8   : > { %p40_p4 = scmp.eq.s32.totalorder %s38_s21, 0 }
   0xa   : > { %s2091_s23 = scalar_select %p40_p4, %s2016_s16, %s42_s22  }
   0xc   : > { %202 = sbr.rel (!%p51_p3) target bundleno = 32 (0x20), region = 28  ;;  %s204_s24 = sand.u32 (%p51_p3), 1, %s2016_s16  }
   0xd   : > { %s1803_s25 = sshll.u32 (%p51_p3), %s2024_s18, 4  ;;  %s1693_s26 = sshll.u32 (%p51_p3), %s204_s24, 8 }
   0xe   : > { %s2099_s29 = scalar_lea.vmem (%p51_p3), %s2465_s0, %s1803_s25  ;;  %s2104_s30 = scalar_lea.vmem (%p51_p3), [#allocation3], %s1693_s26 }
   0xf   : > { %v225_v0 = vld [vmem:[%s2099_s29] sm:$0xff] (%p51_p3)  ;;  %v227_v1 = vld [vmem:[%s2099_s29 + $0x8] sm:$0xff] (%p51_p3) }
  0x10   : > { %v229_v2 = vld [vmem:[%s2099_s29 + $0x20] sm:$0xff] (%p51_p3)  ;;  %226 = vst [vmem:[%s2104_s30] sm:$0xff] (%p51_p3), %v225_v0  ;;  %228 = vst [vmem:[%s2104_s30 + $0x8] sm:$0xff] (%p51_p3), %v227_v1  ;;  %v231_v3 = vld [vmem:[%s2099_s29 + $0x28] sm:$0xff] (%p51_p3) }
  0x11   : > { %230 = vst [vmem:[%s2104_s30 + $0x10] sm:$0xff] %v229_v2  ;;  %v233_v4 = vld [vmem:[%s2099_s29 + $0x40] sm:$0xff]  ;;  %v235_v5 = vld [vmem:[%s2099_s29 + $0x48] sm:$0xff]  ;;  %232 = vst [vmem:[%s2104_s30 + $0x18] sm:$0xff] %v231_v3 }
  0x12   : > { %234 = vst [vmem:[%s2104_s30 + $0x20] sm:$0xff] %v233_v4  ;;  %236 = vst [vmem:[%s2104_s30 + $0x28] sm:$0xff] %v235_v5  ;;  %v237_v6 = vld [vmem:[%s2099_s29 + $0x60] sm:$0xff]  ;;  %v239_v7 = vld [vmem:[%s2099_s29 + $0x68] sm:$0xff] }
  0x13   : > { %v241_v8 = vld [vmem:[%s2099_s29 + $0x80] sm:$0xff]  ;;  %238 = vst [vmem:[%s2104_s30 + $0x30] sm:$0xff] %v237_v6  ;;  %240 = vst [vmem:[%s2104_s30 + $0x38] sm:$0xff] %v239_v7  ;;  %v243_v9 = vld [vmem:[%s2099_s29 + $0x88] sm:$0xff] }
  0x14   : > { %242 = vst [vmem:[%s2104_s30 + $0x40] sm:$0xff] %v241_v8  ;;  %v245_v10 = vld [vmem:[%s2099_s29 + $0xa0] sm:$0xff]  ;;  %v247_v11 = vld [vmem:[%s2099_s29 + $0xa8] sm:$0xff]  ;;  %244 = vst [vmem:[%s2104_s30 + $0x48] sm:$0xff] %v243_v9 }
  0x15   : > { %246 = vst [vmem:[%s2104_s30 + $0x50] sm:$0xff] %v245_v10  ;;  %248 = vst [vmem:[%s2104_s30 + $0x58] sm:$0xff] %v247_v11  ;;  %v249_v12 = vld [vmem:[%s2099_s29 + $0xc0] sm:$0xff]  ;;  %v251_v13 = vld [vmem:[%s2099_s29 + $0xc8] sm:$0xff] }
  0x16   : > { %v253_v14 = vld [vmem:[%s2099_s29 + $0xe0] sm:$0xff]  ;;  %250 = vst [vmem:[%s2104_s30 + $0x60] sm:$0xff] %v249_v12  ;;  %252 = vst [vmem:[%s2104_s30 + $0x68] sm:$0xff] %v251_v13  ;;  %v255_v15 = vld [vmem:[%s2099_s29 + $0xe8] sm:$0xff] }
  0x17   : > { %254 = vst [vmem:[%s2104_s30 + $0x70] sm:$0xff] %v253_v14  ;;  %v257_v16 = vld [vmem:[%s2099_s29 + $0x100] sm:$0xff]  ;;  %v259_v17 = vld [vmem:[%s2099_s29 + $0x108] sm:$0xff]  ;;  %256 = vst [vmem:[%s2104_s30 + $0x78] sm:$0xff] %v255_v15 }
  0x18   : > { %258 = vst [vmem:[%s2104_s30 + $0x80] sm:$0xff] %v257_v16  ;;  %260 = vst [vmem:[%s2104_s30 + $0x88] sm:$0xff] %v259_v17  ;;  %v261_v18 = vld [vmem:[%s2099_s29 + $0x120] sm:$0xff]  ;;  %v263_v19 = vld [vmem:[%s2099_s29 + $0x128] sm:$0xff] }
  0x19   : > { %v265_v20 = vld [vmem:[%s2099_s29 + $0x140] sm:$0xff]  ;;  %262 = vst [vmem:[%s2104_s30 + $0x90] sm:$0xff] %v261_v18  ;;  %264 = vst [vmem:[%s2104_s30 + $0x98] sm:$0xff] %v263_v19  ;;  %v267_v21 = vld [vmem:[%s2099_s29 + $0x148] sm:$0xff] }
  0x1a   : > { %266 = vst [vmem:[%s2104_s30 + $0xa0] sm:$0xff] %v265_v20  ;;  %v269_v22 = vld [vmem:[%s2099_s29 + $0x160] sm:$0xff]  ;;  %v271_v23 = vld [vmem:[%s2099_s29 + $0x168] sm:$0xff]  ;;  %268 = vst [vmem:[%s2104_s30 + $0xa8] sm:$0xff] %v267_v21 }
  0x1b   : > { %270 = vst [vmem:[%s2104_s30 + $0xb0] sm:$0xff] %v269_v22  ;;  %272 = vst [vmem:[%s2104_s30 + $0xb8] sm:$0xff] %v271_v23  ;;  %v273_v24 = vld [vmem:[%s2099_s29 + $0x180] sm:$0xff]  ;;  %v275_v25 = vld [vmem:[%s2099_s29 + $0x188] sm:$0xff] }
  0x1c   : > { %v277_v26 = vld [vmem:[%s2099_s29 + $0x1a0] sm:$0xff]  ;;  %274 = vst [vmem:[%s2104_s30 + $0xc0] sm:$0xff] %v273_v24  ;;  %276 = vst [vmem:[%s2104_s30 + $0xc8] sm:$0xff] %v275_v25  ;;  %v279_v27 = vld [vmem:[%s2099_s29 + $0x1a8] sm:$0xff] }
  0x1d   : > { %278 = vst [vmem:[%s2104_s30 + $0xd0] sm:$0xff] %v277_v26  ;;  %v281_v28 = vld [vmem:[%s2099_s29 + $0x1c0] sm:$0xff]  ;;  %v283_v29 = vld [vmem:[%s2099_s29 + $0x1c8] sm:$0xff]  ;;  %280 = vst [vmem:[%s2104_s30 + $0xd8] sm:$0xff] %v279_v27 }
  0x1e   : > { %282 = vst [vmem:[%s2104_s30 + $0xe0] sm:$0xff] %v281_v28  ;;  %284 = vst [vmem:[%s2104_s30 + $0xe8] sm:$0xff] %v283_v29  ;;  %v285_v30 = vld [vmem:[%s2099_s29 + $0x1e0] sm:$0xff]  ;;  %v287_v31 = vld [vmem:[%s2099_s29 + $0x1e8] sm:$0xff] }
  0x1f   : > { %286 = vst [vmem:[%s2104_s30 + $0xf0] sm:$0xff] %v285_v30  ;;  %288 = vst [vmem:[%s2104_s30 + $0xf8] sm:$0xff] %v287_v31 }
  0x20 PF: > { %p1696_p6 = scmp.ge.s32.totalorder %s2028_s19, 1  ;;  %p308_p7 = scmp.lt.s32.totalorder %s2028_s19, 3 }
  0x22   : > { %p309_p8 = pnand %p1696_p6, %p308_p7 }
  0x23   : > { %s315_s5 = sand.u32 (!%p309_p8), 1, %s2012_s15   ;;  %s1698_s6 = sshll.u32 (!%p309_p8), %s2020_s17, 6 }
  0x24   : > { %312 = sbr.rel (%p309_p8) target bundleno = 436 (0x1b4), region = 55  ;;  %s1697_s7 = sshll.u32 (!%p309_p8), %s315_s5, 8 }
  0x25   : > { %p367_p9 = scmp.lt.s32.totalorder (!%p309_p8), %s1698_s6, 127  ;;  %s2176_s12 = scalar_lea.vmem (!%p309_p8), [#allocation3], %s1697_s7 }
  0x26   : > { %p1701_p10 = scmp.ne.s32.totalorder (!%p309_p8), %s2020_s17, 0 }
  0x29   : > { %s2477_s6 = smov (!%p367_p9, %s1698_s6), 127  ;;  %402 = sbr.rel (%p1701_p10) target bundleno = 63 (0x3f), region = 63 }
  0x2a   : > { %s1804_s8 = sshll.u32 %s2477_s6, 3 }
  0x2b   : > { %s2174_s11 = scalar_lea.vmem %s2466_s1, %s1804_s8 }
  0x2e   : > { %v2030_v32 = vmov 0.0  }
  0x2f   : > { %403 = vst [vmem:[#allocation2 + $0xb0] sm:$0xff] %v2030_v32  ;;  %404 = vst [vmem:[#allocation2] sm:$0xff] %v2030_v32 }
  0x30   : > { %405 = vst [vmem:[#allocation2 + $0xd8] sm:$0xff] %v2030_v32  ;;  %406 = vst [vmem:[#allocation2 + $0x18] sm:$0xff] %v2030_v32 }
  0x31   : > { %407 = vst [vmem:[#allocation2 + $0x50] sm:$0xff] %v2030_v32  ;;  %408 = vst [vmem:[#allocation2 + $0x68] sm:$0xff] %v2030_v32 }
  0x32   : > { %409 = vst [vmem:[#allocation2 + $0x30] sm:$0xff] %v2030_v32  ;;  %410 = vst [vmem:[#allocation2 + $0x48] sm:$0xff] %v2030_v32 }
  0x33   : > { %411 = vst [vmem:[#allocation2 + $0x80] sm:$0xff] %v2030_v32  ;;  %412 = vst [vmem:[#allocation2 + $0x88] sm:$0xff] %v2030_v32 }
  0x34   : > { %413 = vst [vmem:[#allocation2 + $0xe8] sm:$0xff] %v2030_v32  ;;  %414 = vst [vmem:[#allocation2 + $0xb8] sm:$0xff] %v2030_v32 }
  0x35   : > { %415 = vst [vmem:[#allocation2 + $0x60] sm:$0xff] %v2030_v32  ;;  %416 = vst [vmem:[#allocation2 + $0xf0] sm:$0xff] %v2030_v32 }
  0x36   : > { %417 = vst [vmem:[#allocation2 + $0x8] sm:$0xff] %v2030_v32  ;;  %418 = vst [vmem:[#allocation2 + $0x78] sm:$0xff] %v2030_v32 }
  0x37   : > { %419 = vst [vmem:[#allocation2 + $0x38] sm:$0xff] %v2030_v32  ;;  %420 = vst [vmem:[#allocation2 + $0x58] sm:$0xff] %v2030_v32 }
  0x38   : > { %421 = vst [vmem:[#allocation2 + $0x40] sm:$0xff] %v2030_v32  ;;  %422 = vst [vmem:[#allocation2 + $0xc8] sm:$0xff] %v2030_v32 }
  0x39   : > { %423 = vst [vmem:[#allocation2 + $0xe0] sm:$0xff] %v2030_v32  ;;  %424 = vst [vmem:[#allocation2 + $0x90] sm:$0xff] %v2030_v32 }
  0x3a   : > { %425 = vst [vmem:[#allocation2 + $0x70] sm:$0xff] %v2030_v32  ;;  %426 = vst [vmem:[#allocation2 + $0xc0] sm:$0xff] %v2030_v32 }
  0x3b   : > { %427 = vst [vmem:[#allocation2 + $0xa8] sm:$0xff] %v2030_v32  ;;  %428 = vst [vmem:[#allocation2 + $0xd0] sm:$0xff] %v2030_v32 }
  0x3c   : > { %429 = vst [vmem:[#allocation2 + $0x10] sm:$0xff] %v2030_v32  ;;  %430 = vst [vmem:[#allocation2 + $0x28] sm:$0xff] %v2030_v32 }
  0x3d   : > { %431 = vst [vmem:[#allocation2 + $0xa0] sm:$0xff] %v2030_v32  ;;  %432 = vst [vmem:[#allocation2 + $0xf8] sm:$0xff] %v2030_v32 }
  0x3e   : > { %433 = vst [vmem:[#allocation2 + $0x20] sm:$0xff] %v2030_v32  ;;  %434 = vst [vmem:[#allocation2 + $0x98] sm:$0xff] %v2030_v32 }
  0x3f PF: > { %v1846_v33 = vld [vmem:[%s2174_s11 + $0x74] ss:$8 sps:$4 sm:$0xff]   ;;  %v1850_v35 = vld [vmem:[%s2174_s11 + $0x70] ss:$8 sps:$4 sm:$0xff]   ;;  %v1852_v37 = vld [vmem:[%s2174_s11 + $0x64] ss:$8 sps:$4 sm:$0xff]  }
  0x40   : > { %v1848_v34 = vld [vmem:[%s2174_s11 + $0x174] ss:$8 sps:$4 sm:$0xff]   ;;  %1043 = vmatprep.subr.bf16.mxu0 %v1846_v33  ;;  %v1851_v36 = vld [vmem:[%s2174_s11 + $0x170] ss:$8 sps:$4 sm:$0xff]   ;;  %v1854_v38 = vld [vmem:[%s2174_s11 + $0x164] ss:$8 sps:$4 sm:$0xff]  }
  0x41   : > { %1156 = vmatprep.subr.bf16.mxu1 %v1848_v34  ;;  %1044 = vmatpush1.bf16.msra.mxu0 %v1850_v35  ;;  %v1856_v39 = vld [vmem:[%s2174_s11 + $0x60] ss:$8 sps:$4 sm:$0xff]   ;;  %v1858_v41 = vld [vmem:[%s2174_s11 + $0x54] ss:$8 sps:$4 sm:$0xff]   ;;  %v1862_v43 = vld [vmem:[%s2174_s11 + $0x50] ss:$8 sps:$4 sm:$0xff]  }
  0x42   : > { %1157 = vmatpush1.bf16.msra.mxu1 %v1851_v36  ;;  %1045 = vmatprep.subr.bf16.mxu0 %v1852_v37  ;;  %v1857_v40 = vld [vmem:[%s2174_s11 + $0x160] ss:$8 sps:$4 sm:$0xff]   ;;  %v1860_v42 = vld [vmem:[%s2174_s11 + $0x154] ss:$8 sps:$4 sm:$0xff]   ;;  %v1863_v44 = vld [vmem:[%s2174_s11 + $0x150] ss:$8 sps:$4 sm:$0xff]  }
  0x43   : > { %1158 = vmatprep.subr.bf16.mxu1 %v1854_v38  ;;  %v1864_v45 = vld [vmem:[%s2174_s11 + $0x44] ss:$8 sps:$4 sm:$0xff]   ;;  %v1868_v47 = vld [vmem:[%s2174_s11 + $0x40] ss:$8 sps:$4 sm:$0xff]   ;;  %v1870_v49 = vld [vmem:[%s2174_s11 + $0x34] ss:$8 sps:$4 sm:$0xff]  }
  0x44   : > { %v1866_v46 = vld [vmem:[%s2174_s11 + $0x144] ss:$8 sps:$4 sm:$0xff]   ;;  %v1869_v48 = vld [vmem:[%s2174_s11 + $0x140] ss:$8 sps:$4 sm:$0xff]   ;;  %v1872_v50 = vld [vmem:[%s2174_s11 + $0x134] ss:$8 sps:$4 sm:$0xff]  }
  0x45   : > { %1046 = vmatpush1.bf16.msra.mxu0 %v1856_v39  ;;  %v1874_v51 = vld [vmem:[%s2174_s11 + $0x30] ss:$8 sps:$4 sm:$0xff]   ;;  %v1876_v53 = vld [vmem:[%s2174_s11 + $0x24] ss:$8 sps:$4 sm:$0xff]   ;;  %v1880_v55 = vld [vmem:[%s2174_s11 + $0x20] ss:$8 sps:$4 sm:$0xff]  }
  0x46   : > { %1159 = vmatpush1.bf16.msra.mxu1 %v1857_v40  ;;  %1047 = vmatprep.subr.bf16.mxu0 %v1858_v41  ;;  %v1875_v52 = vld [vmem:[%s2174_s11 + $0x130] ss:$8 sps:$4 sm:$0xff]   ;;  %v1878_v54 = vld [vmem:[%s2174_s11 + $0x124] ss:$8 sps:$4 sm:$0xff]   ;;  %v1881_v56 = vld [vmem:[%s2174_s11 + $0x120] ss:$8 sps:$4 sm:$0xff]  }
  0x47   : > { %1160 = vmatprep.subr.bf16.mxu1 %v1860_v42  ;;  %v1882_v57 = vld [vmem:[%s2174_s11 + $0x14] ss:$8 sps:$4 sm:$0xff]   ;;  %v1886_v59 = vld [vmem:[%s2174_s11 + $0x10] ss:$8 sps:$4 sm:$0xff]   ;;  %v1888_v61 = vld [vmem:[%s2174_s11 + $0x4] ss:$8 sps:$4 sm:$0xff]  }
  0x48   : > { %v1884_v58 = vld [vmem:[%s2174_s11 + $0x114] ss:$8 sps:$4 sm:$0xff]   ;;  %v1887_v60 = vld [vmem:[%s2174_s11 + $0x110] ss:$8 sps:$4 sm:$0xff]   ;;  %v1890_v62 = vld [vmem:[%s2174_s11 + $0x104] ss:$8 sps:$4 sm:$0xff]  }
  0x49   : > { %1048 = vmatpush1.bf16.msra.mxu0 %v1862_v43  ;;  %v1892_v63 = vld [vmem:[%s2174_s11] ss:$8 sps:$4 sm:$0xff]   ;;  %v1894_v1 = vld [vmem:[%s2174_s11 + $0xf4] ss:$8 sps:$4 sm:$0xff]   ;;  %v1898_v3 = vld [vmem:[%s2174_s11 + $0xf0] ss:$8 sps:$4 sm:$0xff]  }
  0x4a   : > { %1161 = vmatpush1.bf16.msra.mxu1 %v1863_v44  ;;  %1049 = vmatprep.subr.bf16.mxu0 %v1864_v45  ;;  %v1893_v0 = vld [vmem:[%s2174_s11 + $0x100] ss:$8 sps:$4 sm:$0xff]   ;;  %v1896_v2 = vld [vmem:[%s2174_s11 + $0x1f4] ss:$8 sps:$4 sm:$0xff]   ;;  %v1899_v4 = vld [vmem:[%s2174_s11 + $0x1f0] ss:$8 sps:$4 sm:$0xff]  }
  0x4b   : > { %1162 = vmatprep.subr.bf16.mxu1 %v1866_v46  ;;  %v1900_v5 = vld [vmem:[%s2174_s11 + $0xe4] ss:$8 sps:$4 sm:$0xff]   ;;  %v1904_v7 = vld [vmem:[%s2174_s11 + $0xe0] ss:$8 sps:$4 sm:$0xff]   ;;  %v1906_v9 = vld [vmem:[%s2174_s11 + $0xd4] ss:$8 sps:$4 sm:$0xff]  }
  0x4c   : > { %v1902_v6 = vld [vmem:[%s2174_s11 + $0x1e4] ss:$8 sps:$4 sm:$0xff]   ;;  %v1905_v8 = vld [vmem:[%s2174_s11 + $0x1e0] ss:$8 sps:$4 sm:$0xff]   ;;  %v1908_v10 = vld [vmem:[%s2174_s11 + $0x1d4] ss:$8 sps:$4 sm:$0xff]  }
  0x4d   : > { %1050 = vmatpush1.bf16.msra.mxu0 %v1868_v47  ;;  %v1910_v11 = vld [vmem:[%s2174_s11 + $0xd0] ss:$8 sps:$4 sm:$0xff]   ;;  %v1912_v13 = vld [vmem:[%s2174_s11 + $0xc4] ss:$8 sps:$4 sm:$0xff]   ;;  %v1916_v15 = vld [vmem:[%s2174_s11 + $0xc0] ss:$8 sps:$4 sm:$0xff]  }
  0x4e   : > { %1163 = vmatpush1.bf16.msra.mxu1 %v1869_v48  ;;  %1051 = vmatprep.subr.bf16.mxu0 %v1870_v49  ;;  %v1911_v12 = vld [vmem:[%s2174_s11 + $0x1d0] ss:$8 sps:$4 sm:$0xff]   ;;  %v1914_v14 = vld [vmem:[%s2174_s11 + $0x1c4] ss:$8 sps:$4 sm:$0xff]   ;;  %v1917_v16 = vld [vmem:[%s2174_s11 + $0x1c0] ss:$8 sps:$4 sm:$0xff]  }
  0x4f   : > { %1164 = vmatprep.subr.bf16.mxu1 %v1872_v50  ;;  %v1918_v17 = vld [vmem:[%s2174_s11 + $0xb4] ss:$8 sps:$4 sm:$0xff]   ;;  %v1922_v21 = vld [vmem:[%s2174_s11 + $0xb0] ss:$8 sps:$4 sm:$0xff]   ;;  %v1924_v23 = vld [vmem:[%s2174_s11 + $0xa4] ss:$8 sps:$4 sm:$0xff]  }
  0x50   : > { %v1944_v18 = vld [vmem:[%s2176_s12 + $0x4] ss:$16 sps:$4 sm:$0xff]   ;;  %v1947_v20 = vld [vmem:[%s2176_s12 + $0xc] ss:$16 sps:$4 sm:$0xff]   ;;  %v1923_v22 = vld [vmem:[%s2174_s11 + $0x1b0] ss:$8 sps:$4 sm:$0xff]  }
  0x51   : > { %1052 = vmatpush1.bf16.msra.mxu0 %v1874_v51  ;;  %v1920_v19 = vld [vmem:[%s2174_s11 + $0x1b4] ss:$8 sps:$4 sm:$0xff]   ;;  %1075 = vmatprep.mubr.bf16.mxu0 %v1944_v18  ;;  %v1926_v24 = vld [vmem:[%s2174_s11 + $0x1a4] ss:$8 sps:$4 sm:$0xff]   ;;  %v1928_v25 = vld [vmem:[%s2174_s11 + $0xa0] ss:$8 sps:$4 sm:$0xff]  }
  0x52   : > { %1165 = vmatpush1.bf16.msra.mxu1 %v1875_v52  ;;  %1053 = vmatprep.subr.bf16.mxu0 %v1876_v53  ;;  %v1929_v26 = vld [vmem:[%s2174_s11 + $0x1a0] ss:$8 sps:$4 sm:$0xff]   ;;  %v1930_v27 = vld [vmem:[%s2174_s11 + $0x94] ss:$8 sps:$4 sm:$0xff]   ;;  %v1934_v29 = vld [vmem:[%s2174_s11 + $0x90] ss:$8 sps:$4 sm:$0xff]  }
  0x53   : > { %1166 = vmatprep.subr.bf16.mxu1 %v1878_v54  ;;  %1188 = vmatprep.mubr.bf16.mxu1 %v1947_v20  ;;  %v1932_v28 = vld [vmem:[%s2174_s11 + $0x194] ss:$8 sps:$4 sm:$0xff]   ;;  %v1935_v30 = vld [vmem:[%s2174_s11 + $0x190] ss:$8 sps:$4 sm:$0xff]   ;;  %v1936_v31 = vld [vmem:[%s2174_s11 + $0x84] ss:$8 sps:$4 sm:$0xff]  }
  0x54   : > { %v1938_v32 = vld [vmem:[%s2174_s11 + $0x184] ss:$8 sps:$4 sm:$0xff]   ;;  %v1940_v33 = vld [vmem:[%s2174_s11 + $0x80] ss:$8 sps:$4 sm:$0xff]   ;;  %p1798_p11 = scmp.ne.s32.totalorder %s2020_s17, 1 }
  0x55   : > { %1054 = vmatpush1.bf16.msra.mxu0 %v1880_v55  ;;  %v1941_v34 = vld [vmem:[%s2174_s11 + $0x180] ss:$8 sps:$4 sm:$0xff]   ;;  %v1948_v37 = vld [vmem:[%s2176_s12 + $0x24] ss:$16 sps:$4 sm:$0xff]   ;;  %v1950_v38 = vld [vmem:[%s2176_s12 + $0x2c] ss:$16 sps:$4 sm:$0xff]  }
  0x56   : > { %1167 = vmatpush1.bf16.msra.mxu1 %v1881_v56  ;;  %1055 = vmatprep.subr.bf16.mxu0 %v1882_v57  ;;  %v1942_v35 = vld [vmem:[%s2176_s12] ss:$16 sps:$4 sm:$0xff]   ;;  %v1945_v36 = vld [vmem:[%s2176_s12 + $0x8] ss:$16 sps:$4 sm:$0xff]   ;;  %v1954_v41 = vld [vmem:[%s2176_s12 + $0x44] ss:$16 sps:$4 sm:$0xff]  }
  0x57   : > { %1168 = vmatprep.subr.bf16.mxu1 %v1884_v58  ;;  %v1952_v39 = vld [vmem:[%s2176_s12 + $0x20] ss:$16 sps:$4 sm:$0xff]   ;;  %v1953_v40 = vld [vmem:[%s2176_s12 + $0x28] ss:$16 sps:$4 sm:$0xff]   ;;  %v1956_v42 = vld [vmem:[%s2176_s12 + $0x4c] ss:$16 sps:$4 sm:$0xff]  }
  0x58   : > { %v1958_v43 = vld [vmem:[%s2176_s12 + $0x40] ss:$16 sps:$4 sm:$0xff]   ;;  %v1959_v44 = vld [vmem:[%s2176_s12 + $0x48] ss:$16 sps:$4 sm:$0xff]   ;;  %v1960_v45 = vld [vmem:[%s2176_s12 + $0x64] ss:$16 sps:$4 sm:$0xff]  }
  0x59   : > { %1056 = vmatpush1.bf16.msra.mxu0 %v1886_v59  ;;  %v1962_v46 = vld [vmem:[%s2176_s12 + $0x6c] ss:$16 sps:$4 sm:$0xff]   ;;  %v1964_v47 = vld [vmem:[%s2176_s12 + $0x60] ss:$16 sps:$4 sm:$0xff]   ;;  %v1965_v48 = vld [vmem:[%s2176_s12 + $0x68] ss:$16 sps:$4 sm:$0xff]  }
  0x5a   : > { %1169 = vmatpush1.bf16.msra.mxu1 %v1887_v60  ;;  %1057 = vmatprep.subr.bf16.mxu0 %v1888_v61  ;;  %v1966_v49 = vld [vmem:[%s2176_s12 + $0x84] ss:$16 sps:$4 sm:$0xff]   ;;  %v1968_v50 = vld [vmem:[%s2176_s12 + $0x8c] ss:$16 sps:$4 sm:$0xff]   ;;  %v1970_v51 = vld [vmem:[%s2176_s12 + $0x80] ss:$16 sps:$4 sm:$0xff]  }
  0x5b   : > { %1170 = vmatprep.subr.bf16.mxu1 %v1890_v62  ;;  %v1971_v52 = vld [vmem:[%s2176_s12 + $0x88] ss:$16 sps:$4 sm:$0xff]   ;;  %v1972_v53 = vld [vmem:[%s2176_s12 + $0xa4] ss:$16 sps:$4 sm:$0xff]   ;;  %v1974_v54 = vld [vmem:[%s2176_s12 + $0xac] ss:$16 sps:$4 sm:$0xff]  }
  0x5c   : > { %v1976_v55 = vld [vmem:[%s2176_s12 + $0xa0] ss:$16 sps:$4 sm:$0xff]   ;;  %v1977_v56 = vld [vmem:[%s2176_s12 + $0xa8] ss:$16 sps:$4 sm:$0xff]   ;;  %v1978_v57 = vld [vmem:[%s2176_s12 + $0xc4] ss:$16 sps:$4 sm:$0xff]  }
  0x5d   : > { %1058 = vmatpush1.bf16.msra.mxu0 %v1892_v63  ;;  %v1980_v58 = vld [vmem:[%s2176_s12 + $0xcc] ss:$16 sps:$4 sm:$0xff]   ;;  %v1982_v59 = vld [vmem:[%s2176_s12 + $0xc0] ss:$16 sps:$4 sm:$0xff]   ;;  %v1983_v60 = vld [vmem:[%s2176_s12 + $0xc8] ss:$16 sps:$4 sm:$0xff]  }
  0x5e   : > { %1171 = vmatpush1.bf16.msra.mxu1 %v1893_v0  ;;  %1059 = vmatprep.subr.bf16.mxu0 %v1894_v1  ;;  %v1984_v61 = vld [vmem:[%s2176_s12 + $0xe4] ss:$16 sps:$4 sm:$0xff]   ;;  %v1986_v62 = vld [vmem:[%s2176_s12 + $0xec] ss:$16 sps:$4 sm:$0xff]   ;;  %v1988_v63 = vld [vmem:[%s2176_s12 + $0xe0] ss:$16 sps:$4 sm:$0xff]  }
  0x5f   : > { %1172 = vmatprep.subr.bf16.mxu1 %v1896_v2  ;;  %v1989_v0 = vld [vmem:[%s2176_s12 + $0xe8] ss:$16 sps:$4 sm:$0xff]   ;;  %v435_v2 = vld [vmem:[#allocation2 + $0xb0] sm:$0xff] }
  0x61   : > { %1060 = vmatpush2.bf16.msra.mxu0 %v1898_v3 }
  0x62   : > { %1173 = vmatpush2.bf16.msra.mxu1 %v1899_v4  ;;  %1061 = vmatprep.subr.bf16.mxu0 %v1900_v5 }
  0x63   : > { %1174 = vmatprep.subr.bf16.mxu1 %v1902_v6  ;;  %v436_v6 = vld [vmem:[#allocation2] sm:$0xff] }
  0x65   : > { %1062 = vmatpush2.bf16.msra.mxu0 %v1904_v7 }
  0x66   : > { %1175 = vmatpush2.bf16.msra.mxu1 %v1905_v8  ;;  %1063 = vmatprep.subr.bf16.mxu0 %v1906_v9 }
  0x67   : > { %1176 = vmatprep.subr.bf16.mxu1 %v1908_v10 }
  0x69   : > { %1064 = vmatpush2.bf16.msra.mxu0 %v1910_v11  ;;  %v437_v11 = vld [vmem:[#allocation2 + $0xd8] sm:$0xff] }
  0x6a   : > { %1177 = vmatpush2.bf16.msra.mxu1 %v1911_v12  ;;  %1065 = vmatprep.subr.bf16.mxu0 %v1912_v13 }
  0x6b   : > { %1178 = vmatprep.subr.bf16.mxu1 %v1914_v14 }
  0x6d   : > { %1066 = vmatpush2.bf16.msra.mxu0 %v1916_v15 }
  0x6e   : > { %1179 = vmatpush2.bf16.msra.mxu1 %v1917_v16  ;;  %1067 = vmatprep.subr.bf16.mxu0 %v1918_v17  ;;  %v438_v16 = vld [vmem:[#allocation2 + $0x18] sm:$0xff] }
  0x6f   : > { %1180 = vmatprep.subr.bf16.mxu1 %v1920_v19 }
  0x71   : > { %1068 = vmatpush2.bf16.msra.mxu0 %v1922_v21  ;;  %v439_v21 = vld [vmem:[#allocation2 + $0x50] sm:$0xff] }
  0x72   : > { %1181 = vmatpush2.bf16.msra.mxu1 %v1923_v22  ;;  %1069 = vmatprep.subr.bf16.mxu0 %v1924_v23 }
  0x73   : > { %1182 = vmatprep.subr.bf16.mxu1 %v1926_v24 }
  0x75   : > { %1070 = vmatpush2.bf16.msra.mxu0 %v1928_v25 }
  0x76   : > { %1183 = vmatpush2.bf16.msra.mxu1 %v1929_v26  ;;  %1071 = vmatprep.subr.bf16.mxu0 %v1930_v27  ;;  %v440_v26 = vld [vmem:[#allocation2 + $0x68] sm:$0xff] }
  0x77   : > { %1184 = vmatprep.subr.bf16.mxu1 %v1932_v28 }
  0x79   : > { %1072 = vmatpush2.bf16.msra.mxu0 %v1934_v29 }
  0x7a   : > { %1185 = vmatpush2.bf16.msra.mxu1 %v1935_v30  ;;  %1073 = vmatprep.subr.bf16.mxu0 %v1936_v31  ;;  %v441_v31 = vld [vmem:[#allocation2 + $0x30] sm:$0xff] }
  0x7b   : > { %1186 = vmatprep.subr.bf16.mxu1 %v1938_v32 }
  0x7d   : > { %1074 = vmatpush2.bf16.msra.mxu0 %v1940_v33 }
  0x7e   : > { %1187 = vmatpush2.bf16.msra.mxu1 %v1941_v34 }
  0x80   : > { %1076 = vmatmul.mubr.bf16.vlgmr.msra.gmra.mxu0 %v1942_v35 }
  0x81   : > { %1189 = vmatmul.mubr.bf16.vlgmr.msra.gmra.mxu1 %v1945_v36  ;;  %1085 = vmatprep.mubr.bf16.mxu0 %v1948_v37  ;;  %v442_v36 = vld [vmem:[#allocation2 + $0x48] sm:$0xff] }
  0x82   : > { %1198 = vmatprep.mubr.bf16.mxu1 %v1950_v38 }
  0x88   : > { %1086 = vmatmul.mubr.bf16.gmra.mxu0 %v1952_v39 }
  0x89   : > { %1199 = vmatmul.mubr.bf16.gmra.mxu1 %v1953_v40  ;;  %1095 = vmatprep.mubr.bf16.mxu0 %v1954_v41  ;;  %v443_v41 = vld [vmem:[#allocation2 + $0x80] sm:$0xff] }
  0x8a   : > { %1208 = vmatprep.mubr.bf16.mxu1 %v1956_v42 }
  0x90   : > { %1096 = vmatmul.mubr.bf16.gmra.mxu0 %v1958_v43 }
  0x91   : > { %1209 = vmatmul.mubr.bf16.gmra.mxu1 %v1959_v44  ;;  %1105 = vmatprep.mubr.bf16.mxu0 %v1960_v45 }
  0x92   : > { %1218 = vmatprep.mubr.bf16.mxu1 %v1962_v46  ;;  %v444_v46 = vld [vmem:[#allocation2 + $0x88] sm:$0xff] }
  0x98   : > { %1106 = vmatmul.mubr.bf16.gmra.mxu0 %v1964_v47 }
  0x99   : > { %1219 = vmatmul.mubr.bf16.gmra.mxu1 %v1965_v48  ;;  %1115 = vmatprep.mubr.bf16.mxu0 %v1966_v49 }
  0x9a   : > { %1228 = vmatprep.mubr.bf16.mxu1 %v1968_v50 }
  0xa0   : > { %1116 = vmatmul.mubr.bf16.gmra.mxu0 %v1970_v51  ;;  %v445_v51 = vld [vmem:[#allocation2 + $0xe8] sm:$0xff] }
  0xa1   : > { %1229 = vmatmul.mubr.bf16.gmra.mxu1 %v1971_v52  ;;  %1125 = vmatprep.mubr.bf16.mxu0 %v1972_v53 }
  0xa2   : > { %1238 = vmatprep.mubr.bf16.mxu1 %v1974_v54 }
  0xa8   : > { %1126 = vmatmul.mubr.bf16.gmra.mxu0 %v1976_v55 }
  0xa9   : > { %1239 = vmatmul.mubr.bf16.gmra.mxu1 %v1977_v56  ;;  %1135 = vmatprep.mubr.bf16.mxu0 %v1978_v57  ;;  %v446_v56 = vld [vmem:[#allocation2 + $0xb8] sm:$0xff] }
  0xaa   : > { %1248 = vmatprep.mubr.bf16.mxu1 %v1980_v58 }
  0xb0   : > { %1136 = vmatmul.mubr.bf16.gmra.mxu0 %v1982_v59 }
  0xb1   : > { %1249 = vmatmul.mubr.bf16.gmra.mxu1 %v1983_v60  ;;  %1145 = vmatprep.mubr.bf16.mxu0 %v1984_v61  ;;  %v447_v61 = vld [vmem:[#allocation2 + $0x60] sm:$0xff] }
  0xb2   : > { %1258 = vmatprep.mubr.bf16.mxu1 %v1986_v62 }
  0xb8   : > { %1146 = vmatmul.mubr.bf16.gmra.mxu0 %v1988_v63 }
  0xb9   : > { %1259 = vmatmul.mubr.bf16.gmra.mxu1 %v1989_v0 }
 0x140   : > { %v1077_v1 = vpop.f32.mrf.mxu0 }
 0x141   : > { %v1190_v3 = vpop.f32.mrf.mxu1 }
 0x142   : > { %v1191_v4 = vadd.f32 %v1190_v3, %v1077_v1  ;;  %v1079_v5 = vpop.f32.mrf.mxu0 }
 0x143   : > { %v1192_v7 = vpop.f32.mrf.mxu1 }
 0x144   : > { %v1269_v8 = vadd.f32 %v1191_v4, %v435_v2  ;;  %v1193_v9 = vadd.f32 %v1192_v7, %v1079_v5  ;;  %v1081_v10 = vpop.f32.mrf.mxu0  ;;  %v448_v2 = vld [vmem:[#allocation2 + $0xf0] sm:$0xff]  ;;  %v449_v7 = vld [vmem:[#allocation2 + $0x8] sm:$0xff] }
 0x145   : > { %v1194_v12 = vpop.f32.mrf.mxu1 }
 0x146   : > { %1301 = vst [vmem:[#allocation2 + $0xb0] sm:$0xff] %v1269_v8  ;;  %v1270_v13 = vadd.f32 %v1193_v9, %v436_v6  ;;  %v1195_v14 = vadd.f32 %v1194_v12, %v1081_v10  ;;  %v1083_v15 = vpop.f32.mrf.mxu0  ;;  %v450_v12 = vld [vmem:[#allocation2 + $0x78] sm:$0xff] }
 0x147   : > { %v1196_v17 = vpop.f32.mrf.mxu1 }
 0x148   : > { %1302 = vst [vmem:[#allocation2] sm:$0xff] %v1270_v13  ;;  %v1271_v18 = vadd.f32 %v1195_v14, %v437_v11  ;;  %v1197_v19 = vadd.f32 %v1196_v17, %v1083_v15  ;;  %v1087_v20 = vpop.f32.mrf.mxu0  ;;  %v451_v17 = vld [vmem:[#allocation2 + $0x38] sm:$0xff] }
 0x149   : > { %v1200_v22 = vpop.f32.mrf.mxu1 }
 0x14a   : > { %1303 = vst [vmem:[#allocation2 + $0xd8] sm:$0xff] %v1271_v18  ;;  %v1272_v23 = vadd.f32 %v1197_v19, %v438_v16  ;;  %v1201_v24 = vadd.f32 %v1200_v22, %v1087_v20  ;;  %v1089_v25 = vpop.f32.mrf.mxu0  ;;  %v452_v22 = vld [vmem:[#allocation2 + $0x58] sm:$0xff] }
 0x14b   : > { %v1202_v27 = vpop.f32.mrf.mxu1 }
 0x14c   : > { %1304 = vst [vmem:[#allocation2 + $0x18] sm:$0xff] %v1272_v23  ;;  %v1273_v28 = vadd.f32 %v1201_v24, %v439_v21  ;;  %v1203_v29 = vadd.f32 %v1202_v27, %v1089_v25  ;;  %v1091_v30 = vpop.f32.mrf.mxu0  ;;  %v453_v27 = vld [vmem:[#allocation2 + $0x40] sm:$0xff] }
 0x14d   : > { %v1204_v32 = vpop.f32.mrf.mxu1 }
 0x14e   : > { %1305 = vst [vmem:[#allocation2 + $0x50] sm:$0xff] %v1273_v28  ;;  %v1274_v33 = vadd.f32 %v1203_v29, %v440_v26  ;;  %v1205_v34 = vadd.f32 %v1204_v32, %v1091_v30  ;;  %v1093_v35 = vpop.f32.mrf.mxu0  ;;  %v454_v32 = vld [vmem:[#allocation2 + $0xc8] sm:$0xff] }
 0x14f   : > { %v1206_v37 = vpop.f32.mrf.mxu1 }
 0x150   : > { %1306 = vst [vmem:[#allocation2 + $0x68] sm:$0xff] %v1274_v33  ;;  %v1275_v38 = vadd.f32 %v1205_v34, %v441_v31  ;;  %v1207_v39 = vadd.f32 %v1206_v37, %v1093_v35  ;;  %v1097_v40 = vpop.f32.mrf.mxu0  ;;  %v455_v37 = vld [vmem:[#allocation2 + $0xe0] sm:$0xff] }
 0x151   : > { %v1210_v42 = vpop.f32.mrf.mxu1 }
 0x152   : > { %1307 = vst [vmem:[#allocation2 + $0x30] sm:$0xff] %v1275_v38  ;;  %v1276_v43 = vadd.f32 %v1207_v39, %v442_v36  ;;  %v1211_v44 = vadd.f32 %v1210_v42, %v1097_v40  ;;  %v1099_v45 = vpop.f32.mrf.mxu0  ;;  %v456_v42 = vld [vmem:[#allocation2 + $0x90] sm:$0xff] }
 0x153   : > { %v1212_v47 = vpop.f32.mrf.mxu1 }
 0x154   : > { %1308 = vst [vmem:[#allocation2 + $0x48] sm:$0xff] %v1276_v43  ;;  %v1277_v48 = vadd.f32 %v1211_v44, %v443_v41  ;;  %v1213_v49 = vadd.f32 %v1212_v47, %v1099_v45  ;;  %v1101_v50 = vpop.f32.mrf.mxu0  ;;  %v457_v47 = vld [vmem:[#allocation2 + $0x70] sm:$0xff] }
 0x155   : > { %v1214_v52 = vpop.f32.mrf.mxu1 }
 0x156   : > { %1309 = vst [vmem:[#allocation2 + $0x80] sm:$0xff] %v1277_v48  ;;  %v1278_v53 = vadd.f32 %v1213_v49, %v444_v46  ;;  %v1215_v54 = vadd.f32 %v1214_v52, %v1101_v50  ;;  %v1103_v55 = vpop.f32.mrf.mxu0  ;;  %v458_v52 = vld [vmem:[#allocation2 + $0xc0] sm:$0xff] }
 0x157   : > { %v1216_v57 = vpop.f32.mrf.mxu1 }
 0x158   : > { %1310 = vst [vmem:[#allocation2 + $0x88] sm:$0xff] %v1278_v53  ;;  %v1279_v58 = vadd.f32 %v1215_v54, %v445_v51  ;;  %v1217_v59 = vadd.f32 %v1216_v57, %v1103_v55  ;;  %v1107_v60 = vpop.f32.mrf.mxu0  ;;  %v459_v57 = vld [vmem:[#allocation2 + $0xa8] sm:$0xff] }
 0x159   : > { %v1220_v62 = vpop.f32.mrf.mxu1 }
 0x15a   : > { %1311 = vst [vmem:[#allocation2 + $0xe8] sm:$0xff] %v1279_v58  ;;  %v1280_v63 = vadd.f32 %v1217_v59, %v446_v56  ;;  %v1221_v0 = vadd.f32 %v1220_v62, %v1107_v60  ;;  %v1109_v1 = vpop.f32.mrf.mxu0  ;;  %v460_v62 = vld [vmem:[#allocation2 + $0xd0] sm:$0xff] }
 0x15b   : > { %v1222_v3 = vpop.f32.mrf.mxu1 }
 0x15c   : > { %1312 = vst [vmem:[#allocation2 + $0xb8] sm:$0xff] %v1280_v63  ;;  %v1281_v4 = vadd.f32 %v1221_v0, %v447_v61  ;;  %v1223_v5 = vadd.f32 %v1222_v3, %v1109_v1  ;;  %v1111_v6 = vpop.f32.mrf.mxu0  ;;  %v461_v3 = vld [vmem:[#allocation2 + $0x10] sm:$0xff] }
 0x15d   : > { %v1224_v8 = vpop.f32.mrf.mxu1 }
 0x15e   : > { %1313 = vst [vmem:[#allocation2 + $0x60] sm:$0xff] %v1281_v4  ;;  %v1282_v9 = vadd.f32 %v1223_v5, %v448_v2  ;;  %v1225_v10 = vadd.f32 %v1224_v8, %v1111_v6  ;;  %v1113_v11 = vpop.f32.mrf.mxu0  ;;  %v462_v8 = vld [vmem:[#allocation2 + $0x28] sm:$0xff] }
 0x15f   : > { %v1226_v13 = vpop.f32.mrf.mxu1 }
 0x160   : > { %1314 = vst [vmem:[#allocation2 + $0xf0] sm:$0xff] %v1282_v9  ;;  %v1283_v14 = vadd.f32 %v1225_v10, %v449_v7  ;;  %v1227_v15 = vadd.f32 %v1226_v13, %v1113_v11  ;;  %v1117_v16 = vpop.f32.mrf.mxu0  ;;  %v463_v13 = vld [vmem:[#allocation2 + $0xa0] sm:$0xff] }
 0x161   : > { %v1230_v18 = vpop.f32.mrf.mxu1 }
 0x162   : > { %1315 = vst [vmem:[#allocation2 + $0x8] sm:$0xff] %v1283_v14  ;;  %v1284_v19 = vadd.f32 %v1227_v15, %v450_v12  ;;  %v1231_v20 = vadd.f32 %v1230_v18, %v1117_v16  ;;  %v1119_v21 = vpop.f32.mrf.mxu0  ;;  %v464_v18 = vld [vmem:[#allocation2 + $0xf8] sm:$0xff] }
 0x163   : > { %v1232_v23 = vpop.f32.mrf.mxu1 }
 0x164   : > { %1316 = vst [vmem:[#allocation2 + $0x78] sm:$0xff] %v1284_v19  ;;  %v1285_v24 = vadd.f32 %v1231_v20, %v451_v17  ;;  %v1233_v25 = vadd.f32 %v1232_v23, %v1119_v21  ;;  %v1121_v26 = vpop.f32.mrf.mxu0  ;;  %v465_v23 = vld [vmem:[#allocation2 + $0x20] sm:$0xff] }
 0x165   : > { %v1234_v28 = vpop.f32.mrf.mxu1 }
 0x166   : > { %1317 = vst [vmem:[#allocation2 + $0x38] sm:$0xff] %v1285_v24  ;;  %v1286_v29 = vadd.f32 %v1233_v25, %v452_v22  ;;  %v1235_v30 = vadd.f32 %v1234_v28, %v1121_v26  ;;  %v1123_v31 = vpop.f32.mrf.mxu0  ;;  %v466_v28 = vld [vmem:[#allocation2 + $0x98] sm:$0xff] }
 0x167   : > { %v1236_v33 = vpop.f32.mrf.mxu1 }
 0x168   : > { %1318 = vst [vmem:[#allocation2 + $0x58] sm:$0xff] %v1286_v29  ;;  %v1287_v34 = vadd.f32 %v1235_v30, %v453_v27  ;;  %v1237_v35 = vadd.f32 %v1236_v33, %v1123_v31  ;;  %v1127_v36 = vpop.f32.mrf.mxu0 }
 0x169   : > { %v1240_v38 = vpop.f32.mrf.mxu1 }
 0x16a   : > { %1319 = vst [vmem:[#allocation2 + $0x40] sm:$0xff] %v1287_v34  ;;  %v1288_v39 = vadd.f32 %v1237_v35, %v454_v32  ;;  %v1241_v40 = vadd.f32 %v1240_v38, %v1127_v36  ;;  %v1129_v41 = vpop.f32.mrf.mxu0 }
 0x16b   : > { %v1242_v43 = vpop.f32.mrf.mxu1 }
 0x16c   : > { %1320 = vst [vmem:[#allocation2 + $0xc8] sm:$0xff] %v1288_v39  ;;  %v1289_v44 = vadd.f32 %v1241_v40, %v455_v37  ;;  %v1243_v45 = vadd.f32 %v1242_v43, %v1129_v41  ;;  %v1131_v46 = vpop.f32.mrf.mxu0 }
 0x16d   : > { %v1244_v48 = vpop.f32.mrf.mxu1 }
 0x16e   : > { %1321 = vst [vmem:[#allocation2 + $0xe0] sm:$0xff] %v1289_v44  ;;  %v1290_v49 = vadd.f32 %v1243_v45, %v456_v42  ;;  %v1245_v50 = vadd.f32 %v1244_v48, %v1131_v46  ;;  %v1133_v51 = vpop.f32.mrf.mxu0 }
 0x16f   : > { %v1246_v53 = vpop.f32.mrf.mxu1 }
 0x170   : > { %1322 = vst [vmem:[#allocation2 + $0x90] sm:$0xff] %v1290_v49  ;;  %v1291_v54 = vadd.f32 %v1245_v50, %v457_v47  ;;  %v1247_v55 = vadd.f32 %v1246_v53, %v1133_v51  ;;  %v1137_v56 = vpop.f32.mrf.mxu0 }
 0x171   : > { %v1250_v58 = vpop.f32.mrf.mxu1 }
 0x172   : > { %1323 = vst [vmem:[#allocation2 + $0x70] sm:$0xff] %v1291_v54  ;;  %v1292_v59 = vadd.f32 %v1247_v55, %v458_v52  ;;  %v1251_v60 = vadd.f32 %v1250_v58, %v1137_v56  ;;  %v1139_v61 = vpop.f32.mrf.mxu0 }
 0x173   : > { %v1252_v63 = vpop.f32.mrf.mxu1 }
 0x174   : > { %1324 = vst [vmem:[#allocation2 + $0xc0] sm:$0xff] %v1292_v59  ;;  %v1293_v0 = vadd.f32 %v1251_v60, %v459_v57  ;;  %v1253_v1 = vadd.f32 %v1252_v63, %v1139_v61  ;;  %v1141_v2 = vpop.f32.mrf.mxu0 }
 0x175   : > { %v1254_v4 = vpop.f32.mrf.mxu1 }
 0x176   : > { %1325 = vst [vmem:[#allocation2 + $0xa8] sm:$0xff] %v1293_v0  ;;  %v1294_v5 = vadd.f32 %v1253_v1, %v460_v62  ;;  %v1255_v6 = vadd.f32 %v1254_v4, %v1141_v2  ;;  %v1143_v7 = vpop.f32.mrf.mxu0 }
 0x177   : > { %v1256_v9 = vpop.f32.mrf.mxu1 }
 0x178   : > { %1326 = vst [vmem:[#allocation2 + $0xd0] sm:$0xff] %v1294_v5  ;;  %v1295_v10 = vadd.f32 %v1255_v6, %v461_v3  ;;  %v1257_v11 = vadd.f32 %v1256_v9, %v1143_v7  ;;  %v1147_v12 = vpop.f32.mrf.mxu0 }
 0x179   : > { %v1260_v14 = vpop.f32.mrf.mxu1 }
 0x17a   : > { %1327 = vst [vmem:[#allocation2 + $0x10] sm:$0xff] %v1295_v10  ;;  %v1296_v15 = vadd.f32 %v1257_v11, %v462_v8  ;;  %v1261_v16 = vadd.f32 %v1260_v14, %v1147_v12  ;;  %v1149_v17 = vpop.f32.mrf.mxu0 }
 0x17b   : > { %v1262_v19 = vpop.f32.mrf.mxu1 }
 0x17c   : > { %1328 = vst [vmem:[#allocation2 + $0x28] sm:$0xff] %v1296_v15  ;;  %v1297_v20 = vadd.f32 %v1261_v16, %v463_v13  ;;  %v1263_v21 = vadd.f32 %v1262_v19, %v1149_v17  ;;  %v1151_v22 = vpop.f32.mrf.mxu0 }
 0x17d   : > { %v1264_v24 = vpop.f32.mrf.mxu1 }
 0x17e   : > { %1329 = vst [vmem:[#allocation2 + $0xa0] sm:$0xff] %v1297_v20  ;;  %v1298_v25 = vadd.f32 %v1263_v21, %v464_v18  ;;  %v1265_v26 = vadd.f32 %v1264_v24, %v1151_v22  ;;  %v1153_v27 = vpop.f32.mrf.mxu0 }
 0x17f   : > { %v1266_v29 = vpop.f32.mrf.mxu1 }
 0x180   : > { %1330 = vst [vmem:[#allocation2 + $0xf8] sm:$0xff] %v1298_v25  ;;  %v1299_v30 = vadd.f32 %v1265_v26, %v465_v23  ;;  %v1267_v31 = vadd.f32 %v1266_v29, %v1153_v27  ;;  %1336 = sbr.rel (%p1798_p11) target bundleno = 436 (0x1b4), region = 67 }
 0x182   : > { %1331 = vst [vmem:[#allocation2 + $0x20] sm:$0xff] %v1299_v30  ;;  %v1300_v32 = vadd.f32 %v1267_v31, %v466_v28 }
 0x184   : > { %1332 = vst [vmem:[#allocation2 + $0x98] sm:$0xff] %v1300_v32 }
 0x185   : > { %v1371_v33 = vlaneseq  ;;  %v1369_v35 = vld [vmem:[%s2467_s2] sm:$0x3]  ;;  %v1337_v37 = vld [vmem:[#allocation2 + $0xb0] sm:$0xff]  ;;  %v1339_v41 = vld [vmem:[#allocation2 + $0xd8] sm:$0xff] }
 0x186   : > { %v1413_v36 = vld [vmem:[%s2468_s3] sm:$0x3]  ;;  %v1340_v42 = vld [vmem:[#allocation2 + $0x18] sm:$0xff]  ;;  %v1341_v43 = vld [vmem:[#allocation2 + $0x50] sm:$0xff] }
 0x187   : > { %v1372_v34 = vshrl.u32 %v1371_v33, 7  ;;  %v1338_v39 = vld [vmem:[#allocation2] sm:$0xff]  ;;  %v1342_v48 = vld [vmem:[#allocation2 + $0x68] sm:$0xff]  ;;  %v1343_v49 = vld [vmem:[#allocation2 + $0x30] sm:$0xff] }
 0x188   : > { %v1344_v50 = vld [vmem:[#allocation2 + $0x48] sm:$0xff]  ;;  %v1345_v3 = vld [vmem:[#allocation2 + $0x80] sm:$0xff]  ;;  %v1348_v10 = vld [vmem:[#allocation2 + $0xb8] sm:$0xff] }
 0x189   : > { %v1373_v38 = vsub.s32 0, %v1372_v34  ;;  %v1377_v40 = vsub.s32 1, %v1372_v34  ;;  %v1346_v4 = vld [vmem:[#allocation2 + $0x88] sm:$0xff]  ;;  %v1349_v15 = vld [vmem:[#allocation2 + $0x60] sm:$0xff]  ;;  %v1350_v16 = vld [vmem:[#allocation2 + $0xf0] sm:$0xff] }
 0x18a   : > { %v1347_v9 = vld [vmem:[#allocation2 + $0xe8] sm:$0xff]  ;;  %v1352_v22 = vld [vmem:[#allocation2 + $0x78] sm:$0xff] }
 0x18b   : > { %v2282_v44 = vrot.slane %v1369_v35, %v1373_v38  ;;  %v2284_v45 = vrot.slane %v1413_v36, %v1373_v38  ;;  %v2286_v46 = vrot.slane %v1369_v35, %v1377_v40  ;;  %v2288_v47 = vrot.slane %v1413_v36, %v1377_v40  ;;  %v1351_v21 = vld [vmem:[#allocation2 + $0x8] sm:$0xff] }
 0x18d   : > { %v1381_v51 = vmul.f32 %v2282_v44, %v1337_v37  ;;  %v1382_v52 = vmul.f32 %v2286_v46, %v1338_v39  ;;  %v1383_v53 = vmul.f32 %v2282_v44, %v1339_v41  ;;  %v1384_v54 = vmul.f32 %v2286_v46, %v1340_v42 }
 0x18e   : > { %v1385_v55 = vmul.f32 %v2282_v44, %v1341_v43  ;;  %v1386_v56 = vmul.f32 %v2286_v46, %v1342_v48  ;;  %v1387_v57 = vmul.f32 %v2282_v44, %v1343_v49  ;;  %v1388_v58 = vmul.f32 %v2286_v46, %v1344_v50  ;;  %v1353_v43 = vld [vmem:[#allocation2 + $0x38] sm:$0xff] }
 0x18f   : > { %v1425_v59 = vadd.f32 %v2284_v45, %v1381_v51  ;;  %v1426_v60 = vadd.f32 %v2288_v47, %v1382_v52  ;;  %v1427_v61 = vadd.f32 %v2284_v45, %v1383_v53  ;;  %v1428_v62 = vadd.f32 %v2288_v47, %v1384_v54  ;;  %v1354_v48 = vld [vmem:[#allocation2 + $0x58] sm:$0xff]  ;;  %v1355_v53 = vld [vmem:[#allocation2 + $0x40] sm:$0xff]  ;;  %v1356_v54 = vld [vmem:[#allocation2 + $0xc8] sm:$0xff] }
 0x190   : > { %v1429_v63 = vadd.f32 %v2284_v45, %v1385_v55  ;;  %v1430_v0 = vadd.f32 %v2288_v47, %v1386_v56  ;;  %v1431_v1 = vadd.f32 %v2284_v45, %v1387_v57  ;;  %v1432_v2 = vadd.f32 %v2288_v47, %v1388_v58 }
 0x191   : > { %v1457_v5 = vmax.f32 %v1425_v59, 0.0  ;;  %v1458_v6 = vmax.f32 %v1426_v60, 0.0  ;;  %v1459_v7 = vmax.f32 %v1427_v61, 0.0  ;;  %v1460_v8 = vmax.f32 %v1428_v62, 0.0  ;;  %v1357_v59 = vld [vmem:[#allocation2 + $0xe0] sm:$0xff]  ;;  %v1358_v60 = vld [vmem:[#allocation2 + $0x90] sm:$0xff] }
 0x192   : > { %v1461_v11 = vmax.f32 %v1429_v63, 0.0  ;;  %v1462_v12 = vmax.f32 %v1430_v0, 0.0  ;;  %v1463_v13 = vmax.f32 %v1431_v1, 0.0  ;;  %v1464_v14 = vmax.f32 %v1432_v2, 0.0  ;;  %v1359_v1 = vld [vmem:[#allocation2 + $0x70] sm:$0xff]  ;;  %v1360_v2 = vld [vmem:[#allocation2 + $0xc0] sm:$0xff] }
 0x193   : > { %v1489_v17 = vmin.f32 %v1457_v5, 6.0  ;;  %v1490_v18 = vmin.f32 %v1458_v6, 6.0  ;;  %v1491_v19 = vmin.f32 %v1459_v7, 6.0  ;;  %v1492_v20 = vmin.f32 %v1460_v8, 6.0 }
 0x194   : > { %v1493_v23 = vmin.f32 %v1461_v11, 6.0  ;;  %v1494_v24 = vmin.f32 %v1462_v12, 6.0  ;;  %v1495_v25 = vmin.f32 %v1463_v13, 6.0  ;;  %v1496_v26 = vmin.f32 %v1464_v14, 6.0 }
 0x195   : > { %1521 = vst [vmem:[%s2469_s4] sm:$0xff] %v1489_v17  ;;  %1522 = vst [vmem:[%s2469_s4 + $0x8] sm:$0xff] %v1490_v18  ;;  %v1389_v27 = vmul.f32 %v2282_v44, %v1345_v3  ;;  %v1390_v28 = vmul.f32 %v2286_v46, %v1346_v4  ;;  %v1391_v29 = vmul.f32 %v2282_v44, %v1347_v9 }
 0x196   : > { %1523 = vst [vmem:[%s2469_s4 + $0x10] sm:$0xff] %v1491_v19  ;;  %1524 = vst [vmem:[%s2469_s4 + $0x18] sm:$0xff] %v1492_v20  ;;  %v1392_v30 = vmul.f32 %v2286_v46, %v1348_v10  ;;  %v1393_v31 = vmul.f32 %v2282_v44, %v1349_v15  ;;  %v1394_v32 = vmul.f32 %v2286_v46, %v1350_v16 }
 0x197   : > { %1525 = vst [vmem:[%s2469_s4 + $0x20] sm:$0xff] %v1493_v23  ;;  %1526 = vst [vmem:[%s2469_s4 + $0x28] sm:$0xff] %v1494_v24  ;;  %v1395_v33 = vmul.f32 %v2282_v44, %v1351_v21  ;;  %v1396_v34 = vmul.f32 %v2286_v46, %v1352_v22  ;;  %v1433_v35 = vadd.f32 %v2284_v45, %v1389_v27  ;;  %v1361_v23 = vld [vmem:[#allocation2 + $0xa8] sm:$0xff]  ;;  %v1362_v24 = vld [vmem:[#allocation2 + $0xd0] sm:$0xff] }
 0x198   : > { %1527 = vst [vmem:[%s2469_s4 + $0x30] sm:$0xff] %v1495_v25  ;;  %1528 = vst [vmem:[%s2469_s4 + $0x38] sm:$0xff] %v1496_v26  ;;  %v1434_v36 = vadd.f32 %v2288_v47, %v1390_v28  ;;  %v1435_v37 = vadd.f32 %v2284_v45, %v1391_v29  ;;  %v1436_v38 = vadd.f32 %v2288_v47, %v1392_v30  ;;  %v1363_v29 = vld [vmem:[#allocation2 + $0x10] sm:$0xff]  ;;  %v1364_v30 = vld [vmem:[#allocation2 + $0x28] sm:$0xff] }
 0x199   : > { %v1437_v39 = vadd.f32 %v2284_v45, %v1393_v31  ;;  %v1438_v40 = vadd.f32 %v2288_v47, %v1394_v32  ;;  %v1439_v41 = vadd.f32 %v2284_v45, %v1395_v33  ;;  %v1440_v42 = vadd.f32 %v2288_v47, %v1396_v34 }
 0x19a   : > { %v1465_v49 = vmax.f32 %v1433_v35, 0.0  ;;  %v1466_v50 = vmax.f32 %v1434_v36, 0.0  ;;  %v1467_v51 = vmax.f32 %v1435_v37, 0.0  ;;  %v1468_v52 = vmax.f32 %v1436_v38, 0.0  ;;  %v1365_v35 = vld [vmem:[#allocation2 + $0xa0] sm:$0xff]  ;;  %v1366_v36 = vld [vmem:[#allocation2 + $0xf8] sm:$0xff] }
 0x19b   : > { %v1469_v55 = vmax.f32 %v1437_v39, 0.0  ;;  %v1470_v56 = vmax.f32 %v1438_v40, 0.0  ;;  %v1471_v57 = vmax.f32 %v1439_v41, 0.0  ;;  %v1472_v58 = vmax.f32 %v1440_v42, 0.0  ;;  %v1367_v41 = vld [vmem:[#allocation2 + $0x20] sm:$0xff]  ;;  %v1368_v42 = vld [vmem:[#allocation2 + $0x98] sm:$0xff] }
 0x19c   : > { %v1497_v61 = vmin.f32 %v1465_v49, 6.0  ;;  %v1498_v62 = vmin.f32 %v1466_v50, 6.0  ;;  %v1499_v63 = vmin.f32 %v1467_v51, 6.0  ;;  %v1500_v0 = vmin.f32 %v1468_v52, 6.0 }
 0x19d   : > { %v1501_v3 = vmin.f32 %v1469_v55, 6.0  ;;  %v1502_v4 = vmin.f32 %v1470_v56, 6.0  ;;  %v1503_v5 = vmin.f32 %v1471_v57, 6.0  ;;  %v1504_v6 = vmin.f32 %v1472_v58, 6.0 }
 0x19e   : > { %1529 = vst [vmem:[%s2469_s4 + $0x40] sm:$0xff] %v1497_v61  ;;  %1530 = vst [vmem:[%s2469_s4 + $0x48] sm:$0xff] %v1498_v62  ;;  %v1397_v7 = vmul.f32 %v2282_v44, %v1353_v43  ;;  %v1398_v8 = vmul.f32 %v2286_v46, %v1354_v48  ;;  %v1399_v9 = vmul.f32 %v2282_v44, %v1355_v53 }
 0x19f   : > { %1531 = vst [vmem:[%s2469_s4 + $0x50] sm:$0xff] %v1499_v63  ;;  %1532 = vst [vmem:[%s2469_s4 + $0x58] sm:$0xff] %v1500_v0  ;;  %v1400_v10 = vmul.f32 %v2286_v46, %v1356_v54  ;;  %v1401_v11 = vmul.f32 %v2282_v44, %v1357_v59  ;;  %v1402_v12 = vmul.f32 %v2286_v46, %v1358_v60 }
 0x1a0   : > { %1533 = vst [vmem:[%s2469_s4 + $0x60] sm:$0xff] %v1501_v3  ;;  %1534 = vst [vmem:[%s2469_s4 + $0x68] sm:$0xff] %v1502_v4  ;;  %v1403_v13 = vmul.f32 %v2282_v44, %v1359_v1  ;;  %v1404_v14 = vmul.f32 %v2286_v46, %v1360_v2  ;;  %v1441_v15 = vadd.f32 %v2284_v45, %v1397_v7 }
 0x1a1   : > { %1535 = vst [vmem:[%s2469_s4 + $0x70] sm:$0xff] %v1503_v5  ;;  %1536 = vst [vmem:[%s2469_s4 + $0x78] sm:$0xff] %v1504_v6  ;;  %v1442_v16 = vadd.f32 %v2288_v47, %v1398_v8  ;;  %v1443_v17 = vadd.f32 %v2284_v45, %v1399_v9  ;;  %v1444_v18 = vadd.f32 %v2288_v47, %v1400_v10 }
 0x1a2   : > { %v1445_v19 = vadd.f32 %v2284_v45, %v1401_v11  ;;  %v1446_v20 = vadd.f32 %v2288_v47, %v1402_v12  ;;  %v1447_v21 = vadd.f32 %v2284_v45, %v1403_v13  ;;  %v1448_v22 = vadd.f32 %v2288_v47, %v1404_v14 }
 0x1a3   : > { %v1473_v25 = vmax.f32 %v1441_v15, 0.0  ;;  %v1474_v26 = vmax.f32 %v1442_v16, 0.0  ;;  %v1475_v27 = vmax.f32 %v1443_v17, 0.0  ;;  %v1476_v28 = vmax.f32 %v1444_v18, 0.0 }
 0x1a4   : > { %v1477_v31 = vmax.f32 %v1445_v19, 0.0  ;;  %v1478_v32 = vmax.f32 %v1446_v20, 0.0  ;;  %v1479_v33 = vmax.f32 %v1447_v21, 0.0  ;;  %v1480_v34 = vmax.f32 %v1448_v22, 0.0 }
 0x1a5   : > { %v1505_v37 = vmin.f32 %v1473_v25, 6.0  ;;  %v1506_v38 = vmin.f32 %v1474_v26, 6.0  ;;  %v1507_v39 = vmin.f32 %v1475_v27, 6.0  ;;  %v1508_v40 = vmin.f32 %v1476_v28, 6.0 }
 0x1a6   : > { %v1509_v43 = vmin.f32 %v1477_v31, 6.0  ;;  %v1510_v48 = vmin.f32 %v1478_v32, 6.0  ;;  %v1511_v49 = vmin.f32 %v1479_v33, 6.0  ;;  %v1512_v50 = vmin.f32 %v1480_v34, 6.0 }
 0x1a7   : > { %1537 = vst [vmem:[%s2469_s4 + $0x80] sm:$0xff] %v1505_v37  ;;  %1538 = vst [vmem:[%s2469_s4 + $0x88] sm:$0xff] %v1506_v38  ;;  %v1405_v51 = vmul.f32 %v2282_v44, %v1361_v23  ;;  %v1406_v52 = vmul.f32 %v2286_v46, %v1362_v24  ;;  %v1407_v53 = vmul.f32 %v2282_v44, %v1363_v29 }
 0x1a8   : > { %1539 = vst [vmem:[%s2469_s4 + $0x90] sm:$0xff] %v1507_v39  ;;  %1540 = vst [vmem:[%s2469_s4 + $0x98] sm:$0xff] %v1508_v40  ;;  %v1408_v54 = vmul.f32 %v2286_v46, %v1364_v30  ;;  %v1409_v55 = vmul.f32 %v2282_v44, %v1365_v35  ;;  %v1410_v56 = vmul.f32 %v2286_v46, %v1366_v36 }
 0x1a9   : > { %1541 = vst [vmem:[%s2469_s4 + $0xa0] sm:$0xff] %v1509_v43  ;;  %1542 = vst [vmem:[%s2469_s4 + $0xa8] sm:$0xff] %v1510_v48  ;;  %v1411_v57 = vmul.f32 %v2282_v44, %v1367_v41  ;;  %v1412_v58 = vmul.f32 %v2286_v46, %v1368_v42  ;;  %v1449_v59 = vadd.f32 %v2284_v45, %v1405_v51 }
 0x1aa   : > { %1543 = vst [vmem:[%s2469_s4 + $0xb0] sm:$0xff] %v1511_v49  ;;  %1544 = vst [vmem:[%s2469_s4 + $0xb8] sm:$0xff] %v1512_v50  ;;  %v1450_v60 = vadd.f32 %v2288_v47, %v1406_v52  ;;  %v1451_v61 = vadd.f32 %v2284_v45, %v1407_v53  ;;  %v1452_v62 = vadd.f32 %v2288_v47, %v1408_v54 }
 0x1ab   : > { %v1453_v63 = vadd.f32 %v2284_v45, %v1409_v55  ;;  %v1454_v0 = vadd.f32 %v2288_v47, %v1410_v56  ;;  %v1455_v1 = vadd.f32 %v2284_v45, %v1411_v57  ;;  %v1456_v2 = vadd.f32 %v2288_v47, %v1412_v58 }
 0x1ac   : > { %v1481_v3 = vmax.f32 %v1449_v59, 0.0  ;;  %v1482_v44 = vmax.f32 %v1450_v60, 0.0  ;;  %v1483_v4 = vmax.f32 %v1451_v61, 0.0  ;;  %v1484_v46 = vmax.f32 %v1452_v62, 0.0 }
 0x1ad   : > { %v1485_v5 = vmax.f32 %v1453_v63, 0.0  ;;  %v1486_v6 = vmax.f32 %v1454_v0, 0.0  ;;  %v1487_v7 = vmax.f32 %v1455_v1, 0.0  ;;  %v1488_v8 = vmax.f32 %v1456_v2, 0.0 }
 0x1ae   : > { %v1513_v9 = vmin.f32 %v1481_v3, 6.0  ;;  %v1514_v10 = vmin.f32 %v1482_v44, 6.0  ;;  %v1515_v11 = vmin.f32 %v1483_v4, 6.0  ;;  %v1516_v12 = vmin.f32 %v1484_v46, 6.0 }
 0x1af   : > { %v1517_v13 = vmin.f32 %v1485_v5, 6.0  ;;  %v1518_v14 = vmin.f32 %v1486_v6, 6.0  ;;  %v1519_v15 = vmin.f32 %v1487_v7, 6.0  ;;  %v1520_v16 = vmin.f32 %v1488_v8, 6.0 }
 0x1b0   : > { %1545 = vst [vmem:[%s2469_s4 + $0xc0] sm:$0xff] %v1513_v9  ;;  %1546 = vst [vmem:[%s2469_s4 + $0xc8] sm:$0xff] %v1514_v10 }
 0x1b1   : > { %1547 = vst [vmem:[%s2469_s4 + $0xd0] sm:$0xff] %v1515_v11  ;;  %1548 = vst [vmem:[%s2469_s4 + $0xd8] sm:$0xff] %v1516_v12 }
 0x1b2   : > { %1549 = vst [vmem:[%s2469_s4 + $0xe0] sm:$0xff] %v1517_v13  ;;  %1550 = vst [vmem:[%s2469_s4 + $0xe8] sm:$0xff] %v1518_v14 }
 0x1b3   : > { %1551 = vst [vmem:[%s2469_s4 + $0xf0] sm:$0xff] %v1519_v15  ;;  %1552 = vst [vmem:[%s2469_s4 + $0xf8] sm:$0xff] %v1520_v16 }
 0x1b4 PF: > { %s14_s19 = sadd.s32 1, %s2028_s19   ;;  %s2470_s15 = smov %s2016_s16 }
 0x1b5   : > { %p11_p12 = scmp.ge.s32.totalorder %s14_s19, 4   ;;  %s2471_s16 = smov %s2091_s23 }
 0x1b6   : > { %s2472_s17 = smov %s2024_s18  ;;  %s2473_s18 = smov %s2475_s20 }
 0x1b7   :  { %13 = sbr.rel (!%p11_p12) target bundleno = 3 (0x3), region = 111 }

// kernel: segmentation_custom_forward.18
= control target key start
LH: loop header
LB: loop body
LE: loop exit
PB: predicated region body
PF: predicated region fallthrough
CT: control target
= control target key end

     0   :  { %s2056_s15 = smov 0   ;;  %s2058_s16 = smov 0   ;;  %s2465_s0 = inlined_call_operand.vmem [shape: bf16[128,8704], index: 0, kind: input, shape index: {}]   ;;  %s2466_s1 = inlined_call_operand.vmem [shape: bf16[8704,256], index: 1, kind: input, shape index: {}]   ;;  %s2467_s2 = inlined_call_operand.vmem [shape: f32[1,256], index: 2, kind: input, shape index: {}]   ;;  %s2468_s3 = inlined_call_operand.vmem [shape: f32[1,256], index: 3, kind: input, shape index: {}]   ;;  %s2469_s4 = inlined_call_operand.vmem [shape: f32[128,256], index: 4, kind: output, shape index: {}]  }
   0x1   :  { %s2060_s17 = smov 0   ;;  %s2062_s18 = smov 0  }
   0x2   :  { %s2064_s19 = smov 0  }
   0x3 LB: > { %s26_s20 = sadd.s32 1, %s2024_s18  ;;  %p49_p1 = scmp.ne.s32.totalorder %s2016_s16, %s2012_s15  ;;  %s2028_s19 = sphi %s2064_s19, %s14_s19   ;;  %s2024_s18 = sphi %s2062_s18, %s2473_s18   ;;  %s2020_s17 = sphi %s2060_s17, %s2472_s17   ;;  %s2016_s16 = sphi %s2058_s16, %s2471_s16   ;;  %s2012_s15 = sphi %s2056_s15, %s2470_s15  }
   0x4   : > { %p27_p0 = scmp.ge.s32.totalorder %s26_s20, 17  ;;  %p50_p2 = scmp.eq.s32.totalorder %s2028_s19, 0 }
   0x5   : > { %s42_s22 = sadd.s32 1, %s2016_s16  ;;  %p1692_p5 = scmp.ge.s32.totalorder %s2028_s19, 17 }
   0x6   : > { %s2475_s20 = smov (%p27_p0, %s26_s20), 0  ;;  %p51_p3 = por %p50_p2, %p49_p1 }
   0x7   : > { %s38_s21 = ssub.s32 %s2024_s18, %s2475_s20  ;;  %199 = sbr.rel (%p1692_p5) target bundleno = 32 (0x20), region = 24 }
   0x8   : > { %p40_p4 = scmp.eq.s32.totalorder %s38_s21, 0 }
   0xa   : > { %s2091_s23 = scalar_select %p40_p4, %s2016_s16, %s42_s22  }
   0xc   : > { %202 = sbr.rel (!%p51_p3) target bundleno = 32 (0x20), region = 28  ;;  %s204_s24 = sand.u32 (%p51_p3), 1, %s2016_s16  }
   0xd   : > { %s1803_s25 = sshll.u32 (%p51_p3), %s2024_s18, 4  ;;  %s1693_s26 = sshll.u32 (%p51_p3), %s204_s24, 8 }
   0xe   : > { %s2099_s29 = scalar_lea.vmem (%p51_p3), %s2465_s0, %s1803_s25  ;;  %s2104_s30 = scalar_lea.vmem (%p51_p3), [#allocation3], %s1693_s26 }
   0xf   : > { %v225_v0 = vld [vmem:[%s2099_s29] sm:$0xff] (%p51_p3)  ;;  %v227_v1 = vld [vmem:[%s2099_s29 + $0x8] sm:$0xff] (%p51_p3)  ;;  %v229_v2 = vld [vmem:[%s2099_s29 + $0x110] sm:$0xff] (%p51_p3) }
  0x10   : > { %226 = vst [vmem:[%s2104_s30] sm:$0xff] (%p51_p3), %v225_v0  ;;  %228 = vst [vmem:[%s2104_s30 + $0x8] sm:$0xff] (%p51_p3), %v227_v1  ;;  %v231_v3 = vld [vmem:[%s2099_s29 + $0x118] sm:$0xff] (%p51_p3)  ;;  %v233_v4 = vld [vmem:[%s2099_s29 + $0x220] sm:$0xff] (%p51_p3) }
  0x11   : > { %230 = vst [vmem:[%s2104_s30 + $0x10] sm:$0xff] %v229_v2  ;;  %v235_v5 = vld [vmem:[%s2099_s29 + $0x228] sm:$0xff]  ;;  %232 = vst [vmem:[%s2104_s30 + $0x18] sm:$0xff] %v231_v3  ;;  %v237_v6 = vld [vmem:[%s2099_s29 + $0x330] sm:$0xff] }
  0x12   : > { %234 = vst [vmem:[%s2104_s30 + $0x20] sm:$0xff] %v233_v4  ;;  %236 = vst [vmem:[%s2104_s30 + $0x28] sm:$0xff] %v235_v5  ;;  %v239_v7 = vld [vmem:[%s2099_s29 + $0x338] sm:$0xff]  ;;  %v241_v8 = vld [vmem:[%s2099_s29 + $0x440] sm:$0xff] }
  0x13   : > { %238 = vst [vmem:[%s2104_s30 + $0x30] sm:$0xff] %v237_v6  ;;  %240 = vst [vmem:[%s2104_s30 + $0x38] sm:$0xff] %v239_v7  ;;  %v243_v9 = vld [vmem:[%s2099_s29 + $0x448] sm:$0xff]  ;;  %v245_v10 = vld [vmem:[%s2099_s29 + $0x550] sm:$0xff] }
  0x14   : > { %242 = vst [vmem:[%s2104_s30 + $0x40] sm:$0xff] %v241_v8  ;;  %v247_v11 = vld [vmem:[%s2099_s29 + $0x558] sm:$0xff]  ;;  %244 = vst [vmem:[%s2104_s30 + $0x48] sm:$0xff] %v243_v9  ;;  %v249_v12 = vld [vmem:[%s2099_s29 + $0x660] sm:$0xff] }
  0x15   : > { %246 = vst [vmem:[%s2104_s30 + $0x50] sm:$0xff] %v245_v10  ;;  %248 = vst [vmem:[%s2104_s30 + $0x58] sm:$0xff] %v247_v11  ;;  %v251_v13 = vld [vmem:[%s2099_s29 + $0x668] sm:$0xff]  ;;  %v253_v14 = vld [vmem:[%s2099_s29 + $0x770] sm:$0xff] }
  0x16   : > { %250 = vst [vmem:[%s2104_s30 + $0x60] sm:$0xff] %v249_v12  ;;  %252 = vst [vmem:[%s2104_s30 + $0x68] sm:$0xff] %v251_v13  ;;  %v255_v15 = vld [vmem:[%s2099_s29 + $0x778] sm:$0xff]  ;;  %v257_v16 = vld [vmem:[%s2099_s29 + $0x880] sm:$0xff] }
  0x17   : > { %254 = vst [vmem:[%s2104_s30 + $0x70] sm:$0xff] %v253_v14  ;;  %v259_v17 = vld [vmem:[%s2099_s29 + $0x888] sm:$0xff]  ;;  %256 = vst [vmem:[%s2104_s30 + $0x78] sm:$0xff] %v255_v15  ;;  %v261_v18 = vld [vmem:[%s2099_s29 + $0x990] sm:$0xff] }
  0x18   : > { %258 = vst [vmem:[%s2104_s30 + $0x80] sm:$0xff] %v257_v16  ;;  %260 = vst [vmem:[%s2104_s30 + $0x88] sm:$0xff] %v259_v17  ;;  %v263_v19 = vld [vmem:[%s2099_s29 + $0x998] sm:$0xff]  ;;  %v265_v20 = vld [vmem:[%s2099_s29 + $0xaa0] sm:$0xff] }
  0x19   : > { %262 = vst [vmem:[%s2104_s30 + $0x90] sm:$0xff] %v261_v18  ;;  %264 = vst [vmem:[%s2104_s30 + $0x98] sm:$0xff] %v263_v19  ;;  %v267_v21 = vld [vmem:[%s2099_s29 + $0xaa8] sm:$0xff]  ;;  %v269_v22 = vld [vmem:[%s2099_s29 + $0xbb0] sm:$0xff] }
  0x1a   : > { %266 = vst [vmem:[%s2104_s30 + $0xa0] sm:$0xff] %v265_v20  ;;  %v271_v23 = vld [vmem:[%s2099_s29 + $0xbb8] sm:$0xff]  ;;  %268 = vst [vmem:[%s2104_s30 + $0xa8] sm:$0xff] %v267_v21  ;;  %v273_v24 = vld [vmem:[%s2099_s29 + $0xcc0] sm:$0xff] }
  0x1b   : > { %270 = vst [vmem:[%s2104_s30 + $0xb0] sm:$0xff] %v269_v22  ;;  %272 = vst [vmem:[%s2104_s30 + $0xb8] sm:$0xff] %v271_v23  ;;  %v275_v25 = vld [vmem:[%s2099_s29 + $0xcc8] sm:$0xff]  ;;  %v277_v26 = vld [vmem:[%s2099_s29 + $0xdd0] sm:$0xff] }
  0x1c   : > { %274 = vst [vmem:[%s2104_s30 + $0xc0] sm:$0xff] %v273_v24  ;;  %276 = vst [vmem:[%s2104_s30 + $0xc8] sm:$0xff] %v275_v25  ;;  %v279_v27 = vld [vmem:[%s2099_s29 + $0xdd8] sm:$0xff]  ;;  %v281_v28 = vld [vmem:[%s2099_s29 + $0xee0] sm:$0xff] }
  0x1d   : > { %278 = vst [vmem:[%s2104_s30 + $0xd0] sm:$0xff] %v277_v26  ;;  %v283_v29 = vld [vmem:[%s2099_s29 + $0xee8] sm:$0xff]  ;;  %280 = vst [vmem:[%s2104_s30 + $0xd8] sm:$0xff] %v279_v27  ;;  %v285_v30 = vld [vmem:[%s2099_s29 + $0xff0] sm:$0xff] }
  0x1e   : > { %282 = vst [vmem:[%s2104_s30 + $0xe0] sm:$0xff] %v281_v28  ;;  %284 = vst [vmem:[%s2104_s30 + $0xe8] sm:$0xff] %v283_v29  ;;  %v287_v31 = vld [vmem:[%s2099_s29 + $0xff8] sm:$0xff] }
  0x1f   : > { %286 = vst [vmem:[%s2104_s30 + $0xf0] sm:$0xff] %v285_v30  ;;  %288 = vst [vmem:[%s2104_s30 + $0xf8] sm:$0xff] %v287_v31 }
  0x20 PF: > { %p1696_p6 = scmp.ge.s32.totalorder %s2028_s19, 1  ;;  %p308_p7 = scmp.lt.s32.totalorder %s2028_s19, 18 }
  0x22   : > { %p309_p8 = pnand %p1696_p6, %p308_p7 }
  0x23   : > { %s315_s5 = sand.u32 (!%p309_p8), 1, %s2012_s15   ;;  %s1698_s6 = sshll.u32 (!%p309_p8), %s2020_s17, 6 }
  0x24   : > { %312 = sbr.rel (%p309_p8) target bundleno = 436 (0x1b4), region = 55  ;;  %s1697_s7 = sshll.u32 (!%p309_p8), %s315_s5, 8 }
  0x25   : > { %p367_p9 = scmp.lt.s32.totalorder (!%p309_p8), %s1698_s6, 1087  ;;  %s2176_s12 = scalar_lea.vmem (!%p309_p8), [#allocation3], %s1697_s7 }
  0x26   : > { %p1701_p10 = scmp.ne.s32.totalorder (!%p309_p8), %s2020_s17, 0 }
  0x29   : > { %s2477_s6 = smov (!%p367_p9, %s1698_s6), 1087  ;;  %402 = sbr.rel (%p1701_p10) target bundleno = 63 (0x3f), region = 63 }
  0x2a   : > { %s1804_s8 = sshll.u32 %s2477_s6, 3 }
  0x2b   : > { %s2174_s11 = scalar_lea.vmem %s2466_s1, %s1804_s8 }
  0x2e   : > { %v2030_v32 = vmov 0.0  }
  0x2f   : > { %403 = vst [vmem:[#allocation2 + $0xb0] sm:$0xff] %v2030_v32  ;;  %404 = vst [vmem:[#allocation2] sm:$0xff] %v2030_v32 }
  0x30   : > { %405 = vst [vmem:[#allocation2 + $0xd8] sm:$0xff] %v2030_v32  ;;  %406 = vst [vmem:[#allocation2 + $0x18] sm:$0xff] %v2030_v32 }
  0x31   : > { %407 = vst [vmem:[#allocation2 + $0x50] sm:$0xff] %v2030_v32  ;;  %408 = vst [vmem:[#allocation2 + $0x68] sm:$0xff] %v2030_v32 }
  0x32   : > { %409 = vst [vmem:[#allocation2 + $0x30] sm:$0xff] %v2030_v32  ;;  %410 = vst [vmem:[#allocation2 + $0x48] sm:$0xff] %v2030_v32 }
  0x33   : > { %411 = vst [vmem:[#allocation2 + $0x80] sm:$0xff] %v2030_v32  ;;  %412 = vst [vmem:[#allocation2 + $0x88] sm:$0xff] %v2030_v32 }
  0x34   : > { %413 = vst [vmem:[#allocation2 + $0xe8] sm:$0xff] %v2030_v32  ;;  %414 = vst [vmem:[#allocation2 + $0xb8] sm:$0xff] %v2030_v32 }
  0x35   : > { %415 = vst [vmem:[#allocation2 + $0x60] sm:$0xff] %v2030_v32  ;;  %416 = vst [vmem:[#allocation2 + $0xf0] sm:$0xff] %v2030_v32 }
  0x36   : > { %417 = vst [vmem:[#allocation2 + $0x8] sm:$0xff] %v2030_v32  ;;  %418 = vst [vmem:[#allocation2 + $0x78] sm:$0xff] %v2030_v32 }
  0x37   : > { %419 = vst [vmem:[#allocation2 + $0x38] sm:$0xff] %v2030_v32  ;;  %420 = vst [vmem:[#allocation2 + $0x58] sm:$0xff] %v2030_v32 }
  0x38   : > { %421 = vst [vmem:[#allocation2 + $0x40] sm:$0xff] %v2030_v32  ;;  %422 = vst [vmem:[#allocation2 + $0xc8] sm:$0xff] %v2030_v32 }
  0x39   : > { %423 = vst [vmem:[#allocation2 + $0xe0] sm:$0xff] %v2030_v32  ;;  %424 = vst [vmem:[#allocation2 + $0x90] sm:$0xff] %v2030_v32 }
  0x3a   : > { %425 = vst [vmem:[#allocation2 + $0x70] sm:$0xff] %v2030_v32  ;;  %426 = vst [vmem:[#allocation2 + $0xc0] sm:$0xff] %v2030_v32 }
  0x3b   : > { %427 = vst [vmem:[#allocation2 + $0xa8] sm:$0xff] %v2030_v32  ;;  %428 = vst [vmem:[#allocation2 + $0xd0] sm:$0xff] %v2030_v32 }
  0x3c   : > { %429 = vst [vmem:[#allocation2 + $0x10] sm:$0xff] %v2030_v32  ;;  %430 = vst [vmem:[#allocation2 + $0x28] sm:$0xff] %v2030_v32 }
  0x3d   : > { %431 = vst [vmem:[#allocation2 + $0xa0] sm:$0xff] %v2030_v32  ;;  %432 = vst [vmem:[#allocation2 + $0xf8] sm:$0xff] %v2030_v32 }
  0x3e   : > { %433 = vst [vmem:[#allocation2 + $0x20] sm:$0xff] %v2030_v32  ;;  %434 = vst [vmem:[#allocation2 + $0x98] sm:$0xff] %v2030_v32 }
  0x3f PF: > { %v1846_v33 = vld [vmem:[%s2174_s11 + $0x74] ss:$8 sps:$4 sm:$0xff]   ;;  %v1850_v35 = vld [vmem:[%s2174_s11 + $0x70] ss:$8 sps:$4 sm:$0xff]   ;;  %v1852_v37 = vld [vmem:[%s2174_s11 + $0x64] ss:$8 sps:$4 sm:$0xff]  }
  0x40   : > { %v1848_v34 = vld [vmem:[%s2174_s11 + $0x174] ss:$8 sps:$4 sm:$0xff]   ;;  %1043 = vmatprep.subr.bf16.mxu0 %v1846_v33  ;;  %v1851_v36 = vld [vmem:[%s2174_s11 + $0x170] ss:$8 sps:$4 sm:$0xff]   ;;  %v1854_v38 = vld [vmem:[%s2174_s11 + $0x164] ss:$8 sps:$4 sm:$0xff]  }
  0x41   : > { %1156 = vmatprep.subr.bf16.mxu1 %v1848_v34  ;;  %1044 = vmatpush1.bf16.msra.mxu0 %v1850_v35  ;;  %v1856_v39 = vld [vmem:[%s2174_s11 + $0x60] ss:$8 sps:$4 sm:$0xff]   ;;  %v1858_v41 = vld [vmem:[%s2174_s11 + $0x54] ss:$8 sps:$4 sm:$0xff]   ;;  %v1862_v43 = vld [vmem:[%s2174_s11 + $0x50] ss:$8 sps:$4 sm:$0xff]  }
  0x42   : > { %1157 = vmatpush1.bf16.msra.mxu1 %v1851_v36  ;;  %1045 = vmatprep.subr.bf16.mxu0 %v1852_v37  ;;  %v1857_v40 = vld [vmem:[%s2174_s11 + $0x160] ss:$8 sps:$4 sm:$0xff]   ;;  %v1860_v42 = vld [vmem:[%s2174_s11 + $0x154] ss:$8 sps:$4 sm:$0xff]   ;;  %v1863_v44 = vld [vmem:[%s2174_s11 + $0x150] ss:$8 sps:$4 sm:$0xff]  }
  0x43   : > { %1158 = vmatprep.subr.bf16.mxu1 %v1854_v38  ;;  %v1864_v45 = vld [vmem:[%s2174_s11 + $0x44] ss:$8 sps:$4 sm:$0xff]   ;;  %v1868_v47 = vld [vmem:[%s2174_s11 + $0x40] ss:$8 sps:$4 sm:$0xff]   ;;  %v1870_v49 = vld [vmem:[%s2174_s11 + $0x34] ss:$8 sps:$4 sm:$0xff]  }
  0x44   : > { %v1866_v46 = vld [vmem:[%s2174_s11 + $0x144] ss:$8 sps:$4 sm:$0xff]   ;;  %v1869_v48 = vld [vmem:[%s2174_s11 + $0x140] ss:$8 sps:$4 sm:$0xff]   ;;  %v1872_v50 = vld [vmem:[%s2174_s11 + $0x134] ss:$8 sps:$4 sm:$0xff]  }
  0x45   : > { %1046 = vmatpush1.bf16.msra.mxu0 %v1856_v39  ;;  %v1874_v51 = vld [vmem:[%s2174_s11 + $0x30] ss:$8 sps:$4 sm:$0xff]   ;;  %v1876_v53 = vld [vmem:[%s2174_s11 + $0x24] ss:$8 sps:$4 sm:$0xff]   ;;  %v1880_v55 = vld [vmem:[%s2174_s11 + $0x20] ss:$8 sps:$4 sm:$0xff]  }
  0x46   : > { %1159 = vmatpush1.bf16.msra.mxu1 %v1857_v40  ;;  %1047 = vmatprep.subr.bf16.mxu0 %v1858_v41  ;;  %v1875_v52 = vld [vmem:[%s2174_s11 + $0x130] ss:$8 sps:$4 sm:$0xff]   ;;  %v1878_v54 = vld [vmem:[%s2174_s11 + $0x124] ss:$8 sps:$4 sm:$0xff]   ;;  %v1881_v56 = vld [vmem:[%s2174_s11 + $0x120] ss:$8 sps:$4 sm:$0xff]  }
  0x47   : > { %1160 = vmatprep.subr.bf16.mxu1 %v1860_v42  ;;  %v1882_v57 = vld [vmem:[%s2174_s11 + $0x14] ss:$8 sps:$4 sm:$0xff]   ;;  %v1886_v59 = vld [vmem:[%s2174_s11 + $0x10] ss:$8 sps:$4 sm:$0xff]   ;;  %v1888_v61 = vld [vmem:[%s2174_s11 + $0x4] ss:$8 sps:$4 sm:$0xff]  }
  0x48   : > { %v1884_v58 = vld [vmem:[%s2174_s11 + $0x114] ss:$8 sps:$4 sm:$0xff]   ;;  %v1887_v60 = vld [vmem:[%s2174_s11 + $0x110] ss:$8 sps:$4 sm:$0xff]   ;;  %v1890_v62 = vld [vmem:[%s2174_s11 + $0x104] ss:$8 sps:$4 sm:$0xff]  }
  0x49   : > { %1048 = vmatpush1.bf16.msra.mxu0 %v1862_v43  ;;  %v1892_v63 = vld [vmem:[%s2174_s11] ss:$8 sps:$4 sm:$0xff]   ;;  %v1894_v1 = vld [vmem:[%s2174_s11 + $0xf4] ss:$8 sps:$4 sm:$0xff]   ;;  %v1898_v3 = vld [vmem:[%s2174_s11 + $0xf0] ss:$8 sps:$4 sm:$0xff]  }
  0x4a   : > { %1161 = vmatpush1.bf16.msra.mxu1 %v1863_v44  ;;  %1049 = vmatprep.subr.bf16.mxu0 %v1864_v45  ;;  %v1893_v0 = vld [vmem:[%s2174_s11 + $0x100] ss:$8 sps:$4 sm:$0xff]   ;;  %v1896_v2 = vld [vmem:[%s2174_s11 + $0x1f4] ss:$8 sps:$4 sm:$0xff]   ;;  %v1899_v4 = vld [vmem:[%s2174_s11 + $0x1f0] ss:$8 sps:$4 sm:$0xff]  }
  0x4b   : > { %1162 = vmatprep.subr.bf16.mxu1 %v1866_v46  ;;  %v1900_v5 = vld [vmem:[%s2174_s11 + $0xe4] ss:$8 sps:$4 sm:$0xff]   ;;  %v1904_v7 = vld [vmem:[%s2174_s11 + $0xe0] ss:$8 sps:$4 sm:$0xff]   ;;  %v1906_v9 = vld [vmem:[%s2174_s11 + $0xd4] ss:$8 sps:$4 sm:$0xff]  }
  0x4c   : > { %v1902_v6 = vld [vmem:[%s2174_s11 + $0x1e4] ss:$8 sps:$4 sm:$0xff]   ;;  %v1905_v8 = vld [vmem:[%s2174_s11 + $0x1e0] ss:$8 sps:$4 sm:$0xff]   ;;  %v1908_v10 = vld [vmem:[%s2174_s11 + $0x1d4] ss:$8 sps:$4 sm:$0xff]  }
  0x4d   : > { %1050 = vmatpush1.bf16.msra.mxu0 %v1868_v47  ;;  %v1910_v11 = vld [vmem:[%s2174_s11 + $0xd0] ss:$8 sps:$4 sm:$0xff]   ;;  %v1912_v13 = vld [vmem:[%s2174_s11 + $0xc4] ss:$8 sps:$4 sm:$0xff]   ;;  %v1916_v15 = vld [vmem:[%s2174_s11 + $0xc0] ss:$8 sps:$4 sm:$0xff]  }
  0x4e   : > { %1163 = vmatpush1.bf16.msra.mxu1 %v1869_v48  ;;  %1051 = vmatprep.subr.bf16.mxu0 %v1870_v49  ;;  %v1911_v12 = vld [vmem:[%s2174_s11 + $0x1d0] ss:$8 sps:$4 sm:$0xff]   ;;  %v1914_v14 = vld [vmem:[%s2174_s11 + $0x1c4] ss:$8 sps:$4 sm:$0xff]   ;;  %v1917_v16 = vld [vmem:[%s2174_s11 + $0x1c0] ss:$8 sps:$4 sm:$0xff]  }
  0x4f   : > { %1164 = vmatprep.subr.bf16.mxu1 %v1872_v50  ;;  %v1918_v17 = vld [vmem:[%s2174_s11 + $0xb4] ss:$8 sps:$4 sm:$0xff]   ;;  %v1922_v21 = vld [vmem:[%s2174_s11 + $0xb0] ss:$8 sps:$4 sm:$0xff]   ;;  %v1924_v23 = vld [vmem:[%s2174_s11 + $0xa4] ss:$8 sps:$4 sm:$0xff]  }
  0x50   : > { %v1944_v18 = vld [vmem:[%s2176_s12 + $0x4] ss:$16 sps:$4 sm:$0xff]   ;;  %v1947_v20 = vld [vmem:[%s2176_s12 + $0xc] ss:$16 sps:$4 sm:$0xff]   ;;  %v1923_v22 = vld [vmem:[%s2174_s11 + $0x1b0] ss:$8 sps:$4 sm:$0xff]  }
  0x51   : > { %1052 = vmatpush1.bf16.msra.mxu0 %v1874_v51  ;;  %v1920_v19 = vld [vmem:[%s2174_s11 + $0x1b4] ss:$8 sps:$4 sm:$0xff]   ;;  %1075 = vmatprep.mubr.bf16.mxu0 %v1944_v18  ;;  %v1926_v24 = vld [vmem:[%s2174_s11 + $0x1a4] ss:$8 sps:$4 sm:$0xff]   ;;  %v1928_v25 = vld [vmem:[%s2174_s11 + $0xa0] ss:$8 sps:$4 sm:$0xff]  }
  0x52   : > { %1165 = vmatpush1.bf16.msra.mxu1 %v1875_v52  ;;  %1053 = vmatprep.subr.bf16.mxu0 %v1876_v53  ;;  %v1929_v26 = vld [vmem:[%s2174_s11 + $0x1a0] ss:$8 sps:$4 sm:$0xff]   ;;  %v1930_v27 = vld [vmem:[%s2174_s11 + $0x94] ss:$8 sps:$4 sm:$0xff]   ;;  %v1934_v29 = vld [vmem:[%s2174_s11 + $0x90] ss:$8 sps:$4 sm:$0xff]  }
  0x53   : > { %1166 = vmatprep.subr.bf16.mxu1 %v1878_v54  ;;  %1188 = vmatprep.mubr.bf16.mxu1 %v1947_v20  ;;  %v1932_v28 = vld [vmem:[%s2174_s11 + $0x194] ss:$8 sps:$4 sm:$0xff]   ;;  %v1935_v30 = vld [vmem:[%s2174_s11 + $0x190] ss:$8 sps:$4 sm:$0xff]   ;;  %v1936_v31 = vld [vmem:[%s2174_s11 + $0x84] ss:$8 sps:$4 sm:$0xff]  }
  0x54   : > { %v1938_v32 = vld [vmem:[%s2174_s11 + $0x184] ss:$8 sps:$4 sm:$0xff]   ;;  %v1940_v33 = vld [vmem:[%s2174_s11 + $0x80] ss:$8 sps:$4 sm:$0xff]   ;;  %p1798_p11 = scmp.ne.s32.totalorder %s2020_s17, 16 }
  0x55   : > { %1054 = vmatpush1.bf16.msra.mxu0 %v1880_v55  ;;  %v1941_v34 = vld [vmem:[%s2174_s11 + $0x180] ss:$8 sps:$4 sm:$0xff]   ;;  %v1948_v37 = vld [vmem:[%s2176_s12 + $0x24] ss:$16 sps:$4 sm:$0xff]   ;;  %v1950_v38 = vld [vmem:[%s2176_s12 + $0x2c] ss:$16 sps:$4 sm:$0xff]  }
  0x56   : > { %1167 = vmatpush1.bf16.msra.mxu1 %v1881_v56  ;;  %1055 = vmatprep.subr.bf16.mxu0 %v1882_v57  ;;  %v1942_v35 = vld [vmem:[%s2176_s12] ss:$16 sps:$4 sm:$0xff]   ;;  %v1945_v36 = vld [vmem:[%s2176_s12 + $0x8] ss:$16 sps:$4 sm:$0xff]   ;;  %v1954_v41 = vld [vmem:[%s2176_s12 + $0x44] ss:$16 sps:$4 sm:$0xff]  }
  0x57   : > { %1168 = vmatprep.subr.bf16.mxu1 %v1884_v58  ;;  %v1952_v39 = vld [vmem:[%s2176_s12 + $0x20] ss:$16 sps:$4 sm:$0xff]   ;;  %v1953_v40 = vld [vmem:[%s2176_s12 + $0x28] ss:$16 sps:$4 sm:$0xff]   ;;  %v1956_v42 = vld [vmem:[%s2176_s12 + $0x4c] ss:$16 sps:$4 sm:$0xff]  }
  0x58   : > { %v1958_v43 = vld [vmem:[%s2176_s12 + $0x40] ss:$16 sps:$4 sm:$0xff]   ;;  %v1959_v44 = vld [vmem:[%s2176_s12 + $0x48] ss:$16 sps:$4 sm:$0xff]   ;;  %v1960_v45 = vld [vmem:[%s2176_s12 + $0x64] ss:$16 sps:$4 sm:$0xff]  }
  0x59   : > { %1056 = vmatpush1.bf16.msra.mxu0 %v1886_v59  ;;  %v1962_v46 = vld [vmem:[%s2176_s12 + $0x6c] ss:$16 sps:$4 sm:$0xff]   ;;  %v1964_v47 = vld [vmem:[%s2176_s12 + $0x60] ss:$16 sps:$4 sm:$0xff]   ;;  %v1965_v48 = vld [vmem:[%s2176_s12 + $0x68] ss:$16 sps:$4 sm:$0xff]  }
  0x5a   : > { %1169 = vmatpush1.bf16.msra.mxu1 %v1887_v60  ;;  %1057 = vmatprep.subr.bf16.mxu0 %v1888_v61  ;;  %v1966_v49 = vld [vmem:[%s2176_s12 + $0x84] ss:$16 sps:$4 sm:$0xff]   ;;  %v1968_v50 = vld [vmem:[%s2176_s12 + $0x8c] ss:$16 sps:$4 sm:$0xff]   ;;  %v1970_v51 = vld [vmem:[%s2176_s12 + $0x80] ss:$16 sps:$4 sm:$0xff]  }
  0x5b   : > { %1170 = vmatprep.subr.bf16.mxu1 %v1890_v62  ;;  %v1971_v52 = vld [vmem:[%s2176_s12 + $0x88] ss:$16 sps:$4 sm:$0xff]   ;;  %v1972_v53 = vld [vmem:[%s2176_s12 + $0xa4] ss:$16 sps:$4 sm:$0xff]   ;;  %v1974_v54 = vld [vmem:[%s2176_s12 + $0xac] ss:$16 sps:$4 sm:$0xff]  }
  0x5c   : > { %v1976_v55 = vld [vmem:[%s2176_s12 + $0xa0] ss:$16 sps:$4 sm:$0xff]   ;;  %v1977_v56 = vld [vmem:[%s2176_s12 + $0xa8] ss:$16 sps:$4 sm:$0xff]   ;;  %v1978_v57 = vld [vmem:[%s2176_s12 + $0xc4] ss:$16 sps:$4 sm:$0xff]  }
  0x5d   : > { %1058 = vmatpush1.bf16.msra.mxu0 %v1892_v63  ;;  %v1980_v58 = vld [vmem:[%s2176_s12 + $0xcc] ss:$16 sps:$4 sm:$0xff]   ;;  %v1982_v59 = vld [vmem:[%s2176_s12 + $0xc0] ss:$16 sps:$4 sm:$0xff]   ;;  %v1983_v60 = vld [vmem:[%s2176_s12 + $0xc8] ss:$16 sps:$4 sm:$0xff]  }
  0x5e   : > { %1171 = vmatpush1.bf16.msra.mxu1 %v1893_v0  ;;  %1059 = vmatprep.subr.bf16.mxu0 %v1894_v1  ;;  %v1984_v61 = vld [vmem:[%s2176_s12 + $0xe4] ss:$16 sps:$4 sm:$0xff]   ;;  %v1986_v62 = vld [vmem:[%s2176_s12 + $0xec] ss:$16 sps:$4 sm:$0xff]   ;;  %v1988_v63 = vld [vmem:[%s2176_s12 + $0xe0] ss:$16 sps:$4 sm:$0xff]  }
  0x5f   : > { %1172 = vmatprep.subr.bf16.mxu1 %v1896_v2  ;;  %v1989_v0 = vld [vmem:[%s2176_s12 + $0xe8] ss:$16 sps:$4 sm:$0xff]   ;;  %v435_v2 = vld [vmem:[#allocation2 + $0xb0] sm:$0xff] }
  0x61   : > { %1060 = vmatpush2.bf16.msra.mxu0 %v1898_v3 }
  0x62   : > { %1173 = vmatpush2.bf16.msra.mxu1 %v1899_v4  ;;  %1061 = vmatprep.subr.bf16.mxu0 %v1900_v5 }
  0x63   : > { %1174 = vmatprep.subr.bf16.mxu1 %v1902_v6  ;;  %v436_v6 = vld [vmem:[#allocation2] sm:$0xff] }
  0x65   : > { %1062 = vmatpush2.bf16.msra.mxu0 %v1904_v7 }
  0x66   : > { %1175 = vmatpush2.bf16.msra.mxu1 %v1905_v8  ;;  %1063 = vmatprep.subr.bf16.mxu0 %v1906_v9 }
  0x67   : > { %1176 = vmatprep.subr.bf16.mxu1 %v1908_v10 }
  0x69   : > { %1064 = vmatpush2.bf16.msra.mxu0 %v1910_v11  ;;  %v437_v11 = vld [vmem:[#allocation2 + $0xd8] sm:$0xff] }
  0x6a   : > { %1177 = vmatpush2.bf16.msra.mxu1 %v1911_v12  ;;  %1065 = vmatprep.subr.bf16.mxu0 %v1912_v13 }
  0x6b   : > { %1178 = vmatprep.subr.bf16.mxu1 %v1914_v14 }
  0x6d   : > { %1066 = vmatpush2.bf16.msra.mxu0 %v1916_v15 }
  0x6e   : > { %1179 = vmatpush2.bf16.msra.mxu1 %v1917_v16  ;;  %1067 = vmatprep.subr.bf16.mxu0 %v1918_v17  ;;  %v438_v16 = vld [vmem:[#allocation2 + $0x18] sm:$0xff] }
  0x6f   : > { %1180 = vmatprep.subr.bf16.mxu1 %v1920_v19 }
  0x71   : > { %1068 = vmatpush2.bf16.msra.mxu0 %v1922_v21  ;;  %v439_v21 = vld [vmem:[#allocation2 + $0x50] sm:$0xff] }
  0x72   : > { %1181 = vmatpush2.bf16.msra.mxu1 %v1923_v22  ;;  %1069 = vmatprep.subr.bf16.mxu0 %v1924_v23 }
  0x73   : > { %1182 = vmatprep.subr.bf16.mxu1 %v1926_v24 }
  0x75   : > { %1070 = vmatpush2.bf16.msra.mxu0 %v1928_v25 }
  0x76   : > { %1183 = vmatpush2.bf16.msra.mxu1 %v1929_v26  ;;  %1071 = vmatprep.subr.bf16.mxu0 %v1930_v27  ;;  %v440_v26 = vld [vmem:[#allocation2 + $0x68] sm:$0xff] }
  0x77   : > { %1184 = vmatprep.subr.bf16.mxu1 %v1932_v28 }
  0x79   : > { %1072 = vmatpush2.bf16.msra.mxu0 %v1934_v29 }
  0x7a   : > { %1185 = vmatpush2.bf16.msra.mxu1 %v1935_v30  ;;  %1073 = vmatprep.subr.bf16.mxu0 %v1936_v31  ;;  %v441_v31 = vld [vmem:[#allocation2 + $0x30] sm:$0xff] }
  0x7b   : > { %1186 = vmatprep.subr.bf16.mxu1 %v1938_v32 }
  0x7d   : > { %1074 = vmatpush2.bf16.msra.mxu0 %v1940_v33 }
  0x7e   : > { %1187 = vmatpush2.bf16.msra.mxu1 %v1941_v34 }
  0x80   : > { %1076 = vmatmul.mubr.bf16.vlgmr.msra.gmra.mxu0 %v1942_v35 }
  0x81   : > { %1189 = vmatmul.mubr.bf16.vlgmr.msra.gmra.mxu1 %v1945_v36  ;;  %1085 = vmatprep.mubr.bf16.mxu0 %v1948_v37  ;;  %v442_v36 = vld [vmem:[#allocation2 + $0x48] sm:$0xff] }
  0x82   : > { %1198 = vmatprep.mubr.bf16.mxu1 %v1950_v38 }
  0x88   : > { %1086 = vmatmul.mubr.bf16.gmra.mxu0 %v1952_v39 }
  0x89   : > { %1199 = vmatmul.mubr.bf16.gmra.mxu1 %v1953_v40  ;;  %1095 = vmatprep.mubr.bf16.mxu0 %v1954_v41  ;;  %v443_v41 = vld [vmem:[#allocation2 + $0x80] sm:$0xff] }
  0x8a   : > { %1208 = vmatprep.mubr.bf16.mxu1 %v1956_v42 }
  0x90   : > { %1096 = vmatmul.mubr.bf16.gmra.mxu0 %v1958_v43 }
  0x91   : > { %1209 = vmatmul.mubr.bf16.gmra.mxu1 %v1959_v44  ;;  %1105 = vmatprep.mubr.bf16.mxu0 %v1960_v45 }
  0x92   : > { %1218 = vmatprep.mubr.bf16.mxu1 %v1962_v46  ;;  %v444_v46 = vld [vmem:[#allocation2 + $0x88] sm:$0xff] }
  0x98   : > { %1106 = vmatmul.mubr.bf16.gmra.mxu0 %v1964_v47 }
  0x99   : > { %1219 = vmatmul.mubr.bf16.gmra.mxu1 %v1965_v48  ;;  %1115 = vmatprep.mubr.bf16.mxu0 %v1966_v49 }
  0x9a   : > { %1228 = vmatprep.mubr.bf16.mxu1 %v1968_v50 }
  0xa0   : > { %1116 = vmatmul.mubr.bf16.gmra.mxu0 %v1970_v51  ;;  %v445_v51 = vld [vmem:[#allocation2 + $0xe8] sm:$0xff] }
  0xa1   : > { %1229 = vmatmul.mubr.bf16.gmra.mxu1 %v1971_v52  ;;  %1125 = vmatprep.mubr.bf16.mxu0 %v1972_v53 }
  0xa2   : > { %1238 = vmatprep.mubr.bf16.mxu1 %v1974_v54 }
  0xa8   : > { %1126 = vmatmul.mubr.bf16.gmra.mxu0 %v1976_v55 }
  0xa9   : > { %1239 = vmatmul.mubr.bf16.gmra.mxu1 %v1977_v56  ;;  %1135 = vmatprep.mubr.bf16.mxu0 %v1978_v57  ;;  %v446_v56 = vld [vmem:[#allocation2 + $0xb8] sm:$0xff] }
  0xaa   : > { %1248 = vmatprep.mubr.bf16.mxu1 %v1980_v58 }
  0xb0   : > { %1136 = vmatmul.mubr.bf16.gmra.mxu0 %v1982_v59 }
  0xb1   : > { %1249 = vmatmul.mubr.bf16.gmra.mxu1 %v1983_v60  ;;  %1145 = vmatprep.mubr.bf16.mxu0 %v1984_v61  ;;  %v447_v61 = vld [vmem:[#allocation2 + $0x60] sm:$0xff] }
  0xb2   : > { %1258 = vmatprep.mubr.bf16.mxu1 %v1986_v62 }
  0xb8   : > { %1146 = vmatmul.mubr.bf16.gmra.mxu0 %v1988_v63 }
  0xb9   : > { %1259 = vmatmul.mubr.bf16.gmra.mxu1 %v1989_v0 }
 0x140   : > { %v1077_v1 = vpop.f32.mrf.mxu0 }
 0x141   : > { %v1190_v3 = vpop.f32.mrf.mxu1 }
 0x142   : > { %v1191_v4 = vadd.f32 %v1190_v3, %v1077_v1  ;;  %v1079_v5 = vpop.f32.mrf.mxu0 }
 0x143   : > { %v1192_v7 = vpop.f32.mrf.mxu1 }
 0x144   : > { %v1269_v8 = vadd.f32 %v1191_v4, %v435_v2  ;;  %v1193_v9 = vadd.f32 %v1192_v7, %v1079_v5  ;;  %v1081_v10 = vpop.f32.mrf.mxu0  ;;  %v448_v2 = vld [vmem:[#allocation2 + $0xf0] sm:$0xff]  ;;  %v449_v7 = vld [vmem:[#allocation2 + $0x8] sm:$0xff] }
 0x145   : > { %v1194_v12 = vpop.f32.mrf.mxu1 }
 0x146   : > { %1301 = vst [vmem:[#allocation2 + $0xb0] sm:$0xff] %v1269_v8  ;;  %v1270_v13 = vadd.f32 %v1193_v9, %v436_v6  ;;  %v1195_v14 = vadd.f32 %v1194_v12, %v1081_v10  ;;  %v1083_v15 = vpop.f32.mrf.mxu0  ;;  %v450_v12 = vld [vmem:[#allocation2 + $0x78] sm:$0xff] }
 0x147   : > { %v1196_v17 = vpop.f32.mrf.mxu1 }
 0x148   : > { %1302 = vst [vmem:[#allocation2] sm:$0xff] %v1270_v13  ;;  %v1271_v18 = vadd.f32 %v1195_v14, %v437_v11  ;;  %v1197_v19 = vadd.f32 %v1196_v17, %v1083_v15  ;;  %v1087_v20 = vpop.f32.mrf.mxu0  ;;  %v451_v17 = vld [vmem:[#allocation2 + $0x38] sm:$0xff] }
 0x149   : > { %v1200_v22 = vpop.f32.mrf.mxu1 }
 0x14a   : > { %1303 = vst [vmem:[#allocation2 + $0xd8] sm:$0xff] %v1271_v18  ;;  %v1272_v23 = vadd.f32 %v1197_v19, %v438_v16  ;;  %v1201_v24 = vadd.f32 %v1200_v22, %v1087_v20  ;;  %v1089_v25 = vpop.f32.mrf.mxu0  ;;  %v452_v22 = vld [vmem:[#allocation2 + $0x58] sm:$0xff] }
 0x14b   : > { %v1202_v27 = vpop.f32.mrf.mxu1 }
 0x14c   : > { %1304 = vst [vmem:[#allocation2 + $0x18] sm:$0xff] %v1272_v23  ;;  %v1273_v28 = vadd.f32 %v1201_v24, %v439_v21  ;;  %v1203_v29 = vadd.f32 %v1202_v27, %v1089_v25  ;;  %v1091_v30 = vpop.f32.mrf.mxu0  ;;  %v453_v27 = vld [vmem:[#allocation2 + $0x40] sm:$0xff] }
 0x14d   : > { %v1204_v32 = vpop.f32.mrf.mxu1 }
 0x14e   : > { %1305 = vst [vmem:[#allocation2 + $0x50] sm:$0xff] %v1273_v28  ;;  %v1274_v33 = vadd.f32 %v1203_v29, %v440_v26  ;;  %v1205_v34 = vadd.f32 %v1204_v32, %v1091_v30  ;;  %v1093_v35 = vpop.f32.mrf.mxu0  ;;  %v454_v32 = vld [vmem:[#allocation2 + $0xc8] sm:$0xff] }
 0x14f   : > { %v1206_v37 = vpop.f32.mrf.mxu1 }
 0x150   : > { %1306 = vst [vmem:[#allocation2 + $0x68] sm:$0xff] %v1274_v33  ;;  %v1275_v38 = vadd.f32 %v1205_v34, %v441_v31  ;;  %v1207_v39 = vadd.f32 %v1206_v37, %v1093_v35  ;;  %v1097_v40 = vpop.f32.mrf.mxu0  ;;  %v455_v37 = vld [vmem:[#allocation2 + $0xe0] sm:$0xff] }
 0x151   : > { %v1210_v42 = vpop.f32.mrf.mxu1 }
 0x152   : > { %1307 = vst [vmem:[#allocation2 + $0x30] sm:$0xff] %v1275_v38  ;;  %v1276_v43 = vadd.f32 %v1207_v39, %v442_v36  ;;  %v1211_v44 = vadd.f32 %v1210_v42, %v1097_v40  ;;  %v1099_v45 = vpop.f32.mrf.mxu0  ;;  %v456_v42 = vld [vmem:[#allocation2 + $0x90] sm:$0xff] }
 0x153   : > { %v1212_v47 = vpop.f32.mrf.mxu1 }
 0x154   : > { %1308 = vst [vmem:[#allocation2 + $0x48] sm:$0xff] %v1276_v43  ;;  %v1277_v48 = vadd.f32 %v1211_v44, %v443_v41  ;;  %v1213_v49 = vadd.f32 %v1212_v47, %v1099_v45  ;;  %v1101_v50 = vpop.f32.mrf.mxu0  ;;  %v457_v47 = vld [vmem:[#allocation2 + $0x70] sm:$0xff] }
 0x155   : > { %v1214_v52 = vpop.f32.mrf.mxu1 }
 0x156   : > { %1309 = vst [vmem:[#allocation2 + $0x80] sm:$0xff] %v1277_v48  ;;  %v1278_v53 = vadd.f32 %v1213_v49, %v444_v46  ;;  %v1215_v54 = vadd.f32 %v1214_v52, %v1101_v50  ;;  %v1103_v55 = vpop.f32.mrf.mxu0  ;;  %v458_v52 = vld [vmem:[#allocation2 + $0xc0] sm:$0xff] }
 0x157   : > { %v1216_v57 = vpop.f32.mrf.mxu1 }
 0x158   : > { %1310 = vst [vmem:[#allocation2 + $0x88] sm:$0xff] %v1278_v53  ;;  %v1279_v58 = vadd.f32 %v1215_v54, %v445_v51  ;;  %v1217_v59 = vadd.f32 %v1216_v57, %v1103_v55  ;;  %v1107_v60 = vpop.f32.mrf.mxu0  ;;  %v459_v57 = vld [vmem:[#allocation2 + $0xa8] sm:$0xff] }
 0x159   : > { %v1220_v62 = vpop.f32.mrf.mxu1 }
 0x15a   : > { %1311 = vst [vmem:[#allocation2 + $0xe8] sm:$0xff] %v1279_v58  ;;  %v1280_v63 = vadd.f32 %v1217_v59, %v446_v56  ;;  %v1221_v0 = vadd.f32 %v1220_v62, %v1107_v60  ;;  %v1109_v1 = vpop.f32.mrf.mxu0  ;;  %v460_v62 = vld [vmem:[#allocation2 + $0xd0] sm:$0xff] }
 0x15b   : > { %v1222_v3 = vpop.f32.mrf.mxu1 }
 0x15c   : > { %1312 = vst [vmem:[#allocation2 + $0xb8] sm:$0xff] %v1280_v63  ;;  %v1281_v4 = vadd.f32 %v1221_v0, %v447_v61  ;;  %v1223_v5 = vadd.f32 %v1222_v3, %v1109_v1  ;;  %v1111_v6 = vpop.f32.mrf.mxu0  ;;  %v461_v3 = vld [vmem:[#allocation2 + $0x10] sm:$0xff] }
 0x15d   : > { %v1224_v8 = vpop.f32.mrf.mxu1 }
 0x15e   : > { %1313 = vst [vmem:[#allocation2 + $0x60] sm:$0xff] %v1281_v4  ;;  %v1282_v9 = vadd.f32 %v1223_v5, %v448_v2  ;;  %v1225_v10 = vadd.f32 %v1224_v8, %v1111_v6  ;;  %v1113_v11 = vpop.f32.mrf.mxu0  ;;  %v462_v8 = vld [vmem:[#allocation2 + $0x28] sm:$0xff] }
 0x15f   : > { %v1226_v13 = vpop.f32.mrf.mxu1 }
 0x160   : > { %1314 = vst [vmem:[#allocation2 + $0xf0] sm:$0xff] %v1282_v9  ;;  %v1283_v14 = vadd.f32 %v1225_v10, %v449_v7  ;;  %v1227_v15 = vadd.f32 %v1226_v13, %v1113_v11  ;;  %v1117_v16 = vpop.f32.mrf.mxu0  ;;  %v463_v13 = vld [vmem:[#allocation2 + $0xa0] sm:$0xff] }
 0x161   : > { %v1230_v18 = vpop.f32.mrf.mxu1 }
 0x162   : > { %1315 = vst [vmem:[#allocation2 + $0x8] sm:$0xff] %v1283_v14  ;;  %v1284_v19 = vadd.f32 %v1227_v15, %v450_v12  ;;  %v1231_v20 = vadd.f32 %v1230_v18, %v1117_v16  ;;  %v1119_v21 = vpop.f32.mrf.mxu0  ;;  %v464_v18 = vld [vmem:[#allocation2 + $0xf8] sm:$0xff] }
 0x163   : > { %v1232_v23 = vpop.f32.mrf.mxu1 }
 0x164   : > { %1316 = vst [vmem:[#allocation2 + $0x78] sm:$0xff] %v1284_v19  ;;  %v1285_v24 = vadd.f32 %v1231_v20, %v451_v17  ;;  %v1233_v25 = vadd.f32 %v1232_v23, %v1119_v21  ;;  %v1121_v26 = vpop.f32.mrf.mxu0  ;;  %v465_v23 = vld [vmem:[#allocation2 + $0x20] sm:$0xff] }
 0x165   : > { %v1234_v28 = vpop.f32.mrf.mxu1 }
 0x166   : > { %1317 = vst [vmem:[#allocation2 + $0x38] sm:$0xff] %v1285_v24  ;;  %v1286_v29 = vadd.f32 %v1233_v25, %v452_v22  ;;  %v1235_v30 = vadd.f32 %v1234_v28, %v1121_v26  ;;  %v1123_v31 = vpop.f32.mrf.mxu0  ;;  %v466_v28 = vld [vmem:[#allocation2 + $0x98] sm:$0xff] }
 0x167   : > { %v1236_v33 = vpop.f32.mrf.mxu1 }
 0x168   : > { %1318 = vst [vmem:[#allocation2 + $0x58] sm:$0xff] %v1286_v29  ;;  %v1287_v34 = vadd.f32 %v1235_v30, %v453_v27  ;;  %v1237_v35 = vadd.f32 %v1236_v33, %v1123_v31  ;;  %v1127_v36 = vpop.f32.mrf.mxu0 }
 0x169   : > { %v1240_v38 = vpop.f32.mrf.mxu1 }
 0x16a   : > { %1319 = vst [vmem:[#allocation2 + $0x40] sm:$0xff] %v1287_v34  ;;  %v1288_v39 = vadd.f32 %v1237_v35, %v454_v32  ;;  %v1241_v40 = vadd.f32 %v1240_v38, %v1127_v36  ;;  %v1129_v41 = vpop.f32.mrf.mxu0 }
 0x16b   : > { %v1242_v43 = vpop.f32.mrf.mxu1 }
 0x16c   : > { %1320 = vst [vmem:[#allocation2 + $0xc8] sm:$0xff] %v1288_v39  ;;  %v1289_v44 = vadd.f32 %v1241_v40, %v455_v37  ;;  %v1243_v45 = vadd.f32 %v1242_v43, %v1129_v41  ;;  %v1131_v46 = vpop.f32.mrf.mxu0 }
 0x16d   : > { %v1244_v48 = vpop.f32.mrf.mxu1 }
 0x16e   : > { %1321 = vst [vmem:[#allocation2 + $0xe0] sm:$0xff] %v1289_v44  ;;  %v1290_v49 = vadd.f32 %v1243_v45, %v456_v42  ;;  %v1245_v50 = vadd.f32 %v1244_v48, %v1131_v46  ;;  %v1133_v51 = vpop.f32.mrf.mxu0 }
 0x16f   : > { %v1246_v53 = vpop.f32.mrf.mxu1 }
 0x170   : > { %1322 = vst [vmem:[#allocation2 + $0x90] sm:$0xff] %v1290_v49  ;;  %v1291_v54 = vadd.f32 %v1245_v50, %v457_v47  ;;  %v1247_v55 = vadd.f32 %v1246_v53, %v1133_v51  ;;  %v1137_v56 = vpop.f32.mrf.mxu0 }
 0x171   : > { %v1250_v58 = vpop.f32.mrf.mxu1 }
 0x172   : > { %1323 = vst [vmem:[#allocation2 + $0x70] sm:$0xff] %v1291_v54  ;;  %v1292_v59 = vadd.f32 %v1247_v55, %v458_v52  ;;  %v1251_v60 = vadd.f32 %v1250_v58, %v1137_v56  ;;  %v1139_v61 = vpop.f32.mrf.mxu0 }
 0x173   : > { %v1252_v63 = vpop.f32.mrf.mxu1 }
 0x174   : > { %1324 = vst [vmem:[#allocation2 + $0xc0] sm:$0xff] %v1292_v59  ;;  %v1293_v0 = vadd.f32 %v1251_v60, %v459_v57  ;;  %v1253_v1 = vadd.f32 %v1252_v63, %v1139_v61  ;;  %v1141_v2 = vpop.f32.mrf.mxu0 }
 0x175   : > { %v1254_v4 = vpop.f32.mrf.mxu1 }
 0x176   : > { %1325 = vst [vmem:[#allocation2 + $0xa8] sm:$0xff] %v1293_v0  ;;  %v1294_v5 = vadd.f32 %v1253_v1, %v460_v62  ;;  %v1255_v6 = vadd.f32 %v1254_v4, %v1141_v2  ;;  %v1143_v7 = vpop.f32.mrf.mxu0 }
 0x177   : > { %v1256_v9 = vpop.f32.mrf.mxu1 }
 0x178   : > { %1326 = vst [vmem:[#allocation2 + $0xd0] sm:$0xff] %v1294_v5  ;;  %v1295_v10 = vadd.f32 %v1255_v6, %v461_v3  ;;  %v1257_v11 = vadd.f32 %v1256_v9, %v1143_v7  ;;  %v1147_v12 = vpop.f32.mrf.mxu0 }
 0x179   : > { %v1260_v14 = vpop.f32.mrf.mxu1 }
 0x17a   : > { %1327 = vst [vmem:[#allocation2 + $0x10] sm:$0xff] %v1295_v10  ;;  %v1296_v15 = vadd.f32 %v1257_v11, %v462_v8  ;;  %v1261_v16 = vadd.f32 %v1260_v14, %v1147_v12  ;;  %v1149_v17 = vpop.f32.mrf.mxu0 }
 0x17b   : > { %v1262_v19 = vpop.f32.mrf.mxu1 }
 0x17c   : > { %1328 = vst [vmem:[#allocation2 + $0x28] sm:$0xff] %v1296_v15  ;;  %v1297_v20 = vadd.f32 %v1261_v16, %v463_v13  ;;  %v1263_v21 = vadd.f32 %v1262_v19, %v1149_v17  ;;  %v1151_v22 = vpop.f32.mrf.mxu0 }
 0x17d   : > { %v1264_v24 = vpop.f32.mrf.mxu1 }
 0x17e   : > { %1329 = vst [vmem:[#allocation2 + $0xa0] sm:$0xff] %v1297_v20  ;;  %v1298_v25 = vadd.f32 %v1263_v21, %v464_v18  ;;  %v1265_v26 = vadd.f32 %v1264_v24, %v1151_v22  ;;  %v1153_v27 = vpop.f32.mrf.mxu0 }
 0x17f   : > { %v1266_v29 = vpop.f32.mrf.mxu1 }
 0x180   : > { %1330 = vst [vmem:[#allocation2 + $0xf8] sm:$0xff] %v1298_v25  ;;  %v1299_v30 = vadd.f32 %v1265_v26, %v465_v23  ;;  %v1267_v31 = vadd.f32 %v1266_v29, %v1153_v27  ;;  %1336 = sbr.rel (%p1798_p11) target bundleno = 436 (0x1b4), region = 67 }
 0x182   : > { %1331 = vst [vmem:[#allocation2 + $0x20] sm:$0xff] %v1299_v30  ;;  %v1300_v32 = vadd.f32 %v1267_v31, %v466_v28 }
 0x184   : > { %1332 = vst [vmem:[#allocation2 + $0x98] sm:$0xff] %v1300_v32 }
 0x185   : > { %v1371_v33 = vlaneseq  ;;  %v1369_v35 = vld [vmem:[%s2467_s2] sm:$0x3]  ;;  %v1337_v37 = vld [vmem:[#allocation2 + $0xb0] sm:$0xff]  ;;  %v1339_v41 = vld [vmem:[#allocation2 + $0xd8] sm:$0xff] }
 0x186   : > { %v1413_v36 = vld [vmem:[%s2468_s3] sm:$0x3]  ;;  %v1340_v42 = vld [vmem:[#allocation2 + $0x18] sm:$0xff]  ;;  %v1341_v43 = vld [vmem:[#allocation2 + $0x50] sm:$0xff] }
 0x187   : > { %v1372_v34 = vshrl.u32 %v1371_v33, 7  ;;  %v1338_v39 = vld [vmem:[#allocation2] sm:$0xff]  ;;  %v1342_v48 = vld [vmem:[#allocation2 + $0x68] sm:$0xff]  ;;  %v1343_v49 = vld [vmem:[#allocation2 + $0x30] sm:$0xff] }
 0x188   : > { %v1344_v50 = vld [vmem:[#allocation2 + $0x48] sm:$0xff]  ;;  %v1345_v3 = vld [vmem:[#allocation2 + $0x80] sm:$0xff]  ;;  %v1348_v10 = vld [vmem:[#allocation2 + $0xb8] sm:$0xff] }
 0x189   : > { %v1373_v38 = vsub.s32 0, %v1372_v34  ;;  %v1377_v40 = vsub.s32 1, %v1372_v34  ;;  %v1346_v4 = vld [vmem:[#allocation2 + $0x88] sm:$0xff]  ;;  %v1349_v15 = vld [vmem:[#allocation2 + $0x60] sm:$0xff]  ;;  %v1350_v16 = vld [vmem:[#allocation2 + $0xf0] sm:$0xff] }
 0x18a   : > { %v1347_v9 = vld [vmem:[#allocation2 + $0xe8] sm:$0xff]  ;;  %v1352_v22 = vld [vmem:[#allocation2 + $0x78] sm:$0xff] }
 0x18b   : > { %v2282_v44 = vrot.slane %v1369_v35, %v1373_v38  ;;  %v2284_v45 = vrot.slane %v1413_v36, %v1373_v38  ;;  %v2286_v46 = vrot.slane %v1369_v35, %v1377_v40  ;;  %v2288_v47 = vrot.slane %v1413_v36, %v1377_v40  ;;  %v1351_v21 = vld [vmem:[#allocation2 + $0x8] sm:$0xff] }
 0x18d   : > { %v1381_v51 = vmul.f32 %v2282_v44, %v1337_v37  ;;  %v1382_v52 = vmul.f32 %v2286_v46, %v1338_v39  ;;  %v1383_v53 = vmul.f32 %v2282_v44, %v1339_v41  ;;  %v1384_v54 = vmul.f32 %v2286_v46, %v1340_v42 }
 0x18e   : > { %v1385_v55 = vmul.f32 %v2282_v44, %v1341_v43  ;;  %v1386_v56 = vmul.f32 %v2286_v46, %v1342_v48  ;;  %v1387_v57 = vmul.f32 %v2282_v44, %v1343_v49  ;;  %v1388_v58 = vmul.f32 %v2286_v46, %v1344_v50  ;;  %v1353_v43 = vld [vmem:[#allocation2 + $0x38] sm:$0xff] }
 0x18f   : > { %v1425_v59 = vadd.f32 %v2284_v45, %v1381_v51  ;;  %v1426_v60 = vadd.f32 %v2288_v47, %v1382_v52  ;;  %v1427_v61 = vadd.f32 %v2284_v45, %v1383_v53  ;;  %v1428_v62 = vadd.f32 %v2288_v47, %v1384_v54  ;;  %v1354_v48 = vld [vmem:[#allocation2 + $0x58] sm:$0xff]  ;;  %v1355_v53 = vld [vmem:[#allocation2 + $0x40] sm:$0xff]  ;;  %v1356_v54 = vld [vmem:[#allocation2 + $0xc8] sm:$0xff] }
 0x190   : > { %v1429_v63 = vadd.f32 %v2284_v45, %v1385_v55  ;;  %v1430_v0 = vadd.f32 %v2288_v47, %v1386_v56  ;;  %v1431_v1 = vadd.f32 %v2284_v45, %v1387_v57  ;;  %v1432_v2 = vadd.f32 %v2288_v47, %v1388_v58 }
 0x191   : > { %v1457_v5 = vmax.f32 %v1425_v59, 0.0  ;;  %v1458_v6 = vmax.f32 %v1426_v60, 0.0  ;;  %v1459_v7 = vmax.f32 %v1427_v61, 0.0  ;;  %v1460_v8 = vmax.f32 %v1428_v62, 0.0  ;;  %v1357_v59 = vld [vmem:[#allocation2 + $0xe0] sm:$0xff]  ;;  %v1358_v60 = vld [vmem:[#allocation2 + $0x90] sm:$0xff] }
 0x192   : > { %v1461_v11 = vmax.f32 %v1429_v63, 0.0  ;;  %v1462_v12 = vmax.f32 %v1430_v0, 0.0  ;;  %v1463_v13 = vmax.f32 %v1431_v1, 0.0  ;;  %v1464_v14 = vmax.f32 %v1432_v2, 0.0  ;;  %v1359_v1 = vld [vmem:[#allocation2 + $0x70] sm:$0xff]  ;;  %v1360_v2 = vld [vmem:[#allocation2 + $0xc0] sm:$0xff] }
 0x193   : > { %v1489_v17 = vmin.f32 %v1457_v5, 6.0  ;;  %v1490_v18 = vmin.f32 %v1458_v6, 6.0  ;;  %v1491_v19 = vmin.f32 %v1459_v7, 6.0  ;;  %v1492_v20 = vmin.f32 %v1460_v8, 6.0 }
 0x194   : > { %v1493_v23 = vmin.f32 %v1461_v11, 6.0  ;;  %v1494_v24 = vmin.f32 %v1462_v12, 6.0  ;;  %v1495_v25 = vmin.f32 %v1463_v13, 6.0  ;;  %v1496_v26 = vmin.f32 %v1464_v14, 6.0 }
 0x195   : > { %1521 = vst [vmem:[%s2469_s4] sm:$0xff] %v1489_v17  ;;  %1522 = vst [vmem:[%s2469_s4 + $0x8] sm:$0xff] %v1490_v18  ;;  %v1389_v27 = vmul.f32 %v2282_v44, %v1345_v3  ;;  %v1390_v28 = vmul.f32 %v2286_v46, %v1346_v4  ;;  %v1391_v29 = vmul.f32 %v2282_v44, %v1347_v9 }
 0x196   : > { %1523 = vst [vmem:[%s2469_s4 + $0x10] sm:$0xff] %v1491_v19  ;;  %1524 = vst [vmem:[%s2469_s4 + $0x18] sm:$0xff] %v1492_v20  ;;  %v1392_v30 = vmul.f32 %v2286_v46, %v1348_v10  ;;  %v1393_v31 = vmul.f32 %v2282_v44, %v1349_v15  ;;  %v1394_v32 = vmul.f32 %v2286_v46, %v1350_v16 }
 0x197   : > { %1525 = vst [vmem:[%s2469_s4 + $0x20] sm:$0xff] %v1493_v23  ;;  %1526 = vst [vmem:[%s2469_s4 + $0x28] sm:$0xff] %v1494_v24  ;;  %v1395_v33 = vmul.f32 %v2282_v44, %v1351_v21  ;;  %v1396_v34 = vmul.f32 %v2286_v46, %v1352_v22  ;;  %v1433_v35 = vadd.f32 %v2284_v45, %v1389_v27  ;;  %v1361_v23 = vld [vmem:[#allocation2 + $0xa8] sm:$0xff]  ;;  %v1362_v24 = vld [vmem:[#allocation2 + $0xd0] sm:$0xff] }
 0x198   : > { %1527 = vst [vmem:[%s2469_s4 + $0x30] sm:$0xff] %v1495_v25  ;;  %1528 = vst [vmem:[%s2469_s4 + $0x38] sm:$0xff] %v1496_v26  ;;  %v1434_v36 = vadd.f32 %v2288_v47, %v1390_v28  ;;  %v1435_v37 = vadd.f32 %v2284_v45, %v1391_v29  ;;  %v1436_v38 = vadd.f32 %v2288_v47, %v1392_v30  ;;  %v1363_v29 = vld [vmem:[#allocation2 + $0x10] sm:$0xff]  ;;  %v1364_v30 = vld [vmem:[#allocation2 + $0x28] sm:$0xff] }
 0x199   : > { %v1437_v39 = vadd.f32 %v2284_v45, %v1393_v31  ;;  %v1438_v40 = vadd.f32 %v2288_v47, %v1394_v32  ;;  %v1439_v41 = vadd.f32 %v2284_v45, %v1395_v33  ;;  %v1440_v42 = vadd.f32 %v2288_v47, %v1396_v34 }
 0x19a   : > { %v1465_v49 = vmax.f32 %v1433_v35, 0.0  ;;  %v1466_v50 = vmax.f32 %v1434_v36, 0.0  ;;  %v1467_v51 = vmax.f32 %v1435_v37, 0.0  ;;  %v1468_v52 = vmax.f32 %v1436_v38, 0.0  ;;  %v1365_v35 = vld [vmem:[#allocation2 + $0xa0] sm:$0xff]  ;;  %v1366_v36 = vld [vmem:[#allocation2 + $0xf8] sm:$0xff] }
 0x19b   : > { %v1469_v55 = vmax.f32 %v1437_v39, 0.0  ;;  %v1470_v56 = vmax.f32 %v1438_v40, 0.0  ;;  %v1471_v57 = vmax.f32 %v1439_v41, 0.0  ;;  %v1472_v58 = vmax.f32 %v1440_v42, 0.0  ;;  %v1367_v41 = vld [vmem:[#allocation2 + $0x20] sm:$0xff]  ;;  %v1368_v42 = vld [vmem:[#allocation2 + $0x98] sm:$0xff] }
 0x19c   : > { %v1497_v61 = vmin.f32 %v1465_v49, 6.0  ;;  %v1498_v62 = vmin.f32 %v1466_v50, 6.0  ;;  %v1499_v63 = vmin.f32 %v1467_v51, 6.0  ;;  %v1500_v0 = vmin.f32 %v1468_v52, 6.0 }
 0x19d   : > { %v1501_v3 = vmin.f32 %v1469_v55, 6.0  ;;  %v1502_v4 = vmin.f32 %v1470_v56, 6.0  ;;  %v1503_v5 = vmin.f32 %v1471_v57, 6.0  ;;  %v1504_v6 = vmin.f32 %v1472_v58, 6.0 }
 0x19e   : > { %1529 = vst [vmem:[%s2469_s4 + $0x40] sm:$0xff] %v1497_v61  ;;  %1530 = vst [vmem:[%s2469_s4 + $0x48] sm:$0xff] %v1498_v62  ;;  %v1397_v7 = vmul.f32 %v2282_v44, %v1353_v43  ;;  %v1398_v8 = vmul.f32 %v2286_v46, %v1354_v48  ;;  %v1399_v9 = vmul.f32 %v2282_v44, %v1355_v53 }
 0x19f   : > { %1531 = vst [vmem:[%s2469_s4 + $0x50] sm:$0xff] %v1499_v63  ;;  %1532 = vst [vmem:[%s2469_s4 + $0x58] sm:$0xff] %v1500_v0  ;;  %v1400_v10 = vmul.f32 %v2286_v46, %v1356_v54  ;;  %v1401_v11 = vmul.f32 %v2282_v44, %v1357_v59  ;;  %v1402_v12 = vmul.f32 %v2286_v46, %v1358_v60 }
 0x1a0   : > { %1533 = vst [vmem:[%s2469_s4 + $0x60] sm:$0xff] %v1501_v3  ;;  %1534 = vst [vmem:[%s2469_s4 + $0x68] sm:$0xff] %v1502_v4  ;;  %v1403_v13 = vmul.f32 %v2282_v44, %v1359_v1  ;;  %v1404_v14 = vmul.f32 %v2286_v46, %v1360_v2  ;;  %v1441_v15 = vadd.f32 %v2284_v45, %v1397_v7 }
 0x1a1   : > { %1535 = vst [vmem:[%s2469_s4 + $0x70] sm:$0xff] %v1503_v5  ;;  %1536 = vst [vmem:[%s2469_s4 + $0x78] sm:$0xff] %v1504_v6  ;;  %v1442_v16 = vadd.f32 %v2288_v47, %v1398_v8  ;;  %v1443_v17 = vadd.f32 %v2284_v45, %v1399_v9  ;;  %v1444_v18 = vadd.f32 %v2288_v47, %v1400_v10 }
 0x1a2   : > { %v1445_v19 = vadd.f32 %v2284_v45, %v1401_v11  ;;  %v1446_v20 = vadd.f32 %v2288_v47, %v1402_v12  ;;  %v1447_v21 = vadd.f32 %v2284_v45, %v1403_v13  ;;  %v1448_v22 = vadd.f32 %v2288_v47, %v1404_v14 }
 0x1a3   : > { %v1473_v25 = vmax.f32 %v1441_v15, 0.0  ;;  %v1474_v26 = vmax.f32 %v1442_v16, 0.0  ;;  %v1475_v27 = vmax.f32 %v1443_v17, 0.0  ;;  %v1476_v28 = vmax.f32 %v1444_v18, 0.0 }
 0x1a4   : > { %v1477_v31 = vmax.f32 %v1445_v19, 0.0  ;;  %v1478_v32 = vmax.f32 %v1446_v20, 0.0  ;;  %v1479_v33 = vmax.f32 %v1447_v21, 0.0  ;;  %v1480_v34 = vmax.f32 %v1448_v22, 0.0 }
 0x1a5   : > { %v1505_v37 = vmin.f32 %v1473_v25, 6.0  ;;  %v1506_v38 = vmin.f32 %v1474_v26, 6.0  ;;  %v1507_v39 = vmin.f32 %v1475_v27, 6.0  ;;  %v1508_v40 = vmin.f32 %v1476_v28, 6.0 }
 0x1a6   : > { %v1509_v43 = vmin.f32 %v1477_v31, 6.0  ;;  %v1510_v48 = vmin.f32 %v1478_v32, 6.0  ;;  %v1511_v49 = vmin.f32 %v1479_v33, 6.0  ;;  %v1512_v50 = vmin.f32 %v1480_v34, 6.0 }
 0x1a7   : > { %1537 = vst [vmem:[%s2469_s4 + $0x80] sm:$0xff] %v1505_v37  ;;  %1538 = vst [vmem:[%s2469_s4 + $0x88] sm:$0xff] %v1506_v38  ;;  %v1405_v51 = vmul.f32 %v2282_v44, %v1361_v23  ;;  %v1406_v52 = vmul.f32 %v2286_v46, %v1362_v24  ;;  %v1407_v53 = vmul.f32 %v2282_v44, %v1363_v29 }
 0x1a8   : > { %1539 = vst [vmem:[%s2469_s4 + $0x90] sm:$0xff] %v1507_v39  ;;  %1540 = vst [vmem:[%s2469_s4 + $0x98] sm:$0xff] %v1508_v40  ;;  %v1408_v54 = vmul.f32 %v2286_v46, %v1364_v30  ;;  %v1409_v55 = vmul.f32 %v2282_v44, %v1365_v35  ;;  %v1410_v56 = vmul.f32 %v2286_v46, %v1366_v36 }
 0x1a9   : > { %1541 = vst [vmem:[%s2469_s4 + $0xa0] sm:$0xff] %v1509_v43  ;;  %1542 = vst [vmem:[%s2469_s4 + $0xa8] sm:$0xff] %v1510_v48  ;;  %v1411_v57 = vmul.f32 %v2282_v44, %v1367_v41  ;;  %v1412_v58 = vmul.f32 %v2286_v46, %v1368_v42  ;;  %v1449_v59 = vadd.f32 %v2284_v45, %v1405_v51 }
 0x1aa   : > { %1543 = vst [vmem:[%s2469_s4 + $0xb0] sm:$0xff] %v1511_v49  ;;  %1544 = vst [vmem:[%s2469_s4 + $0xb8] sm:$0xff] %v1512_v50  ;;  %v1450_v60 = vadd.f32 %v2288_v47, %v1406_v52  ;;  %v1451_v61 = vadd.f32 %v2284_v45, %v1407_v53  ;;  %v1452_v62 = vadd.f32 %v2288_v47, %v1408_v54 }
 0x1ab   : > { %v1453_v63 = vadd.f32 %v2284_v45, %v1409_v55  ;;  %v1454_v0 = vadd.f32 %v2288_v47, %v1410_v56  ;;  %v1455_v1 = vadd.f32 %v2284_v45, %v1411_v57  ;;  %v1456_v2 = vadd.f32 %v2288_v47, %v1412_v58 }
 0x1ac   : > { %v1481_v3 = vmax.f32 %v1449_v59, 0.0  ;;  %v1482_v44 = vmax.f32 %v1450_v60, 0.0  ;;  %v1483_v4 = vmax.f32 %v1451_v61, 0.0  ;;  %v1484_v46 = vmax.f32 %v1452_v62, 0.0 }
 0x1ad   : > { %v1485_v5 = vmax.f32 %v1453_v63, 0.0  ;;  %v1486_v6 = vmax.f32 %v1454_v0, 0.0  ;;  %v1487_v7 = vmax.f32 %v1455_v1, 0.0  ;;  %v1488_v8 = vmax.f32 %v1456_v2, 0.0 }
 0x1ae   : > { %v1513_v9 = vmin.f32 %v1481_v3, 6.0  ;;  %v1514_v10 = vmin.f32 %v1482_v44, 6.0  ;;  %v1515_v11 = vmin.f32 %v1483_v4, 6.0  ;;  %v1516_v12 = vmin.f32 %v1484_v46, 6.0 }
 0x1af   : > { %v1517_v13 = vmin.f32 %v1485_v5, 6.0  ;;  %v1518_v14 = vmin.f32 %v1486_v6, 6.0  ;;  %v1519_v15 = vmin.f32 %v1487_v7, 6.0  ;;  %v1520_v16 = vmin.f32 %v1488_v8, 6.0 }
 0x1b0   : > { %1545 = vst [vmem:[%s2469_s4 + $0xc0] sm:$0xff] %v1513_v9  ;;  %1546 = vst [vmem:[%s2469_s4 + $0xc8] sm:$0xff] %v1514_v10 }
 0x1b1   : > { %1547 = vst [vmem:[%s2469_s4 + $0xd0] sm:$0xff] %v1515_v11  ;;  %1548 = vst [vmem:[%s2469_s4 + $0xd8] sm:$0xff] %v1516_v12 }
 0x1b2   : > { %1549 = vst [vmem:[%s2469_s4 + $0xe0] sm:$0xff] %v1517_v13  ;;  %1550 = vst [vmem:[%s2469_s4 + $0xe8] sm:$0xff] %v1518_v14 }
 0x1b3   : > { %1551 = vst [vmem:[%s2469_s4 + $0xf0] sm:$0xff] %v1519_v15  ;;  %1552 = vst [vmem:[%s2469_s4 + $0xf8] sm:$0xff] %v1520_v16 }
 0x1b4 PF: > { %s14_s19 = sadd.s32 1, %s2028_s19   ;;  %s2470_s15 = smov %s2016_s16 }
 0x1b5   : > { %p11_p12 = scmp.ge.s32.totalorder %s14_s19, 19   ;;  %s2471_s16 = smov %s2091_s23 }
 0x1b6   : > { %s2472_s17 = smov %s2024_s18  ;;  %s2473_s18 = smov %s2475_s20 }
 0x1b7   :  { %13 = sbr.rel (!%p11_p12) target bundleno = 3 (0x3), region = 111 }

// kernel: segmentation_custom_forward.22
= control target key start
LH: loop header
LB: loop body
LE: loop exit
PB: predicated region body
PF: predicated region fallthrough
CT: control target
= control target key end

     0   :  { %s2056_s15 = smov 0   ;;  %s2058_s16 = smov 0   ;;  %s2465_s0 = inlined_call_operand.vmem [shape: bf16[128,1536], index: 0, kind: input, shape index: {}]   ;;  %s2466_s1 = inlined_call_operand.vmem [shape: bf16[1536,256], index: 1, kind: input, shape index: {}]   ;;  %s2467_s2 = inlined_call_operand.vmem [shape: f32[1,256], index: 2, kind: input, shape index: {}]   ;;  %s2468_s3 = inlined_call_operand.vmem [shape: f32[1,256], index: 3, kind: input, shape index: {}]   ;;  %s2469_s4 = inlined_call_operand.vmem [shape: f32[128,256], index: 4, kind: output, shape index: {}]  }
   0x1   :  { %s2060_s17 = smov 0   ;;  %s2062_s18 = smov 0  }
   0x2   :  { %s2064_s19 = smov 0  }
   0x3 LB: > { %s26_s20 = sadd.s32 1, %s2024_s18  ;;  %p49_p1 = scmp.ne.s32.totalorder %s2016_s16, %s2012_s15  ;;  %s2028_s19 = sphi %s2064_s19, %s14_s19   ;;  %s2024_s18 = sphi %s2062_s18, %s2473_s18   ;;  %s2020_s17 = sphi %s2060_s17, %s2472_s17   ;;  %s2016_s16 = sphi %s2058_s16, %s2471_s16   ;;  %s2012_s15 = sphi %s2056_s15, %s2470_s15  }
   0x4   : > { %p27_p0 = scmp.ge.s32.totalorder %s26_s20, 3  ;;  %p50_p2 = scmp.eq.s32.totalorder %s2028_s19, 0 }
   0x5   : > { %s42_s22 = sadd.s32 1, %s2016_s16  ;;  %p1692_p5 = scmp.ge.s32.totalorder %s2028_s19, 3 }
   0x6   : > { %s2475_s20 = smov (%p27_p0, %s26_s20), 0  ;;  %p51_p3 = por %p50_p2, %p49_p1 }
   0x7   : > { %s38_s21 = ssub.s32 %s2024_s18, %s2475_s20  ;;  %199 = sbr.rel (%p1692_p5) target bundleno = 32 (0x20), region = 24 }
   0x8   : > { %p40_p4 = scmp.eq.s32.totalorder %s38_s21, 0 }
   0xa   : > { %s2091_s23 = scalar_select %p40_p4, %s2016_s16, %s42_s22  }
   0xc   : > { %202 = sbr.rel (!%p51_p3) target bundleno = 32 (0x20), region = 28  ;;  %s204_s24 = sand.u32 (%p51_p3), 1, %s2016_s16  }
   0xd   : > { %s1803_s25 = sshll.u32 (%p51_p3), %s2024_s18, 4  ;;  %s1693_s26 = sshll.u32 (%p51_p3), %s204_s24, 8 }
   0xe   : > { %s2099_s29 = scalar_lea.vmem (%p51_p3), %s2465_s0, %s1803_s25  ;;  %s2104_s30 = scalar_lea.vmem (%p51_p3), [#allocation3], %s1693_s26 }
   0xf   : > { %v225_v0 = vld [vmem:[%s2099_s29] sm:$0xff] (%p51_p3)  ;;  %v227_v1 = vld [vmem:[%s2099_s29 + $0x8] sm:$0xff] (%p51_p3)  ;;  %v229_v2 = vld [vmem:[%s2099_s29 + $0x30] sm:$0xff] (%p51_p3) }
  0x10   : > { %226 = vst [vmem:[%s2104_s30] sm:$0xff] (%p51_p3), %v225_v0  ;;  %228 = vst [vmem:[%s2104_s30 + $0x8] sm:$0xff] (%p51_p3), %v227_v1  ;;  %v231_v3 = vld [vmem:[%s2099_s29 + $0x38] sm:$0xff] (%p51_p3)  ;;  %v233_v4 = vld [vmem:[%s2099_s29 + $0x60] sm:$0xff] (%p51_p3) }
  0x11   : > { %230 = vst [vmem:[%s2104_s30 + $0x10] sm:$0xff] %v229_v2  ;;  %v235_v5 = vld [vmem:[%s2099_s29 + $0x68] sm:$0xff]  ;;  %232 = vst [vmem:[%s2104_s30 + $0x18] sm:$0xff] %v231_v3  ;;  %v237_v6 = vld [vmem:[%s2099_s29 + $0x90] sm:$0xff] }
  0x12   : > { %234 = vst [vmem:[%s2104_s30 + $0x20] sm:$0xff] %v233_v4  ;;  %236 = vst [vmem:[%s2104_s30 + $0x28] sm:$0xff] %v235_v5  ;;  %v239_v7 = vld [vmem:[%s2099_s29 + $0x98] sm:$0xff]  ;;  %v241_v8 = vld [vmem:[%s2099_s29 + $0xc0] sm:$0xff] }
  0x13   : > { %238 = vst [vmem:[%s2104_s30 + $0x30] sm:$0xff] %v237_v6  ;;  %240 = vst [vmem:[%s2104_s30 + $0x38] sm:$0xff] %v239_v7  ;;  %v243_v9 = vld [vmem:[%s2099_s29 + $0xc8] sm:$0xff]  ;;  %v245_v10 = vld [vmem:[%s2099_s29 + $0xf0] sm:$0xff] }
  0x14   : > { %242 = vst [vmem:[%s2104_s30 + $0x40] sm:$0xff] %v241_v8  ;;  %v247_v11 = vld [vmem:[%s2099_s29 + $0xf8] sm:$0xff]  ;;  %244 = vst [vmem:[%s2104_s30 + $0x48] sm:$0xff] %v243_v9  ;;  %v249_v12 = vld [vmem:[%s2099_s29 + $0x120] sm:$0xff] }
  0x15   : > { %246 = vst [vmem:[%s2104_s30 + $0x50] sm:$0xff] %v245_v10  ;;  %248 = vst [vmem:[%s2104_s30 + $0x58] sm:$0xff] %v247_v11  ;;  %v251_v13 = vld [vmem:[%s2099_s29 + $0x128] sm:$0xff]  ;;  %v253_v14 = vld [vmem:[%s2099_s29 + $0x150] sm:$0xff] }
  0x16   : > { %250 = vst [vmem:[%s2104_s30 + $0x60] sm:$0xff] %v249_v12  ;;  %252 = vst [vmem:[%s2104_s30 + $0x68] sm:$0xff] %v251_v13  ;;  %v255_v15 = vld [vmem:[%s2099_s29 + $0x158] sm:$0xff]  ;;  %v257_v16 = vld [vmem:[%s2099_s29 + $0x180] sm:$0xff] }
  0x17   : > { %254 = vst [vmem:[%s2104_s30 + $0x70] sm:$0xff] %v253_v14  ;;  %v259_v17 = vld [vmem:[%s2099_s29 + $0x188] sm:$0xff]  ;;  %256 = vst [vmem:[%s2104_s30 + $0x78] sm:$0xff] %v255_v15  ;;  %v261_v18 = vld [vmem:[%s2099_s29 + $0x1b0] sm:$0xff] }
  0x18   : > { %258 = vst [vmem:[%s2104_s30 + $0x80] sm:$0xff] %v257_v16  ;;  %260 = vst [vmem:[%s2104_s30 + $0x88] sm:$0xff] %v259_v17  ;;  %v263_v19 = vld [vmem:[%s2099_s29 + $0x1b8] sm:$0xff]  ;;  %v265_v20 = vld [vmem:[%s2099_s29 + $0x1e0] sm:$0xff] }
  0x19   : > { %262 = vst [vmem:[%s2104_s30 + $0x90] sm:$0xff] %v261_v18  ;;  %264 = vst [vmem:[%s2104_s30 + $0x98] sm:$0xff] %v263_v19  ;;  %v267_v21 = vld [vmem:[%s2099_s29 + $0x1e8] sm:$0xff]  ;;  %v269_v22 = vld [vmem:[%s2099_s29 + $0x210] sm:$0xff] }
  0x1a   : > { %266 = vst [vmem:[%s2104_s30 + $0xa0] sm:$0xff] %v265_v20  ;;  %v271_v23 = vld [vmem:[%s2099_s29 + $0x218] sm:$0xff]  ;;  %268 = vst [vmem:[%s2104_s30 + $0xa8] sm:$0xff] %v267_v21  ;;  %v273_v24 = vld [vmem:[%s2099_s29 + $0x240] sm:$0xff] }
  0x1b   : > { %270 = vst [vmem:[%s2104_s30 + $0xb0] sm:$0xff] %v269_v22  ;;  %272 = vst [vmem:[%s2104_s30 + $0xb8] sm:$0xff] %v271_v23  ;;  %v275_v25 = vld [vmem:[%s2099_s29 + $0x248] sm:$0xff]  ;;  %v277_v26 = vld [vmem:[%s2099_s29 + $0x270] sm:$0xff] }
  0x1c   : > { %274 = vst [vmem:[%s2104_s30 + $0xc0] sm:$0xff] %v273_v24  ;;  %276 = vst [vmem:[%s2104_s30 + $0xc8] sm:$0xff] %v275_v25  ;;  %v279_v27 = vld [vmem:[%s2099_s29 + $0x278] sm:$0xff]  ;;  %v281_v28 = vld [vmem:[%s2099_s29 + $0x2a0] sm:$0xff] }
  0x1d   : > { %278 = vst [vmem:[%s2104_s30 + $0xd0] sm:$0xff] %v277_v26  ;;  %v283_v29 = vld [vmem:[%s2099_s29 + $0x2a8] sm:$0xff]  ;;  %280 = vst [vmem:[%s2104_s30 + $0xd8] sm:$0xff] %v279_v27  ;;  %v285_v30 = vld [vmem:[%s2099_s29 + $0x2d0] sm:$0xff] }
  0x1e   : > { %282 = vst [vmem:[%s2104_s30 + $0xe0] sm:$0xff] %v281_v28  ;;  %284 = vst [vmem:[%s2104_s30 + $0xe8] sm:$0xff] %v283_v29  ;;  %v287_v31 = vld [vmem:[%s2099_s29 + $0x2d8] sm:$0xff] }
  0x1f   : > { %286 = vst [vmem:[%s2104_s30 + $0xf0] sm:$0xff] %v285_v30  ;;  %288 = vst [vmem:[%s2104_s30 + $0xf8] sm:$0xff] %v287_v31 }
  0x20 PF: > { %p1696_p6 = scmp.ge.s32.totalorder %s2028_s19, 1  ;;  %p308_p7 = scmp.lt.s32.totalorder %s2028_s19, 4 }
  0x22   : > { %p309_p8 = pnand %p1696_p6, %p308_p7 }
  0x23   : > { %s315_s5 = sand.u32 (!%p309_p8), 1, %s2012_s15   ;;  %s1698_s6 = sshll.u32 (!%p309_p8), %s2020_s17, 6 }
  0x24   : > { %312 = sbr.rel (%p309_p8) target bundleno = 436 (0x1b4), region = 55  ;;  %s1697_s7 = sshll.u32 (!%p309_p8), %s315_s5, 8 }
  0x25   : > { %p367_p9 = scmp.lt.s32.totalorder (!%p309_p8), %s1698_s6, 191  ;;  %s2176_s12 = scalar_lea.vmem (!%p309_p8), [#allocation3], %s1697_s7 }
  0x26   : > { %p1701_p10 = scmp.ne.s32.totalorder (!%p309_p8), %s2020_s17, 0 }
  0x29   : > { %s2477_s6 = smov (!%p367_p9, %s1698_s6), 191  ;;  %402 = sbr.rel (%p1701_p10) target bundleno = 63 (0x3f), region = 63 }
  0x2a   : > { %s1804_s8 = sshll.u32 %s2477_s6, 3 }
  0x2b   : > { %s2174_s11 = scalar_lea.vmem %s2466_s1, %s1804_s8 }
  0x2e   : > { %v2030_v32 = vmov 0.0  }
  0x2f   : > { %403 = vst [vmem:[#allocation2 + $0xb0] sm:$0xff] %v2030_v32  ;;  %404 = vst [vmem:[#allocation2] sm:$0xff] %v2030_v32 }
  0x30   : > { %405 = vst [vmem:[#allocation2 + $0xd8] sm:$0xff] %v2030_v32  ;;  %406 = vst [vmem:[#allocation2 + $0x18] sm:$0xff] %v2030_v32 }
  0x31   : > { %407 = vst [vmem:[#allocation2 + $0x50] sm:$0xff] %v2030_v32  ;;  %408 = vst [vmem:[#allocation2 + $0x68] sm:$0xff] %v2030_v32 }
  0x32   : > { %409 = vst [vmem:[#allocation2 + $0x30] sm:$0xff] %v2030_v32  ;;  %410 = vst [vmem:[#allocation2 + $0x48] sm:$0xff] %v2030_v32 }
  0x33   : > { %411 = vst [vmem:[#allocation2 + $0x80] sm:$0xff] %v2030_v32  ;;  %412 = vst [vmem:[#allocation2 + $0x88] sm:$0xff] %v2030_v32 }
  0x34   : > { %413 = vst [vmem:[#allocation2 + $0xe8] sm:$0xff] %v2030_v32  ;;  %414 = vst [vmem:[#allocation2 + $0xb8] sm:$0xff] %v2030_v32 }
  0x35   : > { %415 = vst [vmem:[#allocation2 + $0x60] sm:$0xff] %v2030_v32  ;;  %416 = vst [vmem:[#allocation2 + $0xf0] sm:$0xff] %v2030_v32 }
  0x36   : > { %417 = vst [vmem:[#allocation2 + $0x8] sm:$0xff] %v2030_v32  ;;  %418 = vst [vmem:[#allocation2 + $0x78] sm:$0xff] %v2030_v32 }
  0x37   : > { %419 = vst [vmem:[#allocation2 + $0x38] sm:$0xff] %v2030_v32  ;;  %420 = vst [vmem:[#allocation2 + $0x58] sm:$0xff] %v2030_v32 }
  0x38   : > { %421 = vst [vmem:[#allocation2 + $0x40] sm:$0xff] %v2030_v32  ;;  %422 = vst [vmem:[#allocation2 + $0xc8] sm:$0xff] %v2030_v32 }
  0x39   : > { %423 = vst [vmem:[#allocation2 + $0xe0] sm:$0xff] %v2030_v32  ;;  %424 = vst [vmem:[#allocation2 + $0x90] sm:$0xff] %v2030_v32 }
  0x3a   : > { %425 = vst [vmem:[#allocation2 + $0x70] sm:$0xff] %v2030_v32  ;;  %426 = vst [vmem:[#allocation2 + $0xc0] sm:$0xff] %v2030_v32 }
  0x3b   : > { %427 = vst [vmem:[#allocation2 + $0xa8] sm:$0xff] %v2030_v32  ;;  %428 = vst [vmem:[#allocation2 + $0xd0] sm:$0xff] %v2030_v32 }
  0x3c   : > { %429 = vst [vmem:[#allocation2 + $0x10] sm:$0xff] %v2030_v32  ;;  %430 = vst [vmem:[#allocation2 + $0x28] sm:$0xff] %v2030_v32 }
  0x3d   : > { %431 = vst [vmem:[#allocation2 + $0xa0] sm:$0xff] %v2030_v32  ;;  %432 = vst [vmem:[#allocation2 + $0xf8] sm:$0xff] %v2030_v32 }
  0x3e   : > { %433 = vst [vmem:[#allocation2 + $0x20] sm:$0xff] %v2030_v32  ;;  %434 = vst [vmem:[#allocation2 + $0x98] sm:$0xff] %v2030_v32 }
  0x3f PF: > { %v1846_v33 = vld [vmem:[%s2174_s11 + $0x74] ss:$8 sps:$4 sm:$0xff]   ;;  %v1850_v35 = vld [vmem:[%s2174_s11 + $0x70] ss:$8 sps:$4 sm:$0xff]   ;;  %v1852_v37 = vld [vmem:[%s2174_s11 + $0x64] ss:$8 sps:$4 sm:$0xff]  }
  0x40   : > { %v1848_v34 = vld [vmem:[%s2174_s11 + $0x174] ss:$8 sps:$4 sm:$0xff]   ;;  %1043 = vmatprep.subr.bf16.mxu0 %v1846_v33  ;;  %v1851_v36 = vld [vmem:[%s2174_s11 + $0x170] ss:$8 sps:$4 sm:$0xff]   ;;  %v1854_v38 = vld [vmem:[%s2174_s11 + $0x164] ss:$8 sps:$4 sm:$0xff]  }
  0x41   : > { %1156 = vmatprep.subr.bf16.mxu1 %v1848_v34  ;;  %1044 = vmatpush1.bf16.msra.mxu0 %v1850_v35  ;;  %v1856_v39 = vld [vmem:[%s2174_s11 + $0x60] ss:$8 sps:$4 sm:$0xff]   ;;  %v1858_v41 = vld [vmem:[%s2174_s11 + $0x54] ss:$8 sps:$4 sm:$0xff]   ;;  %v1862_v43 = vld [vmem:[%s2174_s11 + $0x50] ss:$8 sps:$4 sm:$0xff]  }
  0x42   : > { %1157 = vmatpush1.bf16.msra.mxu1 %v1851_v36  ;;  %1045 = vmatprep.subr.bf16.mxu0 %v1852_v37  ;;  %v1857_v40 = vld [vmem:[%s2174_s11 + $0x160] ss:$8 sps:$4 sm:$0xff]   ;;  %v1860_v42 = vld [vmem:[%s2174_s11 + $0x154] ss:$8 sps:$4 sm:$0xff]   ;;  %v1863_v44 = vld [vmem:[%s2174_s11 + $0x150] ss:$8 sps:$4 sm:$0xff]  }
  0x43   : > { %1158 = vmatprep.subr.bf16.mxu1 %v1854_v38  ;;  %v1864_v45 = vld [vmem:[%s2174_s11 + $0x44] ss:$8 sps:$4 sm:$0xff]   ;;  %v1868_v47 = vld [vmem:[%s2174_s11 + $0x40] ss:$8 sps:$4 sm:$0xff]   ;;  %v1870_v49 = vld [vmem:[%s2174_s11 + $0x34] ss:$8 sps:$4 sm:$0xff]  }
  0x44   : > { %v1866_v46 = vld [vmem:[%s2174_s11 + $0x144] ss:$8 sps:$4 sm:$0xff]   ;;  %v1869_v48 = vld [vmem:[%s2174_s11 + $0x140] ss:$8 sps:$4 sm:$0xff]   ;;  %v1872_v50 = vld [vmem:[%s2174_s11 + $0x134] ss:$8 sps:$4 sm:$0xff]  }
  0x45   : > { %1046 = vmatpush1.bf16.msra.mxu0 %v1856_v39  ;;  %v1874_v51 = vld [vmem:[%s2174_s11 + $0x30] ss:$8 sps:$4 sm:$0xff]   ;;  %v1876_v53 = vld [vmem:[%s2174_s11 + $0x24] ss:$8 sps:$4 sm:$0xff]   ;;  %v1880_v55 = vld [vmem:[%s2174_s11 + $0x20] ss:$8 sps:$4 sm:$0xff]  }
  0x46   : > { %1159 = vmatpush1.bf16.msra.mxu1 %v1857_v40  ;;  %1047 = vmatprep.subr.bf16.mxu0 %v1858_v41  ;;  %v1875_v52 = vld [vmem:[%s2174_s11 + $0x130] ss:$8 sps:$4 sm:$0xff]   ;;  %v1878_v54 = vld [vmem:[%s2174_s11 + $0x124] ss:$8 sps:$4 sm:$0xff]   ;;  %v1881_v56 = vld [vmem:[%s2174_s11 + $0x120] ss:$8 sps:$4 sm:$0xff]  }
  0x47   : > { %1160 = vmatprep.subr.bf16.mxu1 %v1860_v42  ;;  %v1882_v57 = vld [vmem:[%s2174_s11 + $0x14] ss:$8 sps:$4 sm:$0xff]   ;;  %v1886_v59 = vld [vmem:[%s2174_s11 + $0x10] ss:$8 sps:$4 sm:$0xff]   ;;  %v1888_v61 = vld [vmem:[%s2174_s11 + $0x4] ss:$8 sps:$4 sm:$0xff]  }
  0x48   : > { %v1884_v58 = vld [vmem:[%s2174_s11 + $0x114] ss:$8 sps:$4 sm:$0xff]   ;;  %v1887_v60 = vld [vmem:[%s2174_s11 + $0x110] ss:$8 sps:$4 sm:$0xff]   ;;  %v1890_v62 = vld [vmem:[%s2174_s11 + $0x104] ss:$8 sps:$4 sm:$0xff]  }
  0x49   : > { %1048 = vmatpush1.bf16.msra.mxu0 %v1862_v43  ;;  %v1892_v63 = vld [vmem:[%s2174_s11] ss:$8 sps:$4 sm:$0xff]   ;;  %v1894_v1 = vld [vmem:[%s2174_s11 + $0xf4] ss:$8 sps:$4 sm:$0xff]   ;;  %v1898_v3 = vld [vmem:[%s2174_s11 + $0xf0] ss:$8 sps:$4 sm:$0xff]  }
  0x4a   : > { %1161 = vmatpush1.bf16.msra.mxu1 %v1863_v44  ;;  %1049 = vmatprep.subr.bf16.mxu0 %v1864_v45  ;;  %v1893_v0 = vld [vmem:[%s2174_s11 + $0x100] ss:$8 sps:$4 sm:$0xff]   ;;  %v1896_v2 = vld [vmem:[%s2174_s11 + $0x1f4] ss:$8 sps:$4 sm:$0xff]   ;;  %v1899_v4 = vld [vmem:[%s2174_s11 + $0x1f0] ss:$8 sps:$4 sm:$0xff]  }
  0x4b   : > { %1162 = vmatprep.subr.bf16.mxu1 %v1866_v46  ;;  %v1900_v5 = vld [vmem:[%s2174_s11 + $0xe4] ss:$8 sps:$4 sm:$0xff]   ;;  %v1904_v7 = vld [vmem:[%s2174_s11 + $0xe0] ss:$8 sps:$4 sm:$0xff]   ;;  %v1906_v9 = vld [vmem:[%s2174_s11 + $0xd4] ss:$8 sps:$4 sm:$0xff]  }
  0x4c   : > { %v1902_v6 = vld [vmem:[%s2174_s11 + $0x1e4] ss:$8 sps:$4 sm:$0xff]   ;;  %v1905_v8 = vld [vmem:[%s2174_s11 + $0x1e0] ss:$8 sps:$4 sm:$0xff]   ;;  %v1908_v10 = vld [vmem:[%s2174_s11 + $0x1d4] ss:$8 sps:$4 sm:$0xff]  }
  0x4d   : > { %1050 = vmatpush1.bf16.msra.mxu0 %v1868_v47  ;;  %v1910_v11 = vld [vmem:[%s2174_s11 + $0xd0] ss:$8 sps:$4 sm:$0xff]   ;;  %v1912_v13 = vld [vmem:[%s2174_s11 + $0xc4] ss:$8 sps:$4 sm:$0xff]   ;;  %v1916_v15 = vld [vmem:[%s2174_s11 + $0xc0] ss:$8 sps:$4 sm:$0xff]  }
  0x4e   : > { %1163 = vmatpush1.bf16.msra.mxu1 %v1869_v48  ;;  %1051 = vmatprep.subr.bf16.mxu0 %v1870_v49  ;;  %v1911_v12 = vld [vmem:[%s2174_s11 + $0x1d0] ss:$8 sps:$4 sm:$0xff]   ;;  %v1914_v14 = vld [vmem:[%s2174_s11 + $0x1c4] ss:$8 sps:$4 sm:$0xff]   ;;  %v1917_v16 = vld [vmem:[%s2174_s11 + $0x1c0] ss:$8 sps:$4 sm:$0xff]  }
  0x4f   : > { %1164 = vmatprep.subr.bf16.mxu1 %v1872_v50  ;;  %v1918_v17 = vld [vmem:[%s2174_s11 + $0xb4] ss:$8 sps:$4 sm:$0xff]   ;;  %v1922_v21 = vld [vmem:[%s2174_s11 + $0xb0] ss:$8 sps:$4 sm:$0xff]   ;;  %v1924_v23 = vld [vmem:[%s2174_s11 + $0xa4] ss:$8 sps:$4 sm:$0xff]  }
  0x50   : > { %v1944_v18 = vld [vmem:[%s2176_s12 + $0x4] ss:$16 sps:$4 sm:$0xff]   ;;  %v1947_v20 = vld [vmem:[%s2176_s12 + $0xc] ss:$16 sps:$4 sm:$0xff]   ;;  %v1923_v22 = vld [vmem:[%s2174_s11 + $0x1b0] ss:$8 sps:$4 sm:$0xff]  }
  0x51   : > { %1052 = vmatpush1.bf16.msra.mxu0 %v1874_v51  ;;  %v1920_v19 = vld [vmem:[%s2174_s11 + $0x1b4] ss:$8 sps:$4 sm:$0xff]   ;;  %1075 = vmatprep.mubr.bf16.mxu0 %v1944_v18  ;;  %v1926_v24 = vld [vmem:[%s2174_s11 + $0x1a4] ss:$8 sps:$4 sm:$0xff]   ;;  %v1928_v25 = vld [vmem:[%s2174_s11 + $0xa0] ss:$8 sps:$4 sm:$0xff]  }
  0x52   : > { %1165 = vmatpush1.bf16.msra.mxu1 %v1875_v52  ;;  %1053 = vmatprep.subr.bf16.mxu0 %v1876_v53  ;;  %v1929_v26 = vld [vmem:[%s2174_s11 + $0x1a0] ss:$8 sps:$4 sm:$0xff]   ;;  %v1930_v27 = vld [vmem:[%s2174_s11 + $0x94] ss:$8 sps:$4 sm:$0xff]   ;;  %v1934_v29 = vld [vmem:[%s2174_s11 + $0x90] ss:$8 sps:$4 sm:$0xff]  }
  0x53   : > { %1166 = vmatprep.subr.bf16.mxu1 %v1878_v54  ;;  %1188 = vmatprep.mubr.bf16.mxu1 %v1947_v20  ;;  %v1932_v28 = vld [vmem:[%s2174_s11 + $0x194] ss:$8 sps:$4 sm:$0xff]   ;;  %v1935_v30 = vld [vmem:[%s2174_s11 + $0x190] ss:$8 sps:$4 sm:$0xff]   ;;  %v1936_v31 = vld [vmem:[%s2174_s11 + $0x84] ss:$8 sps:$4 sm:$0xff]  }
  0x54   : > { %v1938_v32 = vld [vmem:[%s2174_s11 + $0x184] ss:$8 sps:$4 sm:$0xff]   ;;  %v1940_v33 = vld [vmem:[%s2174_s11 + $0x80] ss:$8 sps:$4 sm:$0xff]   ;;  %p1798_p11 = scmp.ne.s32.totalorder %s2020_s17, 2 }
  0x55   : > { %1054 = vmatpush1.bf16.msra.mxu0 %v1880_v55  ;;  %v1941_v34 = vld [vmem:[%s2174_s11 + $0x180] ss:$8 sps:$4 sm:$0xff]   ;;  %v1948_v37 = vld [vmem:[%s2176_s12 + $0x24] ss:$16 sps:$4 sm:$0xff]   ;;  %v1950_v38 = vld [vmem:[%s2176_s12 + $0x2c] ss:$16 sps:$4 sm:$0xff]  }
  0x56   : > { %1167 = vmatpush1.bf16.msra.mxu1 %v1881_v56  ;;  %1055 = vmatprep.subr.bf16.mxu0 %v1882_v57  ;;  %v1942_v35 = vld [vmem:[%s2176_s12] ss:$16 sps:$4 sm:$0xff]   ;;  %v1945_v36 = vld [vmem:[%s2176_s12 + $0x8] ss:$16 sps:$4 sm:$0xff]   ;;  %v1954_v41 = vld [vmem:[%s2176_s12 + $0x44] ss:$16 sps:$4 sm:$0xff]  }
  0x57   : > { %1168 = vmatprep.subr.bf16.mxu1 %v1884_v58  ;;  %v1952_v39 = vld [vmem:[%s2176_s12 + $0x20] ss:$16 sps:$4 sm:$0xff]   ;;  %v1953_v40 = vld [vmem:[%s2176_s12 + $0x28] ss:$16 sps:$4 sm:$0xff]   ;;  %v1956_v42 = vld [vmem:[%s2176_s12 + $0x4c] ss:$16 sps:$4 sm:$0xff]  }
  0x58   : > { %v1958_v43 = vld [vmem:[%s2176_s12 + $0x40] ss:$16 sps:$4 sm:$0xff]   ;;  %v1959_v44 = vld [vmem:[%s2176_s12 + $0x48] ss:$16 sps:$4 sm:$0xff]   ;;  %v1960_v45 = vld [vmem:[%s2176_s12 + $0x64] ss:$16 sps:$4 sm:$0xff]  }
  0x59   : > { %1056 = vmatpush1.bf16.msra.mxu0 %v1886_v59  ;;  %v1962_v46 = vld [vmem:[%s2176_s12 + $0x6c] ss:$16 sps:$4 sm:$0xff]   ;;  %v1964_v47 = vld [vmem:[%s2176_s12 + $0x60] ss:$16 sps:$4 sm:$0xff]   ;;  %v1965_v48 = vld [vmem:[%s2176_s12 + $0x68] ss:$16 sps:$4 sm:$0xff]  }
  0x5a   : > { %1169 = vmatpush1.bf16.msra.mxu1 %v1887_v60  ;;  %1057 = vmatprep.subr.bf16.mxu0 %v1888_v61  ;;  %v1966_v49 = vld [vmem:[%s2176_s12 + $0x84] ss:$16 sps:$4 sm:$0xff]   ;;  %v1968_v50 = vld [vmem:[%s2176_s12 + $0x8c] ss:$16 sps:$4 sm:$0xff]   ;;  %v1970_v51 = vld [vmem:[%s2176_s12 + $0x80] ss:$16 sps:$4 sm:$0xff]  }
  0x5b   : > { %1170 = vmatprep.subr.bf16.mxu1 %v1890_v62  ;;  %v1971_v52 = vld [vmem:[%s2176_s12 + $0x88] ss:$16 sps:$4 sm:$0xff]   ;;  %v1972_v53 = vld [vmem:[%s2176_s12 + $0xa4] ss:$16 sps:$4 sm:$0xff]   ;;  %v1974_v54 = vld [vmem:[%s2176_s12 + $0xac] ss:$16 sps:$4 sm:$0xff]  }
  0x5c   : > { %v1976_v55 = vld [vmem:[%s2176_s12 + $0xa0] ss:$16 sps:$4 sm:$0xff]   ;;  %v1977_v56 = vld [vmem:[%s2176_s12 + $0xa8] ss:$16 sps:$4 sm:$0xff]   ;;  %v1978_v57 = vld [vmem:[%s2176_s12 + $0xc4] ss:$16 sps:$4 sm:$0xff]  }
  0x5d   : > { %1058 = vmatpush1.bf16.msra.mxu0 %v1892_v63  ;;  %v1980_v58 = vld [vmem:[%s2176_s12 + $0xcc] ss:$16 sps:$4 sm:$0xff]   ;;  %v1982_v59 = vld [vmem:[%s2176_s12 + $0xc0] ss:$16 sps:$4 sm:$0xff]   ;;  %v1983_v60 = vld [vmem:[%s2176_s12 + $0xc8] ss:$16 sps:$4 sm:$0xff]  }
  0x5e   : > { %1171 = vmatpush1.bf16.msra.mxu1 %v1893_v0  ;;  %1059 = vmatprep.subr.bf16.mxu0 %v1894_v1  ;;  %v1984_v61 = vld [vmem:[%s2176_s12 + $0xe4] ss:$16 sps:$4 sm:$0xff]   ;;  %v1986_v62 = vld [vmem:[%s2176_s12 + $0xec] ss:$16 sps:$4 sm:$0xff]   ;;  %v1988_v63 = vld [vmem:[%s2176_s12 + $0xe0] ss:$16 sps:$4 sm:$0xff]  }
  0x5f   : > { %1172 = vmatprep.subr.bf16.mxu1 %v1896_v2  ;;  %v1989_v0 = vld [vmem:[%s2176_s12 + $0xe8] ss:$16 sps:$4 sm:$0xff]   ;;  %v435_v2 = vld [vmem:[#allocation2 + $0xb0] sm:$0xff] }
  0x61   : > { %1060 = vmatpush2.bf16.msra.mxu0 %v1898_v3 }
  0x62   : > { %1173 = vmatpush2.bf16.msra.mxu1 %v1899_v4  ;;  %1061 = vmatprep.subr.bf16.mxu0 %v1900_v5 }
  0x63   : > { %1174 = vmatprep.subr.bf16.mxu1 %v1902_v6  ;;  %v436_v6 = vld [vmem:[#allocation2] sm:$0xff] }
  0x65   : > { %1062 = vmatpush2.bf16.msra.mxu0 %v1904_v7 }
  0x66   : > { %1175 = vmatpush2.bf16.msra.mxu1 %v1905_v8  ;;  %1063 = vmatprep.subr.bf16.mxu0 %v1906_v9 }
  0x67   : > { %1176 = vmatprep.subr.bf16.mxu1 %v1908_v10 }
  0x69   : > { %1064 = vmatpush2.bf16.msra.mxu0 %v1910_v11  ;;  %v437_v11 = vld [vmem:[#allocation2 + $0xd8] sm:$0xff] }
  0x6a   : > { %1177 = vmatpush2.bf16.msra.mxu1 %v1911_v12  ;;  %1065 = vmatprep.subr.bf16.mxu0 %v1912_v13 }
  0x6b   : > { %1178 = vmatprep.subr.bf16.mxu1 %v1914_v14 }
  0x6d   : > { %1066 = vmatpush2.bf16.msra.mxu0 %v1916_v15 }
  0x6e   : > { %1179 = vmatpush2.bf16.msra.mxu1 %v1917_v16  ;;  %1067 = vmatprep.subr.bf16.mxu0 %v1918_v17  ;;  %v438_v16 = vld [vmem:[#allocation2 + $0x18] sm:$0xff] }
  0x6f   : > { %1180 = vmatprep.subr.bf16.mxu1 %v1920_v19 }
  0x71   : > { %1068 = vmatpush2.bf16.msra.mxu0 %v1922_v21  ;;  %v439_v21 = vld [vmem:[#allocation2 + $0x50] sm:$0xff] }
  0x72   : > { %1181 = vmatpush2.bf16.msra.mxu1 %v1923_v22  ;;  %1069 = vmatprep.subr.bf16.mxu0 %v1924_v23 }
  0x73   : > { %1182 = vmatprep.subr.bf16.mxu1 %v1926_v24 }
  0x75   : > { %1070 = vmatpush2.bf16.msra.mxu0 %v1928_v25 }
  0x76   : > { %1183 = vmatpush2.bf16.msra.mxu1 %v1929_v26  ;;  %1071 = vmatprep.subr.bf16.mxu0 %v1930_v27  ;;  %v440_v26 = vld [vmem:[#allocation2 + $0x68] sm:$0xff] }
  0x77   : > { %1184 = vmatprep.subr.bf16.mxu1 %v1932_v28 }
  0x79   : > { %1072 = vmatpush2.bf16.msra.mxu0 %v1934_v29 }
  0x7a   : > { %1185 = vmatpush2.bf16.msra.mxu1 %v1935_v30  ;;  %1073 = vmatprep.subr.bf16.mxu0 %v1936_v31  ;;  %v441_v31 = vld [vmem:[#allocation2 + $0x30] sm:$0xff] }
  0x7b   : > { %1186 = vmatprep.subr.bf16.mxu1 %v1938_v32 }
  0x7d   : > { %1074 = vmatpush2.bf16.msra.mxu0 %v1940_v33 }
  0x7e   : > { %1187 = vmatpush2.bf16.msra.mxu1 %v1941_v34 }
  0x80   : > { %1076 = vmatmul.mubr.bf16.vlgmr.msra.gmra.mxu0 %v1942_v35 }
  0x81   : > { %1189 = vmatmul.mubr.bf16.vlgmr.msra.gmra.mxu1 %v1945_v36  ;;  %1085 = vmatprep.mubr.bf16.mxu0 %v1948_v37  ;;  %v442_v36 = vld [vmem:[#allocation2 + $0x48] sm:$0xff] }
  0x82   : > { %1198 = vmatprep.mubr.bf16.mxu1 %v1950_v38 }
  0x88   : > { %1086 = vmatmul.mubr.bf16.gmra.mxu0 %v1952_v39 }
  0x89   : > { %1199 = vmatmul.mubr.bf16.gmra.mxu1 %v1953_v40  ;;  %1095 = vmatprep.mubr.bf16.mxu0 %v1954_v41  ;;  %v443_v41 = vld [vmem:[#allocation2 + $0x80] sm:$0xff] }
  0x8a   : > { %1208 = vmatprep.mubr.bf16.mxu1 %v1956_v42 }
  0x90   : > { %1096 = vmatmul.mubr.bf16.gmra.mxu0 %v1958_v43 }
  0x91   : > { %1209 = vmatmul.mubr.bf16.gmra.mxu1 %v1959_v44  ;;  %1105 = vmatprep.mubr.bf16.mxu0 %v1960_v45 }
  0x92   : > { %1218 = vmatprep.mubr.bf16.mxu1 %v1962_v46  ;;  %v444_v46 = vld [vmem:[#allocation2 + $0x88] sm:$0xff] }
  0x98   : > { %1106 = vmatmul.mubr.bf16.gmra.mxu0 %v1964_v47 }
  0x99   : > { %1219 = vmatmul.mubr.bf16.gmra.mxu1 %v1965_v48  ;;  %1115 = vmatprep.mubr.bf16.mxu0 %v1966_v49 }
  0x9a   : > { %1228 = vmatprep.mubr.bf16.mxu1 %v1968_v50 }
  0xa0   : > { %1116 = vmatmul.mubr.bf16.gmra.mxu0 %v1970_v51  ;;  %v445_v51 = vld [vmem:[#allocation2 + $0xe8] sm:$0xff] }
  0xa1   : > { %1229 = vmatmul.mubr.bf16.gmra.mxu1 %v1971_v52  ;;  %1125 = vmatprep.mubr.bf16.mxu0 %v1972_v53 }
  0xa2   : > { %1238 = vmatprep.mubr.bf16.mxu1 %v1974_v54 }
  0xa8   : > { %1126 = vmatmul.mubr.bf16.gmra.mxu0 %v1976_v55 }
  0xa9   : > { %1239 = vmatmul.mubr.bf16.gmra.mxu1 %v1977_v56  ;;  %1135 = vmatprep.mubr.bf16.mxu0 %v1978_v57  ;;  %v446_v56 = vld [vmem:[#allocation2 + $0xb8] sm:$0xff] }
  0xaa   : > { %1248 = vmatprep.mubr.bf16.mxu1 %v1980_v58 }
  0xb0   : > { %1136 = vmatmul.mubr.bf16.gmra.mxu0 %v1982_v59 }
  0xb1   : > { %1249 = vmatmul.mubr.bf16.gmra.mxu1 %v1983_v60  ;;  %1145 = vmatprep.mubr.bf16.mxu0 %v1984_v61  ;;  %v447_v61 = vld [vmem:[#allocation2 + $0x60] sm:$0xff] }
  0xb2   : > { %1258 = vmatprep.mubr.bf16.mxu1 %v1986_v62 }
  0xb8   : > { %1146 = vmatmul.mubr.bf16.gmra.mxu0 %v1988_v63 }
  0xb9   : > { %1259 = vmatmul.mubr.bf16.gmra.mxu1 %v1989_v0 }
 0x140   : > { %v1077_v1 = vpop.f32.mrf.mxu0 }
 0x141   : > { %v1190_v3 = vpop.f32.mrf.mxu1 }
 0x142   : > { %v1191_v4 = vadd.f32 %v1190_v3, %v1077_v1  ;;  %v1079_v5 = vpop.f32.mrf.mxu0 }
 0x143   : > { %v1192_v7 = vpop.f32.mrf.mxu1 }
 0x144   : > { %v1269_v8 = vadd.f32 %v1191_v4, %v435_v2  ;;  %v1193_v9 = vadd.f32 %v1192_v7, %v1079_v5  ;;  %v1081_v10 = vpop.f32.mrf.mxu0  ;;  %v448_v2 = vld [vmem:[#allocation2 + $0xf0] sm:$0xff]  ;;  %v449_v7 = vld [vmem:[#allocation2 + $0x8] sm:$0xff] }
 0x145   : > { %v1194_v12 = vpop.f32.mrf.mxu1 }
 0x146   : > { %1301 = vst [vmem:[#allocation2 + $0xb0] sm:$0xff] %v1269_v8  ;;  %v1270_v13 = vadd.f32 %v1193_v9, %v436_v6  ;;  %v1195_v14 = vadd.f32 %v1194_v12, %v1081_v10  ;;  %v1083_v15 = vpop.f32.mrf.mxu0  ;;  %v450_v12 = vld [vmem:[#allocation2 + $0x78] sm:$0xff] }
 0x147   : > { %v1196_v17 = vpop.f32.mrf.mxu1 }
 0x148   : > { %1302 = vst [vmem:[#allocation2] sm:$0xff] %v1270_v13  ;;  %v1271_v18 = vadd.f32 %v1195_v14, %v437_v11  ;;  %v1197_v19 = vadd.f32 %v1196_v17, %v1083_v15  ;;  %v1087_v20 = vpop.f32.mrf.mxu0  ;;  %v451_v17 = vld [vmem:[#allocation2 + $0x38] sm:$0xff] }
 0x149   : > { %v1200_v22 = vpop.f32.mrf.mxu1 }
 0x14a   : > { %1303 = vst [vmem:[#allocation2 + $0xd8] sm:$0xff] %v1271_v18  ;;  %v1272_v23 = vadd.f32 %v1197_v19, %v438_v16  ;;  %v1201_v24 = vadd.f32 %v1200_v22, %v1087_v20  ;;  %v1089_v25 = vpop.f32.mrf.mxu0  ;;  %v452_v22 = vld [vmem:[#allocation2 + $0x58] sm:$0xff] }
 0x14b   : > { %v1202_v27 = vpop.f32.mrf.mxu1 }
 0x14c   : > { %1304 = vst [vmem:[#allocation2 + $0x18] sm:$0xff] %v1272_v23  ;;  %v1273_v28 = vadd.f32 %v1201_v24, %v439_v21  ;;  %v1203_v29 = vadd.f32 %v1202_v27, %v1089_v25  ;;  %v1091_v30 = vpop.f32.mrf.mxu0  ;;  %v453_v27 = vld [vmem:[#allocation2 + $0x40] sm:$0xff] }
 0x14d   : > { %v1204_v32 = vpop.f32.mrf.mxu1 }
 0x14e   : > { %1305 = vst [vmem:[#allocation2 + $0x50] sm:$0xff] %v1273_v28  ;;  %v1274_v33 = vadd.f32 %v1203_v29, %v440_v26  ;;  %v1205_v34 = vadd.f32 %v1204_v32, %v1091_v30  ;;  %v1093_v35 = vpop.f32.mrf.mxu0  ;;  %v454_v32 = vld [vmem:[#allocation2 + $0xc8] sm:$0xff] }
 0x14f   : > { %v1206_v37 = vpop.f32.mrf.mxu1 }
 0x150   : > { %1306 = vst [vmem:[#allocation2 + $0x68] sm:$0xff] %v1274_v33  ;;  %v1275_v38 = vadd.f32 %v1205_v34, %v441_v31  ;;  %v1207_v39 = vadd.f32 %v1206_v37, %v1093_v35  ;;  %v1097_v40 = vpop.f32.mrf.mxu0  ;;  %v455_v37 = vld [vmem:[#allocation2 + $0xe0] sm:$0xff] }
 0x151   : > { %v1210_v42 = vpop.f32.mrf.mxu1 }
 0x152   : > { %1307 = vst [vmem:[#allocation2 + $0x30] sm:$0xff] %v1275_v38  ;;  %v1276_v43 = vadd.f32 %v1207_v39, %v442_v36  ;;  %v1211_v44 = vadd.f32 %v1210_v42, %v1097_v40  ;;  %v1099_v45 = vpop.f32.mrf.mxu0  ;;  %v456_v42 = vld [vmem:[#allocation2 + $0x90] sm:$0xff] }
 0x153   : > { %v1212_v47 = vpop.f32.mrf.mxu1 }
 0x154   : > { %1308 = vst [vmem:[#allocation2 + $0x48] sm:$0xff] %v1276_v43  ;;  %v1277_v48 = vadd.f32 %v1211_v44, %v443_v41  ;;  %v1213_v49 = vadd.f32 %v1212_v47, %v1099_v45  ;;  %v1101_v50 = vpop.f32.mrf.mxu0  ;;  %v457_v47 = vld [vmem:[#allocation2 + $0x70] sm:$0xff] }
 0x155   : > { %v1214_v52 = vpop.f32.mrf.mxu1 }
 0x156   : > { %1309 = vst [vmem:[#allocation2 + $0x80] sm:$0xff] %v1277_v48  ;;  %v1278_v53 = vadd.f32 %v1213_v49, %v444_v46  ;;  %v1215_v54 = vadd.f32 %v1214_v52, %v1101_v50  ;;  %v1103_v55 = vpop.f32.mrf.mxu0  ;;  %v458_v52 = vld [vmem:[#allocation2 + $0xc0] sm:$0xff] }
 0x157   : > { %v1216_v57 = vpop.f32.mrf.mxu1 }
 0x158   : > { %1310 = vst [vmem:[#allocation2 + $0x88] sm:$0xff] %v1278_v53  ;;  %v1279_v58 = vadd.f32 %v1215_v54, %v445_v51  ;;  %v1217_v59 = vadd.f32 %v1216_v57, %v1103_v55  ;;  %v1107_v60 = vpop.f32.mrf.mxu0  ;;  %v459_v57 = vld [vmem:[#allocation2 + $0xa8] sm:$0xff] }
 0x159   : > { %v1220_v62 = vpop.f32.mrf.mxu1 }
 0x15a   : > { %1311 = vst [vmem:[#allocation2 + $0xe8] sm:$0xff] %v1279_v58  ;;  %v1280_v63 = vadd.f32 %v1217_v59, %v446_v56  ;;  %v1221_v0 = vadd.f32 %v1220_v62, %v1107_v60  ;;  %v1109_v1 = vpop.f32.mrf.mxu0  ;;  %v460_v62 = vld [vmem:[#allocation2 + $0xd0] sm:$0xff] }
 0x15b   : > { %v1222_v3 = vpop.f32.mrf.mxu1 }
 0x15c   : > { %1312 = vst [vmem:[#allocation2 + $0xb8] sm:$0xff] %v1280_v63  ;;  %v1281_v4 = vadd.f32 %v1221_v0, %v447_v61  ;;  %v1223_v5 = vadd.f32 %v1222_v3, %v1109_v1  ;;  %v1111_v6 = vpop.f32.mrf.mxu0  ;;  %v461_v3 = vld [vmem:[#allocation2 + $0x10] sm:$0xff] }
 0x15d   : > { %v1224_v8 = vpop.f32.mrf.mxu1 }
 0x15e   : > { %1313 = vst [vmem:[#allocation2 + $0x60] sm:$0xff] %v1281_v4  ;;  %v1282_v9 = vadd.f32 %v1223_v5, %v448_v2  ;;  %v1225_v10 = vadd.f32 %v1224_v8, %v1111_v6  ;;  %v1113_v11 = vpop.f32.mrf.mxu0  ;;  %v462_v8 = vld [vmem:[#allocation2 + $0x28] sm:$0xff] }
 0x15f   : > { %v1226_v13 = vpop.f32.mrf.mxu1 }
 0x160   : > { %1314 = vst [vmem:[#allocation2 + $0xf0] sm:$0xff] %v1282_v9  ;;  %v1283_v14 = vadd.f32 %v1225_v10, %v449_v7  ;;  %v1227_v15 = vadd.f32 %v1226_v13, %v1113_v11  ;;  %v1117_v16 = vpop.f32.mrf.mxu0  ;;  %v463_v13 = vld [vmem:[#allocation2 + $0xa0] sm:$0xff] }
 0x161   : > { %v1230_v18 = vpop.f32.mrf.mxu1 }
 0x162   : > { %1315 = vst [vmem:[#allocation2 + $0x8] sm:$0xff] %v1283_v14  ;;  %v1284_v19 = vadd.f32 %v1227_v15, %v450_v12  ;;  %v1231_v20 = vadd.f32 %v1230_v18, %v1117_v16  ;;  %v1119_v21 = vpop.f32.mrf.mxu0  ;;  %v464_v18 = vld [vmem:[#allocation2 + $0xf8] sm:$0xff] }
 0x163   : > { %v1232_v23 = vpop.f32.mrf.mxu1 }
 0x164   : > { %1316 = vst [vmem:[#allocation2 + $0x78] sm:$0xff] %v1284_v19  ;;  %v1285_v24 = vadd.f32 %v1231_v20, %v451_v17  ;;  %v1233_v25 = vadd.f32 %v1232_v23, %v1119_v21  ;;  %v1121_v26 = vpop.f32.mrf.mxu0  ;;  %v465_v23 = vld [vmem:[#allocation2 + $0x20] sm:$0xff] }
 0x165   : > { %v1234_v28 = vpop.f32.mrf.mxu1 }
 0x166   : > { %1317 = vst [vmem:[#allocation2 + $0x38] sm:$0xff] %v1285_v24  ;;  %v1286_v29 = vadd.f32 %v1233_v25, %v452_v22  ;;  %v1235_v30 = vadd.f32 %v1234_v28, %v1121_v26  ;;  %v1123_v31 = vpop.f32.mrf.mxu0  ;;  %v466_v28 = vld [vmem:[#allocation2 + $0x98] sm:$0xff] }
 0x167   : > { %v1236_v33 = vpop.f32.mrf.mxu1 }
 0x168   : > { %1318 = vst [vmem:[#allocation2 + $0x58] sm:$0xff] %v1286_v29  ;;  %v1287_v34 = vadd.f32 %v1235_v30, %v453_v27  ;;  %v1237_v35 = vadd.f32 %v1236_v33, %v1123_v31  ;;  %v1127_v36 = vpop.f32.mrf.mxu0 }
 0x169   : > { %v1240_v38 = vpop.f32.mrf.mxu1 }
 0x16a   : > { %1319 = vst [vmem:[#allocation2 + $0x40] sm:$0xff] %v1287_v34  ;;  %v1288_v39 = vadd.f32 %v1237_v35, %v454_v32  ;;  %v1241_v40 = vadd.f32 %v1240_v38, %v1127_v36  ;;  %v1129_v41 = vpop.f32.mrf.mxu0 }
 0x16b   : > { %v1242_v43 = vpop.f32.mrf.mxu1 }
 0x16c   : > { %1320 = vst [vmem:[#allocation2 + $0xc8] sm:$0xff] %v1288_v39  ;;  %v1289_v44 = vadd.f32 %v1241_v40, %v455_v37  ;;  %v1243_v45 = vadd.f32 %v1242_v43, %v1129_v41  ;;  %v1131_v46 = vpop.f32.mrf.mxu0 }
 0x16d   : > { %v1244_v48 = vpop.f32.mrf.mxu1 }
 0x16e   : > { %1321 = vst [vmem:[#allocation2 + $0xe0] sm:$0xff] %v1289_v44  ;;  %v1290_v49 = vadd.f32 %v1243_v45, %v456_v42  ;;  %v1245_v50 = vadd.f32 %v1244_v48, %v1131_v46  ;;  %v1133_v51 = vpop.f32.mrf.mxu0 }
 0x16f   : > { %v1246_v53 = vpop.f32.mrf.mxu1 }
 0x170   : > { %1322 = vst [vmem:[#allocation2 + $0x90] sm:$0xff] %v1290_v49  ;;  %v1291_v54 = vadd.f32 %v1245_v50, %v457_v47  ;;  %v1247_v55 = vadd.f32 %v1246_v53, %v1133_v51  ;;  %v1137_v56 = vpop.f32.mrf.mxu0 }
 0x171   : > { %v1250_v58 = vpop.f32.mrf.mxu1 }
 0x172   : > { %1323 = vst [vmem:[#allocation2 + $0x70] sm:$0xff] %v1291_v54  ;;  %v1292_v59 = vadd.f32 %v1247_v55, %v458_v52  ;;  %v1251_v60 = vadd.f32 %v1250_v58, %v1137_v56  ;;  %v1139_v61 = vpop.f32.mrf.mxu0 }
 0x173   : > { %v1252_v63 = vpop.f32.mrf.mxu1 }
 0x174   : > { %1324 = vst [vmem:[#allocation2 + $0xc0] sm:$0xff] %v1292_v59  ;;  %v1293_v0 = vadd.f32 %v1251_v60, %v459_v57  ;;  %v1253_v1 = vadd.f32 %v1252_v63, %v1139_v61  ;;  %v1141_v2 = vpop.f32.mrf.mxu0 }
 0x175   : > { %v1254_v4 = vpop.f32.mrf.mxu1 }
 0x176   : > { %1325 = vst [vmem:[#allocation2 + $0xa8] sm:$0xff] %v1293_v0  ;;  %v1294_v5 = vadd.f32 %v1253_v1, %v460_v62  ;;  %v1255_v6 = vadd.f32 %v1254_v4, %v1141_v2  ;;  %v1143_v7 = vpop.f32.mrf.mxu0 }
 0x177   : > { %v1256_v9 = vpop.f32.mrf.mxu1 }
 0x178   : > { %1326 = vst [vmem:[#allocation2 + $0xd0] sm:$0xff] %v1294_v5  ;;  %v1295_v10 = vadd.f32 %v1255_v6, %v461_v3  ;;  %v1257_v11 = vadd.f32 %v1256_v9, %v1143_v7  ;;  %v1147_v12 = vpop.f32.mrf.mxu0 }
 0x179   : > { %v1260_v14 = vpop.f32.mrf.mxu1 }
 0x17a   : > { %1327 = vst [vmem:[#allocation2 + $0x10] sm:$0xff] %v1295_v10  ;;  %v1296_v15 = vadd.f32 %v1257_v11, %v462_v8  ;;  %v1261_v16 = vadd.f32 %v1260_v14, %v1147_v12  ;;  %v1149_v17 = vpop.f32.mrf.mxu0 }
 0x17b   : > { %v1262_v19 = vpop.f32.mrf.mxu1 }
 0x17c   : > { %1328 = vst [vmem:[#allocation2 + $0x28] sm:$0xff] %v1296_v15  ;;  %v1297_v20 = vadd.f32 %v1261_v16, %v463_v13  ;;  %v1263_v21 = vadd.f32 %v1262_v19, %v1149_v17  ;;  %v1151_v22 = vpop.f32.mrf.mxu0 }
 0x17d   : > { %v1264_v24 = vpop.f32.mrf.mxu1 }
 0x17e   : > { %1329 = vst [vmem:[#allocation2 + $0xa0] sm:$0xff] %v1297_v20  ;;  %v1298_v25 = vadd.f32 %v1263_v21, %v464_v18  ;;  %v1265_v26 = vadd.f32 %v1264_v24, %v1151_v22  ;;  %v1153_v27 = vpop.f32.mrf.mxu0 }
 0x17f   : > { %v1266_v29 = vpop.f32.mrf.mxu1 }
 0x180   : > { %1330 = vst [vmem:[#allocation2 + $0xf8] sm:$0xff] %v1298_v25  ;;  %v1299_v30 = vadd.f32 %v1265_v26, %v465_v23  ;;  %v1267_v31 = vadd.f32 %v1266_v29, %v1153_v27  ;;  %1336 = sbr.rel (%p1798_p11) target bundleno = 436 (0x1b4), region = 67 }
 0x182   : > { %1331 = vst [vmem:[#allocation2 + $0x20] sm:$0xff] %v1299_v30  ;;  %v1300_v32 = vadd.f32 %v1267_v31, %v466_v28 }
 0x184   : > { %1332 = vst [vmem:[#allocation2 + $0x98] sm:$0xff] %v1300_v32 }
 0x185   : > { %v1371_v33 = vlaneseq  ;;  %v1369_v35 = vld [vmem:[%s2467_s2] sm:$0x3]  ;;  %v1337_v37 = vld [vmem:[#allocation2 + $0xb0] sm:$0xff]  ;;  %v1339_v41 = vld [vmem:[#allocation2 + $0xd8] sm:$0xff] }
 0x186   : > { %v1413_v36 = vld [vmem:[%s2468_s3] sm:$0x3]  ;;  %v1340_v42 = vld [vmem:[#allocation2 + $0x18] sm:$0xff]  ;;  %v1341_v43 = vld [vmem:[#allocation2 + $0x50] sm:$0xff] }
 0x187   : > { %v1372_v34 = vshrl.u32 %v1371_v33, 7  ;;  %v1338_v39 = vld [vmem:[#allocation2] sm:$0xff]  ;;  %v1342_v48 = vld [vmem:[#allocation2 + $0x68] sm:$0xff]  ;;  %v1343_v49 = vld [vmem:[#allocation2 + $0x30] sm:$0xff] }
 0x188   : > { %v1344_v50 = vld [vmem:[#allocation2 + $0x48] sm:$0xff]  ;;  %v1345_v3 = vld [vmem:[#allocation2 + $0x80] sm:$0xff]  ;;  %v1348_v10 = vld [vmem:[#allocation2 + $0xb8] sm:$0xff] }
 0x189   : > { %v1373_v38 = vsub.s32 0, %v1372_v34  ;;  %v1377_v40 = vsub.s32 1, %v1372_v34  ;;  %v1346_v4 = vld [vmem:[#allocation2 + $0x88] sm:$0xff]  ;;  %v1349_v15 = vld [vmem:[#allocation2 + $0x60] sm:$0xff]  ;;  %v1350_v16 = vld [vmem:[#allocation2 + $0xf0] sm:$0xff] }
 0x18a   : > { %v1347_v9 = vld [vmem:[#allocation2 + $0xe8] sm:$0xff]  ;;  %v1352_v22 = vld [vmem:[#allocation2 + $0x78] sm:$0xff] }
 0x18b   : > { %v2282_v44 = vrot.slane %v1369_v35, %v1373_v38  ;;  %v2284_v45 = vrot.slane %v1413_v36, %v1373_v38  ;;  %v2286_v46 = vrot.slane %v1369_v35, %v1377_v40  ;;  %v2288_v47 = vrot.slane %v1413_v36, %v1377_v40  ;;  %v1351_v21 = vld [vmem:[#allocation2 + $0x8] sm:$0xff] }
 0x18d   : > { %v1381_v51 = vmul.f32 %v2282_v44, %v1337_v37  ;;  %v1382_v52 = vmul.f32 %v2286_v46, %v1338_v39  ;;  %v1383_v53 = vmul.f32 %v2282_v44, %v1339_v41  ;;  %v1384_v54 = vmul.f32 %v2286_v46, %v1340_v42 }
 0x18e   : > { %v1385_v55 = vmul.f32 %v2282_v44, %v1341_v43  ;;  %v1386_v56 = vmul.f32 %v2286_v46, %v1342_v48  ;;  %v1387_v57 = vmul.f32 %v2282_v44, %v1343_v49  ;;  %v1388_v58 = vmul.f32 %v2286_v46, %v1344_v50  ;;  %v1353_v43 = vld [vmem:[#allocation2 + $0x38] sm:$0xff] }
 0x18f   : > { %v1425_v59 = vadd.f32 %v2284_v45, %v1381_v51  ;;  %v1426_v60 = vadd.f32 %v2288_v47, %v1382_v52  ;;  %v1427_v61 = vadd.f32 %v2284_v45, %v1383_v53  ;;  %v1428_v62 = vadd.f32 %v2288_v47, %v1384_v54  ;;  %v1354_v48 = vld [vmem:[#allocation2 + $0x58] sm:$0xff]  ;;  %v1355_v53 = vld [vmem:[#allocation2 + $0x40] sm:$0xff]  ;;  %v1356_v54 = vld [vmem:[#allocation2 + $0xc8] sm:$0xff] }
 0x190   : > { %v1429_v63 = vadd.f32 %v2284_v45, %v1385_v55  ;;  %v1430_v0 = vadd.f32 %v2288_v47, %v1386_v56  ;;  %v1431_v1 = vadd.f32 %v2284_v45, %v1387_v57  ;;  %v1432_v2 = vadd.f32 %v2288_v47, %v1388_v58 }
 0x191   : > { %v1457_v5 = vmax.f32 %v1425_v59, 0.0  ;;  %v1458_v6 = vmax.f32 %v1426_v60, 0.0  ;;  %v1459_v7 = vmax.f32 %v1427_v61, 0.0  ;;  %v1460_v8 = vmax.f32 %v1428_v62, 0.0  ;;  %v1357_v59 = vld [vmem:[#allocation2 + $0xe0] sm:$0xff]  ;;  %v1358_v60 = vld [vmem:[#allocation2 + $0x90] sm:$0xff] }
 0x192   : > { %v1461_v11 = vmax.f32 %v1429_v63, 0.0  ;;  %v1462_v12 = vmax.f32 %v1430_v0, 0.0  ;;  %v1463_v13 = vmax.f32 %v1431_v1, 0.0  ;;  %v1464_v14 = vmax.f32 %v1432_v2, 0.0  ;;  %v1359_v1 = vld [vmem:[#allocation2 + $0x70] sm:$0xff]  ;;  %v1360_v2 = vld [vmem:[#allocation2 + $0xc0] sm:$0xff] }
 0x193   : > { %v1489_v17 = vmin.f32 %v1457_v5, 6.0  ;;  %v1490_v18 = vmin.f32 %v1458_v6, 6.0  ;;  %v1491_v19 = vmin.f32 %v1459_v7, 6.0  ;;  %v1492_v20 = vmin.f32 %v1460_v8, 6.0 }
 0x194   : > { %v1493_v23 = vmin.f32 %v1461_v11, 6.0  ;;  %v1494_v24 = vmin.f32 %v1462_v12, 6.0  ;;  %v1495_v25 = vmin.f32 %v1463_v13, 6.0  ;;  %v1496_v26 = vmin.f32 %v1464_v14, 6.0 }
 0x195   : > { %1521 = vst [vmem:[%s2469_s4] sm:$0xff] %v1489_v17  ;;  %1522 = vst [vmem:[%s2469_s4 + $0x8] sm:$0xff] %v1490_v18  ;;  %v1389_v27 = vmul.f32 %v2282_v44, %v1345_v3  ;;  %v1390_v28 = vmul.f32 %v2286_v46, %v1346_v4  ;;  %v1391_v29 = vmul.f32 %v2282_v44, %v1347_v9 }
 0x196   : > { %1523 = vst [vmem:[%s2469_s4 + $0x10] sm:$0xff] %v1491_v19  ;;  %1524 = vst [vmem:[%s2469_s4 + $0x18] sm:$0xff] %v1492_v20  ;;  %v1392_v30 = vmul.f32 %v2286_v46, %v1348_v10  ;;  %v1393_v31 = vmul.f32 %v2282_v44, %v1349_v15  ;;  %v1394_v32 = vmul.f32 %v2286_v46, %v1350_v16 }
 0x197   : > { %1525 = vst [vmem:[%s2469_s4 + $0x20] sm:$0xff] %v1493_v23  ;;  %1526 = vst [vmem:[%s2469_s4 + $0x28] sm:$0xff] %v1494_v24  ;;  %v1395_v33 = vmul.f32 %v2282_v44, %v1351_v21  ;;  %v1396_v34 = vmul.f32 %v2286_v46, %v1352_v22  ;;  %v1433_v35 = vadd.f32 %v2284_v45, %v1389_v27  ;;  %v1361_v23 = vld [vmem:[#allocation2 + $0xa8] sm:$0xff]  ;;  %v1362_v24 = vld [vmem:[#allocation2 + $0xd0] sm:$0xff] }
 0x198   : > { %1527 = vst [vmem:[%s2469_s4 + $0x30] sm:$0xff] %v1495_v25  ;;  %1528 = vst [vmem:[%s2469_s4 + $0x38] sm:$0xff] %v1496_v26  ;;  %v1434_v36 = vadd.f32 %v2288_v47, %v1390_v28  ;;  %v1435_v37 = vadd.f32 %v2284_v45, %v1391_v29  ;;  %v1436_v38 = vadd.f32 %v2288_v47, %v1392_v30  ;;  %v1363_v29 = vld [vmem:[#allocation2 + $0x10] sm:$0xff]  ;;  %v1364_v30 = vld [vmem:[#allocation2 + $0x28] sm:$0xff] }
 0x199   : > { %v1437_v39 = vadd.f32 %v2284_v45, %v1393_v31  ;;  %v1438_v40 = vadd.f32 %v2288_v47, %v1394_v32  ;;  %v1439_v41 = vadd.f32 %v2284_v45, %v1395_v33  ;;  %v1440_v42 = vadd.f32 %v2288_v47, %v1396_v34 }
 0x19a   : > { %v1465_v49 = vmax.f32 %v1433_v35, 0.0  ;;  %v1466_v50 = vmax.f32 %v1434_v36, 0.0  ;;  %v1467_v51 = vmax.f32 %v1435_v37, 0.0  ;;  %v1468_v52 = vmax.f32 %v1436_v38, 0.0  ;;  %v1365_v35 = vld [vmem:[#allocation2 + $0xa0] sm:$0xff]  ;;  %v1366_v36 = vld [vmem:[#allocation2 + $0xf8] sm:$0xff] }
 0x19b   : > { %v1469_v55 = vmax.f32 %v1437_v39, 0.0  ;;  %v1470_v56 = vmax.f32 %v1438_v40, 0.0  ;;  %v1471_v57 = vmax.f32 %v1439_v41, 0.0  ;;  %v1472_v58 = vmax.f32 %v1440_v42, 0.0  ;;  %v1367_v41 = vld [vmem:[#allocation2 + $0x20] sm:$0xff]  ;;  %v1368_v42 = vld [vmem:[#allocation2 + $0x98] sm:$0xff] }
 0x19c   : > { %v1497_v61 = vmin.f32 %v1465_v49, 6.0  ;;  %v1498_v62 = vmin.f32 %v1466_v50, 6.0  ;;  %v1499_v63 = vmin.f32 %v1467_v51, 6.0  ;;  %v1500_v0 = vmin.f32 %v1468_v52, 6.0 }
 0x19d   : > { %v1501_v3 = vmin.f32 %v1469_v55, 6.0  ;;  %v1502_v4 = vmin.f32 %v1470_v56, 6.0  ;;  %v1503_v5 = vmin.f32 %v1471_v57, 6.0  ;;  %v1504_v6 = vmin.f32 %v1472_v58, 6.0 }
 0x19e   : > { %1529 = vst [vmem:[%s2469_s4 + $0x40] sm:$0xff] %v1497_v61  ;;  %1530 = vst [vmem:[%s2469_s4 + $0x48] sm:$0xff] %v1498_v62  ;;  %v1397_v7 = vmul.f32 %v2282_v44, %v1353_v43  ;;  %v1398_v8 = vmul.f32 %v2286_v46, %v1354_v48  ;;  %v1399_v9 = vmul.f32 %v2282_v44, %v1355_v53 }
 0x19f   : > { %1531 = vst [vmem:[%s2469_s4 + $0x50] sm:$0xff] %v1499_v63  ;;  %1532 = vst [vmem:[%s2469_s4 + $0x58] sm:$0xff] %v1500_v0  ;;  %v1400_v10 = vmul.f32 %v2286_v46, %v1356_v54  ;;  %v1401_v11 = vmul.f32 %v2282_v44, %v1357_v59  ;;  %v1402_v12 = vmul.f32 %v2286_v46, %v1358_v60 }
 0x1a0   : > { %1533 = vst [vmem:[%s2469_s4 + $0x60] sm:$0xff] %v1501_v3  ;;  %1534 = vst [vmem:[%s2469_s4 + $0x68] sm:$0xff] %v1502_v4  ;;  %v1403_v13 = vmul.f32 %v2282_v44, %v1359_v1  ;;  %v1404_v14 = vmul.f32 %v2286_v46, %v1360_v2  ;;  %v1441_v15 = vadd.f32 %v2284_v45, %v1397_v7 }
 0x1a1   : > { %1535 = vst [vmem:[%s2469_s4 + $0x70] sm:$0xff] %v1503_v5  ;;  %1536 = vst [vmem:[%s2469_s4 + $0x78] sm:$0xff] %v1504_v6  ;;  %v1442_v16 = vadd.f32 %v2288_v47, %v1398_v8  ;;  %v1443_v17 = vadd.f32 %v2284_v45, %v1399_v9  ;;  %v1444_v18 = vadd.f32 %v2288_v47, %v1400_v10 }
 0x1a2   : > { %v1445_v19 = vadd.f32 %v2284_v45, %v1401_v11  ;;  %v1446_v20 = vadd.f32 %v2288_v47, %v1402_v12  ;;  %v1447_v21 = vadd.f32 %v2284_v45, %v1403_v13  ;;  %v1448_v22 = vadd.f32 %v2288_v47, %v1404_v14 }
 0x1a3   : > { %v1473_v25 = vmax.f32 %v1441_v15, 0.0  ;;  %v1474_v26 = vmax.f32 %v1442_v16, 0.0  ;;  %v1475_v27 = vmax.f32 %v1443_v17, 0.0  ;;  %v1476_v28 = vmax.f32 %v1444_v18, 0.0 }
 0x1a4   : > { %v1477_v31 = vmax.f32 %v1445_v19, 0.0  ;;  %v1478_v32 = vmax.f32 %v1446_v20, 0.0  ;;  %v1479_v33 = vmax.f32 %v1447_v21, 0.0  ;;  %v1480_v34 = vmax.f32 %v1448_v22, 0.0 }
 0x1a5   : > { %v1505_v37 = vmin.f32 %v1473_v25, 6.0  ;;  %v1506_v38 = vmin.f32 %v1474_v26, 6.0  ;;  %v1507_v39 = vmin.f32 %v1475_v27, 6.0  ;;  %v1508_v40 = vmin.f32 %v1476_v28, 6.0 }
 0x1a6   : > { %v1509_v43 = vmin.f32 %v1477_v31, 6.0  ;;  %v1510_v48 = vmin.f32 %v1478_v32, 6.0  ;;  %v1511_v49 = vmin.f32 %v1479_v33, 6.0  ;;  %v1512_v50 = vmin.f32 %v1480_v34, 6.0 }
 0x1a7   : > { %1537 = vst [vmem:[%s2469_s4 + $0x80] sm:$0xff] %v1505_v37  ;;  %1538 = vst [vmem:[%s2469_s4 + $0x88] sm:$0xff] %v1506_v38  ;;  %v1405_v51 = vmul.f32 %v2282_v44, %v1361_v23  ;;  %v1406_v52 = vmul.f32 %v2286_v46, %v1362_v24  ;;  %v1407_v53 = vmul.f32 %v2282_v44, %v1363_v29 }
 0x1a8   : > { %1539 = vst [vmem:[%s2469_s4 + $0x90] sm:$0xff] %v1507_v39  ;;  %1540 = vst [vmem:[%s2469_s4 + $0x98] sm:$0xff] %v1508_v40  ;;  %v1408_v54 = vmul.f32 %v2286_v46, %v1364_v30  ;;  %v1409_v55 = vmul.f32 %v2282_v44, %v1365_v35  ;;  %v1410_v56 = vmul.f32 %v2286_v46, %v1366_v36 }
 0x1a9   : > { %1541 = vst [vmem:[%s2469_s4 + $0xa0] sm:$0xff] %v1509_v43  ;;  %1542 = vst [vmem:[%s2469_s4 + $0xa8] sm:$0xff] %v1510_v48  ;;  %v1411_v57 = vmul.f32 %v2282_v44, %v1367_v41  ;;  %v1412_v58 = vmul.f32 %v2286_v46, %v1368_v42  ;;  %v1449_v59 = vadd.f32 %v2284_v45, %v1405_v51 }
 0x1aa   : > { %1543 = vst [vmem:[%s2469_s4 + $0xb0] sm:$0xff] %v1511_v49  ;;  %1544 = vst [vmem:[%s2469_s4 + $0xb8] sm:$0xff] %v1512_v50  ;;  %v1450_v60 = vadd.f32 %v2288_v47, %v1406_v52  ;;  %v1451_v61 = vadd.f32 %v2284_v45, %v1407_v53  ;;  %v1452_v62 = vadd.f32 %v2288_v47, %v1408_v54 }
 0x1ab   : > { %v1453_v63 = vadd.f32 %v2284_v45, %v1409_v55  ;;  %v1454_v0 = vadd.f32 %v2288_v47, %v1410_v56  ;;  %v1455_v1 = vadd.f32 %v2284_v45, %v1411_v57  ;;  %v1456_v2 = vadd.f32 %v2288_v47, %v1412_v58 }
 0x1ac   : > { %v1481_v3 = vmax.f32 %v1449_v59, 0.0  ;;  %v1482_v44 = vmax.f32 %v1450_v60, 0.0  ;;  %v1483_v4 = vmax.f32 %v1451_v61, 0.0  ;;  %v1484_v46 = vmax.f32 %v1452_v62, 0.0 }
 0x1ad   : > { %v1485_v5 = vmax.f32 %v1453_v63, 0.0  ;;  %v1486_v6 = vmax.f32 %v1454_v0, 0.0  ;;  %v1487_v7 = vmax.f32 %v1455_v1, 0.0  ;;  %v1488_v8 = vmax.f32 %v1456_v2, 0.0 }
 0x1ae   : > { %v1513_v9 = vmin.f32 %v1481_v3, 6.0  ;;  %v1514_v10 = vmin.f32 %v1482_v44, 6.0  ;;  %v1515_v11 = vmin.f32 %v1483_v4, 6.0  ;;  %v1516_v12 = vmin.f32 %v1484_v46, 6.0 }
 0x1af   : > { %v1517_v13 = vmin.f32 %v1485_v5, 6.0  ;;  %v1518_v14 = vmin.f32 %v1486_v6, 6.0  ;;  %v1519_v15 = vmin.f32 %v1487_v7, 6.0  ;;  %v1520_v16 = vmin.f32 %v1488_v8, 6.0 }
 0x1b0   : > { %1545 = vst [vmem:[%s2469_s4 + $0xc0] sm:$0xff] %v1513_v9  ;;  %1546 = vst [vmem:[%s2469_s4 + $0xc8] sm:$0xff] %v1514_v10 }
 0x1b1   : > { %1547 = vst [vmem:[%s2469_s4 + $0xd0] sm:$0xff] %v1515_v11  ;;  %1548 = vst [vmem:[%s2469_s4 + $0xd8] sm:$0xff] %v1516_v12 }
 0x1b2   : > { %1549 = vst [vmem:[%s2469_s4 + $0xe0] sm:$0xff] %v1517_v13  ;;  %1550 = vst [vmem:[%s2469_s4 + $0xe8] sm:$0xff] %v1518_v14 }
 0x1b3   : > { %1551 = vst [vmem:[%s2469_s4 + $0xf0] sm:$0xff] %v1519_v15  ;;  %1552 = vst [vmem:[%s2469_s4 + $0xf8] sm:$0xff] %v1520_v16 }
 0x1b4 PF: > { %s14_s19 = sadd.s32 1, %s2028_s19   ;;  %s2470_s15 = smov %s2016_s16 }
 0x1b5   : > { %p11_p12 = scmp.ge.s32.totalorder %s14_s19, 5   ;;  %s2471_s16 = smov %s2091_s23 }
 0x1b6   : > { %s2472_s17 = smov %s2024_s18  ;;  %s2473_s18 = smov %s2475_s20 }
 0x1b7   :  { %13 = sbr.rel (!%p11_p12) target bundleno = 3 (0x3), region = 111 }

// kernel: segmentation_custom_forward.24
= control target key start
LH: loop header
LB: loop body
LE: loop exit
PB: predicated region body
PF: predicated region fallthrough
CT: control target
= control target key end

     0   :  { %s2024_s15 = smov 0   ;;  %s2026_s16 = smov 0   ;;  %s2433_s0 = inlined_call_operand.vmem [shape: bf16[128,3072], index: 0, kind: input, shape index: {}]   ;;  %s2434_s1 = inlined_call_operand.vmem [shape: bf16[3072,256], index: 1, kind: input, shape index: {}]   ;;  %s2435_s2 = inlined_call_operand.vmem [shape: f32[1,256], index: 2, kind: input, shape index: {}]   ;;  %s2436_s3 = inlined_call_operand.vmem [shape: f32[1,256], index: 3, kind: input, shape index: {}]   ;;  %s2437_s4 = inlined_call_operand.vmem [shape: f32[128,256], index: 4, kind: output, shape index: {}]  }
   0x1   :  { %s2028_s17 = smov 0   ;;  %s2030_s18 = smov 0  }
   0x2   :  { %s2032_s19 = smov 0  }
   0x3 LB: > { %s26_s20 = sadd.s32 1, %s1992_s18  ;;  %p49_p1 = scmp.ne.s32.totalorder %s1984_s16, %s1980_s15  ;;  %s1996_s19 = sphi %s2032_s19, %s14_s19   ;;  %s1992_s18 = sphi %s2030_s18, %s2441_s18   ;;  %s1988_s17 = sphi %s2028_s17, %s2440_s17   ;;  %s1984_s16 = sphi %s2026_s16, %s2439_s16   ;;  %s1980_s15 = sphi %s2024_s15, %s2438_s15  }
   0x4   : > { %p27_p0 = scmp.ge.s32.totalorder %s26_s20, 6  ;;  %p50_p2 = scmp.eq.s32.totalorder %s1996_s19, 0 }
   0x5   : > { %s42_s22 = sadd.s32 1, %s1984_s16  ;;  %p1660_p5 = scmp.ge.s32.totalorder %s1996_s19, 6 }
   0x6   : > { %s2443_s20 = smov (%p27_p0, %s26_s20), 0  ;;  %p51_p3 = por %p50_p2, %p49_p1 }
   0x7   : > { %s38_s21 = ssub.s32 %s1992_s18, %s2443_s20  ;;  %199 = sbr.rel (%p1660_p5) target bundleno = 32 (0x20), region = 24 }
   0x8   : > { %p40_p4 = scmp.eq.s32.totalorder %s38_s21, 0 }
   0xa   : > { %s2059_s23 = scalar_select %p40_p4, %s1984_s16, %s42_s22  }
   0xc   : > { %202 = sbr.rel (!%p51_p3) target bundleno = 32 (0x20), region = 28  ;;  %s204_s24 = sand.u32 (%p51_p3), 1, %s1984_s16  }
   0xd   : > { %s1771_s25 = sshll.u32 (%p51_p3), %s1992_s18, 4  ;;  %s1661_s26 = sshll.u32 (%p51_p3), %s204_s24, 8 }
   0xe   : > { %s2067_s29 = scalar_lea.vmem (%p51_p3), %s2433_s0, %s1771_s25  ;;  %s2072_s30 = scalar_lea.vmem (%p51_p3), [#allocation3], %s1661_s26 }
   0xf   : > { %v225_v0 = vld [vmem:[%s2067_s29] sm:$0xff] (%p51_p3)  ;;  %v227_v1 = vld [vmem:[%s2067_s29 + $0x8] sm:$0xff] (%p51_p3) }
  0x10   : > { %v229_v2 = vld [vmem:[%s2067_s29 + $0x60] sm:$0xff] (%p51_p3)  ;;  %226 = vst [vmem:[%s2072_s30] sm:$0xff] (%p51_p3), %v225_v0  ;;  %228 = vst [vmem:[%s2072_s30 + $0x8] sm:$0xff] (%p51_p3), %v227_v1  ;;  %v231_v3 = vld [vmem:[%s2067_s29 + $0x68] sm:$0xff] (%p51_p3) }
  0x11   : > { %230 = vst [vmem:[%s2072_s30 + $0x10] sm:$0xff] %v229_v2  ;;  %v233_v4 = vld [vmem:[%s2067_s29 + $0xc0] sm:$0xff]  ;;  %v235_v5 = vld [vmem:[%s2067_s29 + $0xc8] sm:$0xff]  ;;  %232 = vst [vmem:[%s2072_s30 + $0x18] sm:$0xff] %v231_v3 }
  0x12   : > { %234 = vst [vmem:[%s2072_s30 + $0x20] sm:$0xff] %v233_v4  ;;  %236 = vst [vmem:[%s2072_s30 + $0x28] sm:$0xff] %v235_v5  ;;  %v237_v6 = vld [vmem:[%s2067_s29 + $0x120] sm:$0xff]  ;;  %v239_v7 = vld [vmem:[%s2067_s29 + $0x128] sm:$0xff] }
  0x13   : > { %v241_v8 = vld [vmem:[%s2067_s29 + $0x180] sm:$0xff]  ;;  %238 = vst [vmem:[%s2072_s30 + $0x30] sm:$0xff] %v237_v6  ;;  %240 = vst [vmem:[%s2072_s30 + $0x38] sm:$0xff] %v239_v7  ;;  %v243_v9 = vld [vmem:[%s2067_s29 + $0x188] sm:$0xff] }
  0x14   : > { %242 = vst [vmem:[%s2072_s30 + $0x40] sm:$0xff] %v241_v8  ;;  %v245_v10 = vld [vmem:[%s2067_s29 + $0x1e0] sm:$0xff]  ;;  %v247_v11 = vld [vmem:[%s2067_s29 + $0x1e8] sm:$0xff]  ;;  %244 = vst [vmem:[%s2072_s30 + $0x48] sm:$0xff] %v243_v9 }
  0x15   : > { %246 = vst [vmem:[%s2072_s30 + $0x50] sm:$0xff] %v245_v10  ;;  %248 = vst [vmem:[%s2072_s30 + $0x58] sm:$0xff] %v247_v11  ;;  %v249_v12 = vld [vmem:[%s2067_s29 + $0x240] sm:$0xff]  ;;  %v251_v13 = vld [vmem:[%s2067_s29 + $0x248] sm:$0xff] }
  0x16   : > { %v253_v14 = vld [vmem:[%s2067_s29 + $0x2a0] sm:$0xff]  ;;  %250 = vst [vmem:[%s2072_s30 + $0x60] sm:$0xff] %v249_v12  ;;  %252 = vst [vmem:[%s2072_s30 + $0x68] sm:$0xff] %v251_v13  ;;  %v255_v15 = vld [vmem:[%s2067_s29 + $0x2a8] sm:$0xff] }
  0x17   : > { %254 = vst [vmem:[%s2072_s30 + $0x70] sm:$0xff] %v253_v14  ;;  %v257_v16 = vld [vmem:[%s2067_s29 + $0x300] sm:$0xff]  ;;  %v259_v17 = vld [vmem:[%s2067_s29 + $0x308] sm:$0xff]  ;;  %256 = vst [vmem:[%s2072_s30 + $0x78] sm:$0xff] %v255_v15 }
  0x18   : > { %258 = vst [vmem:[%s2072_s30 + $0x80] sm:$0xff] %v257_v16  ;;  %260 = vst [vmem:[%s2072_s30 + $0x88] sm:$0xff] %v259_v17  ;;  %v261_v18 = vld [vmem:[%s2067_s29 + $0x360] sm:$0xff]  ;;  %v263_v19 = vld [vmem:[%s2067_s29 + $0x368] sm:$0xff] }
  0x19   : > { %v265_v20 = vld [vmem:[%s2067_s29 + $0x3c0] sm:$0xff]  ;;  %262 = vst [vmem:[%s2072_s30 + $0x90] sm:$0xff] %v261_v18  ;;  %264 = vst [vmem:[%s2072_s30 + $0x98] sm:$0xff] %v263_v19  ;;  %v267_v21 = vld [vmem:[%s2067_s29 + $0x3c8] sm:$0xff] }
  0x1a   : > { %266 = vst [vmem:[%s2072_s30 + $0xa0] sm:$0xff] %v265_v20  ;;  %v269_v22 = vld [vmem:[%s2067_s29 + $0x420] sm:$0xff]  ;;  %v271_v23 = vld [vmem:[%s2067_s29 + $0x428] sm:$0xff]  ;;  %268 = vst [vmem:[%s2072_s30 + $0xa8] sm:$0xff] %v267_v21 }
  0x1b   : > { %270 = vst [vmem:[%s2072_s30 + $0xb0] sm:$0xff] %v269_v22  ;;  %272 = vst [vmem:[%s2072_s30 + $0xb8] sm:$0xff] %v271_v23  ;;  %v273_v24 = vld [vmem:[%s2067_s29 + $0x480] sm:$0xff]  ;;  %v275_v25 = vld [vmem:[%s2067_s29 + $0x488] sm:$0xff] }
  0x1c   : > { %v277_v26 = vld [vmem:[%s2067_s29 + $0x4e0] sm:$0xff]  ;;  %274 = vst [vmem:[%s2072_s30 + $0xc0] sm:$0xff] %v273_v24  ;;  %276 = vst [vmem:[%s2072_s30 + $0xc8] sm:$0xff] %v275_v25  ;;  %v279_v27 = vld [vmem:[%s2067_s29 + $0x4e8] sm:$0xff] }
  0x1d   : > { %278 = vst [vmem:[%s2072_s30 + $0xd0] sm:$0xff] %v277_v26  ;;  %v281_v28 = vld [vmem:[%s2067_s29 + $0x540] sm:$0xff]  ;;  %v283_v29 = vld [vmem:[%s2067_s29 + $0x548] sm:$0xff]  ;;  %280 = vst [vmem:[%s2072_s30 + $0xd8] sm:$0xff] %v279_v27 }
  0x1e   : > { %282 = vst [vmem:[%s2072_s30 + $0xe0] sm:$0xff] %v281_v28  ;;  %284 = vst [vmem:[%s2072_s30 + $0xe8] sm:$0xff] %v283_v29  ;;  %v285_v30 = vld [vmem:[%s2067_s29 + $0x5a0] sm:$0xff]  ;;  %v287_v31 = vld [vmem:[%s2067_s29 + $0x5a8] sm:$0xff] }
  0x1f   : > { %286 = vst [vmem:[%s2072_s30 + $0xf0] sm:$0xff] %v285_v30  ;;  %288 = vst [vmem:[%s2072_s30 + $0xf8] sm:$0xff] %v287_v31 }
  0x20 PF: > { %p1664_p6 = scmp.ge.s32.totalorder %s1996_s19, 1  ;;  %p308_p7 = scmp.lt.s32.totalorder %s1996_s19, 7 }
  0x22   : > { %p309_p8 = pnand %p1664_p6, %p308_p7 }
  0x23   : > { %s315_s5 = sand.u32 (!%p309_p8), 1, %s1980_s15   ;;  %s1666_s6 = sshll.u32 (!%p309_p8), %s1988_s17, 6 }
  0x24   : > { %312 = sbr.rel (%p309_p8) target bundleno = 428 (0x1ac), region = 55  ;;  %s1665_s7 = sshll.u32 (!%p309_p8), %s315_s5, 8 }
  0x25   : > { %p367_p9 = scmp.lt.s32.totalorder (!%p309_p8), %s1666_s6, 383  ;;  %s2144_s12 = scalar_lea.vmem (!%p309_p8), [#allocation3], %s1665_s7 }
  0x26   : > { %p1669_p10 = scmp.ne.s32.totalorder (!%p309_p8), %s1988_s17, 0 }
  0x29   : > { %s2445_s6 = smov (!%p367_p9, %s1666_s6), 383  ;;  %402 = sbr.rel (%p1669_p10) target bundleno = 63 (0x3f), region = 63 }
  0x2a   : > { %s1772_s8 = sshll.u32 %s2445_s6, 3 }
  0x2b   : > { %s2142_s11 = scalar_lea.vmem %s2434_s1, %s1772_s8 }
  0x2e   : > { %v1998_v32 = vmov 0.0  }
  0x2f   : > { %403 = vst [vmem:[#allocation2 + $0xb0] sm:$0xff] %v1998_v32  ;;  %404 = vst [vmem:[#allocation2] sm:$0xff] %v1998_v32 }
  0x30   : > { %405 = vst [vmem:[#allocation2 + $0xd8] sm:$0xff] %v1998_v32  ;;  %406 = vst [vmem:[#allocation2 + $0x18] sm:$0xff] %v1998_v32 }
  0x31   : > { %407 = vst [vmem:[#allocation2 + $0x50] sm:$0xff] %v1998_v32  ;;  %408 = vst [vmem:[#allocation2 + $0x68] sm:$0xff] %v1998_v32 }
  0x32   : > { %409 = vst [vmem:[#allocation2 + $0x30] sm:$0xff] %v1998_v32  ;;  %410 = vst [vmem:[#allocation2 + $0x48] sm:$0xff] %v1998_v32 }
  0x33   : > { %411 = vst [vmem:[#allocation2 + $0x80] sm:$0xff] %v1998_v32  ;;  %412 = vst [vmem:[#allocation2 + $0x88] sm:$0xff] %v1998_v32 }
  0x34   : > { %413 = vst [vmem:[#allocation2 + $0xe8] sm:$0xff] %v1998_v32  ;;  %414 = vst [vmem:[#allocation2 + $0xb8] sm:$0xff] %v1998_v32 }
  0x35   : > { %415 = vst [vmem:[#allocation2 + $0x60] sm:$0xff] %v1998_v32  ;;  %416 = vst [vmem:[#allocation2 + $0xf0] sm:$0xff] %v1998_v32 }
  0x36   : > { %417 = vst [vmem:[#allocation2 + $0x8] sm:$0xff] %v1998_v32  ;;  %418 = vst [vmem:[#allocation2 + $0x78] sm:$0xff] %v1998_v32 }
  0x37   : > { %419 = vst [vmem:[#allocation2 + $0x38] sm:$0xff] %v1998_v32  ;;  %420 = vst [vmem:[#allocation2 + $0x58] sm:$0xff] %v1998_v32 }
  0x38   : > { %421 = vst [vmem:[#allocation2 + $0x40] sm:$0xff] %v1998_v32  ;;  %422 = vst [vmem:[#allocation2 + $0xc8] sm:$0xff] %v1998_v32 }
  0x39   : > { %423 = vst [vmem:[#allocation2 + $0xe0] sm:$0xff] %v1998_v32  ;;  %424 = vst [vmem:[#allocation2 + $0x90] sm:$0xff] %v1998_v32 }
  0x3a   : > { %425 = vst [vmem:[#allocation2 + $0x70] sm:$0xff] %v1998_v32  ;;  %426 = vst [vmem:[#allocation2 + $0xc0] sm:$0xff] %v1998_v32 }
  0x3b   : > { %427 = vst [vmem:[#allocation2 + $0xa8] sm:$0xff] %v1998_v32  ;;  %428 = vst [vmem:[#allocation2 + $0xd0] sm:$0xff] %v1998_v32 }
  0x3c   : > { %429 = vst [vmem:[#allocation2 + $0x10] sm:$0xff] %v1998_v32  ;;  %430 = vst [vmem:[#allocation2 + $0x28] sm:$0xff] %v1998_v32 }
  0x3d   : > { %431 = vst [vmem:[#allocation2 + $0xa0] sm:$0xff] %v1998_v32  ;;  %432 = vst [vmem:[#allocation2 + $0xf8] sm:$0xff] %v1998_v32 }
  0x3e   : > { %433 = vst [vmem:[#allocation2 + $0x20] sm:$0xff] %v1998_v32  ;;  %434 = vst [vmem:[#allocation2 + $0x98] sm:$0xff] %v1998_v32 }
  0x3f PF: > { %v1814_v33 = vld [vmem:[%s2142_s11 + $0x74] ss:$8 sps:$4 sm:$0xff]   ;;  %v1818_v35 = vld [vmem:[%s2142_s11 + $0x70] ss:$8 sps:$4 sm:$0xff]   ;;  %v1820_v37 = vld [vmem:[%s2142_s11 + $0x64] ss:$8 sps:$4 sm:$0xff]  }
  0x40   : > { %v1816_v34 = vld [vmem:[%s2142_s11 + $0x174] ss:$8 sps:$4 sm:$0xff]   ;;  %1043 = vmatprep.subr.bf16.mxu0 %v1814_v33  ;;  %v1819_v36 = vld [vmem:[%s2142_s11 + $0x170] ss:$8 sps:$4 sm:$0xff]   ;;  %v1822_v38 = vld [vmem:[%s2142_s11 + $0x164] ss:$8 sps:$4 sm:$0xff]  }
  0x41   : > { %1156 = vmatprep.subr.bf16.mxu1 %v1816_v34  ;;  %1044 = vmatpush1.bf16.msra.mxu0 %v1818_v35  ;;  %v1824_v39 = vld [vmem:[%s2142_s11 + $0x60] ss:$8 sps:$4 sm:$0xff]   ;;  %v1826_v41 = vld [vmem:[%s2142_s11 + $0x54] ss:$8 sps:$4 sm:$0xff]   ;;  %v1830_v43 = vld [vmem:[%s2142_s11 + $0x50] ss:$8 sps:$4 sm:$0xff]  }
  0x42   : > { %1157 = vmatpush1.bf16.msra.mxu1 %v1819_v36  ;;  %1045 = vmatprep.subr.bf16.mxu0 %v1820_v37  ;;  %v1825_v40 = vld [vmem:[%s2142_s11 + $0x160] ss:$8 sps:$4 sm:$0xff]   ;;  %v1828_v42 = vld [vmem:[%s2142_s11 + $0x154] ss:$8 sps:$4 sm:$0xff]   ;;  %v1831_v44 = vld [vmem:[%s2142_s11 + $0x150] ss:$8 sps:$4 sm:$0xff]  }
  0x43   : > { %1158 = vmatprep.subr.bf16.mxu1 %v1822_v38  ;;  %v1832_v45 = vld [vmem:[%s2142_s11 + $0x44] ss:$8 sps:$4 sm:$0xff]   ;;  %v1836_v47 = vld [vmem:[%s2142_s11 + $0x40] ss:$8 sps:$4 sm:$0xff]   ;;  %v1838_v49 = vld [vmem:[%s2142_s11 + $0x34] ss:$8 sps:$4 sm:$0xff]  }
  0x44   : > { %v1834_v46 = vld [vmem:[%s2142_s11 + $0x144] ss:$8 sps:$4 sm:$0xff]   ;;  %v1837_v48 = vld [vmem:[%s2142_s11 + $0x140] ss:$8 sps:$4 sm:$0xff]   ;;  %v1840_v50 = vld [vmem:[%s2142_s11 + $0x134] ss:$8 sps:$4 sm:$0xff]  }
  0x45   : > { %1046 = vmatpush1.bf16.msra.mxu0 %v1824_v39  ;;  %v1842_v51 = vld [vmem:[%s2142_s11 + $0x30] ss:$8 sps:$4 sm:$0xff]   ;;  %v1844_v53 = vld [vmem:[%s2142_s11 + $0x24] ss:$8 sps:$4 sm:$0xff]   ;;  %v1848_v55 = vld [vmem:[%s2142_s11 + $0x20] ss:$8 sps:$4 sm:$0xff]  }
  0x46   : > { %1159 = vmatpush1.bf16.msra.mxu1 %v1825_v40  ;;  %1047 = vmatprep.subr.bf16.mxu0 %v1826_v41  ;;  %v1843_v52 = vld [vmem:[%s2142_s11 + $0x130] ss:$8 sps:$4 sm:$0xff]   ;;  %v1846_v54 = vld [vmem:[%s2142_s11 + $0x124] ss:$8 sps:$4 sm:$0xff]   ;;  %v1849_v56 = vld [vmem:[%s2142_s11 + $0x120] ss:$8 sps:$4 sm:$0xff]  }
  0x47   : > { %1160 = vmatprep.subr.bf16.mxu1 %v1828_v42  ;;  %v1850_v57 = vld [vmem:[%s2142_s11 + $0x14] ss:$8 sps:$4 sm:$0xff]   ;;  %v1854_v59 = vld [vmem:[%s2142_s11 + $0x10] ss:$8 sps:$4 sm:$0xff]   ;;  %v1856_v61 = vld [vmem:[%s2142_s11 + $0x4] ss:$8 sps:$4 sm:$0xff]  }
  0x48   : > { %v1852_v58 = vld [vmem:[%s2142_s11 + $0x114] ss:$8 sps:$4 sm:$0xff]   ;;  %v1855_v60 = vld [vmem:[%s2142_s11 + $0x110] ss:$8 sps:$4 sm:$0xff]   ;;  %v1858_v62 = vld [vmem:[%s2142_s11 + $0x104] ss:$8 sps:$4 sm:$0xff]  }
  0x49   : > { %1048 = vmatpush1.bf16.msra.mxu0 %v1830_v43  ;;  %v1860_v63 = vld [vmem:[%s2142_s11] ss:$8 sps:$4 sm:$0xff]   ;;  %v1862_v1 = vld [vmem:[%s2142_s11 + $0xf4] ss:$8 sps:$4 sm:$0xff]   ;;  %v1866_v3 = vld [vmem:[%s2142_s11 + $0xf0] ss:$8 sps:$4 sm:$0xff]  }
  0x4a   : > { %1161 = vmatpush1.bf16.msra.mxu1 %v1831_v44  ;;  %1049 = vmatprep.subr.bf16.mxu0 %v1832_v45  ;;  %v1861_v0 = vld [vmem:[%s2142_s11 + $0x100] ss:$8 sps:$4 sm:$0xff]   ;;  %v1864_v2 = vld [vmem:[%s2142_s11 + $0x1f4] ss:$8 sps:$4 sm:$0xff]   ;;  %v1867_v4 = vld [vmem:[%s2142_s11 + $0x1f0] ss:$8 sps:$4 sm:$0xff]  }
  0x4b   : > { %1162 = vmatprep.subr.bf16.mxu1 %v1834_v46  ;;  %v1868_v5 = vld [vmem:[%s2142_s11 + $0xe4] ss:$8 sps:$4 sm:$0xff]   ;;  %v1872_v7 = vld [vmem:[%s2142_s11 + $0xe0] ss:$8 sps:$4 sm:$0xff]   ;;  %v1874_v9 = vld [vmem:[%s2142_s11 + $0xd4] ss:$8 sps:$4 sm:$0xff]  }
  0x4c   : > { %v1870_v6 = vld [vmem:[%s2142_s11 + $0x1e4] ss:$8 sps:$4 sm:$0xff]   ;;  %v1873_v8 = vld [vmem:[%s2142_s11 + $0x1e0] ss:$8 sps:$4 sm:$0xff]   ;;  %v1876_v10 = vld [vmem:[%s2142_s11 + $0x1d4] ss:$8 sps:$4 sm:$0xff]  }
  0x4d   : > { %1050 = vmatpush1.bf16.msra.mxu0 %v1836_v47  ;;  %v1878_v11 = vld [vmem:[%s2142_s11 + $0xd0] ss:$8 sps:$4 sm:$0xff]   ;;  %v1880_v13 = vld [vmem:[%s2142_s11 + $0xc4] ss:$8 sps:$4 sm:$0xff]   ;;  %v1884_v15 = vld [vmem:[%s2142_s11 + $0xc0] ss:$8 sps:$4 sm:$0xff]  }
  0x4e   : > { %1163 = vmatpush1.bf16.msra.mxu1 %v1837_v48  ;;  %1051 = vmatprep.subr.bf16.mxu0 %v1838_v49  ;;  %v1879_v12 = vld [vmem:[%s2142_s11 + $0x1d0] ss:$8 sps:$4 sm:$0xff]   ;;  %v1882_v14 = vld [vmem:[%s2142_s11 + $0x1c4] ss:$8 sps:$4 sm:$0xff]   ;;  %v1885_v16 = vld [vmem:[%s2142_s11 + $0x1c0] ss:$8 sps:$4 sm:$0xff]  }
  0x4f   : > { %1164 = vmatprep.subr.bf16.mxu1 %v1840_v50  ;;  %v1886_v17 = vld [vmem:[%s2142_s11 + $0xb4] ss:$8 sps:$4 sm:$0xff]   ;;  %v1890_v21 = vld [vmem:[%s2142_s11 + $0xb0] ss:$8 sps:$4 sm:$0xff]   ;;  %v1892_v23 = vld [vmem:[%s2142_s11 + $0xa4] ss:$8 sps:$4 sm:$0xff]  }
  0x50   : > { %v1912_v18 = vld [vmem:[%s2144_s12 + $0x4] ss:$16 sps:$4 sm:$0xff]   ;;  %v1915_v20 = vld [vmem:[%s2144_s12 + $0xc] ss:$16 sps:$4 sm:$0xff]   ;;  %v1891_v22 = vld [vmem:[%s2142_s11 + $0x1b0] ss:$8 sps:$4 sm:$0xff]  }
  0x51   : > { %1052 = vmatpush1.bf16.msra.mxu0 %v1842_v51  ;;  %v1888_v19 = vld [vmem:[%s2142_s11 + $0x1b4] ss:$8 sps:$4 sm:$0xff]   ;;  %1075 = vmatprep.mubr.bf16.mxu0 %v1912_v18  ;;  %v1894_v24 = vld [vmem:[%s2142_s11 + $0x1a4] ss:$8 sps:$4 sm:$0xff]   ;;  %v1896_v25 = vld [vmem:[%s2142_s11 + $0xa0] ss:$8 sps:$4 sm:$0xff]  }
  0x52   : > { %1165 = vmatpush1.bf16.msra.mxu1 %v1843_v52  ;;  %1053 = vmatprep.subr.bf16.mxu0 %v1844_v53  ;;  %v1897_v26 = vld [vmem:[%s2142_s11 + $0x1a0] ss:$8 sps:$4 sm:$0xff]   ;;  %v1898_v27 = vld [vmem:[%s2142_s11 + $0x94] ss:$8 sps:$4 sm:$0xff]   ;;  %v1902_v29 = vld [vmem:[%s2142_s11 + $0x90] ss:$8 sps:$4 sm:$0xff]  }
  0x53   : > { %1166 = vmatprep.subr.bf16.mxu1 %v1846_v54  ;;  %1188 = vmatprep.mubr.bf16.mxu1 %v1915_v20  ;;  %v1900_v28 = vld [vmem:[%s2142_s11 + $0x194] ss:$8 sps:$4 sm:$0xff]   ;;  %v1903_v30 = vld [vmem:[%s2142_s11 + $0x190] ss:$8 sps:$4 sm:$0xff]   ;;  %v1904_v31 = vld [vmem:[%s2142_s11 + $0x84] ss:$8 sps:$4 sm:$0xff]  }
  0x54   : > { %v1906_v32 = vld [vmem:[%s2142_s11 + $0x184] ss:$8 sps:$4 sm:$0xff]   ;;  %v1908_v33 = vld [vmem:[%s2142_s11 + $0x80] ss:$8 sps:$4 sm:$0xff]   ;;  %p1766_p11 = scmp.ne.s32.totalorder %s1988_s17, 5 }
  0x55   : > { %1054 = vmatpush1.bf16.msra.mxu0 %v1848_v55  ;;  %v1909_v34 = vld [vmem:[%s2142_s11 + $0x180] ss:$8 sps:$4 sm:$0xff]   ;;  %v1916_v37 = vld [vmem:[%s2144_s12 + $0x24] ss:$16 sps:$4 sm:$0xff]   ;;  %v1918_v38 = vld [vmem:[%s2144_s12 + $0x2c] ss:$16 sps:$4 sm:$0xff]  }
  0x56   : > { %1167 = vmatpush1.bf16.msra.mxu1 %v1849_v56  ;;  %1055 = vmatprep.subr.bf16.mxu0 %v1850_v57  ;;  %v1910_v35 = vld [vmem:[%s2144_s12] ss:$16 sps:$4 sm:$0xff]   ;;  %v1913_v36 = vld [vmem:[%s2144_s12 + $0x8] ss:$16 sps:$4 sm:$0xff]   ;;  %v1922_v41 = vld [vmem:[%s2144_s12 + $0x44] ss:$16 sps:$4 sm:$0xff]  }
  0x57   : > { %1168 = vmatprep.subr.bf16.mxu1 %v1852_v58  ;;  %v1920_v39 = vld [vmem:[%s2144_s12 + $0x20] ss:$16 sps:$4 sm:$0xff]   ;;  %v1921_v40 = vld [vmem:[%s2144_s12 + $0x28] ss:$16 sps:$4 sm:$0xff]   ;;  %v1924_v42 = vld [vmem:[%s2144_s12 + $0x4c] ss:$16 sps:$4 sm:$0xff]  }
  0x58   : > { %v1926_v43 = vld [vmem:[%s2144_s12 + $0x40] ss:$16 sps:$4 sm:$0xff]   ;;  %v1927_v44 = vld [vmem:[%s2144_s12 + $0x48] ss:$16 sps:$4 sm:$0xff]   ;;  %v1928_v45 = vld [vmem:[%s2144_s12 + $0x64] ss:$16 sps:$4 sm:$0xff]  }
  0x59   : > { %1056 = vmatpush1.bf16.msra.mxu0 %v1854_v59  ;;  %v1930_v46 = vld [vmem:[%s2144_s12 + $0x6c] ss:$16 sps:$4 sm:$0xff]   ;;  %v1932_v47 = vld [vmem:[%s2144_s12 + $0x60] ss:$16 sps:$4 sm:$0xff]   ;;  %v1933_v48 = vld [vmem:[%s2144_s12 + $0x68] ss:$16 sps:$4 sm:$0xff]  }
  0x5a   : > { %1169 = vmatpush1.bf16.msra.mxu1 %v1855_v60  ;;  %1057 = vmatprep.subr.bf16.mxu0 %v1856_v61  ;;  %v1934_v49 = vld [vmem:[%s2144_s12 + $0x84] ss:$16 sps:$4 sm:$0xff]   ;;  %v1936_v50 = vld [vmem:[%s2144_s12 + $0x8c] ss:$16 sps:$4 sm:$0xff]   ;;  %v1938_v51 = vld [vmem:[%s2144_s12 + $0x80] ss:$16 sps:$4 sm:$0xff]  }
  0x5b   : > { %1170 = vmatprep.subr.bf16.mxu1 %v1858_v62  ;;  %v1939_v52 = vld [vmem:[%s2144_s12 + $0x88] ss:$16 sps:$4 sm:$0xff]   ;;  %v1940_v53 = vld [vmem:[%s2144_s12 + $0xa4] ss:$16 sps:$4 sm:$0xff]   ;;  %v1942_v54 = vld [vmem:[%s2144_s12 + $0xac] ss:$16 sps:$4 sm:$0xff]  }
  0x5c   : > { %v1944_v55 = vld [vmem:[%s2144_s12 + $0xa0] ss:$16 sps:$4 sm:$0xff]   ;;  %v1945_v56 = vld [vmem:[%s2144_s12 + $0xa8] ss:$16 sps:$4 sm:$0xff]   ;;  %v1946_v57 = vld [vmem:[%s2144_s12 + $0xc4] ss:$16 sps:$4 sm:$0xff]  }
  0x5d   : > { %1058 = vmatpush1.bf16.msra.mxu0 %v1860_v63  ;;  %v1948_v58 = vld [vmem:[%s2144_s12 + $0xcc] ss:$16 sps:$4 sm:$0xff]   ;;  %v1950_v59 = vld [vmem:[%s2144_s12 + $0xc0] ss:$16 sps:$4 sm:$0xff]   ;;  %v1951_v60 = vld [vmem:[%s2144_s12 + $0xc8] ss:$16 sps:$4 sm:$0xff]  }
  0x5e   : > { %1171 = vmatpush1.bf16.msra.mxu1 %v1861_v0  ;;  %1059 = vmatprep.subr.bf16.mxu0 %v1862_v1  ;;  %v1952_v61 = vld [vmem:[%s2144_s12 + $0xe4] ss:$16 sps:$4 sm:$0xff]   ;;  %v1954_v62 = vld [vmem:[%s2144_s12 + $0xec] ss:$16 sps:$4 sm:$0xff]   ;;  %v1956_v63 = vld [vmem:[%s2144_s12 + $0xe0] ss:$16 sps:$4 sm:$0xff]  }
  0x5f   : > { %1172 = vmatprep.subr.bf16.mxu1 %v1864_v2  ;;  %v1957_v0 = vld [vmem:[%s2144_s12 + $0xe8] ss:$16 sps:$4 sm:$0xff]   ;;  %v435_v2 = vld [vmem:[#allocation2 + $0xb0] sm:$0xff] }
  0x61   : > { %1060 = vmatpush2.bf16.msra.mxu0 %v1866_v3 }
  0x62   : > { %1173 = vmatpush2.bf16.msra.mxu1 %v1867_v4  ;;  %1061 = vmatprep.subr.bf16.mxu0 %v1868_v5 }
  0x63   : > { %1174 = vmatprep.subr.bf16.mxu1 %v1870_v6  ;;  %v436_v6 = vld [vmem:[#allocation2] sm:$0xff] }
  0x65   : > { %1062 = vmatpush2.bf16.msra.mxu0 %v1872_v7 }
  0x66   : > { %1175 = vmatpush2.bf16.msra.mxu1 %v1873_v8  ;;  %1063 = vmatprep.subr.bf16.mxu0 %v1874_v9 }
  0x67   : > { %1176 = vmatprep.subr.bf16.mxu1 %v1876_v10 }
  0x69   : > { %1064 = vmatpush2.bf16.msra.mxu0 %v1878_v11  ;;  %v437_v11 = vld [vmem:[#allocation2 + $0xd8] sm:$0xff] }
  0x6a   : > { %1177 = vmatpush2.bf16.msra.mxu1 %v1879_v12  ;;  %1065 = vmatprep.subr.bf16.mxu0 %v1880_v13 }
  0x6b   : > { %1178 = vmatprep.subr.bf16.mxu1 %v1882_v14 }
  0x6d   : > { %1066 = vmatpush2.bf16.msra.mxu0 %v1884_v15 }
  0x6e   : > { %1179 = vmatpush2.bf16.msra.mxu1 %v1885_v16  ;;  %1067 = vmatprep.subr.bf16.mxu0 %v1886_v17  ;;  %v438_v16 = vld [vmem:[#allocation2 + $0x18] sm:$0xff] }
  0x6f   : > { %1180 = vmatprep.subr.bf16.mxu1 %v1888_v19 }
  0x71   : > { %1068 = vmatpush2.bf16.msra.mxu0 %v1890_v21  ;;  %v439_v21 = vld [vmem:[#allocation2 + $0x50] sm:$0xff] }
  0x72   : > { %1181 = vmatpush2.bf16.msra.mxu1 %v1891_v22  ;;  %1069 = vmatprep.subr.bf16.mxu0 %v1892_v23 }
  0x73   : > { %1182 = vmatprep.subr.bf16.mxu1 %v1894_v24 }
  0x75   : > { %1070 = vmatpush2.bf16.msra.mxu0 %v1896_v25 }
  0x76   : > { %1183 = vmatpush2.bf16.msra.mxu1 %v1897_v26  ;;  %1071 = vmatprep.subr.bf16.mxu0 %v1898_v27  ;;  %v440_v26 = vld [vmem:[#allocation2 + $0x68] sm:$0xff] }
  0x77   : > { %1184 = vmatprep.subr.bf16.mxu1 %v1900_v28 }
  0x79   : > { %1072 = vmatpush2.bf16.msra.mxu0 %v1902_v29 }
  0x7a   : > { %1185 = vmatpush2.bf16.msra.mxu1 %v1903_v30  ;;  %1073 = vmatprep.subr.bf16.mxu0 %v1904_v31  ;;  %v441_v31 = vld [vmem:[#allocation2 + $0x30] sm:$0xff] }
  0x7b   : > { %1186 = vmatprep.subr.bf16.mxu1 %v1906_v32 }
  0x7d   : > { %1074 = vmatpush2.bf16.msra.mxu0 %v1908_v33 }
  0x7e   : > { %1187 = vmatpush2.bf16.msra.mxu1 %v1909_v34 }
  0x80   : > { %1076 = vmatmul.mubr.bf16.vlgmr.msra.gmra.mxu0 %v1910_v35 }
  0x81   : > { %1189 = vmatmul.mubr.bf16.vlgmr.msra.gmra.mxu1 %v1913_v36  ;;  %1085 = vmatprep.mubr.bf16.mxu0 %v1916_v37  ;;  %v442_v36 = vld [vmem:[#allocation2 + $0x48] sm:$0xff] }
  0x82   : > { %1198 = vmatprep.mubr.bf16.mxu1 %v1918_v38 }
  0x88   : > { %1086 = vmatmul.mubr.bf16.gmra.mxu0 %v1920_v39 }
  0x89   : > { %1199 = vmatmul.mubr.bf16.gmra.mxu1 %v1921_v40  ;;  %1095 = vmatprep.mubr.bf16.mxu0 %v1922_v41  ;;  %v443_v41 = vld [vmem:[#allocation2 + $0x80] sm:$0xff] }
  0x8a   : > { %1208 = vmatprep.mubr.bf16.mxu1 %v1924_v42 }
  0x90   : > { %1096 = vmatmul.mubr.bf16.gmra.mxu0 %v1926_v43 }
  0x91   : > { %1209 = vmatmul.mubr.bf16.gmra.mxu1 %v1927_v44  ;;  %1105 = vmatprep.mubr.bf16.mxu0 %v1928_v45 }
  0x92   : > { %1218 = vmatprep.mubr.bf16.mxu1 %v1930_v46  ;;  %v444_v46 = vld [vmem:[#allocation2 + $0x88] sm:$0xff] }
  0x98   : > { %1106 = vmatmul.mubr.bf16.gmra.mxu0 %v1932_v47 }
  0x99   : > { %1219 = vmatmul.mubr.bf16.gmra.mxu1 %v1933_v48  ;;  %1115 = vmatprep.mubr.bf16.mxu0 %v1934_v49 }
  0x9a   : > { %1228 = vmatprep.mubr.bf16.mxu1 %v1936_v50 }
  0xa0   : > { %1116 = vmatmul.mubr.bf16.gmra.mxu0 %v1938_v51  ;;  %v445_v51 = vld [vmem:[#allocation2 + $0xe8] sm:$0xff] }
  0xa1   : > { %1229 = vmatmul.mubr.bf16.gmra.mxu1 %v1939_v52  ;;  %1125 = vmatprep.mubr.bf16.mxu0 %v1940_v53 }
  0xa2   : > { %1238 = vmatprep.mubr.bf16.mxu1 %v1942_v54 }
  0xa8   : > { %1126 = vmatmul.mubr.bf16.gmra.mxu0 %v1944_v55 }
  0xa9   : > { %1239 = vmatmul.mubr.bf16.gmra.mxu1 %v1945_v56  ;;  %1135 = vmatprep.mubr.bf16.mxu0 %v1946_v57  ;;  %v446_v56 = vld [vmem:[#allocation2 + $0xb8] sm:$0xff] }
  0xaa   : > { %1248 = vmatprep.mubr.bf16.mxu1 %v1948_v58 }
  0xb0   : > { %1136 = vmatmul.mubr.bf16.gmra.mxu0 %v1950_v59 }
  0xb1   : > { %1249 = vmatmul.mubr.bf16.gmra.mxu1 %v1951_v60  ;;  %1145 = vmatprep.mubr.bf16.mxu0 %v1952_v61  ;;  %v447_v61 = vld [vmem:[#allocation2 + $0x60] sm:$0xff] }
  0xb2   : > { %1258 = vmatprep.mubr.bf16.mxu1 %v1954_v62 }
  0xb8   : > { %1146 = vmatmul.mubr.bf16.gmra.mxu0 %v1956_v63 }
  0xb9   : > { %1259 = vmatmul.mubr.bf16.gmra.mxu1 %v1957_v0 }
 0x140   : > { %v1077_v1 = vpop.f32.mrf.mxu0 }
 0x141   : > { %v1190_v3 = vpop.f32.mrf.mxu1 }
 0x142   : > { %v1191_v4 = vadd.f32 %v1190_v3, %v1077_v1  ;;  %v1079_v5 = vpop.f32.mrf.mxu0 }
 0x143   : > { %v1192_v7 = vpop.f32.mrf.mxu1 }
 0x144   : > { %v1269_v8 = vadd.f32 %v1191_v4, %v435_v2  ;;  %v1193_v9 = vadd.f32 %v1192_v7, %v1079_v5  ;;  %v1081_v10 = vpop.f32.mrf.mxu0  ;;  %v448_v2 = vld [vmem:[#allocation2 + $0xf0] sm:$0xff]  ;;  %v449_v7 = vld [vmem:[#allocation2 + $0x8] sm:$0xff] }
 0x145   : > { %v1194_v12 = vpop.f32.mrf.mxu1 }
 0x146   : > { %1301 = vst [vmem:[#allocation2 + $0xb0] sm:$0xff] %v1269_v8  ;;  %v1270_v13 = vadd.f32 %v1193_v9, %v436_v6  ;;  %v1195_v14 = vadd.f32 %v1194_v12, %v1081_v10  ;;  %v1083_v15 = vpop.f32.mrf.mxu0  ;;  %v450_v12 = vld [vmem:[#allocation2 + $0x78] sm:$0xff] }
 0x147   : > { %v1196_v17 = vpop.f32.mrf.mxu1 }
 0x148   : > { %1302 = vst [vmem:[#allocation2] sm:$0xff] %v1270_v13  ;;  %v1271_v18 = vadd.f32 %v1195_v14, %v437_v11  ;;  %v1197_v19 = vadd.f32 %v1196_v17, %v1083_v15  ;;  %v1087_v20 = vpop.f32.mrf.mxu0  ;;  %v451_v17 = vld [vmem:[#allocation2 + $0x38] sm:$0xff] }
 0x149   : > { %v1200_v22 = vpop.f32.mrf.mxu1 }
 0x14a   : > { %1303 = vst [vmem:[#allocation2 + $0xd8] sm:$0xff] %v1271_v18  ;;  %v1272_v23 = vadd.f32 %v1197_v19, %v438_v16  ;;  %v1201_v24 = vadd.f32 %v1200_v22, %v1087_v20  ;;  %v1089_v25 = vpop.f32.mrf.mxu0  ;;  %v452_v22 = vld [vmem:[#allocation2 + $0x58] sm:$0xff] }
 0x14b   : > { %v1202_v27 = vpop.f32.mrf.mxu1 }
 0x14c   : > { %1304 = vst [vmem:[#allocation2 + $0x18] sm:$0xff] %v1272_v23  ;;  %v1273_v28 = vadd.f32 %v1201_v24, %v439_v21  ;;  %v1203_v29 = vadd.f32 %v1202_v27, %v1089_v25  ;;  %v1091_v30 = vpop.f32.mrf.mxu0  ;;  %v453_v27 = vld [vmem:[#allocation2 + $0x40] sm:$0xff] }
 0x14d   : > { %v1204_v32 = vpop.f32.mrf.mxu1 }
 0x14e   : > { %1305 = vst [vmem:[#allocation2 + $0x50] sm:$0xff] %v1273_v28  ;;  %v1274_v33 = vadd.f32 %v1203_v29, %v440_v26  ;;  %v1205_v34 = vadd.f32 %v1204_v32, %v1091_v30  ;;  %v1093_v35 = vpop.f32.mrf.mxu0  ;;  %v454_v32 = vld [vmem:[#allocation2 + $0xc8] sm:$0xff] }
 0x14f   : > { %v1206_v37 = vpop.f32.mrf.mxu1 }
 0x150   : > { %1306 = vst [vmem:[#allocation2 + $0x68] sm:$0xff] %v1274_v33  ;;  %v1275_v38 = vadd.f32 %v1205_v34, %v441_v31  ;;  %v1207_v39 = vadd.f32 %v1206_v37, %v1093_v35  ;;  %v1097_v40 = vpop.f32.mrf.mxu0  ;;  %v455_v37 = vld [vmem:[#allocation2 + $0xe0] sm:$0xff] }
 0x151   : > { %v1210_v42 = vpop.f32.mrf.mxu1 }
 0x152   : > { %1307 = vst [vmem:[#allocation2 + $0x30] sm:$0xff] %v1275_v38  ;;  %v1276_v43 = vadd.f32 %v1207_v39, %v442_v36  ;;  %v1211_v44 = vadd.f32 %v1210_v42, %v1097_v40  ;;  %v1099_v45 = vpop.f32.mrf.mxu0  ;;  %v456_v42 = vld [vmem:[#allocation2 + $0x90] sm:$0xff] }
 0x153   : > { %v1212_v47 = vpop.f32.mrf.mxu1 }
 0x154   : > { %1308 = vst [vmem:[#allocation2 + $0x48] sm:$0xff] %v1276_v43  ;;  %v1277_v48 = vadd.f32 %v1211_v44, %v443_v41  ;;  %v1213_v49 = vadd.f32 %v1212_v47, %v1099_v45  ;;  %v1101_v50 = vpop.f32.mrf.mxu0  ;;  %v457_v47 = vld [vmem:[#allocation2 + $0x70] sm:$0xff] }
 0x155   : > { %v1214_v52 = vpop.f32.mrf.mxu1 }
 0x156   : > { %1309 = vst [vmem:[#allocation2 + $0x80] sm:$0xff] %v1277_v48  ;;  %v1278_v53 = vadd.f32 %v1213_v49, %v444_v46  ;;  %v1215_v54 = vadd.f32 %v1214_v52, %v1101_v50  ;;  %v1103_v55 = vpop.f32.mrf.mxu0  ;;  %v458_v52 = vld [vmem:[#allocation2 + $0xc0] sm:$0xff] }
 0x157   : > { %v1216_v57 = vpop.f32.mrf.mxu1 }
 0x158   : > { %1310 = vst [vmem:[#allocation2 + $0x88] sm:$0xff] %v1278_v53  ;;  %v1279_v58 = vadd.f32 %v1215_v54, %v445_v51  ;;  %v1217_v59 = vadd.f32 %v1216_v57, %v1103_v55  ;;  %v1107_v60 = vpop.f32.mrf.mxu0  ;;  %v459_v57 = vld [vmem:[#allocation2 + $0xa8] sm:$0xff] }
 0x159   : > { %v1220_v62 = vpop.f32.mrf.mxu1 }
 0x15a   : > { %1311 = vst [vmem:[#allocation2 + $0xe8] sm:$0xff] %v1279_v58  ;;  %v1280_v63 = vadd.f32 %v1217_v59, %v446_v56  ;;  %v1221_v0 = vadd.f32 %v1220_v62, %v1107_v60  ;;  %v1109_v1 = vpop.f32.mrf.mxu0  ;;  %v460_v62 = vld [vmem:[#allocation2 + $0xd0] sm:$0xff] }
 0x15b   : > { %v1222_v3 = vpop.f32.mrf.mxu1 }
 0x15c   : > { %1312 = vst [vmem:[#allocation2 + $0xb8] sm:$0xff] %v1280_v63  ;;  %v1281_v4 = vadd.f32 %v1221_v0, %v447_v61  ;;  %v1223_v5 = vadd.f32 %v1222_v3, %v1109_v1  ;;  %v1111_v6 = vpop.f32.mrf.mxu0  ;;  %v461_v3 = vld [vmem:[#allocation2 + $0x10] sm:$0xff] }
 0x15d   : > { %v1224_v8 = vpop.f32.mrf.mxu1 }
 0x15e   : > { %1313 = vst [vmem:[#allocation2 + $0x60] sm:$0xff] %v1281_v4  ;;  %v1282_v9 = vadd.f32 %v1223_v5, %v448_v2  ;;  %v1225_v10 = vadd.f32 %v1224_v8, %v1111_v6  ;;  %v1113_v11 = vpop.f32.mrf.mxu0  ;;  %v462_v8 = vld [vmem:[#allocation2 + $0x28] sm:$0xff] }
 0x15f   : > { %v1226_v13 = vpop.f32.mrf.mxu1 }
 0x160   : > { %1314 = vst [vmem:[#allocation2 + $0xf0] sm:$0xff] %v1282_v9  ;;  %v1283_v14 = vadd.f32 %v1225_v10, %v449_v7  ;;  %v1227_v15 = vadd.f32 %v1226_v13, %v1113_v11  ;;  %v1117_v16 = vpop.f32.mrf.mxu0  ;;  %v463_v13 = vld [vmem:[#allocation2 + $0xa0] sm:$0xff] }
 0x161   : > { %v1230_v18 = vpop.f32.mrf.mxu1 }
 0x162   : > { %1315 = vst [vmem:[#allocation2 + $0x8] sm:$0xff] %v1283_v14  ;;  %v1284_v19 = vadd.f32 %v1227_v15, %v450_v12  ;;  %v1231_v20 = vadd.f32 %v1230_v18, %v1117_v16  ;;  %v1119_v21 = vpop.f32.mrf.mxu0  ;;  %v464_v18 = vld [vmem:[#allocation2 + $0xf8] sm:$0xff] }
 0x163   : > { %v1232_v23 = vpop.f32.mrf.mxu1 }
 0x164   : > { %1316 = vst [vmem:[#allocation2 + $0x78] sm:$0xff] %v1284_v19  ;;  %v1285_v24 = vadd.f32 %v1231_v20, %v451_v17  ;;  %v1233_v25 = vadd.f32 %v1232_v23, %v1119_v21  ;;  %v1121_v26 = vpop.f32.mrf.mxu0  ;;  %v465_v23 = vld [vmem:[#allocation2 + $0x20] sm:$0xff] }
 0x165   : > { %v1234_v28 = vpop.f32.mrf.mxu1 }
 0x166   : > { %1317 = vst [vmem:[#allocation2 + $0x38] sm:$0xff] %v1285_v24  ;;  %v1286_v29 = vadd.f32 %v1233_v25, %v452_v22  ;;  %v1235_v30 = vadd.f32 %v1234_v28, %v1121_v26  ;;  %v1123_v31 = vpop.f32.mrf.mxu0  ;;  %v466_v28 = vld [vmem:[#allocation2 + $0x98] sm:$0xff] }
 0x167   : > { %v1236_v33 = vpop.f32.mrf.mxu1 }
 0x168   : > { %1318 = vst [vmem:[#allocation2 + $0x58] sm:$0xff] %v1286_v29  ;;  %v1287_v34 = vadd.f32 %v1235_v30, %v453_v27  ;;  %v1237_v35 = vadd.f32 %v1236_v33, %v1123_v31  ;;  %v1127_v36 = vpop.f32.mrf.mxu0 }
 0x169   : > { %v1240_v38 = vpop.f32.mrf.mxu1 }
 0x16a   : > { %1319 = vst [vmem:[#allocation2 + $0x40] sm:$0xff] %v1287_v34  ;;  %v1288_v39 = vadd.f32 %v1237_v35, %v454_v32  ;;  %v1241_v40 = vadd.f32 %v1240_v38, %v1127_v36  ;;  %v1129_v41 = vpop.f32.mrf.mxu0 }
 0x16b   : > { %v1242_v43 = vpop.f32.mrf.mxu1 }
 0x16c   : > { %1320 = vst [vmem:[#allocation2 + $0xc8] sm:$0xff] %v1288_v39  ;;  %v1289_v44 = vadd.f32 %v1241_v40, %v455_v37  ;;  %v1243_v45 = vadd.f32 %v1242_v43, %v1129_v41  ;;  %v1131_v46 = vpop.f32.mrf.mxu0 }
 0x16d   : > { %v1244_v48 = vpop.f32.mrf.mxu1 }
 0x16e   : > { %1321 = vst [vmem:[#allocation2 + $0xe0] sm:$0xff] %v1289_v44  ;;  %v1290_v49 = vadd.f32 %v1243_v45, %v456_v42  ;;  %v1245_v50 = vadd.f32 %v1244_v48, %v1131_v46  ;;  %v1133_v51 = vpop.f32.mrf.mxu0 }
 0x16f   : > { %v1246_v53 = vpop.f32.mrf.mxu1 }
 0x170   : > { %1322 = vst [vmem:[#allocation2 + $0x90] sm:$0xff] %v1290_v49  ;;  %v1291_v54 = vadd.f32 %v1245_v50, %v457_v47  ;;  %v1247_v55 = vadd.f32 %v1246_v53, %v1133_v51  ;;  %v1137_v56 = vpop.f32.mrf.mxu0 }
 0x171   : > { %v1250_v58 = vpop.f32.mrf.mxu1 }
 0x172   : > { %1323 = vst [vmem:[#allocation2 + $0x70] sm:$0xff] %v1291_v54  ;;  %v1292_v59 = vadd.f32 %v1247_v55, %v458_v52  ;;  %v1251_v60 = vadd.f32 %v1250_v58, %v1137_v56  ;;  %v1139_v61 = vpop.f32.mrf.mxu0 }
 0x173   : > { %v1252_v63 = vpop.f32.mrf.mxu1 }
 0x174   : > { %1324 = vst [vmem:[#allocation2 + $0xc0] sm:$0xff] %v1292_v59  ;;  %v1293_v0 = vadd.f32 %v1251_v60, %v459_v57  ;;  %v1253_v1 = vadd.f32 %v1252_v63, %v1139_v61  ;;  %v1141_v2 = vpop.f32.mrf.mxu0 }
 0x175   : > { %v1254_v4 = vpop.f32.mrf.mxu1 }
 0x176   : > { %1325 = vst [vmem:[#allocation2 + $0xa8] sm:$0xff] %v1293_v0  ;;  %v1294_v5 = vadd.f32 %v1253_v1, %v460_v62  ;;  %v1255_v6 = vadd.f32 %v1254_v4, %v1141_v2  ;;  %v1143_v7 = vpop.f32.mrf.mxu0 }
 0x177   : > { %v1256_v9 = vpop.f32.mrf.mxu1 }
 0x178   : > { %1326 = vst [vmem:[#allocation2 + $0xd0] sm:$0xff] %v1294_v5  ;;  %v1295_v10 = vadd.f32 %v1255_v6, %v461_v3  ;;  %v1257_v11 = vadd.f32 %v1256_v9, %v1143_v7  ;;  %v1147_v12 = vpop.f32.mrf.mxu0 }
 0x179   : > { %v1260_v14 = vpop.f32.mrf.mxu1 }
 0x17a   : > { %1327 = vst [vmem:[#allocation2 + $0x10] sm:$0xff] %v1295_v10  ;;  %v1296_v15 = vadd.f32 %v1257_v11, %v462_v8  ;;  %v1261_v16 = vadd.f32 %v1260_v14, %v1147_v12  ;;  %v1149_v17 = vpop.f32.mrf.mxu0 }
 0x17b   : > { %v1262_v19 = vpop.f32.mrf.mxu1 }
 0x17c   : > { %1328 = vst [vmem:[#allocation2 + $0x28] sm:$0xff] %v1296_v15  ;;  %v1297_v20 = vadd.f32 %v1261_v16, %v463_v13  ;;  %v1263_v21 = vadd.f32 %v1262_v19, %v1149_v17  ;;  %v1151_v22 = vpop.f32.mrf.mxu0 }
 0x17d   : > { %v1264_v24 = vpop.f32.mrf.mxu1 }
 0x17e   : > { %1329 = vst [vmem:[#allocation2 + $0xa0] sm:$0xff] %v1297_v20  ;;  %v1298_v25 = vadd.f32 %v1263_v21, %v464_v18  ;;  %v1265_v26 = vadd.f32 %v1264_v24, %v1151_v22  ;;  %v1153_v27 = vpop.f32.mrf.mxu0 }
 0x17f   : > { %v1266_v29 = vpop.f32.mrf.mxu1 }
 0x180   : > { %1330 = vst [vmem:[#allocation2 + $0xf8] sm:$0xff] %v1298_v25  ;;  %v1299_v30 = vadd.f32 %v1265_v26, %v465_v23  ;;  %v1267_v31 = vadd.f32 %v1266_v29, %v1153_v27  ;;  %1336 = sbr.rel (%p1766_p11) target bundleno = 428 (0x1ac), region = 67 }
 0x182   : > { %1331 = vst [vmem:[#allocation2 + $0x20] sm:$0xff] %v1299_v30  ;;  %v1300_v32 = vadd.f32 %v1267_v31, %v466_v28 }
 0x184   : > { %1332 = vst [vmem:[#allocation2 + $0x98] sm:$0xff] %v1300_v32 }
 0x185   : > { %v1371_v33 = vlaneseq  ;;  %v1369_v35 = vld [vmem:[%s2435_s2] sm:$0x3]  ;;  %v1337_v37 = vld [vmem:[#allocation2 + $0xb0] sm:$0xff]  ;;  %v1339_v41 = vld [vmem:[#allocation2 + $0xd8] sm:$0xff] }
 0x186   : > { %v1413_v36 = vld [vmem:[%s2436_s3] sm:$0x3]  ;;  %v1340_v42 = vld [vmem:[#allocation2 + $0x18] sm:$0xff]  ;;  %v1341_v43 = vld [vmem:[#allocation2 + $0x50] sm:$0xff] }
 0x187   : > { %v1372_v34 = vshrl.u32 %v1371_v33, 7  ;;  %v1338_v39 = vld [vmem:[#allocation2] sm:$0xff]  ;;  %v1342_v48 = vld [vmem:[#allocation2 + $0x68] sm:$0xff]  ;;  %v1343_v49 = vld [vmem:[#allocation2 + $0x30] sm:$0xff] }
 0x188   : > { %v1344_v50 = vld [vmem:[#allocation2 + $0x48] sm:$0xff]  ;;  %v1345_v63 = vld [vmem:[#allocation2 + $0x80] sm:$0xff]  ;;  %v1348_v6 = vld [vmem:[#allocation2 + $0xb8] sm:$0xff] }
 0x189   : > { %v1373_v38 = vsub.s32 0, %v1372_v34  ;;  %v1377_v40 = vsub.s32 1, %v1372_v34  ;;  %v1346_v0 = vld [vmem:[#allocation2 + $0x88] sm:$0xff]  ;;  %v1349_v7 = vld [vmem:[#allocation2 + $0x60] sm:$0xff]  ;;  %v1350_v8 = vld [vmem:[#allocation2 + $0xf0] sm:$0xff] }
 0x18a   : > { %v1347_v1 = vld [vmem:[#allocation2 + $0xe8] sm:$0xff]  ;;  %v1352_v14 = vld [vmem:[#allocation2 + $0x78] sm:$0xff]  ;;  %v1355_v33 = vld [vmem:[#allocation2 + $0x40] sm:$0xff] }
 0x18b   : > { %v2250_v44 = vrot.slane %v1369_v35, %v1373_v38  ;;  %v2252_v45 = vrot.slane %v1413_v36, %v1373_v38  ;;  %v2254_v46 = vrot.slane %v1369_v35, %v1377_v40  ;;  %v2256_v47 = vrot.slane %v1413_v36, %v1377_v40  ;;  %v1351_v13 = vld [vmem:[#allocation2 + $0x8] sm:$0xff]  ;;  %v1353_v31 = vld [vmem:[#allocation2 + $0x38] sm:$0xff]  ;;  %v1358_v40 = vld [vmem:[#allocation2 + $0x90] sm:$0xff] }
 0x18c   : > { %v1354_v32 = vld [vmem:[#allocation2 + $0x58] sm:$0xff]  ;;  %v1356_v38 = vld [vmem:[#allocation2 + $0xc8] sm:$0xff] }
 0x18d   : > { %v1381_v51 = vmul.f32 %v2250_v44, %v1337_v37  ;;  %v1382_v52 = vmul.f32 %v2254_v46, %v1338_v39  ;;  %v1383_v53 = vmul.f32 %v2250_v44, %v1339_v41  ;;  %v1384_v54 = vmul.f32 %v2254_v46, %v1340_v42  ;;  %v1357_v39 = vld [vmem:[#allocation2 + $0xe0] sm:$0xff] }
 0x18e   : > { %v1385_v55 = vmul.f32 %v2250_v44, %v1341_v43  ;;  %v1386_v56 = vmul.f32 %v2254_v46, %v1342_v48  ;;  %v1387_v57 = vmul.f32 %v2250_v44, %v1343_v49  ;;  %v1388_v58 = vmul.f32 %v2254_v46, %v1344_v50  ;;  %v1359_v49 = vld [vmem:[#allocation2 + $0x70] sm:$0xff]  ;;  %v1360_v50 = vld [vmem:[#allocation2 + $0xc0] sm:$0xff] }
 0x18f   : > { %v1425_v59 = vadd.f32 %v2252_v45, %v1381_v51  ;;  %v1426_v60 = vadd.f32 %v2256_v47, %v1382_v52  ;;  %v1427_v61 = vadd.f32 %v2252_v45, %v1383_v53  ;;  %v1428_v62 = vadd.f32 %v2256_v47, %v1384_v54 }
 0x190   : > { %v1429_v2 = vadd.f32 %v2252_v45, %v1385_v55  ;;  %v1430_v3 = vadd.f32 %v2256_v47, %v1386_v56  ;;  %v1431_v4 = vadd.f32 %v2252_v45, %v1387_v57  ;;  %v1432_v5 = vadd.f32 %v2256_v47, %v1388_v58 }
 0x191   : > { %v1457_v9 = vmax.f32 %v1425_v59, 0.0  ;;  %v1458_v10 = vmax.f32 %v1426_v60, 0.0  ;;  %v1459_v11 = vmax.f32 %v1427_v61, 0.0  ;;  %v1460_v12 = vmax.f32 %v1428_v62, 0.0 }
 0x192   : > { %v1461_v15 = vmax.f32 %v1429_v2, 0.0  ;;  %v1462_v16 = vmax.f32 %v1430_v3, 0.0  ;;  %v1463_v17 = vmax.f32 %v1431_v4, 0.0  ;;  %v1464_v18 = vmax.f32 %v1432_v5, 0.0  ;;  %v1361_v3 = vld [vmem:[#allocation2 + $0xa8] sm:$0xff]  ;;  %v1362_v4 = vld [vmem:[#allocation2 + $0xd0] sm:$0xff] }
 0x193   : > { %1489 = vst [vmem:[%s2437_s4] sm:$0xff] %v1457_v9  ;;  %1490 = vst [vmem:[%s2437_s4 + $0x8] sm:$0xff] %v1458_v10  ;;  %v1389_v19 = vmul.f32 %v2250_v44, %v1345_v63  ;;  %v1390_v20 = vmul.f32 %v2254_v46, %v1346_v0  ;;  %v1391_v21 = vmul.f32 %v2250_v44, %v1347_v1  ;;  %v1363_v5 = vld [vmem:[#allocation2 + $0x10] sm:$0xff]  ;;  %v1364_v10 = vld [vmem:[#allocation2 + $0x28] sm:$0xff] }
 0x194   : > { %1491 = vst [vmem:[%s2437_s4 + $0x10] sm:$0xff] %v1459_v11  ;;  %1492 = vst [vmem:[%s2437_s4 + $0x18] sm:$0xff] %v1460_v12  ;;  %v1392_v22 = vmul.f32 %v2254_v46, %v1348_v6  ;;  %v1393_v23 = vmul.f32 %v2250_v44, %v1349_v7  ;;  %v1394_v24 = vmul.f32 %v2254_v46, %v1350_v8  ;;  %v1365_v11 = vld [vmem:[#allocation2 + $0xa0] sm:$0xff]  ;;  %v1366_v12 = vld [vmem:[#allocation2 + $0xf8] sm:$0xff] }
 0x195   : > { %1493 = vst [vmem:[%s2437_s4 + $0x20] sm:$0xff] %v1461_v15  ;;  %1494 = vst [vmem:[%s2437_s4 + $0x28] sm:$0xff] %v1462_v16  ;;  %v1395_v25 = vmul.f32 %v2250_v44, %v1351_v13  ;;  %v1396_v26 = vmul.f32 %v2254_v46, %v1352_v14  ;;  %v1433_v27 = vadd.f32 %v2252_v45, %v1389_v19 }
 0x196   : > { %1495 = vst [vmem:[%s2437_s4 + $0x30] sm:$0xff] %v1463_v17  ;;  %1496 = vst [vmem:[%s2437_s4 + $0x38] sm:$0xff] %v1464_v18  ;;  %v1434_v28 = vadd.f32 %v2256_v47, %v1390_v20  ;;  %v1435_v29 = vadd.f32 %v2252_v45, %v1391_v21  ;;  %v1436_v30 = vadd.f32 %v2256_v47, %v1392_v22  ;;  %v1367_v17 = vld [vmem:[#allocation2 + $0x20] sm:$0xff]  ;;  %v1368_v18 = vld [vmem:[#allocation2 + $0x98] sm:$0xff] }
 0x197   : > { %v1437_v34 = vadd.f32 %v2252_v45, %v1393_v23  ;;  %v1438_v35 = vadd.f32 %v2256_v47, %v1394_v24  ;;  %v1439_v36 = vadd.f32 %v2252_v45, %v1395_v25  ;;  %v1440_v37 = vadd.f32 %v2256_v47, %v1396_v26 }
 0x198   : > { %v1465_v41 = vmax.f32 %v1433_v27, 0.0  ;;  %v1466_v42 = vmax.f32 %v1434_v28, 0.0  ;;  %v1467_v43 = vmax.f32 %v1435_v29, 0.0  ;;  %v1468_v48 = vmax.f32 %v1436_v30, 0.0 }
 0x199   : > { %v1469_v51 = vmax.f32 %v1437_v34, 0.0  ;;  %v1470_v52 = vmax.f32 %v1438_v35, 0.0  ;;  %v1471_v53 = vmax.f32 %v1439_v36, 0.0  ;;  %v1472_v54 = vmax.f32 %v1440_v37, 0.0 }
 0x19a   : > { %1497 = vst [vmem:[%s2437_s4 + $0x40] sm:$0xff] %v1465_v41  ;;  %1498 = vst [vmem:[%s2437_s4 + $0x48] sm:$0xff] %v1466_v42  ;;  %v1397_v55 = vmul.f32 %v2250_v44, %v1353_v31  ;;  %v1398_v56 = vmul.f32 %v2254_v46, %v1354_v32  ;;  %v1399_v57 = vmul.f32 %v2250_v44, %v1355_v33 }
 0x19b   : > { %1499 = vst [vmem:[%s2437_s4 + $0x50] sm:$0xff] %v1467_v43  ;;  %1500 = vst [vmem:[%s2437_s4 + $0x58] sm:$0xff] %v1468_v48  ;;  %v1400_v58 = vmul.f32 %v2254_v46, %v1356_v38  ;;  %v1401_v59 = vmul.f32 %v2250_v44, %v1357_v39  ;;  %v1402_v60 = vmul.f32 %v2254_v46, %v1358_v40 }
 0x19c   : > { %1501 = vst [vmem:[%s2437_s4 + $0x60] sm:$0xff] %v1469_v51  ;;  %1502 = vst [vmem:[%s2437_s4 + $0x68] sm:$0xff] %v1470_v52  ;;  %v1403_v61 = vmul.f32 %v2250_v44, %v1359_v49  ;;  %v1404_v62 = vmul.f32 %v2254_v46, %v1360_v50  ;;  %v1441_v63 = vadd.f32 %v2252_v45, %v1397_v55 }
 0x19d   : > { %1503 = vst [vmem:[%s2437_s4 + $0x70] sm:$0xff] %v1471_v53  ;;  %1504 = vst [vmem:[%s2437_s4 + $0x78] sm:$0xff] %v1472_v54  ;;  %v1442_v0 = vadd.f32 %v2256_v47, %v1398_v56  ;;  %v1443_v1 = vadd.f32 %v2252_v45, %v1399_v57  ;;  %v1444_v2 = vadd.f32 %v2256_v47, %v1400_v58 }
 0x19e   : > { %v1445_v6 = vadd.f32 %v2252_v45, %v1401_v59  ;;  %v1446_v7 = vadd.f32 %v2256_v47, %v1402_v60  ;;  %v1447_v8 = vadd.f32 %v2252_v45, %v1403_v61  ;;  %v1448_v9 = vadd.f32 %v2256_v47, %v1404_v62 }
 0x19f   : > { %v1473_v13 = vmax.f32 %v1441_v63, 0.0  ;;  %v1474_v14 = vmax.f32 %v1442_v0, 0.0  ;;  %v1475_v15 = vmax.f32 %v1443_v1, 0.0  ;;  %v1476_v16 = vmax.f32 %v1444_v2, 0.0 }
 0x1a0   : > { %v1477_v19 = vmax.f32 %v1445_v6, 0.0  ;;  %v1478_v20 = vmax.f32 %v1446_v7, 0.0  ;;  %v1479_v21 = vmax.f32 %v1447_v8, 0.0  ;;  %v1480_v22 = vmax.f32 %v1448_v9, 0.0 }
 0x1a1   : > { %1505 = vst [vmem:[%s2437_s4 + $0x80] sm:$0xff] %v1473_v13  ;;  %1506 = vst [vmem:[%s2437_s4 + $0x88] sm:$0xff] %v1474_v14  ;;  %v1405_v23 = vmul.f32 %v2250_v44, %v1361_v3  ;;  %v1406_v24 = vmul.f32 %v2254_v46, %v1362_v4  ;;  %v1407_v25 = vmul.f32 %v2250_v44, %v1363_v5 }
 0x1a2   : > { %1507 = vst [vmem:[%s2437_s4 + $0x90] sm:$0xff] %v1475_v15  ;;  %1508 = vst [vmem:[%s2437_s4 + $0x98] sm:$0xff] %v1476_v16  ;;  %v1408_v26 = vmul.f32 %v2254_v46, %v1364_v10  ;;  %v1409_v27 = vmul.f32 %v2250_v44, %v1365_v11  ;;  %v1410_v28 = vmul.f32 %v2254_v46, %v1366_v12 }
 0x1a3   : > { %1509 = vst [vmem:[%s2437_s4 + $0xa0] sm:$0xff] %v1477_v19  ;;  %1510 = vst [vmem:[%s2437_s4 + $0xa8] sm:$0xff] %v1478_v20  ;;  %v1411_v29 = vmul.f32 %v2250_v44, %v1367_v17  ;;  %v1412_v30 = vmul.f32 %v2254_v46, %v1368_v18  ;;  %v1449_v31 = vadd.f32 %v2252_v45, %v1405_v23 }
 0x1a4   : > { %1511 = vst [vmem:[%s2437_s4 + $0xb0] sm:$0xff] %v1479_v21  ;;  %1512 = vst [vmem:[%s2437_s4 + $0xb8] sm:$0xff] %v1480_v22  ;;  %v1450_v32 = vadd.f32 %v2256_v47, %v1406_v24  ;;  %v1451_v33 = vadd.f32 %v2252_v45, %v1407_v25  ;;  %v1452_v34 = vadd.f32 %v2256_v47, %v1408_v26 }
 0x1a5   : > { %v1453_v35 = vadd.f32 %v2252_v45, %v1409_v27  ;;  %v1454_v36 = vadd.f32 %v2256_v47, %v1410_v28  ;;  %v1455_v37 = vadd.f32 %v2252_v45, %v1411_v29  ;;  %v1456_v38 = vadd.f32 %v2256_v47, %v1412_v30 }
 0x1a6   : > { %v1481_v39 = vmax.f32 %v1449_v31, 0.0  ;;  %v1482_v44 = vmax.f32 %v1450_v32, 0.0  ;;  %v1483_v40 = vmax.f32 %v1451_v33, 0.0  ;;  %v1484_v46 = vmax.f32 %v1452_v34, 0.0 }
 0x1a7   : > { %v1485_v41 = vmax.f32 %v1453_v35, 0.0  ;;  %v1486_v42 = vmax.f32 %v1454_v36, 0.0  ;;  %v1487_v43 = vmax.f32 %v1455_v37, 0.0  ;;  %v1488_v48 = vmax.f32 %v1456_v38, 0.0 }
 0x1a8   : > { %1513 = vst [vmem:[%s2437_s4 + $0xc0] sm:$0xff] %v1481_v39  ;;  %1514 = vst [vmem:[%s2437_s4 + $0xc8] sm:$0xff] %v1482_v44 }
 0x1a9   : > { %1515 = vst [vmem:[%s2437_s4 + $0xd0] sm:$0xff] %v1483_v40  ;;  %1516 = vst [vmem:[%s2437_s4 + $0xd8] sm:$0xff] %v1484_v46 }
 0x1aa   : > { %1517 = vst [vmem:[%s2437_s4 + $0xe0] sm:$0xff] %v1485_v41  ;;  %1518 = vst [vmem:[%s2437_s4 + $0xe8] sm:$0xff] %v1486_v42 }
 0x1ab   : > { %1519 = vst [vmem:[%s2437_s4 + $0xf0] sm:$0xff] %v1487_v43  ;;  %1520 = vst [vmem:[%s2437_s4 + $0xf8] sm:$0xff] %v1488_v48 }
 0x1ac PF: > { %s14_s19 = sadd.s32 1, %s1996_s19   ;;  %s2438_s15 = smov %s1984_s16 }
 0x1ad   : > { %p11_p12 = scmp.ge.s32.totalorder %s14_s19, 8   ;;  %s2439_s16 = smov %s2059_s23 }
 0x1ae   : > { %s2440_s17 = smov %s1992_s18  ;;  %s2441_s18 = smov %s2443_s20 }
 0x1af   :  { %13 = sbr.rel (!%p11_p12) target bundleno = 3 (0x3), region = 111 }

// kernel: segmentation_custom_forward.25
= control target key start
LH: loop header
LB: loop body
LE: loop exit
PB: predicated region body
PF: predicated region fallthrough
CT: control target
= control target key end

     0   :  { %s857_s1 = inlined_call_operand.vmem [shape: bf16[256,128], index: 1, kind: input, shape index: {}]   ;;  %s858_s0 = inlined_call_operand.vmem [shape: bf16[128,256], index: 0, kind: input, shape index: {}]   ;;  %s859_s2 = inlined_call_operand.vmem [shape: f32[1,128], index: 2, kind: input, shape index: {}]   ;;  %s860_s3 = inlined_call_operand.vmem [shape: f32[1,128], index: 3, kind: input, shape index: {}]   ;;  %s861_s4 = inlined_call_operand.vmem [shape: f32[128,128], index: 4, kind: output, shape index: {}]  }
   0x1   :  { %v606_v0 = vld [vmem:[%s857_s1 + $0x78] sm:$0xff]   ;;  %v608_v2 = vld [vmem:[%s857_s1 + $0x70] sm:$0xff]   ;;  %v610_v4 = vld [vmem:[%s857_s1 + $0x68] sm:$0xff]  }
   0x2   :  { %v607_v1 = vld [vmem:[%s857_s1 + $0x38] sm:$0xff]   ;;  %526 = vmatprep.subr.bf16.mxu0 %v606_v0  ;;  %590 = vmatprep.subr.bf16.mxu1 %v606_v0  ;;  %v609_v3 = vld [vmem:[%s857_s1 + $0x30] sm:$0xff]   ;;  %v611_v5 = vld [vmem:[%s857_s1 + $0x28] sm:$0xff]  }
   0x3   :  { %527 = vmatpush3.bf16.msra.mxu0 %v607_v1  ;;  %598 = vmatpush3.bf16.msra.mxu1 %v607_v1  ;;  %v612_v6 = vld [vmem:[%s857_s1 + $0x60] sm:$0xff]   ;;  %v614_v8 = vld [vmem:[%s857_s1 + $0x58] sm:$0xff]   ;;  %v616_v10 = vld [vmem:[%s857_s1 + $0x50] sm:$0xff]  }
   0x4   :  { %528 = vmatprep.subr.bf16.mxu0 %v608_v2  ;;  %591 = vmatprep.subr.bf16.mxu1 %v608_v2  ;;  %v613_v7 = vld [vmem:[%s857_s1 + $0x20] sm:$0xff]   ;;  %v615_v9 = vld [vmem:[%s857_s1 + $0x18] sm:$0xff]   ;;  %v617_v13 = vld [vmem:[%s857_s1 + $0x10] sm:$0xff]  }
   0x5   :  { %v624_v11 = vld [vmem:[%s858_s0 + $0x4] ss:$8 sps:$4 sm:$0xff]   ;;  %v622_v18 = vld [vmem:[%s858_s0] ss:$8 sps:$4 sm:$0xff]   ;;  %v628_v20 = vld [vmem:[%s858_s0 + $0x14] ss:$8 sps:$4 sm:$0xff]  }
   0x6   :  { %v627_v12 = vld [vmem:[%s858_s0 + $0x44] ss:$8 sps:$4 sm:$0xff]   ;;  %310 = vmatprep.mubr.bf16.mxu0 %v624_v11  ;;  %v625_v19 = vld [vmem:[%s858_s0 + $0x40] ss:$8 sps:$4 sm:$0xff]   ;;  %v630_v21 = vld [vmem:[%s858_s0 + $0x54] ss:$8 sps:$4 sm:$0xff]  }
   0x7   :  { %529 = vmatpush3.bf16.msra.mxu0 %v609_v3  ;;  %599 = vmatpush3.bf16.msra.mxu1 %v609_v3  ;;  %v618_v14 = vld [vmem:[%s857_s1 + $0x48] sm:$0xff]   ;;  %v620_v16 = vld [vmem:[%s857_s1 + $0x40] sm:$0xff]   ;;  %v632_v22 = vld [vmem:[%s858_s0 + $0x10] ss:$8 sps:$4 sm:$0xff]  }
   0x8   :  { %530 = vmatprep.subr.bf16.mxu0 %v610_v4  ;;  %592 = vmatprep.subr.bf16.mxu1 %v610_v4  ;;  %v619_v15 = vld [vmem:[%s857_s1 + $0x8] sm:$0xff]   ;;  %v621_v17 = vld [vmem:[%s857_s1] sm:$0xff]   ;;  %v633_v23 = vld [vmem:[%s858_s0 + $0x50] ss:$8 sps:$4 sm:$0xff]  }
   0x9   :  { %342 = vmatprep.mubr.bf16.mxu1 %v627_v12  ;;  %v634_v24 = vld [vmem:[%s858_s0 + $0x24] ss:$8 sps:$4 sm:$0xff]   ;;  %v638_v26 = vld [vmem:[%s858_s0 + $0x20] ss:$8 sps:$4 sm:$0xff]   ;;  %v640_v28 = vld [vmem:[%s858_s0 + $0x34] ss:$8 sps:$4 sm:$0xff]  }
   0xa   :  { %v636_v25 = vld [vmem:[%s858_s0 + $0x64] ss:$8 sps:$4 sm:$0xff]   ;;  %v639_v27 = vld [vmem:[%s858_s0 + $0x60] ss:$8 sps:$4 sm:$0xff]   ;;  %v642_v29 = vld [vmem:[%s858_s0 + $0x74] ss:$8 sps:$4 sm:$0xff]  }
   0xb   :  { %531 = vmatpush3.bf16.msra.mxu0 %v611_v5  ;;  %600 = vmatpush3.bf16.msra.mxu1 %v611_v5  ;;  %v644_v30 = vld [vmem:[%s858_s0 + $0x30] ss:$8 sps:$4 sm:$0xff]   ;;  %v770_v35 = vld [vmem:[%s859_s2] ss:$0 sm:$0xff] }
   0xc   :  { %532 = vmatprep.subr.bf16.mxu0 %v612_v6  ;;  %593 = vmatprep.subr.bf16.mxu1 %v612_v6  ;;  %v645_v31 = vld [vmem:[%s858_s0 + $0x70] ss:$8 sps:$4 sm:$0xff]   ;;  %v775_v39 = vld [vmem:[%s860_s3] ss:$0 sm:$0xff] }
   0xf   :  { %533 = vmatpush3.bf16.msra.mxu0 %v613_v7  ;;  %601 = vmatpush3.bf16.msra.mxu1 %v613_v7 }
  0x10   :  { %534 = vmatprep.subr.bf16.mxu0 %v614_v8  ;;  %594 = vmatprep.subr.bf16.mxu1 %v614_v8 }
  0x13   :  { %535 = vmatpush3.bf16.msra.mxu0 %v615_v9  ;;  %602 = vmatpush3.bf16.msra.mxu1 %v615_v9 }
  0x14   :  { %536 = vmatprep.subr.bf16.mxu0 %v616_v10  ;;  %595 = vmatprep.subr.bf16.mxu1 %v616_v10 }
  0x17   :  { %537 = vmatpush3.bf16.msra.mxu0 %v617_v13  ;;  %603 = vmatpush3.bf16.msra.mxu1 %v617_v13 }
  0x18   :  { %538 = vmatprep.subr.bf16.mxu0 %v618_v14  ;;  %596 = vmatprep.subr.bf16.mxu1 %v618_v14 }
  0x1b   :  { %539 = vmatpush3.bf16.msra.mxu0 %v619_v15  ;;  %604 = vmatpush3.bf16.msra.mxu1 %v619_v15 }
  0x1c   :  { %540 = vmatprep.subr.bf16.mxu0 %v620_v16  ;;  %597 = vmatprep.subr.bf16.mxu1 %v620_v16 }
  0x1f   :  { %541 = vmatpush3.bf16.msra.mxu0 %v621_v17  ;;  %605 = vmatpush3.bf16.msra.mxu1 %v621_v17 }
  0x22   :  { %311 = vmatmul.mubr.bf16.vlgmr.msra.gmra.mxu0 %v622_v18  ;;  %343 = vmatmul.mubr.bf16.vlgmr.msra.gmra.mxu1 %v625_v19 }
  0x23   :  { %318 = vmatprep.mubr.bf16.mxu0 %v628_v20  ;;  %350 = vmatprep.mubr.bf16.mxu1 %v630_v21 }
  0x2a   :  { %319 = vmatmul.mubr.bf16.gmra.mxu0 %v632_v22  ;;  %351 = vmatmul.mubr.bf16.gmra.mxu1 %v633_v23 }
  0x2b   :  { %326 = vmatprep.mubr.bf16.mxu0 %v634_v24  ;;  %358 = vmatprep.mubr.bf16.mxu1 %v636_v25 }
  0x32   :  { %327 = vmatmul.mubr.bf16.gmra.mxu0 %v638_v26  ;;  %359 = vmatmul.mubr.bf16.gmra.mxu1 %v639_v27 }
  0x33   :  { %334 = vmatprep.mubr.bf16.mxu0 %v640_v28  ;;  %366 = vmatprep.mubr.bf16.mxu1 %v642_v29 }
  0x3a   :  { %335 = vmatmul.mubr.bf16.gmra.mxu0 %v644_v30  ;;  %367 = vmatmul.mubr.bf16.gmra.mxu1 %v645_v31 }
  0xe2   :  { %v542_v32 = vpop.f32.mrf.mxu0  ;;  %v566_v33 = vpop.f32.mrf.mxu1 }
  0xe4   :  { %v543_v34 = vpop.f32.mrf.mxu0  ;;  %v567_v36 = vpop.f32.mrf.mxu1 }
  0xe5   :  { %v544_v37 = vadd.f32 %v543_v34, %v542_v32  ;;  %v568_v38 = vadd.f32 %v567_v36, %v566_v33 }
  0xe6   :  { %v545_v40 = vpop.f32.mrf.mxu0  ;;  %v569_v41 = vpop.f32.mrf.mxu1 }
  0xe7   :  { %v433_v42 = vmul.f32 %v544_v37, %v770_v35  ;;  %v441_v43 = vmul.f32 %v568_v38, %v770_v35 }
  0xe8   :  { %v546_v44 = vpop.f32.mrf.mxu0  ;;  %v570_v45 = vpop.f32.mrf.mxu1 }
  0xe9   :  { %v456_v46 = vadd.f32 %v775_v39, %v433_v42  ;;  %v464_v47 = vadd.f32 %v775_v39, %v441_v43  ;;  %v547_v48 = vadd.f32 %v546_v44, %v545_v40  ;;  %v571_v49 = vadd.f32 %v570_v45, %v569_v41 }
  0xea   :  { %v548_v50 = vpop.f32.mrf.mxu0  ;;  %v572_v51 = vpop.f32.mrf.mxu1 }
  0xeb   :  { %472 = vst [vmem:[%s861_s4] sm:$0xff] %v456_v46  ;;  %480 = vst [vmem:[%s861_s4 + $0x40] sm:$0xff] %v464_v47  ;;  %v434_v52 = vmul.f32 %v547_v48, %v770_v35  ;;  %v442_v53 = vmul.f32 %v571_v49, %v770_v35 }
  0xec   :  { %v549_v54 = vpop.f32.mrf.mxu0  ;;  %v573_v55 = vpop.f32.mrf.mxu1 }
  0xed   :  { %v457_v56 = vadd.f32 %v775_v39, %v434_v52  ;;  %v465_v57 = vadd.f32 %v775_v39, %v442_v53  ;;  %v550_v58 = vadd.f32 %v549_v54, %v548_v50  ;;  %v574_v59 = vadd.f32 %v573_v55, %v572_v51 }
  0xee   :  { %v551_v60 = vpop.f32.mrf.mxu0  ;;  %v575_v61 = vpop.f32.mrf.mxu1 }
  0xef   :  { %473 = vst [vmem:[%s861_s4 + $0x8] sm:$0xff] %v457_v56  ;;  %481 = vst [vmem:[%s861_s4 + $0x48] sm:$0xff] %v465_v57  ;;  %v435_v62 = vmul.f32 %v550_v58, %v770_v35  ;;  %v443_v63 = vmul.f32 %v574_v59, %v770_v35 }
  0xf0   :  { %v552_v0 = vpop.f32.mrf.mxu0  ;;  %v576_v1 = vpop.f32.mrf.mxu1 }
  0xf1   :  { %v458_v2 = vadd.f32 %v775_v39, %v435_v62  ;;  %v466_v3 = vadd.f32 %v775_v39, %v443_v63  ;;  %v553_v4 = vadd.f32 %v552_v0, %v551_v60  ;;  %v577_v5 = vadd.f32 %v576_v1, %v575_v61 }
  0xf2   :  { %v554_v6 = vpop.f32.mrf.mxu0  ;;  %v578_v7 = vpop.f32.mrf.mxu1 }
  0xf3   :  { %474 = vst [vmem:[%s861_s4 + $0x10] sm:$0xff] %v458_v2  ;;  %482 = vst [vmem:[%s861_s4 + $0x50] sm:$0xff] %v466_v3  ;;  %v436_v8 = vmul.f32 %v553_v4, %v770_v35  ;;  %v444_v9 = vmul.f32 %v577_v5, %v770_v35 }
  0xf4   :  { %v555_v10 = vpop.f32.mrf.mxu0  ;;  %v579_v11 = vpop.f32.mrf.mxu1 }
  0xf5   :  { %v459_v12 = vadd.f32 %v775_v39, %v436_v8  ;;  %v467_v13 = vadd.f32 %v775_v39, %v444_v9  ;;  %v556_v14 = vadd.f32 %v555_v10, %v554_v6  ;;  %v580_v15 = vadd.f32 %v579_v11, %v578_v7 }
  0xf6   :  { %v557_v16 = vpop.f32.mrf.mxu0  ;;  %v581_v17 = vpop.f32.mrf.mxu1 }
  0xf7   :  { %475 = vst [vmem:[%s861_s4 + $0x18] sm:$0xff] %v459_v12  ;;  %483 = vst [vmem:[%s861_s4 + $0x58] sm:$0xff] %v467_v13  ;;  %v437_v18 = vmul.f32 %v556_v14, %v770_v35  ;;  %v445_v19 = vmul.f32 %v580_v15, %v770_v35 }
  0xf8   :  { %v558_v20 = vpop.f32.mrf.mxu0  ;;  %v582_v21 = vpop.f32.mrf.mxu1 }
  0xf9   :  { %v460_v22 = vadd.f32 %v775_v39, %v437_v18  ;;  %v468_v23 = vadd.f32 %v775_v39, %v445_v19  ;;  %v559_v24 = vadd.f32 %v558_v20, %v557_v16  ;;  %v583_v25 = vadd.f32 %v582_v21, %v581_v17 }
  0xfa   :  { %v560_v26 = vpop.f32.mrf.mxu0  ;;  %v584_v27 = vpop.f32.mrf.mxu1 }
  0xfb   :  { %476 = vst [vmem:[%s861_s4 + $0x20] sm:$0xff] %v460_v22  ;;  %484 = vst [vmem:[%s861_s4 + $0x60] sm:$0xff] %v468_v23  ;;  %v438_v28 = vmul.f32 %v559_v24, %v770_v35  ;;  %v446_v29 = vmul.f32 %v583_v25, %v770_v35 }
  0xfc   :  { %v561_v30 = vpop.f32.mrf.mxu0  ;;  %v585_v31 = vpop.f32.mrf.mxu1 }
  0xfd   :  { %v461_v32 = vadd.f32 %v775_v39, %v438_v28  ;;  %v469_v33 = vadd.f32 %v775_v39, %v446_v29  ;;  %v562_v34 = vadd.f32 %v561_v30, %v560_v26  ;;  %v586_v36 = vadd.f32 %v585_v31, %v584_v27 }
  0xfe   :  { %v563_v37 = vpop.f32.mrf.mxu0  ;;  %v587_v38 = vpop.f32.mrf.mxu1 }
  0xff   :  { %477 = vst [vmem:[%s861_s4 + $0x28] sm:$0xff] %v461_v32  ;;  %485 = vst [vmem:[%s861_s4 + $0x68] sm:$0xff] %v469_v33  ;;  %v439_v40 = vmul.f32 %v562_v34, %v770_v35  ;;  %v447_v41 = vmul.f32 %v586_v36, %v770_v35 }
 0x100   :  { %v564_v42 = vpop.f32.mrf.mxu0  ;;  %v588_v43 = vpop.f32.mrf.mxu1 }
 0x101   :  { %v462_v44 = vadd.f32 %v775_v39, %v439_v40  ;;  %v470_v45 = vadd.f32 %v775_v39, %v447_v41  ;;  %v565_v46 = vadd.f32 %v564_v42, %v563_v37  ;;  %v589_v47 = vadd.f32 %v588_v43, %v587_v38 }
 0x103   :  { %478 = vst [vmem:[%s861_s4 + $0x30] sm:$0xff] %v462_v44  ;;  %486 = vst [vmem:[%s861_s4 + $0x70] sm:$0xff] %v470_v45  ;;  %v440_v48 = vmul.f32 %v565_v46, %v770_v35  ;;  %v448_v49 = vmul.f32 %v589_v47, %v770_v35 }
 0x105   :  { %v463_v50 = vadd.f32 %v775_v39, %v440_v48  ;;  %v471_v51 = vadd.f32 %v775_v39, %v448_v49 }
 0x107   :  { %479 = vst [vmem:[%s861_s4 + $0x38] sm:$0xff] %v463_v50  ;;  %487 = vst [vmem:[%s861_s4 + $0x78] sm:$0xff] %v471_v51 }

</bundles_post_ra>
